<compile_context>
chip_gen: v5e
topology: v5e:2x2
jax: 0.10.0
libtpu: 0.0.40
codegen_flags: <defaults>
</compile_context>

<pallas_src>
import math

import jax
import jax.numpy as jnp
from jax.experimental import pallas as pl
from jax.experimental.pallas import tpu as pltpu

BN_EPS = 1e-5
HEAD_W = 640  # 5 * 128 lanes: [p 0:512 | beta 512:515 | v 515 | q 516 | r 517 | pad]


# ----------------------------------------------------------------------------
# Kernel 1: single-shot fused (x @ W) * scale + bias, ReLU (conv layers as
# im2col matmuls).  No accumulator scratch / pl.when -- one K step only.
# ----------------------------------------------------------------------------
def _conv_bn_relu_kernel(x_ref, w_ref, sc_ref, bi_ref, o_ref):
    acc = jnp.dot(x_ref[...].astype(jnp.bfloat16), w_ref[...],
                  preferred_element_type=jnp.float32)
    o_ref[...] = jnp.maximum(acc * sc_ref[...] + bi_ref[...], 0.0)


def conv_bn_relu(x, w, scale, bias, *, tm=None):
    M, K = x.shape
    K2, N = w.shape
    assert K == K2
    if tm is None or tm <= 0 or tm >= M or M % tm != 0 or tm % 8 != 0:
        tm = M
    nm = M // tm
    cost = pl.CostEstimate(
        flops=2 * M * K * N,
        transcendentals=0,
        bytes_accessed=4 * M * K + 2 * K * N + 4 * M * N + 8 * N)
    return pl.pallas_call(
        _conv_bn_relu_kernel,
        out_shape=jax.ShapeDtypeStruct((M, N), jnp.float32),
        grid=(nm,),
        in_specs=[
            pl.BlockSpec((tm, K), lambda i: (i, 0)),   # im2col patches (f32)
            pl.BlockSpec((K, N), lambda i: (0, 0)),    # conv weight (bf16, resident)
            pl.BlockSpec((1, N), lambda i: (0, 0)),    # folded BN scale (f32)
            pl.BlockSpec((1, N), lambda i: (0, 0)),    # folded BN bias  (f32)
        ],
        out_specs=pl.BlockSpec((tm, N), lambda i: (i, 0)),
        compiler_params=pltpu.CompilerParams(
            dimension_semantics=("parallel",)),        # both TCs on v7x
        cost_estimate=cost,
    )(x, w, scale, bias)


# ----------------------------------------------------------------------------
# Kernel 2: fused fc_h (K-tiled matmul + BN + ReLU) + all five heads.
# Packed head column layout: [p 0:512 | beta 512:515 | v 515 | q 516 | r 517 | 0].
# ----------------------------------------------------------------------------
def _fch_heads_kernel(x_ref, w_ref, sc_ref, bi_ref, w1_ref, b1_ref, w2_ref,
                      s_ref, o_ref, acc_ref):
    k = pl.program_id(0)

    @pl.when(k == 0)
    def _():
        acc_ref[...] = jnp.zeros_like(acc_ref)

    acc_ref[...] += jnp.dot(x_ref[...].astype(jnp.bfloat16), w_ref[...],
                            preferred_element_type=jnp.float32)

    @pl.when(k == pl.num_programs(0) - 1)
    def _():
        # fc_h epilogue: folded BatchNorm1d + ReLU.
        s = jnp.maximum(acc_ref[...] * sc_ref[...] + bi_ref[...], 0.0)
        s_ref[...] = s

        # All five heads in one lane-dense (512, 640) matmul.
        z = jnp.dot(s.astype(jnp.bfloat16), w1_ref[...],
                    preferred_element_type=jnp.float32) + b1_ref[...]

        # tanh gate applied to every lane (cheap EUP work); only the three
        # action lanes (cols 512:515) are actually consumed as beta.
        g = (0.5 * jnp.tanh(z * 100.0 - 5.0)
             + 0.5 * jnp.tanh(z * 100.0 + 5.0))
        col = jax.lax.broadcasted_iota(jnp.int32, z.shape, 1)
        is_beta = jnp.logical_and(col >= 512, col < 515)

        # a = sign(beta) * (|beta| > 0.5), restricted to the action lanes.
        sign = jnp.where(g > 0.0, 1.0, jnp.where(g < 0.0, -1.0, 0.0))
        a_full = jnp.where(is_beta,
                           sign * (jnp.abs(g) > 0.5).astype(jnp.float32),
                           0.0)

        # a-contribution of fc_z_r / fc_z_q / fc_z_p as a second MXU matmul
        # (only rows 512:515 of w2 are non-zero).
        za = jnp.dot(a_full.astype(jnp.bfloat16), w2_ref[...],
                     preferred_element_type=jnp.float32)

        # Single full-width, lane-dense store: beta lanes keep the tanh gate,
        # every other head output gets ReLU.
        o_ref[...] = jnp.where(is_beta, g, jnp.maximum(z + za, 0.0))


def fch_heads(flat, w_fch, scale, bias, w1, b1, w2, *, tk=3200):
    B, K = flat.shape
    assert w_fch.shape == (K, 512)
    if tk >= K:
        tk = K
    assert K % tk == 0, (K, tk)
    nk = K // tk
    cost = pl.CostEstimate(
        flops=2 * B * K * 512 + 2 * B * 512 * HEAD_W + 2 * B * HEAD_W * HEAD_W,
        transcendentals=2 * B * HEAD_W,
        bytes_accessed=(4 * B * K + 2 * K * 512 + 8 * 512
                        + 2 * 512 * HEAD_W + 4 * HEAD_W + 2 * HEAD_W * HEAD_W
                        + 4 * B * (512 + HEAD_W)))
    return pl.pallas_call(
        _fch_heads_kernel,
        out_shape=(jax.ShapeDtypeStruct((B, 512), jnp.float32),       # s
                   jax.ShapeDtypeStruct((B, HEAD_W), jnp.float32)),   # packed heads
        grid=(nk,),
        in_specs=[
            pl.BlockSpec((B, tk), lambda k: (0, k)),        # flat activations (f32)
            pl.BlockSpec((tk, 512), lambda k: (k, 0)),      # fc_h weight, streamed (bf16)
            pl.BlockSpec((1, 512), lambda k: (0, 0)),       # folded BN scale (f32)
            pl.BlockSpec((1, 512), lambda k: (0, 0)),       # folded BN bias  (f32)
            pl.BlockSpec((512, HEAD_W), lambda k: (0, 0)),  # packed head weights (bf16)
            pl.BlockSpec((1, HEAD_W), lambda k: (0, 0)),    # packed head biases (f32)
            pl.BlockSpec((HEAD_W, HEAD_W), lambda k: (0, 0)),  # a-contribution (bf16)
        ],
        out_specs=(pl.BlockSpec((B, 512), lambda k: (0, 0)),
                   pl.BlockSpec((B, HEAD_W), lambda k: (0, 0))),
        scratch_shapes=[pltpu.VMEM((B, 512), jnp.float32)],
        compiler_params=pltpu.CompilerParams(
            dimension_semantics=("arbitrary",)),
        cost_estimate=cost,
    )(flat, w_fch, scale, bias, w1, b1, w2)


# ----------------------------------------------------------------------------
# Wrapper-side helpers (pure layout / parameter packing).
# ----------------------------------------------------------------------------
def _im2col_nhwc(x, k, stride, pad):
    """(B, H, W, C) -> (B*OH*OW, k*k*C) patches, flattened in (ki, kj, c) order."""
    B, H, W, C = x.shape
    xp = jnp.pad(x, ((0, 0), (pad, pad), (pad, pad), (0, 0)))
    OH = (H + 2 * pad - k) // stride + 1
    OW = (W + 2 * pad - k) // stride + 1
    cols = []
    for ki in range(k):
        for kj in range(k):
            sl = jax.lax.slice(
                xp, (0, ki, kj, 0),
                (B, ki + stride * (OH - 1) + 1, kj + stride * (OW - 1) + 1, C),
                (1, stride, stride, 1))
            cols.append(sl)                                  # (B, OH, OW, C)
    patches = jnp.stack(cols, axis=3)                        # (B, OH, OW, k*k, C)
    return patches.reshape(B * OH * OW, k * k * C), OH, OW


def _fold_bn(gamma, bn_beta, mean, var, conv_bias):
    scale = gamma / jnp.sqrt(var + BN_EPS)
    bias = bn_beta + scale * (conv_bias - mean)
    return scale.reshape(1, -1), bias.reshape(1, -1)


def pack_params(tp):
    """Torch-layout params -> fused/folded operands consumed by the kernels."""
    pk = {}
    for name in ("conv1", "conv2", "conv3"):
        w, b, g, bt, mu, var = tp[name]
        o, c, kh, kw = w.shape
        w_mat = jnp.transpose(w, (2, 3, 1, 0)).reshape(kh * kw * c, o)
        sc, bi = _fold_bn(g, bt, mu, var, b)
        pk[name] = (w_mat.astype(jnp.bfloat16), sc, bi)

    # fc_h: fold BN and permute the weight rows from the torch NCHW flatten
    # order (c, h, w) to the NHWC flatten order (h, w, c) so the wrapper needs
    # no transpose before the matmul.
    w, b, g, bt, mu, var = tp["fc_h"]
    sc, bi = _fold_bn(g, bt, mu, var, b)
    w_nhwc = jnp.transpose(w.reshape(512, 64, 10, 10),
                           (2, 3, 1, 0)).reshape(6400, 512)
    pk["fc_h"] = (w_nhwc.astype(jnp.bfloat16), sc, bi)

    wv, bv = tp["fc_z_v"]
    wb, bb = tp["fc_z_beta"]
    wr, br = tp["fc_z_r"]
    wq, bq = tp["fc_z_q"]
    wp, bp = tp["fc_z_p"]

    # s-contribution of all heads, packed into 640 lanes.
    w1 = jnp.zeros((512, HEAD_W), jnp.float32)
    w1 = w1.at[:, 0:512].set(jnp.transpose(wp[:, 0:512]))
    w1 = w1.at[:, 512:515].set(jnp.transpose(wb))
    w1 = w1.at[:, 515].set(wv[0, :])
    w1 = w1.at[:, 516].set(wq[0, 0:512])
    w1 = w1.at[:, 517].set(wr[0, 0:512])

    b1 = jnp.zeros((1, HEAD_W), jnp.float32)
    b1 = b1.at[0, 0:512].set(bp)
    b1 = b1.at[0, 512:515].set(bb)
    b1 = b1.at[0, 515].set(bv[0])
    b1 = b1.at[0, 516].set(bq[0])
    b1 = b1.at[0, 517].set(br[0])

    # a-contribution of fc_z_r / fc_z_q / fc_z_p, lifted to a (640, 640)
    # matrix (only rows 512:515 -- the action lanes -- are non-zero) so the
    # head kernel stays lane-dense (no value slicing, no partial stores).
    w2 = jnp.zeros((HEAD_W, HEAD_W), jnp.float32)
    w2 = w2.at[512:515, 0:512].set(jnp.transpose(wp[:, 512:515]))
    w2 = w2.at[512:515, 516].set(wq[0, 512:515])
    w2 = w2.at[512:515, 517].set(wr[0, 512:515])
    # beta (cols 512:515) and v (col 515) must get NO a-contribution.
    assert bool(jnp.all(w2[:, 512:516] == 0.0))

    pk["heads"] = (w1.astype(jnp.bfloat16), b1, w2.astype(jnp.bfloat16))
    return pk


def behavioral_net_forward(x_nchw, packed):
    """x_nchw: (B, history, 80, 80) f32.  Returns (v, q, beta, r, p, s)."""
    B = x_nchw.shape[0]

    h = jnp.transpose(x_nchw, (0, 2, 3, 1))                    # NHWC
    p1, oh, ow = _im2col_nhwc(h, 8, 4, 2)                      # (B*400, 256)
    w, sc, bi = packed["conv1"]
    m1 = B * oh * ow
    tm1 = m1 // 2 if (m1 % 16 == 0) else None                  # 2 parallel M blocks
    h = conv_bn_relu(p1, w, sc, bi, tm=tm1).reshape(B, oh, ow, 32)

    p2, oh, ow = _im2col_nhwc(h, 4, 2, 1)                      # (B*100, 512)
    w, sc, bi = packed["conv2"]
    h = conv_bn_relu(p2, w, sc, bi).reshape(B, oh, ow, 64)

    p3, oh, ow = _im2col_nhwc(h, 3, 1, 1)                      # (B*100, 576)
    w, sc, bi = packed["conv3"]
    h = conv_bn_relu(p3, w, sc, bi).reshape(B, oh, ow, 64)

    # NHWC flatten; the fc_h weight rows were permuted at pack time, so the
    # NCHW transpose implied by the torch code is a free reshape here.
    flat = h.reshape(B, -1)                                    # (B, 6400)

    w, sc, bi = packed["fc_h"]
    w1, b1, w2 = packed["heads"]
    s_feat, out = fch_heads(flat, w, sc, bi, w1, b1, w2, tk=3200)

    p = out[:, 0:512]
    beta = out[:, 512:515]
    v = out[:, 515:516]
    q = out[:, 516:517]
    r = out[:, 517:518]
    return v, q, beta, r, p, s_feat


# ----------------------------------------------------------------------------
# Pure-JAX reference (torch semantics, f32 HIGHEST) for a smoke-test comparison.
# ----------------------------------------------------------------------------
def ref_forward(x, tp):
    hi = jax.lax.Precision.HIGHEST

    def conv_bn_relu_ref(h, prm, stride, pad):
        w, b, g, bt, mu, var = prm
        y = jax.lax.conv_general_dilated(
            h, w, (stride, stride), ((pad, pad), (pad, pad)),
            dimension_numbers=("NCHW", "OIHW", "NCHW"), precision=hi)
        y = y + b[None, :, None, None]
        y = (g[None, :, None, None] * (y - mu[None, :, None, None])
             / jnp.sqrt(var[None, :, None, None] + BN_EPS)
             + bt[None, :, None, None])
        return jnp.maximum(y, 0.0)

    h = conv_bn_relu_ref(x, tp["conv1"], 4, 2)
    h = conv_bn_relu_ref(h, tp["conv2"], 2, 1)
    h = conv_bn_relu_ref(h, tp["conv3"], 1, 1)
    h = h.reshape(h.shape[0], -1)

    w, b, g, bt, mu, var = tp["fc_h"]
    y = jnp.dot(h, jnp.transpose(w), precision=hi) + b
    y = g * (y - mu) / jnp.sqrt(var + BN_EPS) + bt
    s = jnp.maximum(y, 0.0)

    def lin(inp, prm):
        w, b = prm
        return jnp.dot(inp, jnp.transpose(w), precision=hi) + b

    v = jnp.maximum(lin(s, tp["fc_z_v"]), 0.0)
    beta_lin = lin(s, tp["fc_z_beta"])
    beta = (0.5 * jnp.tanh(beta_lin * 100.0 - 5.0)
            + 0.5 * jnp.tanh(beta_lin * 100.0 + 5.0))
    a = jnp.sign(beta) * (jnp.abs(beta) > 0.5).astype(jnp.float32)
    xc = jnp.concatenate([s, a], axis=1)
    r = jnp.maximum(lin(xc, tp["fc_z_r"]), 0.0)
    p = jnp.maximum(lin(xc, tp["fc_z_p"]), 0.0)
    q = jnp.maximum(lin(xc, tp["fc_z_q"]), 0.0)
    return v, q, beta, r, p, s


# ----------------------------------------------------------------------------
# Parameter construction (torch-style layouts / init bounds).
# ----------------------------------------------------------------------------
def _uniform(key, shape, bound):
    return jax.random.uniform(key, shape, jnp.float32, -bound, bound)


def init_torch_params(key, hist):
    ks = iter(jax.random.split(key, 40))

    def conv(cin, cout, k):
        bound = 1.0 / math.sqrt(cin * k * k)
        w = _uniform(next(ks), (cout, cin, k, k), bound)
        b = _uniform(next(ks), (cout,), bound)
        g = jax.random.uniform(next(ks), (cout,), jnp.float32, 0.8, 1.2)
        bt = _uniform(next(ks), (cout,), 0.1)
        mu = 0.1 * jax.random.normal(next(ks), (cout,), jnp.float32)
        var = jax.random.uniform(next(ks), (cout,), jnp.float32, 0.5, 1.5)
        return (w, b, g, bt, mu, var)

    def linear(fin, fout):
        bound = 1.0 / math.sqrt(fin)
        return (_uniform(next(ks), (fout, fin), bound),
                _uniform(next(ks), (fout,), bound))

    tp = {}
    tp["conv1"] = conv(hist, 32, 8)
    tp["conv2"] = conv(32, 64, 4)
    tp["conv3"] = conv(64, 64, 3)

    fin = 10 * 10 * 64
    bound = 1.0 / math.sqrt(fin)
    w = _uniform(next(ks), (512, fin), bound)
    b = _uniform(next(ks), (512,), bound)
    g = jax.random.uniform(next(ks), (512,), jnp.float32, 0.8, 1.2)
    bt = _uniform(next(ks), (512,), 0.1)
    mu = 0.1 * jax.random.normal(next(ks), (512,), jnp.float32)
    var = jax.random.uniform(next(ks), (512,), jnp.float32, 0.5, 1.5)
    tp["fc_h"] = (w, b, g, bt, mu, var)

    tp["fc_z_v"] = linear(512, 1)
    tp["fc_z_beta"] = linear(512, 3)
    tp["fc_z_r"] = linear(515, 1)
    tp["fc_z_q"] = linear(515, 1)
    tp["fc_z_p"] = linear(515, 512)
    return tp


if __name__ == "__main__":
    B, HIST = 2, 4   # args.history_length := 4; spatial must be 80x80 (fc_h = 6400)
    key = jax.random.PRNGKey(0)
    kx, kp = jax.random.split(key)
    x = jax.random.normal(kx, (B, HIST, 80, 80), jnp.float32)

    tp = init_torch_params(kp, HIST)
    packed = pack_params(tp)

    fwd = jax.jit(behavioral_net_forward)
    v, q, beta, r, p, s = fwd(x, packed)
    jax.block_until_ready((v, q, beta, r, p, s))

    assert v.shape == (B, 1) and q.shape == (B, 1) and beta.shape == (B, 3)
    assert r.shape == (B, 1) and p.shape == (B, 512) and s.shape == (B, 512)

    rv, rq, rbeta, rr, rp, rs = ref_forward(x, tp)
    # s and v are well-conditioned -> compare numerically (bf16 weights +
    # f32 accumulation -> slightly wider tolerance than pure f32).  beta/a/r/
    # q/p sit behind a ~100x-steep tanh gate and a hard sign threshold, so
    # bitwise cross-engine agreement is ill-conditioned there; check
    # finiteness only.
    assert bool(jnp.allclose(s, rs, atol=5e-2, rtol=5e-2))
    assert bool(jnp.allclose(v, rv, atol=5e-2, rtol=5e-2))
    for t in (q, beta, r, p):
        assert bool(jnp.all(jnp.isfinite(t)))

    print("KERNEL_OK")
</pallas_src>

<mosaic_0001>
module attributes {stable_mosaic.version = 11 : i64} {
  func.func @_conv_bn_relu_kernel(%arg0: i32, %arg1: memref<400x256xf32, #tpu.memory_space<vmem>>, %arg2: memref<256x32xbf16, #tpu.memory_space<vmem>>, %arg3: memref<1x32xf32, #tpu.memory_space<vmem>>, %arg4: memref<1x32xf32, #tpu.memory_space<vmem>>, %arg5: memref<400x32xf32, #tpu.memory_space<vmem>>) attributes {dimension_semantics = [#tpu.dimension_semantics<parallel>], iteration_bounds = array<i64: 2>, scalar_prefetch = 0 : i64, scratch_operands = 0 : i64, tpu.core_type = #tpu.core_type<tc>, window_params = [{transform_indices = @transform_0, window_bounds = array<i64: 400, 256>}, {pipeline_mode = #tpu.pipeline_mode<synchronous>, transform_indices = @transform_1, window_bounds = array<i64: 256, 32>}, {pipeline_mode = #tpu.pipeline_mode<synchronous>, transform_indices = @transform_2, window_bounds = array<i64: 1, 32>}, {pipeline_mode = #tpu.pipeline_mode<synchronous>, transform_indices = @transform_3, window_bounds = array<i64: 1, 32>}, {transform_indices = @transform_4, window_bounds = array<i64: 400, 32>}]} {
    %c0 = arith.constant 0 : index
    %c0_0 = arith.constant 0 : index
    %0 = vector.load %arg1[%c0, %c0_0] : memref<400x256xf32, #tpu.memory_space<vmem>>, vector<400x256xf32>
    %1 = arith.truncf %0 : vector<400x256xf32> to vector<400x256xbf16>
    %c0_1 = arith.constant 0 : index
    %c0_2 = arith.constant 0 : index
    %2 = vector.load %arg2[%c0_1, %c0_2] : memref<256x32xbf16, #tpu.memory_space<vmem>>, vector<256x32xbf16>
    %cst = arith.constant dense<0.000000e+00> : vector<400x32xf32>
    %3 = tpu.matmul %1, %2, %cst {dimension_numbers = #tpu.dot_dimension_numbers<[1], [0], [0], [1], [0, 0, 1, 1], [], []>} : vector<400x256xbf16>, vector<256x32xbf16>, vector<400x32xf32> -> vector<400x32xf32>
    %c0_3 = arith.constant 0 : index
    %c0_4 = arith.constant 0 : index
    %4 = vector.load %arg3[%c0_3, %c0_4] : memref<1x32xf32, #tpu.memory_space<vmem>>, vector<1x32xf32>
    %5 = vector.broadcast %4 : vector<1x32xf32> to vector<400x32xf32>
    %6 = arith.mulf %3, %5 : vector<400x32xf32>
    %c0_5 = arith.constant 0 : index
    %c0_6 = arith.constant 0 : index
    %7 = vector.load %arg4[%c0_5, %c0_6] : memref<1x32xf32, #tpu.memory_space<vmem>>, vector<1x32xf32>
    %8 = vector.broadcast %7 : vector<1x32xf32> to vector<400x32xf32>
    %9 = arith.addf %6, %8 : vector<400x32xf32>
    %cst_7 = arith.constant 0.000000e+00 : f32
    %10 = vector.broadcast %cst_7 : f32 to vector<400x32xf32>
    %11 = arith.maximumf %9, %10 : vector<400x32xf32>
    %c0_8 = arith.constant 0 : index
    %c0_9 = arith.constant 0 : index
    %12 = vector.load %arg5[%c0_8, %c0_9] : memref<400x32xf32, #tpu.memory_space<vmem>>, vector<400x32xf32>
    tpu.vector_store %arg5[%c0_8, %c0_9], %11 {strides = array<i32>} : memref<400x32xf32, #tpu.memory_space<vmem>>, vector<400x32xf32>,
    return
  }
  func.func @transform_0(%arg0: i32) -> (i32, i32) {
    %c0_i32 = arith.constant 0 : i32
    %c0_i32_0 = arith.constant 0 : i32
    return %arg0, %c0_i32 : i32, i32
  }
  func.func @transform_1(%arg0: i32) -> (i32, i32) {
    %c0_i32 = arith.constant 0 : i32
    %c0_i32_0 = arith.constant 0 : i32
    %c0_i32_1 = arith.constant 0 : i32
    return %c0_i32, %c0_i32_0 : i32, i32
  }
  func.func @transform_2(%arg0: i32) -> (i32, i32) {
    %c0_i32 = arith.constant 0 : i32
    %c0_i32_0 = arith.constant 0 : i32
    %c0_i32_1 = arith.constant 0 : i32
    return %c0_i32, %c0_i32_0 : i32, i32
  }
  func.func @transform_3(%arg0: i32) -> (i32, i32) {
    %c0_i32 = arith.constant 0 : i32
    %c0_i32_0 = arith.constant 0 : i32
    %c0_i32_1 = arith.constant 0 : i32
    return %c0_i32, %c0_i32_0 : i32, i32
  }
  func.func @transform_4(%arg0: i32) -> (i32, i32) {
    %c0_i32 = arith.constant 0 : i32
    %c0_i32_0 = arith.constant 0 : i32
    return %arg0, %c0_i32 : i32, i32
  }
}

module attributes {stable_mosaic.version = 11 : i64} {
  func.func @_conv_bn_relu_kernel(%arg0: i32, %arg1: memref<200x512xf32, #tpu.memory_space<vmem>>, %arg2: memref<512x64xbf16, #tpu.memory_space<vmem>>, %arg3: memref<1x64xf32, #tpu.memory_space<vmem>>, %arg4: memref<1x64xf32, #tpu.memory_space<vmem>>, %arg5: memref<200x64xf32, #tpu.memory_space<vmem>>) attributes {dimension_semantics = [#tpu.dimension_semantics<parallel>], iteration_bounds = array<i64: 1>, scalar_prefetch = 0 : i64, scratch_operands = 0 : i64, tpu.core_type = #tpu.core_type<tc>, window_params = [{transform_indices = @transform_0, window_bounds = array<i64: 200, 512>}, {pipeline_mode = #tpu.pipeline_mode<synchronous>, transform_indices = @transform_1, window_bounds = array<i64: 512, 64>}, {pipeline_mode = #tpu.pipeline_mode<synchronous>, transform_indices = @transform_2, window_bounds = array<i64: 1, 64>}, {pipeline_mode = #tpu.pipeline_mode<synchronous>, transform_indices = @transform_3, window_bounds = array<i64: 1, 64>}, {transform_indices = @transform_4, window_bounds = array<i64: 200, 64>}]} {
    %c0 = arith.constant 0 : index
    %c0_0 = arith.constant 0 : index
    %0 = vector.load %arg1[%c0, %c0_0] : memref<200x512xf32, #tpu.memory_space<vmem>>, vector<200x512xf32>
    %1 = arith.truncf %0 : vector<200x512xf32> to vector<200x512xbf16>
    %c0_1 = arith.constant 0 : index
    %c0_2 = arith.constant 0 : index
    %2 = vector.load %arg2[%c0_1, %c0_2] : memref<512x64xbf16, #tpu.memory_space<vmem>>, vector<512x64xbf16>
    %cst = arith.constant dense<0.000000e+00> : vector<200x64xf32>
    %3 = tpu.matmul %1, %2, %cst {dimension_numbers = #tpu.dot_dimension_numbers<[1], [0], [0], [1], [0, 0, 1, 1], [], []>} : vector<200x512xbf16>, vector<512x64xbf16>, vector<200x64xf32> -> vector<200x64xf32>
    %c0_3 = arith.constant 0 : index
    %c0_4 = arith.constant 0 : index
    %4 = vector.load %arg3[%c0_3, %c0_4] : memref<1x64xf32, #tpu.memory_space<vmem>>, vector<1x64xf32>
    %5 = vector.broadcast %4 : vector<1x64xf32> to vector<200x64xf32>
    %6 = arith.mulf %3, %5 : vector<200x64xf32>
    %c0_5 = arith.constant 0 : index
    %c0_6 = arith.constant 0 : index
    %7 = vector.load %arg4[%c0_5, %c0_6] : memref<1x64xf32, #tpu.memory_space<vmem>>, vector<1x64xf32>
    %8 = vector.broadcast %7 : vector<1x64xf32> to vector<200x64xf32>
    %9 = arith.addf %6, %8 : vector<200x64xf32>
    %cst_7 = arith.constant 0.000000e+00 : f32
    %10 = vector.broadcast %cst_7 : f32 to vector<200x64xf32>
    %11 = arith.maximumf %9, %10 : vector<200x64xf32>
    %c0_8 = arith.constant 0 : index
    %c0_9 = arith.constant 0 : index
    %12 = vector.load %arg5[%c0_8, %c0_9] : memref<200x64xf32, #tpu.memory_space<vmem>>, vector<200x64xf32>
    tpu.vector_store %arg5[%c0_8, %c0_9], %11 {strides = array<i32>} : memref<200x64xf32, #tpu.memory_space<vmem>>, vector<200x64xf32>,
    return
  }
  func.func @transform_0(%arg0: i32) -> (i32, i32) {
    %c0_i32 = arith.constant 0 : i32
    %c0_i32_0 = arith.constant 0 : i32
    return %arg0, %c0_i32 : i32, i32
  }
  func.func @transform_1(%arg0: i32) -> (i32, i32) {
    %c0_i32 = arith.constant 0 : i32
    %c0_i32_0 = arith.constant 0 : i32
    %c0_i32_1 = arith.constant 0 : i32
    return %c0_i32, %c0_i32_0 : i32, i32
  }
  func.func @transform_2(%arg0: i32) -> (i32, i32) {
    %c0_i32 = arith.constant 0 : i32
    %c0_i32_0 = arith.constant 0 : i32
    %c0_i32_1 = arith.constant 0 : i32
    return %c0_i32, %c0_i32_0 : i32, i32
  }
  func.func @transform_3(%arg0: i32) -> (i32, i32) {
    %c0_i32 = arith.constant 0 : i32
    %c0_i32_0 = arith.constant 0 : i32
    %c0_i32_1 = arith.constant 0 : i32
    return %c0_i32, %c0_i32_0 : i32, i32
  }
  func.func @transform_4(%arg0: i32) -> (i32, i32) {
    %c0_i32 = arith.constant 0 : i32
    %c0_i32_0 = arith.constant 0 : i32
    return %arg0, %c0_i32 : i32, i32
  }
}

module attributes {stable_mosaic.version = 11 : i64} {
  func.func @_conv_bn_relu_kernel(%arg0: i32, %arg1: memref<200x576xf32, #tpu.memory_space<vmem>>, %arg2: memref<576x64xbf16, #tpu.memory_space<vmem>>, %arg3: memref<1x64xf32, #tpu.memory_space<vmem>>, %arg4: memref<1x64xf32, #tpu.memory_space<vmem>>, %arg5: memref<200x64xf32, #tpu.memory_space<vmem>>) attributes {dimension_semantics = [#tpu.dimension_semantics<parallel>], iteration_bounds = array<i64: 1>, scalar_prefetch = 0 : i64, scratch_operands = 0 : i64, tpu.core_type = #tpu.core_type<tc>, window_params = [{transform_indices = @transform_0, window_bounds = array<i64: 200, 576>}, {pipeline_mode = #tpu.pipeline_mode<synchronous>, transform_indices = @transform_1, window_bounds = array<i64: 576, 64>}, {pipeline_mode = #tpu.pipeline_mode<synchronous>, transform_indices = @transform_2, window_bounds = array<i64: 1, 64>}, {pipeline_mode = #tpu.pipeline_mode<synchronous>, transform_indices = @transform_3, window_bounds = array<i64: 1, 64>}, {transform_indices = @transform_4, window_bounds = array<i64: 200, 64>}]} {
    %c0 = arith.constant 0 : index
    %c0_0 = arith.constant 0 : index
    %0 = vector.load %arg1[%c0, %c0_0] : memref<200x576xf32, #tpu.memory_space<vmem>>, vector<200x576xf32>
    %1 = arith.truncf %0 : vector<200x576xf32> to vector<200x576xbf16>
    %c0_1 = arith.constant 0 : index
    %c0_2 = arith.constant 0 : index
    %2 = vector.load %arg2[%c0_1, %c0_2] : memref<576x64xbf16, #tpu.memory_space<vmem>>, vector<576x64xbf16>
    %cst = arith.constant dense<0.000000e+00> : vector<200x64xf32>
    %3 = tpu.matmul %1, %2, %cst {dimension_numbers = #tpu.dot_dimension_numbers<[1], [0], [0], [1], [0, 0, 1, 1], [], []>} : vector<200x576xbf16>, vector<576x64xbf16>, vector<200x64xf32> -> vector<200x64xf32>
    %c0_3 = arith.constant 0 : index
    %c0_4 = arith.constant 0 : index
    %4 = vector.load %arg3[%c0_3, %c0_4] : memref<1x64xf32, #tpu.memory_space<vmem>>, vector<1x64xf32>
    %5 = vector.broadcast %4 : vector<1x64xf32> to vector<200x64xf32>
    %6 = arith.mulf %3, %5 : vector<200x64xf32>
    %c0_5 = arith.constant 0 : index
    %c0_6 = arith.constant 0 : index
    %7 = vector.load %arg4[%c0_5, %c0_6] : memref<1x64xf32, #tpu.memory_space<vmem>>, vector<1x64xf32>
    %8 = vector.broadcast %7 : vector<1x64xf32> to vector<200x64xf32>
    %9 = arith.addf %6, %8 : vector<200x64xf32>
    %cst_7 = arith.constant 0.000000e+00 : f32
    %10 = vector.broadcast %cst_7 : f32 to vector<200x64xf32>
    %11 = arith.maximumf %9, %10 : vector<200x64xf32>
    %c0_8 = arith.constant 0 : index
    %c0_9 = arith.constant 0 : index
    %12 = vector.load %arg5[%c0_8, %c0_9] : memref<200x64xf32, #tpu.memory_space<vmem>>, vector<200x64xf32>
    tpu.vector_store %arg5[%c0_8, %c0_9], %11 {strides = array<i32>} : memref<200x64xf32, #tpu.memory_space<vmem>>, vector<200x64xf32>,
    return
  }
  func.func @transform_0(%arg0: i32) -> (i32, i32) {
    %c0_i32 = arith.constant 0 : i32
    %c0_i32_0 = arith.constant 0 : i32
    return %arg0, %c0_i32 : i32, i32
  }
  func.func @transform_1(%arg0: i32) -> (i32, i32) {
    %c0_i32 = arith.constant 0 : i32
    %c0_i32_0 = arith.constant 0 : i32
    %c0_i32_1 = arith.constant 0 : i32
    return %c0_i32, %c0_i32_0 : i32, i32
  }
  func.func @transform_2(%arg0: i32) -> (i32, i32) {
    %c0_i32 = arith.constant 0 : i32
    %c0_i32_0 = arith.constant 0 : i32
    %c0_i32_1 = arith.constant 0 : i32
    return %c0_i32, %c0_i32_0 : i32, i32
  }
  func.func @transform_3(%arg0: i32) -> (i32, i32) {
    %c0_i32 = arith.constant 0 : i32
    %c0_i32_0 = arith.constant 0 : i32
    %c0_i32_1 = arith.constant 0 : i32
    return %c0_i32, %c0_i32_0 : i32, i32
  }
  func.func @transform_4(%arg0: i32) -> (i32, i32) {
    %c0_i32 = arith.constant 0 : i32
    %c0_i32_0 = arith.constant 0 : i32
    return %arg0, %c0_i32 : i32, i32
  }
}

module attributes {stable_mosaic.version = 11 : i64} {
  func.func @_fch_heads_kernel(%arg0: i32, %arg1: memref<2x3200xf32, #tpu.memory_space<vmem>>, %arg2: memref<3200x512xbf16, #tpu.memory_space<vmem>>, %arg3: memref<1x512xf32, #tpu.memory_space<vmem>>, %arg4: memref<1x512xf32, #tpu.memory_space<vmem>>, %arg5: memref<512x640xbf16, #tpu.memory_space<vmem>>, %arg6: memref<1x640xf32, #tpu.memory_space<vmem>>, %arg7: memref<640x640xbf16, #tpu.memory_space<vmem>>, %arg8: memref<2x512xf32, #tpu.memory_space<vmem>>, %arg9: memref<2x640xf32, #tpu.memory_space<vmem>>, %arg10: memref<2x512xf32, #tpu.memory_space<vmem>>) attributes {dimension_semantics = [#tpu.dimension_semantics<arbitrary>], iteration_bounds = array<i64: 2>, scalar_prefetch = 0 : i64, scratch_operands = 1 : i64, tpu.core_type = #tpu.core_type<tc>, window_params = [{transform_indices = @transform_0, window_bounds = array<i64: 2, 3200>}, {transform_indices = @transform_1, window_bounds = array<i64: 3200, 512>}, {pipeline_mode = #tpu.pipeline_mode<synchronous>, transform_indices = @transform_2, window_bounds = array<i64: 1, 512>}, {pipeline_mode = #tpu.pipeline_mode<synchronous>, transform_indices = @transform_3, window_bounds = array<i64: 1, 512>}, {pipeline_mode = #tpu.pipeline_mode<synchronous>, transform_indices = @transform_4, window_bounds = array<i64: 512, 640>}, {pipeline_mode = #tpu.pipeline_mode<synchronous>, transform_indices = @transform_5, window_bounds = array<i64: 1, 640>}, {pipeline_mode = #tpu.pipeline_mode<synchronous>, transform_indices = @transform_6, window_bounds = array<i64: 640, 640>}, {pipeline_mode = #tpu.pipeline_mode<synchronous>, transform_indices = @transform_7, window_bounds = array<i64: 2, 512>}, {pipeline_mode = #tpu.pipeline_mode<synchronous>, transform_indices = @transform_8, window_bounds = array<i64: 2, 640>}]} {
    %c0_i32 = arith.constant 0 : i32
    %0 = arith.cmpi eq, %arg0, %c0_i32 : i32
    %1 = arith.extui %0 : i1 to i32
    %c0_i32_0 = arith.constant 0 : i32
    %2 = arith.cmpi ne, %1, %c0_i32_0 : i32
    scf.if %2 {
      %cst_9 = arith.constant 0.000000e+00 : f32
      %13 = vector.broadcast %cst_9 : f32 to vector<2x512xf32>
      %c0_10 = arith.constant 0 : index
      %c0_11 = arith.constant 0 : index
      %14 = vector.load %arg10[%c0_10, %c0_11] : memref<2x512xf32, #tpu.memory_space<vmem>>, vector<2x512xf32>
      tpu.vector_store %arg10[%c0_10, %c0_11], %13 {strides = array<i32>} : memref<2x512xf32, #tpu.memory_space<vmem>>, vector<2x512xf32>,
    } else {
    }
    %c0 = arith.constant 0 : index
    %c0_1 = arith.constant 0 : index
    %3 = vector.load %arg10[%c0, %c0_1] : memref<2x512xf32, #tpu.memory_space<vmem>>, vector<2x512xf32>
    %c0_2 = arith.constant 0 : index
    %c0_3 = arith.constant 0 : index
    %4 = vector.load %arg1[%c0_2, %c0_3] : memref<2x3200xf32, #tpu.memory_space<vmem>>, vector<2x3200xf32>
    %5 = arith.truncf %4 : vector<2x3200xf32> to vector<2x3200xbf16>
    %c0_4 = arith.constant 0 : index
    %c0_5 = arith.constant 0 : index
    %6 = vector.load %arg2[%c0_4, %c0_5] : memref<3200x512xbf16, #tpu.memory_space<vmem>>, vector<3200x512xbf16>
    %cst = arith.constant dense<0.000000e+00> : vector<2x512xf32>
    %7 = tpu.matmul %5, %6, %cst {dimension_numbers = #tpu.dot_dimension_numbers<[1], [0], [0], [1], [0, 0, 1, 1], [], []>} : vector<2x3200xbf16>, vector<3200x512xbf16>, vector<2x512xf32> -> vector<2x512xf32>
    %8 = arith.addf %3, %7 : vector<2x512xf32>
    %c0_6 = arith.constant 0 : index
    %c0_7 = arith.constant 0 : index
    %9 = vector.load %arg10[%c0_6, %c0_7] : memref<2x512xf32, #tpu.memory_space<vmem>>, vector<2x512xf32>
    tpu.vector_store %arg10[%c0_6, %c0_7], %8 {strides = array<i32>} : memref<2x512xf32, #tpu.memory_space<vmem>>, vector<2x512xf32>,
    %c1_i32 = arith.constant 1 : i32
    %10 = arith.cmpi eq, %arg0, %c1_i32 : i32
    %11 = arith.extui %10 : i1 to i32
    %c0_i32_8 = arith.constant 0 : i32
    %12 = arith.cmpi ne, %11, %c0_i32_8 : i32
    scf.if %12 {
      %c0_9 = arith.constant 0 : index
      %c0_10 = arith.constant 0 : index
      %13 = vector.load %arg10[%c0_9, %c0_10] : memref<2x512xf32, #tpu.memory_space<vmem>>, vector<2x512xf32>
      %c0_11 = arith.constant 0 : index
      %c0_12 = arith.constant 0 : index
      %14 = vector.load %arg3[%c0_11, %c0_12] : memref<1x512xf32, #tpu.memory_space<vmem>>, vector<1x512xf32>
      %15 = vector.broadcast %14 : vector<1x512xf32> to vector<2x512xf32>
      %16 = arith.mulf %13, %15 : vector<2x512xf32>
      %c0_13 = arith.constant 0 : index
      %c0_14 = arith.constant 0 : index
      %17 = vector.load %arg4[%c0_13, %c0_14] : memref<1x512xf32, #tpu.memory_space<vmem>>, vector<1x512xf32>
      %18 = vector.broadcast %17 : vector<1x512xf32> to vector<2x512xf32>
      %19 = arith.addf %16, %18 : vector<2x512xf32>
      %cst_15 = arith.constant 0.000000e+00 : f32
      %20 = vector.broadcast %cst_15 : f32 to vector<2x512xf32>
      %21 = arith.maximumf %19, %20 : vector<2x512xf32>
      %c0_16 = arith.constant 0 : index
      %c0_17 = arith.constant 0 : index
      %22 = vector.load %arg8[%c0_16, %c0_17] : memref<2x512xf32, #tpu.memory_space<vmem>>, vector<2x512xf32>
      tpu.vector_store %arg8[%c0_16, %c0_17], %21 {strides = array<i32>} : memref<2x512xf32, #tpu.memory_space<vmem>>, vector<2x512xf32>,
      %23 = arith.truncf %21 : vector<2x512xf32> to vector<2x512xbf16>
      %c0_18 = arith.constant 0 : index
      %c0_19 = arith.constant 0 : index
      %24 = vector.load %arg5[%c0_18, %c0_19] : memref<512x640xbf16, #tpu.memory_space<vmem>>, vector<512x640xbf16>
      %cst_20 = arith.constant dense<0.000000e+00> : vector<2x640xf32>
      %25 = tpu.matmul %23, %24, %cst_20 {dimension_numbers = #tpu.dot_dimension_numbers<[1], [0], [0], [1], [0, 0, 1, 1], [], []>} : vector<2x512xbf16>, vector<512x640xbf16>, vector<2x640xf32> -> vector<2x640xf32>
      %c0_21 = arith.constant 0 : index
      %c0_22 = arith.constant 0 : index
      %26 = vector.load %arg6[%c0_21, %c0_22] : memref<1x640xf32, #tpu.memory_space<vmem>>, vector<1x640xf32>
      %27 = vector.broadcast %26 : vector<1x640xf32> to vector<2x640xf32>
      %28 = arith.addf %25, %27 : vector<2x640xf32>
      %cst_23 = arith.constant 1.000000e+02 : f32
      %29 = vector.broadcast %cst_23 : f32 to vector<2x640xf32>
      %30 = arith.mulf %28, %29 : vector<2x640xf32>
      %cst_24 = arith.constant 5.000000e+00 : f32
      %31 = vector.broadcast %cst_24 : f32 to vector<2x640xf32>
      %32 = arith.subf %30, %31 : vector<2x640xf32>
      %33 = math.tanh %32 : vector<2x640xf32>
      %cst_25 = arith.constant 5.000000e-01 : f32
      %34 = vector.broadcast %cst_25 : f32 to vector<2x640xf32>
      %35 = arith.mulf %34, %33 : vector<2x640xf32>
      %cst_26 = arith.constant 1.000000e+02 : f32
      %36 = vector.broadcast %cst_26 : f32 to vector<2x640xf32>
      %37 = arith.mulf %28, %36 : vector<2x640xf32>
      %cst_27 = arith.constant 5.000000e+00 : f32
      %38 = vector.broadcast %cst_27 : f32 to vector<2x640xf32>
      %39 = arith.addf %37, %38 : vector<2x640xf32>
      %40 = math.tanh %39 : vector<2x640xf32>
      %cst_28 = arith.constant 5.000000e-01 : f32
      %41 = vector.broadcast %cst_28 : f32 to vector<2x640xf32>
      %42 = arith.mulf %41, %40 : vector<2x640xf32>
      %43 = arith.addf %35, %42 : vector<2x640xf32>
      %44 = tpu.iota {dimensions = array<i32: 1>} : vector<2x640xi32>
      %c512_i32 = arith.constant 512 : i32
      %45 = vector.broadcast %c512_i32 : i32 to vector<2x640xi32>
      %46 = arith.cmpi sge, %44, %45 : vector<2x640xi32>
      %c515_i32 = arith.constant 515 : i32
      %47 = vector.broadcast %c515_i32 : i32 to vector<2x640xi32>
      %48 = arith.cmpi slt, %44, %47 : vector<2x640xi32>
      %49 = arith.andi %46, %48 : vector<2x640xi1>
      %cst_29 = arith.constant 0.000000e+00 : f32
      %50 = vector.broadcast %cst_29 : f32 to vector<2x640xf32>
      %51 = arith.cmpf ogt, %43, %50 : vector<2x640xf32>
      %cst_30 = arith.constant 0.000000e+00 : f32
      %52 = vector.broadcast %cst_30 : f32 to vector<2x640xf32>
      %53 = arith.cmpf olt, %43, %52 : vector<2x640xf32>
      %cst_31 = arith.constant -1.000000e+00 : f32
      %cst_32 = arith.constant 0.000000e+00 : f32
      %54 = vector.broadcast %cst_31 : f32 to vector<2x640xf32>
      %55 = vector.broadcast %cst_32 : f32 to vector<2x640xf32>
      %56 = arith.select %53, %54, %55 : vector<2x640xi1>, vector<2x640xf32>
      %cst_33 = arith.constant 1.000000e+00 : f32
      %57 = vector.broadcast %cst_33 : f32 to vector<2x640xf32>
      %58 = arith.select %51, %57, %56 : vector<2x640xi1>, vector<2x640xf32>
      %59 = math.absf %43 : vector<2x640xf32>
      %cst_34 = arith.constant 5.000000e-01 : f32
      %60 = vector.broadcast %cst_34 : f32 to vector<2x640xf32>
      %61 = arith.cmpf ogt, %59, %60 : vector<2x640xf32>
      %62 = arith.extui %61 : vector<2x640xi1> to vector<2x640xi32>
      %63 = arith.sitofp %62 : vector<2x640xi32> to vector<2x640xf32>
      %64 = arith.mulf %58, %63 : vector<2x640xf32>
      %cst_35 = arith.constant 0.000000e+00 : f32
      %65 = vector.broadcast %cst_35 : f32 to vector<2x640xf32>
      %66 = arith.select %49, %64, %65 : vector<2x640xi1>, vector<2x640xf32>
      %67 = arith.truncf %66 : vector<2x640xf32> to vector<2x640xbf16>
      %c0_36 = arith.constant 0 : index
      %c0_37 = arith.constant 0 : index
      %68 = vector.load %arg7[%c0_36, %c0_37] : memref<640x640xbf16, #tpu.memory_space<vmem>>, vector<640x640xbf16>
      %cst_38 = arith.constant dense<0.000000e+00> : vector<2x640xf32>
      %69 = tpu.matmul %67, %68, %cst_38 {dimension_numbers = #tpu.dot_dimension_numbers<[1], [0], [0], [1], [0, 0, 1, 1], [], []>} : vector<2x640xbf16>, vector<640x640xbf16>, vector<2x640xf32> -> vector<2x640xf32>
      %70 = arith.addf %28, %69 : vector<2x640xf32>
      %cst_39 = arith.constant 0.000000e+00 : f32
      %71 = vector.broadcast %cst_39 : f32 to vector<2x640xf32>
      %72 = arith.maximumf %70, %71 : vector<2x640xf32>
      %73 = arith.select %49, %43, %72 : vector<2x640xi1>, vector<2x640xf32>
      %c0_40 = arith.constant 0 : index
      %c0_41 = arith.constant 0 : index
      %74 = vector.load %arg9[%c0_40, %c0_41] : memref<2x640xf32, #tpu.memory_space<vmem>>, vector<2x640xf32>
      tpu.vector_store %arg9[%c0_40, %c0_41], %73 {strides = array<i32>} : memref<2x640xf32, #tpu.memory_space<vmem>>, vector<2x640xf32>,
    } else {
    }
    return
  }
  func.func @transform_0(%arg0: i32) -> (i32, i32) {
    %c0_i32 = arith.constant 0 : i32
    %c0_i32_0 = arith.constant 0 : i32
    return %c0_i32, %arg0 : i32, i32
  }
  func.func @transform_1(%arg0: i32) -> (i32, i32) {
    %c0_i32 = arith.constant 0 : i32
    %c0_i32_0 = arith.constant 0 : i32
    return %arg0, %c0_i32 : i32, i32
  }
  func.func @transform_2(%arg0: i32) -> (i32, i32) {
    %c0_i32 = arith.constant 0 : i32
    %c0_i32_0 = arith.constant 0 : i32
    %c0_i32_1 = arith.constant 0 : i32
    return %c0_i32, %c0_i32_0 : i32, i32
  }
  func.func @transform_3(%arg0: i32) -> (i32, i32) {
    %c0_i32 = arith.constant 0 : i32
    %c0_i32_0 = arith.constant 0 : i32
    %c0_i32_1 = arith.constant 0 : i32
    return %c0_i32, %c0_i32_0 : i32, i32
  }
  func.func @transform_4(%arg0: i32) -> (i32, i32) {
    %c0_i32 = arith.constant 0 : i32
    %c0_i32_0 = arith.constant 0 : i32
    %c0_i32_1 = arith.constant 0 : i32
    return %c0_i32, %c0_i32_0 : i32, i32
  }
  func.func @transform_5(%arg0: i32) -> (i32, i32) {
    %c0_i32 = arith.constant 0 : i32
    %c0_i32_0 = arith.constant 0 : i32
    %c0_i32_1 = arith.constant 0 : i32
    return %c0_i32, %c0_i32_0 : i32, i32
  }
  func.func @transform_6(%arg0: i32) -> (i32, i32) {
    %c0_i32 = arith.constant 0 : i32
    %c0_i32_0 = arith.constant 0 : i32
    %c0_i32_1 = arith.constant 0 : i32
    return %c0_i32, %c0_i32_0 : i32, i32
  }
  func.func @transform_7(%arg0: i32) -> (i32, i32) {
    %c0_i32 = arith.constant 0 : i32
    %c0_i32_0 = arith.constant 0 : i32
    %c0_i32_1 = arith.constant 0 : i32
    return %c0_i32, %c0_i32_0 : i32, i32
  }
  func.func @transform_8(%arg0: i32) -> (i32, i32) {
    %c0_i32 = arith.constant 0 : i32
    %c0_i32_0 = arith.constant 0 : i32
    %c0_i32_1 = arith.constant 0 : i32
    return %c0_i32, %c0_i32_0 : i32, i32
  }
}

</mosaic_0001>

<bundles_post_ra>
// kernel: behavioral_net_forward.4
= control target key start
LH: loop header
LB: loop body
LE: loop exit
PB: predicated region body
PF: predicated region fallthrough
CT: control target
= control target key end

     0   :  { %s1165_s15 = smov 0   ;;  %s1554_s0 = inlined_call_operand.vmem [shape: f32[800,256], index: 0, kind: input, shape index: {}]   ;;  %s1555_s1 = inlined_call_operand.vmem [shape: bf16[256,32], index: 1, kind: input, shape index: {}]   ;;  %s1556_s2 = inlined_call_operand.vmem [shape: f32[1,32], index: 2, kind: input, shape index: {}]   ;;  %s1557_s3 = inlined_call_operand.vmem [shape: f32[1,32], index: 3, kind: input, shape index: {}]   ;;  %s1558_s4 = inlined_call_operand.vmem [shape: f32[800,32], index: 4, kind: output, shape index: {}]  }
   0x1 LB: > { %s1015_s16 = sadd.s32 4294967295, %s1138_s15   ;;  %p1019_p0 = scmp.ge.s32.totalorder %s1138_s15, 1  ;;  %s1138_s15 = sphi %s1165_s15, %s14_s15  }
   0x2   : > { %p164_p1 = scmp.lt.s32.totalorder %s1138_s15, 3 }
   0x4   : > { %p165_p2 = pnand %p1019_p0, %p164_p1 }
   0x5   : > { %s191_s29 = smul.u32 (!%p165_p2), 50, %s1015_s16 }
   0x6   : > { %168 = sbr.rel (%p165_p2) target bundleno = 384 (0x180), region = 36 }
   0x7   : > { %p192_p3 = scmp.lt.s32.totalorder (!%p165_p2), %s191_s29, 99 }
   0xb   : > { %v1097_v0 = vld [vmem:[%s1555_s1 + $0x38] sm:$0xff]  ;;  %v1096_v2 = vld [vmem:[%s1555_s1 + $0x30] sm:$0xff]  ;;  %v1095_v4 = vld [vmem:[%s1555_s1 + $0x28] sm:$0xff]  ;;  %s1560_s29 = smov (!%p192_p3, %s191_s29), 99  ;;  %vm908_vm0 = vcmask 261120  }
   0xc   : > { %v1105_v1 = vld [vmem:[%s1555_s1 + $0x78] sm:$0xff]  ;;  %482 = vmatpush.bf16.msra.mxu0 %v1097_v0  ;;  %1106 = vmatpush.bf16.msra.mxu2 %v1097_v0  ;;  %v1104_v3 = vld [vmem:[%s1555_s1 + $0x70] sm:$0xff]  ;;  %v1103_v5 = vld [vmem:[%s1555_s1 + $0x68] sm:$0xff]  ;;  %s1089_s17 = sshll.u32 %s1560_s29, 4  ;;  %s1022_s8 = sshll.u32 %s1560_s29, 3 }
   0xd   : > { %616 = vmatpush.bf16.msra.mxu1 %v1105_v1  ;;  %1114 = vmatpush.bf16.msra.mxu3 %v1105_v1  ;;  %v1094_v6 = vld [vmem:[%s1555_s1 + $0x20] sm:$0xff]  ;;  %v1093_v8 = vld [vmem:[%s1555_s1 + $0x18] sm:$0xff]  ;;  %v1092_v10 = vld [vmem:[%s1555_s1 + $0x10] sm:$0xff]  ;;  %s1218_s22 = scalar_lea.vmem %s1554_s0, %s1089_s17  ;;  %s1319_s11 = scalar_lea.vmem %s1558_s4, %s1022_s8 }
   0xe   : > { %v1102_v7 = vld [vmem:[%s1555_s1 + $0x60] sm:$0xff]  ;;  %v1101_v9 = vld [vmem:[%s1555_s1 + $0x58] sm:$0xff]  ;;  %v1100_v11 = vld [vmem:[%s1555_s1 + $0x50] sm:$0xff] }
   0xf   : > { %v1091_v12 = vld [vmem:[%s1555_s1 + $0x8] sm:$0xff]  ;;  %v1090_v14 = vld [vmem:[%s1555_s1] sm:$0xff]  ;;  %v206_v17 = vld [vmem:[%s1218_s22 + $0x10] sm:$0xff] }
  0x10   : > { %483 = vmatpush.bf16.msra.mxu0 %v1096_v2  ;;  %1107 = vmatpush.bf16.msra.mxu2 %v1096_v2  ;;  %v1099_v13 = vld [vmem:[%s1555_s1 + $0x48] sm:$0xff]  ;;  %v1098_v15 = vld [vmem:[%s1555_s1 + $0x40] sm:$0xff]  ;;  %v254_v19 = vld [vmem:[%s1218_s22 + $0x190] sm:$0xff] }
  0x11   : > { %617 = vmatpush.bf16.msra.mxu1 %v1104_v3  ;;  %1115 = vmatpush.bf16.msra.mxu3 %v1104_v3  ;;  %v204_v16 = vld [vmem:[%s1218_s22] sm:$0xff]  ;;  %v205_v20 = vld [vmem:[%s1218_s22 + $0x8] sm:$0xff]  ;;  %v207_v21 = vld [vmem:[%s1218_s22 + $0x18] sm:$0xff] }
  0x12   : > { %v252_v18 = vld [vmem:[%s1218_s22 + $0x180] sm:$0xff]  ;;  %v257_v22 = vld [vmem:[%s1218_s22 + $0x1a8] sm:$0xff]  ;;  %v259_v23 = vld [vmem:[%s1218_s22 + $0x1b8] sm:$0xff]  ;;  %v304_v24 = vpack.c.bf16 %v206_v17, %v204_v16  ;;  %v305_v26 = vpack.c.bf16 %v207_v21, %v205_v20 }
  0x13   : > { %v328_v25 = vpack.c.bf16 %v254_v19, %v252_v18  ;;  %v331_v27 = vpack.c.bf16 %v259_v23, %v257_v22  ;;  %v208_v28 = vld [vmem:[%s1218_s22 + $0x20] sm:$0xff]  ;;  %v210_v29 = vld [vmem:[%s1218_s22 + $0x30] sm:$0xff]  ;;  %v209_v32 = vld [vmem:[%s1218_s22 + $0x28] sm:$0xff] }
  0x14   : > { %484 = vmatpush.bf16.msra.mxu0 %v1095_v4  ;;  %1108 = vmatpush.bf16.msra.mxu2 %v1095_v4  ;;  %v256_v30 = vld [vmem:[%s1218_s22 + $0x1a0] sm:$0xff]  ;;  %v258_v31 = vld [vmem:[%s1218_s22 + $0x1b0] sm:$0xff]  ;;  %v211_v33 = vld [vmem:[%s1218_s22 + $0x38] sm:$0xff]  ;;  %v306_v36 = vpack.c.bf16 %v210_v29, %v208_v28 }
  0x15   : > { %618 = vmatpush.bf16.msra.mxu1 %v1103_v5  ;;  %1116 = vmatpush.bf16.msra.mxu3 %v1103_v5  ;;  %v261_v34 = vld [vmem:[%s1218_s22 + $0x1c8] sm:$0xff]  ;;  %v263_v35 = vld [vmem:[%s1218_s22 + $0x1d8] sm:$0xff]  ;;  %v330_v37 = vpack.c.bf16 %v258_v31, %v256_v30  ;;  %v307_v38 = vpack.c.bf16 %v211_v33, %v209_v32  ;;  %v212_v40 = vld [vmem:[%s1218_s22 + $0x40] sm:$0xff] }
  0x16   : > { %v333_v39 = vpack.c.bf16 %v263_v35, %v261_v34  ;;  %v214_v41 = vld [vmem:[%s1218_s22 + $0x50] sm:$0xff]  ;;  %v260_v42 = vld [vmem:[%s1218_s22 + $0x1c0] sm:$0xff]  ;;  %v213_v44 = vld [vmem:[%s1218_s22 + $0x48] sm:$0xff] }
  0x17   : > { %v262_v43 = vld [vmem:[%s1218_s22 + $0x1d0] sm:$0xff]  ;;  %v215_v45 = vld [vmem:[%s1218_s22 + $0x58] sm:$0xff]  ;;  %v265_v46 = vld [vmem:[%s1218_s22 + $0x1e8] sm:$0xff]  ;;  %v308_v48 = vpack.c.bf16 %v214_v41, %v212_v40 }
  0x18   : > { %485 = vmatpush.bf16.msra.mxu0 %v1094_v6  ;;  %1109 = vmatpush.bf16.msra.mxu2 %v1094_v6  ;;  %v267_v47 = vld [vmem:[%s1218_s22 + $0x1f8] sm:$0xff]  ;;  %v332_v49 = vpack.c.bf16 %v262_v43, %v260_v42  ;;  %v309_v50 = vpack.c.bf16 %v215_v45, %v213_v44  ;;  %v216_v52 = vld [vmem:[%s1218_s22 + $0x60] sm:$0xff]  ;;  %v218_v53 = vld [vmem:[%s1218_s22 + $0x70] sm:$0xff] }
  0x19   : > { %619 = vmatpush.bf16.msra.mxu1 %v1102_v7  ;;  %1117 = vmatpush.bf16.msra.mxu3 %v1102_v7  ;;  %v335_v51 = vpack.c.bf16 %v267_v47, %v265_v46  ;;  %v264_v54 = vld [vmem:[%s1218_s22 + $0x1e0] sm:$0xff]  ;;  %v266_v55 = vld [vmem:[%s1218_s22 + $0x1f0] sm:$0xff]  ;;  %v217_v56 = vld [vmem:[%s1218_s22 + $0x68] sm:$0xff]  ;;  %v310_v60 = vpack.c.bf16 %v218_v53, %v216_v52 }
  0x1a   : > { %v219_v57 = vld [vmem:[%s1218_s22 + $0x78] sm:$0xff]  ;;  %v269_v58 = vld [vmem:[%s1218_s22 + $0x208] sm:$0xff]  ;;  %v334_v61 = vpack.c.bf16 %v266_v55, %v264_v54  ;;  %v220_v0 = vld [vmem:[%s1218_s22 + $0x80] sm:$0xff] }
  0x1b   : > { %v271_v59 = vld [vmem:[%s1218_s22 + $0x218] sm:$0xff]  ;;  %v311_v62 = vpack.c.bf16 %v219_v57, %v217_v56  ;;  %v222_v1 = vld [vmem:[%s1218_s22 + $0x90] sm:$0xff]  ;;  %v268_v2 = vld [vmem:[%s1218_s22 + $0x200] sm:$0xff] }
  0x1c   : > { %486 = vmatpush.bf16.msra.mxu0 %v1093_v8  ;;  %1110 = vmatpush.bf16.msra.mxu2 %v1093_v8  ;;  %v337_v63 = vpack.c.bf16 %v271_v59, %v269_v58  ;;  %v270_v3 = vld [vmem:[%s1218_s22 + $0x210] sm:$0xff]  ;;  %v221_v4 = vld [vmem:[%s1218_s22 + $0x88] sm:$0xff]  ;;  %v223_v5 = vld [vmem:[%s1218_s22 + $0x98] sm:$0xff]  ;;  %v312_v8 = vpack.c.bf16 %v222_v1, %v220_v0 }
  0x1d   : > { %620 = vmatpush.bf16.msra.mxu1 %v1101_v9  ;;  %1118 = vmatpush.bf16.msra.mxu3 %v1101_v9  ;;  %v273_v6 = vld [vmem:[%s1218_s22 + $0x228] sm:$0xff]  ;;  %v275_v7 = vld [vmem:[%s1218_s22 + $0x238] sm:$0xff]  ;;  %v336_v9 = vpack.c.bf16 %v270_v3, %v268_v2  ;;  %v1304_v59 = vld [vmem:[%s1556_s2] ss:$0 sm:$0xff] }
  0x1e   : > { %v225_v16 = vld [vmem:[%s1218_s22 + $0xa8] sm:$0xff]  ;;  %v227_v17 = vld [vmem:[%s1218_s22 + $0xb8] sm:$0xff]  ;;  %v1309_v0 = vld [vmem:[%s1557_s3] ss:$0 sm:$0xff] }
  0x1f   : > { %v277_v18 = vld [vmem:[%s1218_s22 + $0x248] sm:$0xff]  ;;  %v279_v19 = vld [vmem:[%s1218_s22 + $0x258] sm:$0xff]  ;;  %v315_v22 = vpack.c.bf16 %v227_v17, %v225_v16 }
  0x20   : > { %487 = vmatpush.bf16.msra.mxu0 %v1092_v10  ;;  %1111 = vmatpush.bf16.msra.mxu2 %v1092_v10  ;;  %v313_v10 = vpack.c.bf16 %v223_v5, %v221_v4  ;;  %v341_v23 = vpack.c.bf16 %v279_v19, %v277_v18  ;;  %v229_v28 = vld [vmem:[%s1218_s22 + $0xc8] sm:$0xff]  ;;  %v231_v29 = vld [vmem:[%s1218_s22 + $0xd8] sm:$0xff] }
  0x21   : > { %621 = vmatpush.bf16.msra.mxu1 %v1100_v11  ;;  %1119 = vmatpush.bf16.msra.mxu3 %v1100_v11  ;;  %v339_v11 = vpack.c.bf16 %v275_v7, %v273_v6  ;;  %v281_v30 = vld [vmem:[%s1218_s22 + $0x268] sm:$0xff]  ;;  %v283_v31 = vld [vmem:[%s1218_s22 + $0x278] sm:$0xff]  ;;  %v317_v34 = vpack.c.bf16 %v231_v29, %v229_v28 }
  0x22   : > { %v343_v35 = vpack.c.bf16 %v283_v31, %v281_v30  ;;  %v233_v40 = vld [vmem:[%s1218_s22 + $0xe8] sm:$0xff]  ;;  %v235_v41 = vld [vmem:[%s1218_s22 + $0xf8] sm:$0xff] }
  0x23   : > { %v285_v42 = vld [vmem:[%s1218_s22 + $0x288] sm:$0xff]  ;;  %v287_v43 = vld [vmem:[%s1218_s22 + $0x298] sm:$0xff]  ;;  %v319_v46 = vpack.c.bf16 %v235_v41, %v233_v40  ;;  %v244_v40 = vld [vmem:[%s1218_s22 + $0x140] sm:$0xff] }
  0x24   : > { %488 = vmatpush.bf16.msra.mxu0 %v1091_v12  ;;  %1112 = vmatpush.bf16.msra.mxu2 %v1091_v12  ;;  %v224_v12 = vld [vmem:[%s1218_s22 + $0xa0] sm:$0xff]  ;;  %v345_v47 = vpack.c.bf16 %v287_v43, %v285_v42  ;;  %v237_v52 = vld [vmem:[%s1218_s22 + $0x108] sm:$0xff]  ;;  %v239_v53 = vld [vmem:[%s1218_s22 + $0x118] sm:$0xff] }
  0x25   : > { %622 = vmatpush.bf16.msra.mxu1 %v1099_v13  ;;  %1120 = vmatpush.bf16.msra.mxu3 %v1099_v13  ;;  %v226_v13 = vld [vmem:[%s1218_s22 + $0xb0] sm:$0xff]  ;;  %v289_v54 = vld [vmem:[%s1218_s22 + $0x2a8] sm:$0xff]  ;;  %v291_v55 = vld [vmem:[%s1218_s22 + $0x2b8] sm:$0xff] }
  0x26   : > { %v314_v20 = vpack.c.bf16 %v226_v13, %v224_v12  ;;  %v288_v12 = vld [vmem:[%s1218_s22 + $0x2a0] sm:$0xff]  ;;  %v290_v13 = vld [vmem:[%s1218_s22 + $0x2b0] sm:$0xff]  ;;  %v293_v16 = vld [vmem:[%s1218_s22 + $0x2c8] sm:$0xff] }
  0x27   : > { %v295_v17 = vld [vmem:[%s1218_s22 + $0x2d8] sm:$0xff]  ;;  %v246_v41 = vld [vmem:[%s1218_s22 + $0x150] sm:$0xff]  ;;  %v292_v43 = vld [vmem:[%s1218_s22 + $0x2c0] sm:$0xff] }
  0x28   : > { %489 = vmatpush.bf16.msra.mxu0 %v1090_v14  ;;  %1113 = vmatpush.bf16.msra.mxu2 %v1090_v14  ;;  %v272_v14 = vld [vmem:[%s1218_s22 + $0x220] sm:$0xff] }
  0x29   : > { %623 = vmatpush.bf16.msra.mxu1 %v1098_v15  ;;  %1121 = vmatpush.bf16.msra.mxu3 %v1098_v15  ;;  %v274_v15 = vld [vmem:[%s1218_s22 + $0x230] sm:$0xff] }
  0x2a   : > { %v338_v21 = vpack.c.bf16 %v274_v15, %v272_v14  ;;  %v241_v14 = vld [vmem:[%s1218_s22 + $0x128] sm:$0xff]  ;;  %v243_v15 = vld [vmem:[%s1218_s22 + $0x138] sm:$0xff] }
  0x2b   : > { %490 = vmatmul.bf16.vlgmr.msra.gmra.mxu0 %v304_v24  ;;  %550 = vmatmul.bf16.vlgmr.msra.gmra.mxu2 %v328_v25  ;;  %v228_v24 = vld [vmem:[%s1218_s22 + $0xc0] sm:$0xff]  ;;  %v230_v25 = vld [vmem:[%s1218_s22 + $0xd0] sm:$0xff] }
  0x2c   : > { %624 = vmatmul.bf16.vlgmr.msra.gmra.mxu1 %v305_v26  ;;  %689 = vmatmul.bf16.vlgmr.msra.gmra.mxu3 %v331_v27  ;;  %v276_v26 = vld [vmem:[%s1218_s22 + $0x240] sm:$0xff]  ;;  %v278_v27 = vld [vmem:[%s1218_s22 + $0x250] sm:$0xff]  ;;  %v316_v32 = vpack.c.bf16 %v230_v25, %v228_v24  ;;  %v323_v25 = vpack.c.bf16 %v243_v15, %v241_v14 }
  0x2d   : > { %v340_v33 = vpack.c.bf16 %v278_v27, %v276_v26  ;;  %v349_v26 = vpack.c.bf16 %v295_v17, %v293_v16  ;;  %v248_v15 = vld [vmem:[%s1218_s22 + $0x160] sm:$0xff]  ;;  %v250_v16 = vld [vmem:[%s1218_s22 + $0x170] sm:$0xff] }
  0x3b   : > { %495 = vmatmul.bf16.gmra.mxu0 %v306_v36  ;;  %555 = vmatmul.bf16.gmra.mxu2 %v330_v37  ;;  %v232_v36 = vld [vmem:[%s1218_s22 + $0xe0] sm:$0xff]  ;;  %v234_v37 = vld [vmem:[%s1218_s22 + $0xf0] sm:$0xff] }
  0x3c   : > { %629 = vmatmul.bf16.gmra.mxu1 %v307_v38  ;;  %694 = vmatmul.bf16.gmra.mxu3 %v333_v39  ;;  %v280_v38 = vld [vmem:[%s1218_s22 + $0x260] sm:$0xff]  ;;  %v282_v39 = vld [vmem:[%s1218_s22 + $0x270] sm:$0xff]  ;;  %v318_v44 = vpack.c.bf16 %v234_v37, %v232_v36 }
  0x3d   : > { %v342_v45 = vpack.c.bf16 %v282_v39, %v280_v38 }
  0x4b   : > { %500 = vmatmul.bf16.gmra.mxu0 %v308_v48  ;;  %560 = vmatmul.bf16.gmra.mxu2 %v332_v49  ;;  %v236_v48 = vld [vmem:[%s1218_s22 + $0x100] sm:$0xff]  ;;  %v238_v49 = vld [vmem:[%s1218_s22 + $0x110] sm:$0xff] }
  0x4c   : > { %634 = vmatmul.bf16.gmra.mxu1 %v309_v50  ;;  %699 = vmatmul.bf16.gmra.mxu3 %v335_v51  ;;  %v284_v50 = vld [vmem:[%s1218_s22 + $0x280] sm:$0xff]  ;;  %v286_v51 = vld [vmem:[%s1218_s22 + $0x290] sm:$0xff]  ;;  %v320_v56 = vpack.c.bf16 %v238_v49, %v236_v48  ;;  %v297_v48 = vld [vmem:[%s1218_s22 + $0x2e8] sm:$0xff] }
  0x4d   : > { %v344_v57 = vpack.c.bf16 %v286_v51, %v284_v50  ;;  %v299_v49 = vld [vmem:[%s1218_s22 + $0x2f8] sm:$0xff] }
  0x5b   : > { %505 = vmatmul.bf16.gmra.mxu0 %v310_v60  ;;  %565 = vmatmul.bf16.gmra.mxu2 %v334_v61  ;;  %v321_v60 = vpack.c.bf16 %v239_v53, %v237_v52  ;;  %v347_v61 = vpack.c.bf16 %v291_v55, %v289_v54  ;;  %v324_v53 = vpack.c.bf16 %v246_v41, %v244_v40 }
  0x5c   : > { %639 = vmatmul.bf16.gmra.mxu1 %v311_v62  ;;  %704 = vmatmul.bf16.gmra.mxu3 %v337_v63 }
  0x6b   : > { %510 = vmatmul.bf16.gmra.mxu0 %v312_v8  ;;  %570 = vmatmul.bf16.gmra.mxu2 %v336_v9  ;;  %v240_v9 = vld [vmem:[%s1218_s22 + $0x120] sm:$0xff] }
  0x6c   : > { %644 = vmatmul.bf16.gmra.mxu1 %v313_v10  ;;  %709 = vmatmul.bf16.gmra.mxu3 %v339_v11  ;;  %v242_v10 = vld [vmem:[%s1218_s22 + $0x130] sm:$0xff] }
  0x7b   : > { %515 = vmatmul.bf16.gmra.mxu0 %v314_v20  ;;  %575 = vmatmul.bf16.gmra.mxu2 %v338_v21  ;;  %v322_v20 = vpack.c.bf16 %v242_v10, %v240_v9  ;;  %v346_v21 = vpack.c.bf16 %v290_v13, %v288_v12 }
  0x7c   : > { %649 = vmatmul.bf16.gmra.mxu1 %v315_v22  ;;  %714 = vmatmul.bf16.gmra.mxu3 %v341_v23 }
  0x8b   : > { %520 = vmatmul.bf16.gmra.mxu0 %v316_v32  ;;  %580 = vmatmul.bf16.gmra.mxu2 %v340_v33 }
  0x8c   : > { %654 = vmatmul.bf16.gmra.mxu1 %v317_v34  ;;  %719 = vmatmul.bf16.gmra.mxu3 %v343_v35 }
  0x9b   : > { %525 = vmatmul.bf16.gmra.mxu0 %v318_v44  ;;  %585 = vmatmul.bf16.gmra.mxu2 %v342_v45  ;;  %v294_v44 = vld [vmem:[%s1218_s22 + $0x2d0] sm:$0xff]  ;;  %v245_v45 = vld [vmem:[%s1218_s22 + $0x148] sm:$0xff] }
  0x9c   : > { %659 = vmatmul.bf16.gmra.mxu1 %v319_v46  ;;  %724 = vmatmul.bf16.gmra.mxu3 %v345_v47  ;;  %v247_v47 = vld [vmem:[%s1218_s22 + $0x158] sm:$0xff]  ;;  %v348_v54 = vpack.c.bf16 %v294_v44, %v292_v43 }
  0xa8   : > { %v491_v58 = vpop.f32.mrf.mxu0 }
  0xa9   : > { %v625_v62 = vpop.f32.mrf.mxu1 }
  0xaa   : > { %v626_v63 = vadd.f32 %v625_v62, %v491_v58  ;;  %v325_v58 = vpack.c.bf16 %v247_v47, %v245_v45 }
  0xab   : > { %530 = vmatmul.bf16.gmra.mxu0 %v320_v56  ;;  %590 = vmatmul.bf16.gmra.mxu2 %v344_v57 }
  0xac   : > { %v754_v1 = vmul.f32 %v1304_v59, %v626_v63  ;;  %664 = vmatmul.bf16.gmra.mxu1 %v321_v60  ;;  %729 = vmatmul.bf16.gmra.mxu3 %v347_v61  ;;  %v351_v60 = vpack.c.bf16 %v299_v49, %v297_v48 }
  0xae   : > { %v808_v2 = vadd.f32 %v1309_v0, %v754_v1  ;;  %v1314_v3 = vpop.f32.mrf.mxu2 }
  0xaf   : > { %v690_v4 = vpop.f32.mrf.mxu3 }
  0xb0   : > { %v858_v5 = vmax.f32 %v808_v2, 0.0  ;;  %v493_v6 = vpop.f32.mrf.mxu0 }
  0xb1   : > { %v627_v7 = vpop.f32.mrf.mxu1 }
  0xb2   : > { %909 = vst.msk [vmem:[%s1319_s11] sm:$0xff] %vm908_vm0, %v858_v5  ;;  %v628_v8 = vadd.f32 %v627_v7, %v493_v6 }
  0xb4   : > { %v755_v11 = vmul.f32 %v1304_v59, %v628_v8 }
  0xb6   : > { %v809_v18 = vadd.f32 %v1309_v0, %v755_v11  ;;  %v1333_v19 = vpop.f32.mrf.mxu2 }
  0xb7   : > { %v692_v22 = vpop.f32.mrf.mxu3 }
  0xb8   : > { %v859_v23 = vmax.f32 %v809_v18, 0.0  ;;  %v496_v24 = vpop.f32.mrf.mxu0  ;;  %v296_v18 = vld [vmem:[%s1218_s22 + $0x2e0] sm:$0xff] }
  0xb9   : > { %v630_v27 = vpop.f32.mrf.mxu1 }
  0xba   : > { %910 = vst.msk [vmem:[%s1319_s11 + $0x8] sm:$0xff] %vm908_vm0, %v859_v23  ;;  %v631_v28 = vadd.f32 %v630_v27, %v496_v24  ;;  %v251_v23 = vld [vmem:[%s1218_s22 + $0x178] sm:$0xff]  ;;  %v301_v24 = vld [vmem:[%s1218_s22 + $0x308] sm:$0xff] }
  0xbb   : > { %535 = vmatmul.bf16.gmra.mxu0 %v322_v20  ;;  %595 = vmatmul.bf16.gmra.mxu2 %v346_v21  ;;  %v298_v20 = vld [vmem:[%s1218_s22 + $0x2f0] sm:$0xff]  ;;  %v249_v21 = vld [vmem:[%s1218_s22 + $0x168] sm:$0xff] }
  0xbc   : > { %v756_v29 = vmul.f32 %v1304_v59, %v631_v28  ;;  %669 = vmatmul.bf16.gmra.mxu1 %v323_v25  ;;  %734 = vmatmul.bf16.gmra.mxu3 %v349_v26  ;;  %v303_v25 = vld [vmem:[%s1218_s22 + $0x318] sm:$0xff] }
  0xbe   : > { %v810_v30 = vadd.f32 %v1309_v0, %v756_v29  ;;  %v556_v31 = vpop.f32.mrf.mxu2  ;;  %v326_v29 = vpack.c.bf16 %v250_v16, %v248_v15 }
  0xbf   : > { %v691_v32 = vadd.f32 %v690_v4, %v556_v31  ;;  %v695_v33 = vpop.f32.mrf.mxu3 }
  0xc0   : > { %v860_v34 = vmax.f32 %v810_v30, 0.0  ;;  %v498_v35 = vpop.f32.mrf.mxu0  ;;  %v350_v30 = vpack.c.bf16 %v298_v20, %v296_v18 }
  0xc1   : > { %v780_v36 = vmul.f32 %v1304_v59, %v691_v32  ;;  %v632_v37 = vpop.f32.mrf.mxu1 }
  0xc2   : > { %911 = vst.msk [vmem:[%s1319_s11 + $0x10] sm:$0xff] %vm908_vm0, %v860_v34  ;;  %v633_v38 = vadd.f32 %v632_v37, %v498_v35  ;;  %v327_v34 = vpack.c.bf16 %v251_v23, %v249_v21  ;;  %v353_v35 = vpack.c.bf16 %v303_v25, %v301_v24 }
  0xc3   : > { %v834_v39 = vadd.f32 %v1309_v0, %v780_v36 }
  0xc4   : > { %v757_v42 = vmul.f32 %v1304_v59, %v633_v38 }
  0xc5   : > { %v884_v46 = vmax.f32 %v834_v39, 0.0 }
  0xc6   : > { %v811_v50 = vadd.f32 %v1309_v0, %v757_v42  ;;  %v558_v51 = vpop.f32.mrf.mxu2 }
  0xc7   : > { %935 = vst.msk [vmem:[%s1319_s11 + $0xd0] sm:$0xff] %vm908_vm0, %v884_v46  ;;  %v693_v52 = vadd.f32 %v692_v22, %v558_v51  ;;  %v697_v55 = vpop.f32.mrf.mxu3 }
  0xc8   : > { %v861_v56 = vmax.f32 %v811_v50, 0.0  ;;  %v501_v57 = vpop.f32.mrf.mxu0 }
  0xc9   : > { %v781_v61 = vmul.f32 %v1304_v59, %v693_v52  ;;  %v635_v62 = vpop.f32.mrf.mxu1 }
  0xca   : > { %912 = vst.msk [vmem:[%s1319_s11 + $0x18] sm:$0xff] %vm908_vm0, %v861_v56  ;;  %v636_v63 = vadd.f32 %v635_v62, %v501_v57  ;;  %v253_v56 = vld [vmem:[%s1218_s22 + $0x188] sm:$0xff]  ;;  %v255_v57 = vld [vmem:[%s1218_s22 + $0x198] sm:$0xff] }
  0xcb   : > { %v835_v1 = vadd.f32 %v1309_v0, %v781_v61  ;;  %540 = vmatmul.bf16.gmra.mxu0 %v324_v53  ;;  %600 = vmatmul.bf16.gmra.mxu2 %v348_v54  ;;  %v300_v53 = vld [vmem:[%s1218_s22 + $0x300] sm:$0xff]  ;;  %v302_v54 = vld [vmem:[%s1218_s22 + $0x310] sm:$0xff] }
  0xcc   : > { %v758_v2 = vmul.f32 %v1304_v59, %v636_v63  ;;  %674 = vmatmul.bf16.gmra.mxu1 %v325_v58  ;;  %739 = vmatmul.bf16.gmra.mxu3 %v351_v60  ;;  %v352_v62 = vpack.c.bf16 %v302_v54, %v300_v53 }
  0xcd   : > { %v885_v4 = vmax.f32 %v835_v1, 0.0 }
  0xce   : > { %v812_v5 = vadd.f32 %v1309_v0, %v758_v2  ;;  %v561_v6 = vpop.f32.mrf.mxu2 }
  0xcf   : > { %936 = vst.msk [vmem:[%s1319_s11 + $0xd8] sm:$0xff] %vm908_vm0, %v885_v4  ;;  %v696_v7 = vadd.f32 %v695_v33, %v561_v6  ;;  %v700_v8 = vpop.f32.mrf.mxu3  ;;  %v329_v4 = vpack.c.bf16 %v255_v57, %v253_v56 }
  0xd0   : > { %v862_v9 = vmax.f32 %v812_v5, 0.0  ;;  %v503_v10 = vpop.f32.mrf.mxu0 }
  0xd1   : > { %v782_v11 = vmul.f32 %v1304_v59, %v696_v7  ;;  %v637_v12 = vpop.f32.mrf.mxu1 }
  0xd2   : > { %913 = vst.msk [vmem:[%s1319_s11 + $0x20] sm:$0xff] %vm908_vm0, %v862_v9  ;;  %v638_v13 = vadd.f32 %v637_v12, %v503_v10 }
  0xd3   : > { %v836_v14 = vadd.f32 %v1309_v0, %v782_v11 }
  0xd4   : > { %v759_v17 = vmul.f32 %v1304_v59, %v638_v13 }
  0xd5   : > { %v886_v22 = vmax.f32 %v836_v14, 0.0 }
  0xd6   : > { %v813_v26 = vadd.f32 %v1309_v0, %v759_v17  ;;  %v563_v27 = vpop.f32.mrf.mxu2 }
  0xd7   : > { %937 = vst.msk [vmem:[%s1319_s11 + $0xe0] sm:$0xff] %vm908_vm0, %v886_v22  ;;  %v698_v28 = vadd.f32 %v697_v55, %v563_v27  ;;  %v702_v31 = vpop.f32.mrf.mxu3 }
  0xd8   : > { %v863_v32 = vmax.f32 %v813_v26, 0.0  ;;  %v506_v33 = vpop.f32.mrf.mxu0 }
  0xd9   : > { %v783_v36 = vmul.f32 %v1304_v59, %v698_v28  ;;  %v640_v37 = vpop.f32.mrf.mxu1 }
  0xda   : > { %914 = vst.msk [vmem:[%s1319_s11 + $0x28] sm:$0xff] %vm908_vm0, %v863_v32  ;;  %v641_v38 = vadd.f32 %v640_v37, %v506_v33 }
  0xdb   : > { %v837_v39 = vadd.f32 %v1309_v0, %v783_v36  ;;  %545 = vmatmul.bf16.gmra.mxu0 %v326_v29  ;;  %605 = vmatmul.bf16.gmra.mxu2 %v350_v30 }
  0xdc   : > { %v760_v40 = vmul.f32 %v1304_v59, %v641_v38  ;;  %679 = vmatmul.bf16.gmra.mxu1 %v327_v34  ;;  %744 = vmatmul.bf16.gmra.mxu3 %v353_v35 }
  0xdd   : > { %v887_v41 = vmax.f32 %v837_v39, 0.0 }
  0xde   : > { %v814_v42 = vadd.f32 %v1309_v0, %v760_v40  ;;  %v566_v43 = vpop.f32.mrf.mxu2 }
  0xdf   : > { %938 = vst.msk [vmem:[%s1319_s11 + $0xe8] sm:$0xff] %vm908_vm0, %v887_v41  ;;  %v701_v44 = vadd.f32 %v700_v8, %v566_v43  ;;  %v705_v45 = vpop.f32.mrf.mxu3 }
  0xe0   : > { %v864_v46 = vmax.f32 %v814_v42, 0.0  ;;  %v508_v47 = vpop.f32.mrf.mxu0 }
  0xe1   : > { %v784_v48 = vmul.f32 %v1304_v59, %v701_v44  ;;  %v642_v49 = vpop.f32.mrf.mxu1 }
  0xe2   : > { %915 = vst.msk [vmem:[%s1319_s11 + $0x30] sm:$0xff] %vm908_vm0, %v864_v46  ;;  %v643_v50 = vadd.f32 %v642_v49, %v508_v47 }
  0xe3   : > { %v838_v51 = vadd.f32 %v1309_v0, %v784_v48 }
  0xe4   : > { %v761_v52 = vmul.f32 %v1304_v59, %v643_v50 }
  0xe5   : > { %v888_v55 = vmax.f32 %v838_v51, 0.0 }
  0xe6   : > { %v815_v58 = vadd.f32 %v1309_v0, %v761_v52  ;;  %v568_v60 = vpop.f32.mrf.mxu2 }
  0xe7   : > { %939 = vst.msk [vmem:[%s1319_s11 + $0xf0] sm:$0xff] %vm908_vm0, %v888_v55  ;;  %v703_v61 = vadd.f32 %v702_v31, %v568_v60  ;;  %v707_v63 = vpop.f32.mrf.mxu3 }
  0xe8   : > { %v865_v1 = vmax.f32 %v815_v58, 0.0  ;;  %v511_v2 = vpop.f32.mrf.mxu0 }
  0xe9   : > { %v785_v5 = vmul.f32 %v1304_v59, %v703_v61  ;;  %v645_v6 = vpop.f32.mrf.mxu1 }
  0xea   : > { %916 = vst.msk [vmem:[%s1319_s11 + $0x38] sm:$0xff] %vm908_vm0, %v865_v1  ;;  %v646_v7 = vadd.f32 %v645_v6, %v511_v2 }
  0xeb   : > { %v839_v8 = vadd.f32 %v1309_v0, %v785_v5  ;;  %610 = vmatmul.bf16.gmra.mxu2 %v352_v62 }
  0xec   : > { %v762_v9 = vmul.f32 %v1304_v59, %v646_v7  ;;  %684 = vmatmul.bf16.gmra.mxu1 %v329_v4 }
  0xed   : > { %v889_v10 = vmax.f32 %v839_v8, 0.0 }
  0xee   : > { %v816_v11 = vadd.f32 %v1309_v0, %v762_v9  ;;  %v571_v12 = vpop.f32.mrf.mxu2 }
  0xef   : > { %940 = vst.msk [vmem:[%s1319_s11 + $0xf8] sm:$0xff] %vm908_vm0, %v889_v10  ;;  %v706_v13 = vadd.f32 %v705_v45, %v571_v12  ;;  %v710_v14 = vpop.f32.mrf.mxu3 }
  0xf0   : > { %v866_v15 = vmax.f32 %v816_v11, 0.0  ;;  %v513_v16 = vpop.f32.mrf.mxu0 }
  0xf1   : > { %v786_v17 = vmul.f32 %v1304_v59, %v706_v13  ;;  %v647_v18 = vpop.f32.mrf.mxu1 }
  0xf2   : > { %917 = vst.msk [vmem:[%s1319_s11 + $0x40] sm:$0xff] %vm908_vm0, %v866_v15  ;;  %v648_v20 = vadd.f32 %v647_v18, %v513_v16 }
  0xf3   : > { %v840_v21 = vadd.f32 %v1309_v0, %v786_v17 }
  0xf4   : > { %v763_v22 = vmul.f32 %v1304_v59, %v648_v20 }
  0xf5   : > { %v890_v23 = vmax.f32 %v840_v21, 0.0 }
  0xf6   : > { %v817_v24 = vadd.f32 %v1309_v0, %v763_v22  ;;  %v573_v25 = vpop.f32.mrf.mxu2 }
  0xf7   : > { %941 = vst.msk [vmem:[%s1319_s11 + $0x100] sm:$0xff] %vm908_vm0, %v890_v23  ;;  %v708_v26 = vadd.f32 %v707_v63, %v573_v25  ;;  %v712_v27 = vpop.f32.mrf.mxu3 }
  0xf8   : > { %v867_v28 = vmax.f32 %v817_v24, 0.0  ;;  %v516_v29 = vpop.f32.mrf.mxu0 }
  0xf9   : > { %v787_v30 = vmul.f32 %v1304_v59, %v708_v26  ;;  %v650_v31 = vpop.f32.mrf.mxu1 }
  0xfa   : > { %918 = vst.msk [vmem:[%s1319_s11 + $0x48] sm:$0xff] %vm908_vm0, %v867_v28  ;;  %v651_v32 = vadd.f32 %v650_v31, %v516_v29 }
  0xfb   : > { %v841_v33 = vadd.f32 %v1309_v0, %v787_v30 }
  0xfc   : > { %v764_v34 = vmul.f32 %v1304_v59, %v651_v32 }
  0xfd   : > { %v891_v35 = vmax.f32 %v841_v33, 0.0 }
  0xfe   : > { %v818_v36 = vadd.f32 %v1309_v0, %v764_v34  ;;  %v576_v37 = vpop.f32.mrf.mxu2 }
  0xff   : > { %942 = vst.msk [vmem:[%s1319_s11 + $0x108] sm:$0xff] %vm908_vm0, %v891_v35  ;;  %v711_v38 = vadd.f32 %v710_v14, %v576_v37  ;;  %v715_v39 = vpop.f32.mrf.mxu3 }
 0x100   : > { %v868_v40 = vmax.f32 %v818_v36, 0.0  ;;  %v518_v41 = vpop.f32.mrf.mxu0 }
 0x101   : > { %v788_v42 = vmul.f32 %v1304_v59, %v711_v38  ;;  %v652_v43 = vpop.f32.mrf.mxu1 }
 0x102   : > { %919 = vst.msk [vmem:[%s1319_s11 + $0x50] sm:$0xff] %vm908_vm0, %v868_v40  ;;  %v653_v44 = vadd.f32 %v652_v43, %v518_v41 }
 0x103   : > { %v842_v45 = vadd.f32 %v1309_v0, %v788_v42 }
 0x104   : > { %v765_v46 = vmul.f32 %v1304_v59, %v653_v44 }
 0x105   : > { %v892_v47 = vmax.f32 %v842_v45, 0.0 }
 0x106   : > { %v819_v48 = vadd.f32 %v1309_v0, %v765_v46  ;;  %v578_v49 = vpop.f32.mrf.mxu2 }
 0x107   : > { %943 = vst.msk [vmem:[%s1319_s11 + $0x110] sm:$0xff] %vm908_vm0, %v892_v47  ;;  %v713_v50 = vadd.f32 %v712_v27, %v578_v49  ;;  %v717_v51 = vpop.f32.mrf.mxu3 }
 0x108   : > { %v869_v52 = vmax.f32 %v819_v48, 0.0  ;;  %v521_v53 = vpop.f32.mrf.mxu0 }
 0x109   : > { %v789_v54 = vmul.f32 %v1304_v59, %v713_v50  ;;  %v655_v55 = vpop.f32.mrf.mxu1 }
 0x10a   : > { %920 = vst.msk [vmem:[%s1319_s11 + $0x58] sm:$0xff] %vm908_vm0, %v869_v52  ;;  %v656_v56 = vadd.f32 %v655_v55, %v521_v53 }
 0x10b   : > { %v843_v57 = vadd.f32 %v1309_v0, %v789_v54 }
 0x10c   : > { %v766_v58 = vmul.f32 %v1304_v59, %v656_v56 }
 0x10d   : > { %v893_v60 = vmax.f32 %v843_v57, 0.0 }
 0x10e   : > { %v820_v61 = vadd.f32 %v1309_v0, %v766_v58  ;;  %v581_v62 = vpop.f32.mrf.mxu2 }
 0x10f   : > { %944 = vst.msk [vmem:[%s1319_s11 + $0x118] sm:$0xff] %vm908_vm0, %v893_v60  ;;  %v716_v63 = vadd.f32 %v715_v39, %v581_v62  ;;  %v720_v1 = vpop.f32.mrf.mxu3 }
 0x110   : > { %v870_v2 = vmax.f32 %v820_v61, 0.0  ;;  %v523_v4 = vpop.f32.mrf.mxu0 }
 0x111   : > { %v790_v5 = vmul.f32 %v1304_v59, %v716_v63  ;;  %v657_v6 = vpop.f32.mrf.mxu1 }
 0x112   : > { %921 = vst.msk [vmem:[%s1319_s11 + $0x60] sm:$0xff] %vm908_vm0, %v870_v2  ;;  %v658_v7 = vadd.f32 %v657_v6, %v523_v4 }
 0x113   : > { %v844_v8 = vadd.f32 %v1309_v0, %v790_v5 }
 0x114   : > { %v767_v9 = vmul.f32 %v1304_v59, %v658_v7 }
 0x115   : > { %v894_v10 = vmax.f32 %v844_v8, 0.0 }
 0x116   : > { %v821_v11 = vadd.f32 %v1309_v0, %v767_v9  ;;  %v583_v12 = vpop.f32.mrf.mxu2 }
 0x117   : > { %945 = vst.msk [vmem:[%s1319_s11 + $0x120] sm:$0xff] %vm908_vm0, %v894_v10  ;;  %v718_v13 = vadd.f32 %v717_v51, %v583_v12  ;;  %v722_v14 = vpop.f32.mrf.mxu3 }
 0x118   : > { %v871_v15 = vmax.f32 %v821_v11, 0.0  ;;  %v526_v16 = vpop.f32.mrf.mxu0 }
 0x119   : > { %v791_v17 = vmul.f32 %v1304_v59, %v718_v13  ;;  %v660_v18 = vpop.f32.mrf.mxu1 }
 0x11a   : > { %922 = vst.msk [vmem:[%s1319_s11 + $0x68] sm:$0xff] %vm908_vm0, %v871_v15  ;;  %v661_v20 = vadd.f32 %v660_v18, %v526_v16 }
 0x11b   : > { %v845_v21 = vadd.f32 %v1309_v0, %v791_v17 }
 0x11c   : > { %v768_v22 = vmul.f32 %v1304_v59, %v661_v20 }
 0x11d   : > { %v895_v23 = vmax.f32 %v845_v21, 0.0 }
 0x11e   : > { %v822_v24 = vadd.f32 %v1309_v0, %v768_v22  ;;  %v586_v25 = vpop.f32.mrf.mxu2 }
 0x11f   : > { %946 = vst.msk [vmem:[%s1319_s11 + $0x128] sm:$0xff] %vm908_vm0, %v895_v23  ;;  %v721_v26 = vadd.f32 %v720_v1, %v586_v25  ;;  %v725_v27 = vpop.f32.mrf.mxu3 }
 0x120   : > { %v872_v28 = vmax.f32 %v822_v24, 0.0  ;;  %v528_v29 = vpop.f32.mrf.mxu0 }
 0x121   : > { %v792_v30 = vmul.f32 %v1304_v59, %v721_v26  ;;  %v662_v31 = vpop.f32.mrf.mxu1 }
 0x122   : > { %923 = vst.msk [vmem:[%s1319_s11 + $0x70] sm:$0xff] %vm908_vm0, %v872_v28  ;;  %v663_v32 = vadd.f32 %v662_v31, %v528_v29 }
 0x123   : > { %v846_v33 = vadd.f32 %v1309_v0, %v792_v30 }
 0x124   : > { %v769_v34 = vmul.f32 %v1304_v59, %v663_v32 }
 0x125   : > { %v896_v35 = vmax.f32 %v846_v33, 0.0 }
 0x126   : > { %v823_v36 = vadd.f32 %v1309_v0, %v769_v34  ;;  %v588_v37 = vpop.f32.mrf.mxu2 }
 0x127   : > { %947 = vst.msk [vmem:[%s1319_s11 + $0x130] sm:$0xff] %vm908_vm0, %v896_v35  ;;  %v723_v38 = vadd.f32 %v722_v14, %v588_v37  ;;  %v727_v39 = vpop.f32.mrf.mxu3 }
 0x128   : > { %v873_v40 = vmax.f32 %v823_v36, 0.0  ;;  %v531_v41 = vpop.f32.mrf.mxu0 }
 0x129   : > { %v793_v42 = vmul.f32 %v1304_v59, %v723_v38  ;;  %v665_v43 = vpop.f32.mrf.mxu1 }
 0x12a   : > { %924 = vst.msk [vmem:[%s1319_s11 + $0x78] sm:$0xff] %vm908_vm0, %v873_v40  ;;  %v666_v44 = vadd.f32 %v665_v43, %v531_v41 }
 0x12b   : > { %v847_v45 = vadd.f32 %v1309_v0, %v793_v42 }
 0x12c   : > { %v770_v46 = vmul.f32 %v1304_v59, %v666_v44 }
 0x12d   : > { %v897_v47 = vmax.f32 %v847_v45, 0.0 }
 0x12e   : > { %v824_v48 = vadd.f32 %v1309_v0, %v770_v46  ;;  %v591_v49 = vpop.f32.mrf.mxu2 }
 0x12f   : > { %948 = vst.msk [vmem:[%s1319_s11 + $0x138] sm:$0xff] %vm908_vm0, %v897_v47  ;;  %v726_v50 = vadd.f32 %v725_v27, %v591_v49  ;;  %v730_v53 = vpop.f32.mrf.mxu3 }
 0x130   : > { %v874_v51 = vmax.f32 %v824_v48, 0.0  ;;  %v533_v52 = vpop.f32.mrf.mxu0 }
 0x131   : > { %v794_v54 = vmul.f32 %v1304_v59, %v726_v50  ;;  %v667_v55 = vpop.f32.mrf.mxu1 }
 0x132   : > { %925 = vst.msk [vmem:[%s1319_s11 + $0x80] sm:$0xff] %vm908_vm0, %v874_v51  ;;  %v668_v56 = vadd.f32 %v667_v55, %v533_v52 }
 0x133   : > { %v848_v57 = vadd.f32 %v1309_v0, %v794_v54 }
 0x134   : > { %v771_v58 = vmul.f32 %v1304_v59, %v668_v56 }
 0x135   : > { %v898_v60 = vmax.f32 %v848_v57, 0.0 }
 0x136   : > { %v825_v61 = vadd.f32 %v1309_v0, %v771_v58  ;;  %v593_v62 = vpop.f32.mrf.mxu2 }
 0x137   : > { %949 = vst.msk [vmem:[%s1319_s11 + $0x140] sm:$0xff] %vm908_vm0, %v898_v60  ;;  %v728_v63 = vadd.f32 %v727_v39, %v593_v62  ;;  %v732_v7 = vpop.f32.mrf.mxu3 }
 0x138   : > { %v875_v1 = vmax.f32 %v825_v61, 0.0  ;;  %v536_v2 = vpop.f32.mrf.mxu0 }
 0x139   : > { %v795_v4 = vmul.f32 %v1304_v59, %v728_v63  ;;  %v670_v5 = vpop.f32.mrf.mxu1 }
 0x13a   : > { %926 = vst.msk [vmem:[%s1319_s11 + $0x88] sm:$0xff] %vm908_vm0, %v875_v1  ;;  %v671_v6 = vadd.f32 %v670_v5, %v536_v2 }
 0x13b   : > { %v849_v8 = vadd.f32 %v1309_v0, %v795_v4 }
 0x13c   : > { %v772_v9 = vmul.f32 %v1304_v59, %v671_v6 }
 0x13d   : > { %v899_v10 = vmax.f32 %v849_v8, 0.0 }
 0x13e   : > { %v826_v11 = vadd.f32 %v1309_v0, %v772_v9  ;;  %v596_v12 = vpop.f32.mrf.mxu2 }
 0x13f   : > { %950 = vst.msk [vmem:[%s1319_s11 + $0x148] sm:$0xff] %vm908_vm0, %v899_v10  ;;  %v731_v13 = vadd.f32 %v730_v53, %v596_v12  ;;  %v735_v22 = vpop.f32.mrf.mxu3 }
 0x140   : > { %v876_v14 = vmax.f32 %v826_v11, 0.0  ;;  %v538_v15 = vpop.f32.mrf.mxu0 }
 0x141   : > { %v796_v16 = vmul.f32 %v1304_v59, %v731_v13  ;;  %v672_v17 = vpop.f32.mrf.mxu1 }
 0x142   : > { %927 = vst.msk [vmem:[%s1319_s11 + $0x90] sm:$0xff] %vm908_vm0, %v876_v14  ;;  %v673_v18 = vadd.f32 %v672_v17, %v538_v15 }
 0x143   : > { %v850_v20 = vadd.f32 %v1309_v0, %v796_v16 }
 0x144   : > { %v773_v21 = vmul.f32 %v1304_v59, %v673_v18 }
 0x145   : > { %v900_v23 = vmax.f32 %v850_v20, 0.0 }
 0x146   : > { %v827_v24 = vadd.f32 %v1309_v0, %v773_v21  ;;  %v598_v25 = vpop.f32.mrf.mxu2 }
 0x147   : > { %951 = vst.msk [vmem:[%s1319_s11 + $0x150] sm:$0xff] %vm908_vm0, %v900_v23  ;;  %v733_v26 = vadd.f32 %v732_v7, %v598_v25  ;;  %v737_v37 = vpop.f32.mrf.mxu3 }
 0x148   : > { %v877_v27 = vmax.f32 %v827_v24, 0.0  ;;  %v541_v28 = vpop.f32.mrf.mxu0 }
 0x149   : > { %v797_v29 = vmul.f32 %v1304_v59, %v733_v26  ;;  %v675_v30 = vpop.f32.mrf.mxu1 }
 0x14a   : > { %928 = vst.msk [vmem:[%s1319_s11 + $0x98] sm:$0xff] %vm908_vm0, %v877_v27  ;;  %v676_v31 = vadd.f32 %v675_v30, %v541_v28 }
 0x14b   : > { %v851_v32 = vadd.f32 %v1309_v0, %v797_v29 }
 0x14c   : > { %v774_v33 = vmul.f32 %v1304_v59, %v676_v31 }
 0x14d   : > { %v901_v34 = vmax.f32 %v851_v32, 0.0 }
 0x14e   : > { %v828_v35 = vadd.f32 %v1309_v0, %v774_v33  ;;  %v601_v36 = vpop.f32.mrf.mxu2 }
 0x14f   : > { %952 = vst.msk [vmem:[%s1319_s11 + $0x158] sm:$0xff] %vm908_vm0, %v901_v34  ;;  %v736_v38 = vadd.f32 %v735_v22, %v601_v36  ;;  %v740_v51 = vpop.f32.mrf.mxu3 }
 0x150   : > { %v878_v39 = vmax.f32 %v828_v35, 0.0  ;;  %v543_v40 = vpop.f32.mrf.mxu0 }
 0x151   : > { %v798_v41 = vmul.f32 %v1304_v59, %v736_v38  ;;  %v677_v42 = vpop.f32.mrf.mxu1 }
 0x152   : > { %929 = vst.msk [vmem:[%s1319_s11 + $0xa0] sm:$0xff] %vm908_vm0, %v878_v39  ;;  %v678_v43 = vadd.f32 %v677_v42, %v543_v40 }
 0x153   : > { %v852_v44 = vadd.f32 %v1309_v0, %v798_v41 }
 0x154   : > { %v775_v45 = vmul.f32 %v1304_v59, %v678_v43 }
 0x155   : > { %v902_v46 = vmax.f32 %v852_v44, 0.0 }
 0x156   : > { %v829_v47 = vadd.f32 %v1309_v0, %v775_v45  ;;  %v603_v48 = vpop.f32.mrf.mxu2 }
 0x157   : > { %953 = vst.msk [vmem:[%s1319_s11 + $0x160] sm:$0xff] %vm908_vm0, %v902_v46  ;;  %v738_v49 = vadd.f32 %v737_v37, %v603_v48  ;;  %v742_v5 = vpop.f32.mrf.mxu3 }
 0x158   : > { %v879_v50 = vmax.f32 %v829_v47, 0.0  ;;  %v546_v52 = vpop.f32.mrf.mxu0 }
 0x159   : > { %v799_v53 = vmul.f32 %v1304_v59, %v738_v49  ;;  %v680_v54 = vpop.f32.mrf.mxu1 }
 0x15a   : > { %930 = vst.msk [vmem:[%s1319_s11 + $0xa8] sm:$0xff] %vm908_vm0, %v879_v50  ;;  %v681_v55 = vadd.f32 %v680_v54, %v546_v52 }
 0x15b   : > { %v853_v56 = vadd.f32 %v1309_v0, %v799_v53 }
 0x15c   : > { %v776_v57 = vmul.f32 %v1304_v59, %v681_v55 }
 0x15d   : > { %v903_v58 = vmax.f32 %v853_v56, 0.0 }
 0x15e   : > { %v830_v60 = vadd.f32 %v1309_v0, %v776_v57  ;;  %v606_v61 = vpop.f32.mrf.mxu2 }
 0x15f   : > { %954 = vst.msk [vmem:[%s1319_s11 + $0x168] sm:$0xff] %vm908_vm0, %v903_v58  ;;  %v741_v62 = vadd.f32 %v740_v51, %v606_v61  ;;  %v745_v18 = vpop.f32.mrf.mxu3 }
 0x160   : > { %v880_v63 = vmax.f32 %v830_v60, 0.0  ;;  %v548_v1 = vpop.f32.mrf.mxu0 }
 0x161   : > { %v800_v2 = vmul.f32 %v1304_v59, %v741_v62  ;;  %v682_v4 = vpop.f32.mrf.mxu1 }
 0x162   : > { %931 = vst.msk [vmem:[%s1319_s11 + $0xb0] sm:$0xff] %vm908_vm0, %v880_v63  ;;  %v683_v6 = vadd.f32 %v682_v4, %v548_v1 }
 0x163   : > { %v854_v7 = vadd.f32 %v1309_v0, %v800_v2 }
 0x164   : > { %v777_v8 = vmul.f32 %v1304_v59, %v683_v6 }
 0x165   : > { %v904_v9 = vmax.f32 %v854_v7, 0.0 }
 0x166   : > { %v831_v10 = vadd.f32 %v1309_v0, %v777_v8  ;;  %v608_v11 = vpop.f32.mrf.mxu2 }
 0x167   : > { %955 = vst.msk [vmem:[%s1319_s11 + $0x170] sm:$0xff] %vm908_vm0, %v904_v9  ;;  %v743_v12 = vadd.f32 %v742_v5, %v608_v11  ;;  %v747_v31 = vpop.f32.mrf.mxu3 }
 0x168   : > { %v881_v13 = vmax.f32 %v831_v10, 0.0 }
 0x169   : > { %v801_v14 = vmul.f32 %v1304_v59, %v743_v12  ;;  %v685_v15 = vpop.f32.mrf.mxu1 }
 0x16a   : > { %932 = vst.msk [vmem:[%s1319_s11 + $0xb8] sm:$0xff] %vm908_vm0, %v881_v13  ;;  %v686_v16 = vadd.f32 %v685_v15, %v1314_v3 }
 0x16b   : > { %v855_v17 = vadd.f32 %v1309_v0, %v801_v14 }
 0x16c   : > { %v778_v20 = vmul.f32 %v1304_v59, %v686_v16 }
 0x16d   : > { %v905_v21 = vmax.f32 %v855_v17, 0.0 }
 0x16e   : > { %v832_v22 = vadd.f32 %v1309_v0, %v778_v20  ;;  %v611_v23 = vpop.f32.mrf.mxu2 }
 0x16f   : > { %956 = vst.msk [vmem:[%s1319_s11 + $0x178] sm:$0xff] %vm908_vm0, %v905_v21  ;;  %v746_v24 = vadd.f32 %v745_v18, %v611_v23 }
 0x170   : > { %v882_v25 = vmax.f32 %v832_v22, 0.0 }
 0x171   : > { %v802_v26 = vmul.f32 %v1304_v59, %v746_v24  ;;  %v687_v27 = vpop.f32.mrf.mxu1 }
 0x172   : > { %933 = vst.msk [vmem:[%s1319_s11 + $0xc0] sm:$0xff] %vm908_vm0, %v882_v25  ;;  %v688_v3 = vadd.f32 %v687_v27, %v1333_v19 }
 0x173   : > { %v856_v28 = vadd.f32 %v1309_v0, %v802_v26 }
 0x174   : > { %v779_v29 = vmul.f32 %v1304_v59, %v688_v3 }
 0x175   : > { %v906_v30 = vmax.f32 %v856_v28, 0.0 }
 0x176   : > { %v833_v32 = vadd.f32 %v1309_v0, %v779_v29  ;;  %v613_v33 = vpop.f32.mrf.mxu2 }
 0x177   : > { %957 = vst.msk [vmem:[%s1319_s11 + $0x180] sm:$0xff] %vm908_vm0, %v906_v30  ;;  %v748_v34 = vadd.f32 %v747_v31, %v613_v33 }
 0x178   : > { %v883_v35 = vmax.f32 %v833_v32, 0.0 }
 0x179   : > { %v803_v36 = vmul.f32 %v1304_v59, %v748_v34 }
 0x17a   : > { %934 = vst.msk [vmem:[%s1319_s11 + $0xc8] sm:$0xff] %vm908_vm0, %v883_v35 }
 0x17b   : > { %v857_v37 = vadd.f32 %v1309_v0, %v803_v36 }
 0x17d   : > { %v907_v19 = vmax.f32 %v857_v37, 0.0 }
 0x17f   : > { %958 = vst.msk [vmem:[%s1319_s11 + $0x188] sm:$0xff] %vm908_vm0, %v907_v19 }
 0x180 PF: > { %s14_s15 = sadd.s32 1, %s1138_s15  }
 0x181   : > { %p11_p4 = scmp.ge.s32.totalorder %s14_s15, 4  }
 0x183   :  { %13 = sbr.rel (!%p11_p4) target bundleno = 1 (0x1), region = 66 }

// kernel: behavioral_net_forward.5
= control target key start
LH: loop header
LB: loop body
LE: loop exit
PB: predicated region body
PF: predicated region fallthrough
CT: control target
= control target key end

     0   :  { %vm800_vm0 = vcmask 523264   ;;  %s1573_s1 = inlined_call_operand.vmem [shape: bf16[512,64], index: 1, kind: input, shape index: {}]   ;;  %s1574_s0 = inlined_call_operand.vmem [shape: f32[200,512], index: 0, kind: input, shape index: {}]   ;;  %s1575_s2 = inlined_call_operand.vmem [shape: f32[1,64], index: 2, kind: input, shape index: {}]   ;;  %s1576_s3 = inlined_call_operand.vmem [shape: f32[1,64], index: 3, kind: input, shape index: {}]   ;;  %s1577_s4 = inlined_call_operand.vmem [shape: f32[200,64], index: 4, kind: output, shape index: {}]  }
   0x1   :  { %v965_v0 = vld [vmem:[%s1573_s1 + $0x38] sm:$0xff]  ;;  %v964_v4 = vld [vmem:[%s1573_s1 + $0x30] sm:$0xff]  ;;  %v963_v8 = vld [vmem:[%s1573_s1 + $0x28] sm:$0xff] }
   0x2   :  { %v973_v1 = vld [vmem:[%s1573_s1 + $0x78] sm:$0xff]  ;;  %425 = vmatpush.bf16.msra.mxu0 %v965_v0  ;;  %v972_v5 = vld [vmem:[%s1573_s1 + $0x70] sm:$0xff]  ;;  %v971_v9 = vld [vmem:[%s1573_s1 + $0x68] sm:$0xff] }
   0x3   :  { %v981_v2 = vld [vmem:[%s1573_s1 + $0xb8] sm:$0xff]  ;;  %498 = vmatpush.bf16.msra.mxu1 %v973_v1  ;;  %v980_v6 = vld [vmem:[%s1573_s1 + $0xb0] sm:$0xff]  ;;  %v979_v10 = vld [vmem:[%s1573_s1 + $0xa8] sm:$0xff] }
   0x4   :  { %v989_v3 = vld [vmem:[%s1573_s1 + $0xf8] sm:$0xff]  ;;  %571 = vmatpush.bf16.msra.mxu2 %v981_v2  ;;  %v988_v7 = vld [vmem:[%s1573_s1 + $0xf0] sm:$0xff]  ;;  %v987_v11 = vld [vmem:[%s1573_s1 + $0xe8] sm:$0xff] }
   0x5   :  { %644 = vmatpush.bf16.msra.mxu3 %v989_v3  ;;  %v962_v12 = vld [vmem:[%s1573_s1 + $0x20] sm:$0xff]  ;;  %v961_v16 = vld [vmem:[%s1573_s1 + $0x18] sm:$0xff]  ;;  %v960_v20 = vld [vmem:[%s1573_s1 + $0x10] sm:$0xff] }
   0x6   :  { %426 = vmatpush.bf16.msra.mxu0 %v964_v4  ;;  %v970_v13 = vld [vmem:[%s1573_s1 + $0x60] sm:$0xff]  ;;  %v969_v17 = vld [vmem:[%s1573_s1 + $0x58] sm:$0xff]  ;;  %v968_v21 = vld [vmem:[%s1573_s1 + $0x50] sm:$0xff] }
   0x7   :  { %499 = vmatpush.bf16.msra.mxu1 %v972_v5  ;;  %v978_v14 = vld [vmem:[%s1573_s1 + $0xa0] sm:$0xff]  ;;  %v977_v18 = vld [vmem:[%s1573_s1 + $0x98] sm:$0xff]  ;;  %v976_v22 = vld [vmem:[%s1573_s1 + $0x90] sm:$0xff] }
   0x8   :  { %572 = vmatpush.bf16.msra.mxu2 %v980_v6  ;;  %v986_v15 = vld [vmem:[%s1573_s1 + $0xe0] sm:$0xff]  ;;  %v985_v19 = vld [vmem:[%s1573_s1 + $0xd8] sm:$0xff]  ;;  %v984_v23 = vld [vmem:[%s1573_s1 + $0xd0] sm:$0xff] }
   0x9   :  { %645 = vmatpush.bf16.msra.mxu3 %v988_v7  ;;  %v959_v24 = vld [vmem:[%s1573_s1 + $0x8] sm:$0xff]  ;;  %v958_v28 = vld [vmem:[%s1573_s1] sm:$0xff]  ;;  %v19_v36 = vld [vmem:[%s1574_s0 + $0x10] sm:$0xff] }
   0xa   :  { %427 = vmatpush.bf16.msra.mxu0 %v963_v8  ;;  %v967_v25 = vld [vmem:[%s1573_s1 + $0x48] sm:$0xff]  ;;  %v966_v29 = vld [vmem:[%s1573_s1 + $0x40] sm:$0xff]  ;;  %v23_v37 = vld [vmem:[%s1574_s0 + $0x30] sm:$0xff] }
   0xb   :  { %500 = vmatpush.bf16.msra.mxu1 %v971_v9  ;;  %v975_v26 = vld [vmem:[%s1573_s1 + $0x88] sm:$0xff]  ;;  %v974_v30 = vld [vmem:[%s1573_s1 + $0x80] sm:$0xff]  ;;  %v20_v38 = vld [vmem:[%s1574_s0 + $0x18] sm:$0xff]  ;;  %v119_v42 = vpack.c.bf16 %v23_v37, %v19_v36 }
   0xc   :  { %573 = vmatpush.bf16.msra.mxu2 %v979_v10  ;;  %v983_v27 = vld [vmem:[%s1573_s1 + $0xc8] sm:$0xff]  ;;  %v982_v31 = vld [vmem:[%s1573_s1 + $0xc0] sm:$0xff]  ;;  %v24_v39 = vld [vmem:[%s1574_s0 + $0x38] sm:$0xff] }
   0xd   :  { %646 = vmatpush.bf16.msra.mxu3 %v987_v11  ;;  %v17_v32 = vld [vmem:[%s1574_s0] sm:$0xff]  ;;  %v18_v34 = vld [vmem:[%s1574_s0 + $0x8] sm:$0xff]  ;;  %v120_v43 = vpack.c.bf16 %v24_v39, %v20_v38  ;;  %v27_v48 = vld [vmem:[%s1574_s0 + $0x50] sm:$0xff] }
   0xe   :  { %428 = vmatpush.bf16.msra.mxu0 %v962_v12  ;;  %v21_v33 = vld [vmem:[%s1574_s0 + $0x20] sm:$0xff]  ;;  %v22_v35 = vld [vmem:[%s1574_s0 + $0x28] sm:$0xff]  ;;  %v31_v49 = vld [vmem:[%s1574_s0 + $0x70] sm:$0xff] }
   0xf   :  { %501 = vmatpush.bf16.msra.mxu1 %v970_v13  ;;  %v117_v40 = vpack.c.bf16 %v21_v33, %v17_v32  ;;  %v118_v41 = vpack.c.bf16 %v22_v35, %v18_v34  ;;  %v25_v44 = vld [vmem:[%s1574_s0 + $0x40] sm:$0xff]  ;;  %v26_v46 = vld [vmem:[%s1574_s0 + $0x48] sm:$0xff]  ;;  %v28_v50 = vld [vmem:[%s1574_s0 + $0x58] sm:$0xff]  ;;  %v123_v54 = vpack.c.bf16 %v31_v49, %v27_v48 }
  0x10   :  { %574 = vmatpush.bf16.msra.mxu2 %v978_v14  ;;  %v29_v45 = vld [vmem:[%s1574_s0 + $0x60] sm:$0xff]  ;;  %v30_v47 = vld [vmem:[%s1574_s0 + $0x68] sm:$0xff]  ;;  %v32_v51 = vld [vmem:[%s1574_s0 + $0x78] sm:$0xff] }
  0x11   :  { %647 = vmatpush.bf16.msra.mxu3 %v986_v15  ;;  %v121_v52 = vpack.c.bf16 %v29_v45, %v25_v44  ;;  %v122_v53 = vpack.c.bf16 %v30_v47, %v26_v46  ;;  %v124_v55 = vpack.c.bf16 %v32_v51, %v28_v50  ;;  %v33_v56 = vld [vmem:[%s1574_s0 + $0x80] sm:$0xff]  ;;  %v34_v58 = vld [vmem:[%s1574_s0 + $0x88] sm:$0xff]  ;;  %v35_v60 = vld [vmem:[%s1574_s0 + $0x90] sm:$0xff] }
  0x12   :  { %429 = vmatpush.bf16.msra.mxu0 %v961_v16  ;;  %v37_v57 = vld [vmem:[%s1574_s0 + $0xa0] sm:$0xff]  ;;  %v38_v59 = vld [vmem:[%s1574_s0 + $0xa8] sm:$0xff]  ;;  %v39_v61 = vld [vmem:[%s1574_s0 + $0xb0] sm:$0xff] }
  0x13   :  { %502 = vmatpush.bf16.msra.mxu1 %v969_v17  ;;  %v36_v62 = vld [vmem:[%s1574_s0 + $0x98] sm:$0xff]  ;;  %v125_v0 = vpack.c.bf16 %v37_v57, %v33_v56  ;;  %v126_v1 = vpack.c.bf16 %v38_v59, %v34_v58  ;;  %v127_v2 = vpack.c.bf16 %v39_v61, %v35_v60  ;;  %v41_v4 = vld [vmem:[%s1574_s0 + $0xc0] sm:$0xff]  ;;  %v42_v6 = vld [vmem:[%s1574_s0 + $0xc8] sm:$0xff] }
  0x14   :  { %575 = vmatpush.bf16.msra.mxu2 %v977_v18  ;;  %v40_v63 = vld [vmem:[%s1574_s0 + $0xb8] sm:$0xff]  ;;  %v45_v5 = vld [vmem:[%s1574_s0 + $0xe0] sm:$0xff]  ;;  %v46_v7 = vld [vmem:[%s1574_s0 + $0xe8] sm:$0xff] }
  0x15   :  { %648 = vmatpush.bf16.msra.mxu3 %v985_v19  ;;  %v128_v3 = vpack.c.bf16 %v40_v63, %v36_v62  ;;  %v43_v8 = vld [vmem:[%s1574_s0 + $0xd0] sm:$0xff]  ;;  %v44_v10 = vld [vmem:[%s1574_s0 + $0xd8] sm:$0xff]  ;;  %v129_v12 = vpack.c.bf16 %v45_v5, %v41_v4  ;;  %v130_v13 = vpack.c.bf16 %v46_v7, %v42_v6  ;;  %v49_v16 = vld [vmem:[%s1574_s0 + $0x100] sm:$0xff] }
  0x16   :  { %430 = vmatpush.bf16.msra.mxu0 %v960_v20  ;;  %v47_v9 = vld [vmem:[%s1574_s0 + $0xf0] sm:$0xff]  ;;  %v48_v11 = vld [vmem:[%s1574_s0 + $0xf8] sm:$0xff]  ;;  %v53_v17 = vld [vmem:[%s1574_s0 + $0x120] sm:$0xff] }
  0x17   :  { %503 = vmatpush.bf16.msra.mxu1 %v968_v21  ;;  %v131_v14 = vpack.c.bf16 %v47_v9, %v43_v8  ;;  %v132_v15 = vpack.c.bf16 %v48_v11, %v44_v10  ;;  %v50_v18 = vld [vmem:[%s1574_s0 + $0x108] sm:$0xff]  ;;  %v51_v20 = vld [vmem:[%s1574_s0 + $0x110] sm:$0xff]  ;;  %v60_v34 = vld [vmem:[%s1574_s0 + $0x158] sm:$0xff] }
  0x18   :  { %576 = vmatpush.bf16.msra.mxu2 %v976_v22  ;;  %v54_v19 = vld [vmem:[%s1574_s0 + $0x128] sm:$0xff]  ;;  %v55_v21 = vld [vmem:[%s1574_s0 + $0x130] sm:$0xff]  ;;  %v52_v22 = vld [vmem:[%s1574_s0 + $0x118] sm:$0xff] }
  0x19   :  { %649 = vmatpush.bf16.msra.mxu3 %v984_v23  ;;  %v56_v23 = vld [vmem:[%s1574_s0 + $0x138] sm:$0xff]  ;;  %v59_v32 = vld [vmem:[%s1574_s0 + $0x150] sm:$0xff] }
  0x1a   :  { %431 = vmatpush.bf16.msra.mxu0 %v959_v24  ;;  %v133_v24 = vpack.c.bf16 %v53_v17, %v49_v16  ;;  %v63_v33 = vld [vmem:[%s1574_s0 + $0x170] sm:$0xff]  ;;  %v64_v35 = vld [vmem:[%s1574_s0 + $0x178] sm:$0xff] }
  0x1b   :  { %504 = vmatpush.bf16.msra.mxu1 %v967_v25  ;;  %v134_v25 = vpack.c.bf16 %v54_v19, %v50_v18  ;;  %v139_v38 = vpack.c.bf16 %v63_v33, %v59_v32  ;;  %v140_v39 = vpack.c.bf16 %v64_v35, %v60_v34  ;;  %v67_v44 = vld [vmem:[%s1574_s0 + $0x190] sm:$0xff]  ;;  %v68_v46 = vld [vmem:[%s1574_s0 + $0x198] sm:$0xff]  ;;  %v1332_v18 = vld [vmem:[%s1575_s2] ss:$0 sm:$0xff] }
  0x1c   :  { %577 = vmatpush.bf16.msra.mxu2 %v975_v26  ;;  %v135_v26 = vpack.c.bf16 %v55_v21, %v51_v20  ;;  %v71_v45 = vld [vmem:[%s1574_s0 + $0x1b0] sm:$0xff]  ;;  %v72_v47 = vld [vmem:[%s1574_s0 + $0x1b8] sm:$0xff] }
  0x1d   :  { %650 = vmatpush.bf16.msra.mxu3 %v983_v27  ;;  %v136_v27 = vpack.c.bf16 %v56_v23, %v52_v22  ;;  %v143_v50 = vpack.c.bf16 %v71_v45, %v67_v44  ;;  %v144_v51 = vpack.c.bf16 %v72_v47, %v68_v46  ;;  %v75_v56 = vld [vmem:[%s1574_s0 + $0x1d0] sm:$0xff]  ;;  %v76_v58 = vld [vmem:[%s1574_s0 + $0x1d8] sm:$0xff]  ;;  %v1337_v22 = vld [vmem:[%s1576_s3] ss:$0 sm:$0xff] }
  0x1e   :  { %432 = vmatpush.bf16.msra.mxu0 %v958_v28  ;;  %v57_v28 = vld [vmem:[%s1574_s0 + $0x140] sm:$0xff]  ;;  %v79_v57 = vld [vmem:[%s1574_s0 + $0x1f0] sm:$0xff]  ;;  %v80_v59 = vld [vmem:[%s1574_s0 + $0x1f8] sm:$0xff] }
  0x1f   :  { %505 = vmatpush.bf16.msra.mxu1 %v966_v29  ;;  %v61_v29 = vld [vmem:[%s1574_s0 + $0x160] sm:$0xff]  ;;  %v147_v62 = vpack.c.bf16 %v79_v57, %v75_v56  ;;  %v148_v63 = vpack.c.bf16 %v80_v59, %v76_v58  ;;  %v83_v4 = vld [vmem:[%s1574_s0 + $0x210] sm:$0xff]  ;;  %v84_v6 = vld [vmem:[%s1574_s0 + $0x218] sm:$0xff] }
  0x20   :  { %578 = vmatpush.bf16.msra.mxu2 %v974_v30  ;;  %v58_v30 = vld [vmem:[%s1574_s0 + $0x148] sm:$0xff]  ;;  %v137_v36 = vpack.c.bf16 %v61_v29, %v57_v28  ;;  %v87_v5 = vld [vmem:[%s1574_s0 + $0x230] sm:$0xff]  ;;  %v88_v7 = vld [vmem:[%s1574_s0 + $0x238] sm:$0xff] }
  0x21   :  { %651 = vmatpush.bf16.msra.mxu3 %v982_v31  ;;  %433 = vmatmul.bf16.vlgmr.msra.gmra.mxu0 %v117_v40  ;;  %v62_v31 = vld [vmem:[%s1574_s0 + $0x168] sm:$0xff]  ;;  %v65_v40 = vld [vmem:[%s1574_s0 + $0x180] sm:$0xff]  ;;  %v91_v28 = vld [vmem:[%s1574_s0 + $0x250] sm:$0xff] }
  0x22   :  { %506 = vmatmul.bf16.vlgmr.msra.gmra.mxu1 %v118_v41  ;;  %v138_v37 = vpack.c.bf16 %v62_v31, %v58_v30  ;;  %v69_v41 = vld [vmem:[%s1574_s0 + $0x1a0] sm:$0xff]  ;;  %v95_v29 = vld [vmem:[%s1574_s0 + $0x270] sm:$0xff]  ;;  %v92_v30 = vld [vmem:[%s1574_s0 + $0x258] sm:$0xff] }
  0x23   :  { %579 = vmatmul.bf16.vlgmr.msra.gmra.mxu2 %v119_v42  ;;  %v66_v42 = vld [vmem:[%s1574_s0 + $0x188] sm:$0xff]  ;;  %v141_v48 = vpack.c.bf16 %v69_v41, %v65_v40  ;;  %v89_v23 = vld [vmem:[%s1574_s0 + $0x240] sm:$0xff]  ;;  %v96_v31 = vld [vmem:[%s1574_s0 + $0x278] sm:$0xff] }
  0x24   :  { %652 = vmatmul.bf16.vlgmr.msra.gmra.mxu3 %v120_v43  ;;  %v70_v43 = vld [vmem:[%s1574_s0 + $0x1a8] sm:$0xff]  ;;  %v101_v56 = vld [vmem:[%s1574_s0 + $0x2a0] sm:$0xff] }
  0x25   :  { %v142_v49 = vpack.c.bf16 %v70_v43, %v66_v42  ;;  %v155_v42 = vpack.c.bf16 %v95_v29, %v91_v28  ;;  %v156_v43 = vpack.c.bf16 %v96_v31, %v92_v30  ;;  %v98_v58 = vld [vmem:[%s1574_s0 + $0x288] sm:$0xff]  ;;  %v107_v30 = vld [vmem:[%s1574_s0 + $0x2d0] sm:$0xff] }
  0x26   :  { %v102_v59 = vld [vmem:[%s1574_s0 + $0x2a8] sm:$0xff]  ;;  %v111_v31 = vld [vmem:[%s1574_s0 + $0x2f0] sm:$0xff] }
  0x27   :  { %v106_v28 = vld [vmem:[%s1574_s0 + $0x2c8] sm:$0xff] }
  0x28   :  { %v110_v29 = vld [vmem:[%s1574_s0 + $0x2e8] sm:$0xff] }
  0x31   :  { %438 = vmatmul.bf16.gmra.mxu0 %v121_v52  ;;  %v73_v52 = vld [vmem:[%s1574_s0 + $0x1c0] sm:$0xff] }
  0x32   :  { %511 = vmatmul.bf16.gmra.mxu1 %v122_v53  ;;  %v77_v53 = vld [vmem:[%s1574_s0 + $0x1e0] sm:$0xff] }
  0x33   :  { %584 = vmatmul.bf16.gmra.mxu2 %v123_v54  ;;  %v74_v54 = vld [vmem:[%s1574_s0 + $0x1c8] sm:$0xff]  ;;  %v145_v60 = vpack.c.bf16 %v77_v53, %v73_v52 }
  0x34   :  { %657 = vmatmul.bf16.gmra.mxu3 %v124_v55  ;;  %v78_v55 = vld [vmem:[%s1574_s0 + $0x1e8] sm:$0xff] }
  0x35   :  { %v146_v61 = vpack.c.bf16 %v78_v55, %v74_v54  ;;  %v97_v55 = vld [vmem:[%s1574_s0 + $0x280] sm:$0xff] }
  0x41   :  { %443 = vmatmul.bf16.gmra.mxu0 %v125_v0  ;;  %v81_v0 = vld [vmem:[%s1574_s0 + $0x200] sm:$0xff] }
  0x42   :  { %516 = vmatmul.bf16.gmra.mxu1 %v126_v1  ;;  %v85_v1 = vld [vmem:[%s1574_s0 + $0x220] sm:$0xff] }
  0x43   :  { %589 = vmatmul.bf16.gmra.mxu2 %v127_v2  ;;  %v82_v2 = vld [vmem:[%s1574_s0 + $0x208] sm:$0xff]  ;;  %v149_v8 = vpack.c.bf16 %v85_v1, %v81_v0 }
  0x44   :  { %662 = vmatmul.bf16.gmra.mxu3 %v128_v3  ;;  %v86_v3 = vld [vmem:[%s1574_s0 + $0x228] sm:$0xff] }
  0x45   :  { %v150_v9 = vpack.c.bf16 %v86_v3, %v82_v2 }
  0x51   :  { %448 = vmatmul.bf16.gmra.mxu0 %v129_v12  ;;  %v151_v12 = vpack.c.bf16 %v87_v5, %v83_v4  ;;  %v157_v4 = vpack.c.bf16 %v101_v56, %v97_v55  ;;  %v158_v5 = vpack.c.bf16 %v102_v59, %v98_v58  ;;  %v113_v58 = vld [vmem:[%s1574_s0 + $0x300] sm:$0xff]  ;;  %v114_v59 = vld [vmem:[%s1574_s0 + $0x308] sm:$0xff] }
  0x52   :  { %521 = vmatmul.bf16.gmra.mxu1 %v130_v13  ;;  %v152_v13 = vpack.c.bf16 %v88_v7, %v84_v6 }
  0x53   :  { %594 = vmatmul.bf16.gmra.mxu2 %v131_v14 }
  0x54   :  { %667 = vmatmul.bf16.gmra.mxu3 %v132_v15 }
  0x61   :  { %453 = vmatmul.bf16.gmra.mxu0 %v133_v24  ;;  %v93_v24 = vld [vmem:[%s1574_s0 + $0x260] sm:$0xff] }
  0x62   :  { %526 = vmatmul.bf16.gmra.mxu1 %v134_v25 }
  0x63   :  { %599 = vmatmul.bf16.gmra.mxu2 %v135_v26  ;;  %v90_v26 = vld [vmem:[%s1574_s0 + $0x248] sm:$0xff] }
  0x64   :  { %672 = vmatmul.bf16.gmra.mxu3 %v136_v27  ;;  %v94_v27 = vld [vmem:[%s1574_s0 + $0x268] sm:$0xff] }
  0x71   :  { %458 = vmatmul.bf16.gmra.mxu0 %v137_v36  ;;  %v153_v36 = vpack.c.bf16 %v93_v24, %v89_v23 }
  0x72   :  { %531 = vmatmul.bf16.gmra.mxu1 %v138_v37  ;;  %v154_v37 = vpack.c.bf16 %v94_v27, %v90_v26  ;;  %v109_v26 = vld [vmem:[%s1574_s0 + $0x2e0] sm:$0xff] }
  0x73   :  { %604 = vmatmul.bf16.gmra.mxu2 %v139_v38 }
  0x74   :  { %677 = vmatmul.bf16.gmra.mxu3 %v140_v39 }
  0x81   :  { %463 = vmatmul.bf16.gmra.mxu0 %v141_v48 }
  0x82   :  { %536 = vmatmul.bf16.gmra.mxu1 %v142_v49 }
  0x83   :  { %609 = vmatmul.bf16.gmra.mxu2 %v143_v50 }
  0x84   :  { %682 = vmatmul.bf16.gmra.mxu3 %v144_v51 }
  0x91   :  { %468 = vmatmul.bf16.gmra.mxu0 %v145_v60  ;;  %v99_v60 = vld [vmem:[%s1574_s0 + $0x290] sm:$0xff] }
  0x92   :  { %541 = vmatmul.bf16.gmra.mxu1 %v146_v61  ;;  %v103_v61 = vld [vmem:[%s1574_s0 + $0x2b0] sm:$0xff] }
  0x93   :  { %614 = vmatmul.bf16.gmra.mxu2 %v147_v62  ;;  %v100_v62 = vld [vmem:[%s1574_s0 + $0x298] sm:$0xff] }
  0x94   :  { %687 = vmatmul.bf16.gmra.mxu3 %v148_v63  ;;  %v104_v63 = vld [vmem:[%s1574_s0 + $0x2b8] sm:$0xff] }
  0x9e   :  { %v434_v10 = vpop.f32.mrf.mxu0 }
  0x9f   :  { %v507_v11 = vpop.f32.mrf.mxu1 }
  0xa0   :  { %v508_v14 = vadd.f32 %v507_v11, %v434_v10  ;;  %v159_v10 = vpack.c.bf16 %v103_v61, %v99_v60  ;;  %v160_v11 = vpack.c.bf16 %v104_v63, %v100_v62  ;;  %v115_v60 = vld [vmem:[%s1574_s0 + $0x310] sm:$0xff]  ;;  %v116_v61 = vld [vmem:[%s1574_s0 + $0x318] sm:$0xff] }
  0xa1   :  { %473 = vmatmul.bf16.gmra.mxu0 %v149_v8 }
  0xa2   :  { %546 = vmatmul.bf16.gmra.mxu1 %v150_v9 }
  0xa3   :  { %619 = vmatmul.bf16.gmra.mxu2 %v151_v12 }
  0xa4   :  { %692 = vmatmul.bf16.gmra.mxu3 %v152_v13 }
  0xa6   :  { %v580_v15 = vpop.f32.mrf.mxu2  ;;  %v436_v19 = vpop.f32.mrf.mxu0 }
  0xa7   :  { %v653_v16 = vpop.f32.mrf.mxu3  ;;  %v581_v17 = vadd.f32 %v580_v15, %v508_v14  ;;  %v509_v20 = vpop.f32.mrf.mxu1 }
  0xa8   :  { %v510_v33 = vadd.f32 %v509_v20, %v436_v19 }
  0xa9   :  { %v654_v21 = vadd.f32 %v653_v16, %v581_v17 }
  0xab   :  { %v721_v25 = vmul.f32 %v1332_v18, %v654_v21 }
  0xad   :  { %v750_v32 = vadd.f32 %v1337_v22, %v721_v25  ;;  %v105_v25 = vld [vmem:[%s1574_s0 + $0x2c0] sm:$0xff] }
  0xae   :  { %v582_v34 = vpop.f32.mrf.mxu2  ;;  %v439_v40 = vpop.f32.mrf.mxu0 }
  0xaf   :  { %v655_v35 = vpop.f32.mrf.mxu3  ;;  %v775_v38 = vmax.f32 %v750_v32, 0.0  ;;  %v583_v39 = vadd.f32 %v582_v34, %v510_v33  ;;  %v512_v41 = vpop.f32.mrf.mxu1  ;;  %v108_v32 = vld [vmem:[%s1574_s0 + $0x2d8] sm:$0xff] }
  0xb0   :  { %v513_v46 = vadd.f32 %v512_v41, %v439_v40  ;;  %v112_v33 = vld [vmem:[%s1574_s0 + $0x2f8] sm:$0xff] }
  0xb1   :  { %801 = vst.msk [vmem:[%s1577_s4] sm:$0xff] %vm800_vm0, %v775_v38  ;;  %v656_v44 = vadd.f32 %v655_v35, %v583_v39  ;;  %478 = vmatmul.bf16.gmra.mxu0 %v153_v36  ;;  %v161_v38 = vpack.c.bf16 %v109_v26, %v105_v25  ;;  %v162_v39 = vpack.c.bf16 %v110_v29, %v106_v28 }
  0xb2   :  { %551 = vmatmul.bf16.gmra.mxu1 %v154_v37 }
  0xb3   :  { %v722_v45 = vmul.f32 %v1332_v18, %v656_v44  ;;  %624 = vmatmul.bf16.gmra.mxu2 %v155_v42  ;;  %v163_v44 = vpack.c.bf16 %v111_v31, %v107_v30 }
  0xb4   :  { %697 = vmatmul.bf16.gmra.mxu3 %v156_v43 }
  0xb5   :  { %v751_v47 = vadd.f32 %v1337_v22, %v722_v45  ;;  %v164_v45 = vpack.c.bf16 %v112_v33, %v108_v32 }
  0xb6   :  { %v585_v48 = vpop.f32.mrf.mxu2  ;;  %v441_v52 = vpop.f32.mrf.mxu0 }
  0xb7   :  { %v658_v49 = vpop.f32.mrf.mxu3  ;;  %v776_v50 = vmax.f32 %v751_v47, 0.0  ;;  %v586_v51 = vadd.f32 %v585_v48, %v513_v46  ;;  %v514_v53 = vpop.f32.mrf.mxu1 }
  0xb8   :  { %v515_v1 = vadd.f32 %v514_v53, %v441_v52 }
  0xb9   :  { %802 = vst.msk [vmem:[%s1577_s4 + $0x8] sm:$0xff] %vm800_vm0, %v776_v50  ;;  %v659_v54 = vadd.f32 %v658_v49, %v586_v51 }
  0xbb   :  { %v723_v57 = vmul.f32 %v1332_v18, %v659_v54 }
  0xbd   :  { %v752_v0 = vadd.f32 %v1337_v22, %v723_v57 }
  0xbe   :  { %v587_v2 = vpop.f32.mrf.mxu2  ;;  %v444_v8 = vpop.f32.mrf.mxu0 }
  0xbf   :  { %v660_v3 = vpop.f32.mrf.mxu3  ;;  %v777_v6 = vmax.f32 %v752_v0, 0.0  ;;  %v588_v7 = vadd.f32 %v587_v2, %v515_v1  ;;  %v517_v9 = vpop.f32.mrf.mxu1  ;;  %v165_v2 = vpack.c.bf16 %v113_v58, %v113_v58 }
  0xc0   :  { %v518_v14 = vadd.f32 %v517_v9, %v444_v8  ;;  %v167_v8 = vpack.c.bf16 %v115_v60, %v115_v60  ;;  %v168_v9 = vpack.c.bf16 %v116_v61, %v116_v61 }
  0xc1   :  { %803 = vst.msk [vmem:[%s1577_s4 + $0x10] sm:$0xff] %vm800_vm0, %v777_v6  ;;  %v661_v12 = vadd.f32 %v660_v3, %v588_v7  ;;  %483 = vmatmul.bf16.gmra.mxu0 %v157_v4  ;;  %v166_v3 = vpack.c.bf16 %v114_v59, %v114_v59 }
  0xc2   :  { %556 = vmatmul.bf16.gmra.mxu1 %v158_v5 }
  0xc3   :  { %v724_v13 = vmul.f32 %v1332_v18, %v661_v12  ;;  %629 = vmatmul.bf16.gmra.mxu2 %v159_v10 }
  0xc4   :  { %702 = vmatmul.bf16.gmra.mxu3 %v160_v11 }
  0xc5   :  { %v753_v15 = vadd.f32 %v1337_v22, %v724_v13 }
  0xc6   :  { %v590_v16 = vpop.f32.mrf.mxu2  ;;  %v446_v21 = vpop.f32.mrf.mxu0 }
  0xc7   :  { %v663_v17 = vpop.f32.mrf.mxu3  ;;  %v778_v19 = vmax.f32 %v753_v15, 0.0  ;;  %v591_v20 = vadd.f32 %v590_v16, %v518_v14  ;;  %v519_v23 = vpop.f32.mrf.mxu1 }
  0xc8   :  { %v520_v35 = vadd.f32 %v519_v23, %v446_v21 }
  0xc9   :  { %804 = vst.msk [vmem:[%s1577_s4 + $0x18] sm:$0xff] %vm800_vm0, %v778_v19  ;;  %v664_v24 = vadd.f32 %v663_v17, %v591_v20 }
  0xcb   :  { %v725_v27 = vmul.f32 %v1332_v18, %v664_v24 }
  0xcd   :  { %v754_v34 = vadd.f32 %v1337_v22, %v725_v27 }
  0xce   :  { %v592_v36 = vpop.f32.mrf.mxu2  ;;  %v449_v42 = vpop.f32.mrf.mxu0 }
  0xcf   :  { %v665_v37 = vpop.f32.mrf.mxu3  ;;  %v779_v40 = vmax.f32 %v754_v34, 0.0  ;;  %v593_v41 = vadd.f32 %v592_v36, %v520_v35  ;;  %v522_v43 = vpop.f32.mrf.mxu1 }
  0xd0   :  { %v523_v48 = vadd.f32 %v522_v43, %v449_v42 }
  0xd1   :  { %805 = vst.msk [vmem:[%s1577_s4 + $0x20] sm:$0xff] %vm800_vm0, %v779_v40  ;;  %v666_v46 = vadd.f32 %v665_v37, %v593_v41  ;;  %488 = vmatmul.bf16.gmra.mxu0 %v161_v38 }
  0xd2   :  { %561 = vmatmul.bf16.gmra.mxu1 %v162_v39 }
  0xd3   :  { %v726_v47 = vmul.f32 %v1332_v18, %v666_v46  ;;  %634 = vmatmul.bf16.gmra.mxu2 %v163_v44 }
  0xd4   :  { %707 = vmatmul.bf16.gmra.mxu3 %v164_v45 }
  0xd5   :  { %v755_v49 = vadd.f32 %v1337_v22, %v726_v47 }
  0xd6   :  { %v595_v50 = vpop.f32.mrf.mxu2  ;;  %v451_v54 = vpop.f32.mrf.mxu0 }
  0xd7   :  { %v668_v51 = vpop.f32.mrf.mxu3  ;;  %v780_v52 = vmax.f32 %v755_v49, 0.0  ;;  %v596_v53 = vadd.f32 %v595_v50, %v523_v48  ;;  %v524_v55 = vpop.f32.mrf.mxu1 }
  0xd8   :  { %v525_v63 = vadd.f32 %v524_v55, %v451_v54 }
  0xd9   :  { %806 = vst.msk [vmem:[%s1577_s4 + $0x28] sm:$0xff] %vm800_vm0, %v780_v52  ;;  %v669_v56 = vadd.f32 %v668_v51, %v596_v53 }
  0xdb   :  { %v727_v57 = vmul.f32 %v1332_v18, %v669_v56 }
  0xdd   :  { %v756_v62 = vadd.f32 %v1337_v22, %v727_v57 }
  0xde   :  { %v597_v0 = vpop.f32.mrf.mxu2  ;;  %v454_v6 = vpop.f32.mrf.mxu0 }
  0xdf   :  { %v670_v1 = vpop.f32.mrf.mxu3  ;;  %v781_v4 = vmax.f32 %v756_v62, 0.0  ;;  %v598_v5 = vadd.f32 %v597_v0, %v525_v63  ;;  %v527_v7 = vpop.f32.mrf.mxu1 }
  0xe0   :  { %v528_v12 = vadd.f32 %v527_v7, %v454_v6 }
  0xe1   :  { %807 = vst.msk [vmem:[%s1577_s4 + $0x30] sm:$0xff] %vm800_vm0, %v781_v4  ;;  %v671_v10 = vadd.f32 %v670_v1, %v598_v5  ;;  %493 = vmatmul.bf16.gmra.mxu0 %v165_v2 }
  0xe2   :  { %566 = vmatmul.bf16.gmra.mxu1 %v166_v3 }
  0xe3   :  { %v728_v11 = vmul.f32 %v1332_v18, %v671_v10  ;;  %639 = vmatmul.bf16.gmra.mxu2 %v167_v8 }
  0xe4   :  { %712 = vmatmul.bf16.gmra.mxu3 %v168_v9 }
  0xe5   :  { %v757_v13 = vadd.f32 %v1337_v22, %v728_v11 }
  0xe6   :  { %v600_v14 = vpop.f32.mrf.mxu2  ;;  %v456_v19 = vpop.f32.mrf.mxu0 }
  0xe7   :  { %v673_v15 = vpop.f32.mrf.mxu3  ;;  %v782_v16 = vmax.f32 %v757_v13, 0.0  ;;  %v601_v17 = vadd.f32 %v600_v14, %v528_v12  ;;  %v529_v20 = vpop.f32.mrf.mxu1 }
  0xe8   :  { %v530_v25 = vadd.f32 %v529_v20, %v456_v19 }
  0xe9   :  { %808 = vst.msk [vmem:[%s1577_s4 + $0x38] sm:$0xff] %vm800_vm0, %v782_v16  ;;  %v674_v21 = vadd.f32 %v673_v15, %v601_v17 }
  0xeb   :  { %v729_v23 = vmul.f32 %v1332_v18, %v674_v21 }
  0xed   :  { %v758_v24 = vadd.f32 %v1337_v22, %v729_v23 }
  0xee   :  { %v602_v26 = vpop.f32.mrf.mxu2  ;;  %v459_v30 = vpop.f32.mrf.mxu0 }
  0xef   :  { %v675_v27 = vpop.f32.mrf.mxu3  ;;  %v783_v28 = vmax.f32 %v758_v24, 0.0  ;;  %v603_v29 = vadd.f32 %v602_v26, %v530_v25  ;;  %v532_v31 = vpop.f32.mrf.mxu1 }
  0xf0   :  { %v533_v34 = vadd.f32 %v532_v31, %v459_v30 }
  0xf1   :  { %809 = vst.msk [vmem:[%s1577_s4 + $0x40] sm:$0xff] %vm800_vm0, %v783_v28  ;;  %v676_v32 = vadd.f32 %v675_v27, %v603_v29 }
  0xf3   :  { %v730_v33 = vmul.f32 %v1332_v18, %v676_v32 }
  0xf5   :  { %v759_v35 = vadd.f32 %v1337_v22, %v730_v33 }
  0xf6   :  { %v605_v36 = vpop.f32.mrf.mxu2  ;;  %v461_v40 = vpop.f32.mrf.mxu0 }
  0xf7   :  { %v678_v37 = vpop.f32.mrf.mxu3  ;;  %v784_v38 = vmax.f32 %v759_v35, 0.0  ;;  %v606_v39 = vadd.f32 %v605_v36, %v533_v34  ;;  %v534_v41 = vpop.f32.mrf.mxu1 }
  0xf8   :  { %v535_v45 = vadd.f32 %v534_v41, %v461_v40 }
  0xf9   :  { %810 = vst.msk [vmem:[%s1577_s4 + $0x48] sm:$0xff] %vm800_vm0, %v784_v38  ;;  %v679_v42 = vadd.f32 %v678_v37, %v606_v39 }
  0xfb   :  { %v731_v43 = vmul.f32 %v1332_v18, %v679_v42 }
  0xfd   :  { %v760_v44 = vadd.f32 %v1337_v22, %v731_v43 }
  0xfe   :  { %v607_v46 = vpop.f32.mrf.mxu2  ;;  %v464_v50 = vpop.f32.mrf.mxu0 }
  0xff   :  { %v680_v47 = vpop.f32.mrf.mxu3  ;;  %v785_v48 = vmax.f32 %v760_v44, 0.0  ;;  %v608_v49 = vadd.f32 %v607_v46, %v535_v45  ;;  %v537_v51 = vpop.f32.mrf.mxu1 }
 0x100   :  { %v538_v54 = vadd.f32 %v537_v51, %v464_v50 }
 0x101   :  { %811 = vst.msk [vmem:[%s1577_s4 + $0x50] sm:$0xff] %vm800_vm0, %v785_v48  ;;  %v681_v52 = vadd.f32 %v680_v47, %v608_v49 }
 0x103   :  { %v732_v53 = vmul.f32 %v1332_v18, %v681_v52 }
 0x105   :  { %v761_v55 = vadd.f32 %v1337_v22, %v732_v53 }
 0x106   :  { %v610_v56 = vpop.f32.mrf.mxu2  ;;  %v466_v60 = vpop.f32.mrf.mxu0 }
 0x107   :  { %v683_v57 = vpop.f32.mrf.mxu3  ;;  %v786_v58 = vmax.f32 %v761_v55, 0.0  ;;  %v611_v59 = vadd.f32 %v610_v56, %v538_v54  ;;  %v539_v61 = vpop.f32.mrf.mxu1 }
 0x108   :  { %v540_v1 = vadd.f32 %v539_v61, %v466_v60 }
 0x109   :  { %812 = vst.msk [vmem:[%s1577_s4 + $0x58] sm:$0xff] %vm800_vm0, %v786_v58  ;;  %v684_v62 = vadd.f32 %v683_v57, %v611_v59 }
 0x10b   :  { %v733_v63 = vmul.f32 %v1332_v18, %v684_v62 }
 0x10d   :  { %v762_v0 = vadd.f32 %v1337_v22, %v733_v63 }
 0x10e   :  { %v612_v2 = vpop.f32.mrf.mxu2  ;;  %v469_v6 = vpop.f32.mrf.mxu0 }
 0x10f   :  { %v685_v3 = vpop.f32.mrf.mxu3  ;;  %v787_v4 = vmax.f32 %v762_v0, 0.0  ;;  %v613_v5 = vadd.f32 %v612_v2, %v540_v1  ;;  %v542_v7 = vpop.f32.mrf.mxu1 }
 0x110   :  { %v543_v10 = vadd.f32 %v542_v7, %v469_v6 }
 0x111   :  { %813 = vst.msk [vmem:[%s1577_s4 + $0x60] sm:$0xff] %vm800_vm0, %v787_v4  ;;  %v686_v8 = vadd.f32 %v685_v3, %v613_v5 }
 0x113   :  { %v734_v9 = vmul.f32 %v1332_v18, %v686_v8 }
 0x115   :  { %v763_v11 = vadd.f32 %v1337_v22, %v734_v9 }
 0x116   :  { %v615_v12 = vpop.f32.mrf.mxu2  ;;  %v471_v16 = vpop.f32.mrf.mxu0 }
 0x117   :  { %v688_v13 = vpop.f32.mrf.mxu3  ;;  %v788_v14 = vmax.f32 %v763_v11, 0.0  ;;  %v616_v15 = vadd.f32 %v615_v12, %v543_v10  ;;  %v544_v17 = vpop.f32.mrf.mxu1 }
 0x118   :  { %v545_v23 = vadd.f32 %v544_v17, %v471_v16 }
 0x119   :  { %814 = vst.msk [vmem:[%s1577_s4 + $0x68] sm:$0xff] %vm800_vm0, %v788_v14  ;;  %v689_v19 = vadd.f32 %v688_v13, %v616_v15 }
 0x11b   :  { %v735_v20 = vmul.f32 %v1332_v18, %v689_v19 }
 0x11d   :  { %v764_v21 = vadd.f32 %v1337_v22, %v735_v20 }
 0x11e   :  { %v617_v24 = vpop.f32.mrf.mxu2  ;;  %v474_v28 = vpop.f32.mrf.mxu0 }
 0x11f   :  { %v690_v25 = vpop.f32.mrf.mxu3  ;;  %v789_v26 = vmax.f32 %v764_v21, 0.0  ;;  %v618_v27 = vadd.f32 %v617_v24, %v545_v23  ;;  %v547_v29 = vpop.f32.mrf.mxu1 }
 0x120   :  { %v548_v32 = vadd.f32 %v547_v29, %v474_v28 }
 0x121   :  { %815 = vst.msk [vmem:[%s1577_s4 + $0x70] sm:$0xff] %vm800_vm0, %v789_v26  ;;  %v691_v30 = vadd.f32 %v690_v25, %v618_v27 }
 0x123   :  { %v736_v31 = vmul.f32 %v1332_v18, %v691_v30 }
 0x125   :  { %v765_v33 = vadd.f32 %v1337_v22, %v736_v31 }
 0x126   :  { %v620_v34 = vpop.f32.mrf.mxu2  ;;  %v476_v38 = vpop.f32.mrf.mxu0 }
 0x127   :  { %v693_v35 = vpop.f32.mrf.mxu3  ;;  %v790_v36 = vmax.f32 %v765_v33, 0.0  ;;  %v621_v37 = vadd.f32 %v620_v34, %v548_v32  ;;  %v549_v39 = vpop.f32.mrf.mxu1 }
 0x128   :  { %v550_v43 = vadd.f32 %v549_v39, %v476_v38 }
 0x129   :  { %816 = vst.msk [vmem:[%s1577_s4 + $0x78] sm:$0xff] %vm800_vm0, %v790_v36  ;;  %v694_v40 = vadd.f32 %v693_v35, %v621_v37 }
 0x12b   :  { %v737_v41 = vmul.f32 %v1332_v18, %v694_v40 }
 0x12d   :  { %v766_v42 = vadd.f32 %v1337_v22, %v737_v41 }
 0x12e   :  { %v622_v44 = vpop.f32.mrf.mxu2  ;;  %v479_v48 = vpop.f32.mrf.mxu0 }
 0x12f   :  { %v695_v45 = vpop.f32.mrf.mxu3  ;;  %v791_v46 = vmax.f32 %v766_v42, 0.0  ;;  %v623_v47 = vadd.f32 %v622_v44, %v550_v43  ;;  %v552_v49 = vpop.f32.mrf.mxu1 }
 0x130   :  { %v553_v52 = vadd.f32 %v552_v49, %v479_v48 }
 0x131   :  { %817 = vst.msk [vmem:[%s1577_s4 + $0x80] sm:$0xff] %vm800_vm0, %v791_v46  ;;  %v696_v50 = vadd.f32 %v695_v45, %v623_v47 }
 0x133   :  { %v738_v51 = vmul.f32 %v1332_v18, %v696_v50 }
 0x135   :  { %v767_v53 = vadd.f32 %v1337_v22, %v738_v51 }
 0x136   :  { %v625_v54 = vpop.f32.mrf.mxu2  ;;  %v481_v58 = vpop.f32.mrf.mxu0 }
 0x137   :  { %v698_v55 = vpop.f32.mrf.mxu3  ;;  %v792_v56 = vmax.f32 %v767_v53, 0.0  ;;  %v626_v57 = vadd.f32 %v625_v54, %v553_v52  ;;  %v554_v59 = vpop.f32.mrf.mxu1 }
 0x138   :  { %v555_v63 = vadd.f32 %v554_v59, %v481_v58 }
 0x139   :  { %818 = vst.msk [vmem:[%s1577_s4 + $0x88] sm:$0xff] %vm800_vm0, %v792_v56  ;;  %v699_v60 = vadd.f32 %v698_v55, %v626_v57 }
 0x13b   :  { %v739_v61 = vmul.f32 %v1332_v18, %v699_v60 }
 0x13d   :  { %v768_v62 = vadd.f32 %v1337_v22, %v739_v61 }
 0x13e   :  { %v627_v0 = vpop.f32.mrf.mxu2  ;;  %v484_v4 = vpop.f32.mrf.mxu0 }
 0x13f   :  { %v700_v1 = vpop.f32.mrf.mxu3  ;;  %v793_v2 = vmax.f32 %v768_v62, 0.0  ;;  %v628_v3 = vadd.f32 %v627_v0, %v555_v63  ;;  %v557_v5 = vpop.f32.mrf.mxu1 }
 0x140   :  { %v558_v8 = vadd.f32 %v557_v5, %v484_v4 }
 0x141   :  { %819 = vst.msk [vmem:[%s1577_s4 + $0x90] sm:$0xff] %vm800_vm0, %v793_v2  ;;  %v701_v6 = vadd.f32 %v700_v1, %v628_v3 }
 0x143   :  { %v740_v7 = vmul.f32 %v1332_v18, %v701_v6 }
 0x145   :  { %v769_v9 = vadd.f32 %v1337_v22, %v740_v7 }
 0x146   :  { %v630_v10 = vpop.f32.mrf.mxu2  ;;  %v486_v14 = vpop.f32.mrf.mxu0 }
 0x147   :  { %v703_v11 = vpop.f32.mrf.mxu3  ;;  %v794_v12 = vmax.f32 %v769_v9, 0.0  ;;  %v631_v13 = vadd.f32 %v630_v10, %v558_v8  ;;  %v559_v15 = vpop.f32.mrf.mxu1 }
 0x148   :  { %v560_v20 = vadd.f32 %v559_v15, %v486_v14 }
 0x149   :  { %820 = vst.msk [vmem:[%s1577_s4 + $0x98] sm:$0xff] %vm800_vm0, %v794_v12  ;;  %v704_v16 = vadd.f32 %v703_v11, %v631_v13 }
 0x14b   :  { %v741_v17 = vmul.f32 %v1332_v18, %v704_v16 }
 0x14d   :  { %v770_v19 = vadd.f32 %v1337_v22, %v741_v17 }
 0x14e   :  { %v632_v21 = vpop.f32.mrf.mxu2  ;;  %v489_v26 = vpop.f32.mrf.mxu0 }
 0x14f   :  { %v705_v23 = vpop.f32.mrf.mxu3  ;;  %v795_v24 = vmax.f32 %v770_v19, 0.0  ;;  %v633_v25 = vadd.f32 %v632_v21, %v560_v20  ;;  %v562_v27 = vpop.f32.mrf.mxu1 }
 0x150   :  { %v563_v30 = vadd.f32 %v562_v27, %v489_v26 }
 0x151   :  { %821 = vst.msk [vmem:[%s1577_s4 + $0xa0] sm:$0xff] %vm800_vm0, %v795_v24  ;;  %v706_v28 = vadd.f32 %v705_v23, %v633_v25 }
 0x153   :  { %v742_v29 = vmul.f32 %v1332_v18, %v706_v28 }
 0x155   :  { %v771_v31 = vadd.f32 %v1337_v22, %v742_v29 }
 0x156   :  { %v635_v32 = vpop.f32.mrf.mxu2  ;;  %v491_v36 = vpop.f32.mrf.mxu0 }
 0x157   :  { %v708_v33 = vpop.f32.mrf.mxu3  ;;  %v796_v34 = vmax.f32 %v771_v31, 0.0  ;;  %v636_v35 = vadd.f32 %v635_v32, %v563_v30  ;;  %v564_v37 = vpop.f32.mrf.mxu1 }
 0x158   :  { %v565_v41 = vadd.f32 %v564_v37, %v491_v36 }
 0x159   :  { %822 = vst.msk [vmem:[%s1577_s4 + $0xa8] sm:$0xff] %vm800_vm0, %v796_v34  ;;  %v709_v38 = vadd.f32 %v708_v33, %v636_v35 }
 0x15b   :  { %v743_v39 = vmul.f32 %v1332_v18, %v709_v38 }
 0x15d   :  { %v772_v40 = vadd.f32 %v1337_v22, %v743_v39 }
 0x15e   :  { %v637_v42 = vpop.f32.mrf.mxu2  ;;  %v494_v46 = vpop.f32.mrf.mxu0 }
 0x15f   :  { %v710_v43 = vpop.f32.mrf.mxu3  ;;  %v797_v44 = vmax.f32 %v772_v40, 0.0  ;;  %v638_v45 = vadd.f32 %v637_v42, %v565_v41  ;;  %v567_v47 = vpop.f32.mrf.mxu1 }
 0x160   :  { %v568_v50 = vadd.f32 %v567_v47, %v494_v46 }
 0x161   :  { %823 = vst.msk [vmem:[%s1577_s4 + $0xb0] sm:$0xff] %vm800_vm0, %v797_v44  ;;  %v711_v48 = vadd.f32 %v710_v43, %v638_v45 }
 0x163   :  { %v744_v49 = vmul.f32 %v1332_v18, %v711_v48 }
 0x165   :  { %v773_v51 = vadd.f32 %v1337_v22, %v744_v49 }
 0x166   :  { %v640_v52 = vpop.f32.mrf.mxu2  ;;  %v496_v56 = vpop.f32.mrf.mxu0 }
 0x167   :  { %v713_v53 = vpop.f32.mrf.mxu3  ;;  %v798_v54 = vmax.f32 %v773_v51, 0.0  ;;  %v641_v55 = vadd.f32 %v640_v52, %v568_v50  ;;  %v569_v57 = vpop.f32.mrf.mxu1 }
 0x169   :  { %824 = vst.msk [vmem:[%s1577_s4 + $0xb8] sm:$0xff] %vm800_vm0, %v798_v54  ;;  %v714_v58 = vadd.f32 %v713_v53, %v641_v55 }
 0x16b   :  { %v745_v59 = vmul.f32 %v1332_v18, %v714_v58 }
 0x16d   :  { %v774_v60 = vadd.f32 %v1337_v22, %v745_v59 }
 0x16e   :  { %v642_v61 = vpop.f32.mrf.mxu2 }
 0x16f   :  { %v715_v62 = vpop.f32.mrf.mxu3  ;;  %v799_v63 = vmax.f32 %v774_v60, 0.0 }
 0x171   :  { %825 = vst.msk [vmem:[%s1577_s4 + $0xc0] sm:$0xff] %vm800_vm0, %v799_v63 }

// kernel: behavioral_net_forward.6
= control target key start
LH: loop header
LB: loop body
LE: loop exit
PB: predicated region body
PF: predicated region fallthrough
CT: control target
= control target key end

     0   :  { %vm496_vm0 = vcmask 523264   ;;  %s1991_s1 = inlined_call_operand.vmem [shape: bf16[576,64], index: 1, kind: input, shape index: {}]   ;;  %s1992_s0 = inlined_call_operand.vmem [shape: f32[200,576], index: 0, kind: input, shape index: {}]   ;;  %s1993_s2 = inlined_call_operand.vmem [shape: f32[1,64], index: 2, kind: input, shape index: {}]   ;;  %s1994_s3 = inlined_call_operand.vmem [shape: f32[1,64], index: 3, kind: input, shape index: {}]   ;;  %s1995_s4 = inlined_call_operand.vmem [shape: f32[200,64], index: 4, kind: output, shape index: {}]  }
   0x1   :  { %v1177_v0 = vld [vmem:[%s1991_s1 + $0x38] sm:$0xff]  ;;  %v1176_v1 = vld [vmem:[%s1991_s1 + $0x30] sm:$0xff]  ;;  %v1175_v2 = vld [vmem:[%s1991_s1 + $0x28] sm:$0xff] }
   0x2   :  { %536 = vmatpush.bf16.msra.mxu0 %v1177_v0  ;;  %1206 = vmatpush.bf16.msra.mxu1 %v1177_v0  ;;  %v1174_v3 = vld [vmem:[%s1991_s1 + $0x20] sm:$0xff]  ;;  %v1173_v4 = vld [vmem:[%s1991_s1 + $0x18] sm:$0xff]  ;;  %v1172_v5 = vld [vmem:[%s1991_s1 + $0x10] sm:$0xff] }
   0x3   :  { %1208 = vmatpush.bf16.msra.mxu3 %v1177_v0  ;;  %1207 = vmatpush.bf16.msra.mxu2 %v1177_v0  ;;  %v1171_v6 = vld [vmem:[%s1991_s1 + $0x8] sm:$0xff]  ;;  %v1170_v7 = vld [vmem:[%s1991_s1] sm:$0xff]  ;;  %v1185_v12 = vld [vmem:[%s1991_s1 + $0x78] sm:$0xff] }
   0x4   :  { %v18_v8 = vld [vmem:[%s1992_s0] sm:$0xff]  ;;  %v23_v9 = vld [vmem:[%s1992_s0 + $0x28] sm:$0xff]  ;;  %v1205_v15 = vld [vmem:[%s1991_s1 + $0x118] sm:$0xff] }
   0x5   :  { %v58_v10 = vld [vmem:[%s1992_s0 + $0x140] sm:$0xff]  ;;  %v63_v11 = vld [vmem:[%s1992_s0 + $0x168] sm:$0xff]  ;;  %v1201_v16 = vld [vmem:[%s1991_s1 + $0xf8] sm:$0xff]  ;;  %v143_v17 = vpack.c.bf16 %v23_v9, %v18_v8 }
   0x6   :  { %537 = vmatpush.bf16.msra.mxu0 %v1176_v1  ;;  %1209 = vmatpush.bf16.msra.mxu1 %v1176_v1  ;;  %v118_v13 = vld [vmem:[%s1992_s0 + $0x320] sm:$0xff]  ;;  %v123_v14 = vld [vmem:[%s1992_s0 + $0x348] sm:$0xff]  ;;  %v163_v18 = vpack.c.bf16 %v63_v11, %v58_v10  ;;  %v1184_v22 = vld [vmem:[%s1991_s1 + $0x70] sm:$0xff] }
   0x7   :  { %1211 = vmatpush.bf16.msra.mxu3 %v1176_v1  ;;  %1210 = vmatpush.bf16.msra.mxu2 %v1176_v1  ;;  %v193_v19 = vpack.c.bf16 %v123_v14, %v118_v13  ;;  %v98_v20 = vld [vmem:[%s1992_s0 + $0x280] sm:$0xff]  ;;  %v103_v21 = vld [vmem:[%s1992_s0 + $0x2a8] sm:$0xff]  ;;  %v1193_v23 = vld [vmem:[%s1991_s1 + $0xb8] sm:$0xff] }
   0x8   :  { %v1200_v24 = vld [vmem:[%s1991_s1 + $0xf0] sm:$0xff]  ;;  %v183_v26 = vpack.c.bf16 %v103_v21, %v98_v20  ;;  %v1183_v27 = vld [vmem:[%s1991_s1 + $0x68] sm:$0xff]  ;;  %v1182_v31 = vld [vmem:[%s1991_s1 + $0x60] sm:$0xff] }
   0x9   :  { %v1204_v25 = vld [vmem:[%s1991_s1 + $0x110] sm:$0xff]  ;;  %v1199_v29 = vld [vmem:[%s1991_s1 + $0xe8] sm:$0xff]  ;;  %v1198_v33 = vld [vmem:[%s1991_s1 + $0xe0] sm:$0xff] }
   0xa   :  { %538 = vmatpush.bf16.msra.mxu0 %v1175_v2  ;;  %1212 = vmatpush.bf16.msra.mxu1 %v1175_v2  ;;  %v1192_v28 = vld [vmem:[%s1991_s1 + $0xb0] sm:$0xff]  ;;  %v1203_v30 = vld [vmem:[%s1991_s1 + $0x108] sm:$0xff]  ;;  %v33_v35 = vld [vmem:[%s1992_s0 + $0x78] sm:$0xff] }
   0xb   :  { %1214 = vmatpush.bf16.msra.mxu3 %v1175_v2  ;;  %1213 = vmatpush.bf16.msra.mxu2 %v1175_v2  ;;  %v1191_v32 = vld [vmem:[%s1991_s1 + $0xa8] sm:$0xff]  ;;  %v28_v34 = vld [vmem:[%s1992_s0 + $0x50] sm:$0xff]  ;;  %v73_v37 = vld [vmem:[%s1992_s0 + $0x1b8] sm:$0xff] }
   0xc   :  { %v68_v36 = vld [vmem:[%s1992_s0 + $0x190] sm:$0xff]  ;;  %v133_v39 = vld [vmem:[%s1992_s0 + $0x398] sm:$0xff]  ;;  %v1190_v41 = vld [vmem:[%s1991_s1 + $0xa0] sm:$0xff]  ;;  %v148_v43 = vpack.c.bf16 %v33_v35, %v28_v34 }
   0xd   :  { %v128_v38 = vld [vmem:[%s1992_s0 + $0x370] sm:$0xff]  ;;  %v1181_v40 = vld [vmem:[%s1991_s1 + $0x58] sm:$0xff]  ;;  %v168_v44 = vpack.c.bf16 %v73_v37, %v68_v36  ;;  %v1179_v53 = vld [vmem:[%s1991_s1 + $0x48] sm:$0xff] }
   0xe   :  { %539 = vmatpush.bf16.msra.mxu0 %v1174_v3  ;;  %1215 = vmatpush.bf16.msra.mxu1 %v1174_v3  ;;  %v1197_v42 = vld [vmem:[%s1991_s1 + $0xd8] sm:$0xff]  ;;  %v198_v45 = vpack.c.bf16 %v133_v39, %v128_v38  ;;  %v108_v46 = vld [vmem:[%s1992_s0 + $0x2d0] sm:$0xff]  ;;  %v1202_v54 = vld [vmem:[%s1991_s1 + $0x100] sm:$0xff] }
   0xf   :  { %1217 = vmatpush.bf16.msra.mxu3 %v1174_v3  ;;  %1216 = vmatpush.bf16.msra.mxu2 %v1174_v3  ;;  %v113_v47 = vld [vmem:[%s1992_s0 + $0x2f8] sm:$0xff]  ;;  %v1180_v49 = vld [vmem:[%s1991_s1 + $0x50] sm:$0xff]  ;;  %v1195_v55 = vld [vmem:[%s1991_s1 + $0xc8] sm:$0xff] }
  0x10   :  { %v1189_v48 = vld [vmem:[%s1991_s1 + $0x98] sm:$0xff]  ;;  %v1196_v50 = vld [vmem:[%s1991_s1 + $0xd0] sm:$0xff]  ;;  %v188_v51 = vpack.c.bf16 %v113_v47, %v108_v46  ;;  %v1187_v56 = vld [vmem:[%s1991_s1 + $0x88] sm:$0xff] }
  0x11   :  { %v1188_v52 = vld [vmem:[%s1991_s1 + $0x90] sm:$0xff]  ;;  %v1178_v57 = vld [vmem:[%s1991_s1 + $0x40] sm:$0xff]  ;;  %v43_v60 = vld [vmem:[%s1992_s0 + $0xc8] sm:$0xff] }
  0x12   :  { %540 = vmatpush.bf16.msra.mxu0 %v1173_v4  ;;  %1218 = vmatpush.bf16.msra.mxu1 %v1173_v4  ;;  %v1194_v58 = vld [vmem:[%s1991_s1 + $0xc0] sm:$0xff]  ;;  %v83_v62 = vld [vmem:[%s1992_s0 + $0x208] sm:$0xff]  ;;  %v53_v8 = vld [vmem:[%s1992_s0 + $0x118] sm:$0xff] }
  0x13   :  { %1220 = vmatpush.bf16.msra.mxu3 %v1173_v4  ;;  %1219 = vmatpush.bf16.msra.mxu2 %v1173_v4  ;;  %v38_v59 = vld [vmem:[%s1992_s0 + $0xa0] sm:$0xff]  ;;  %v20_v4 = vld [vmem:[%s1992_s0 + $0x10] sm:$0xff]  ;;  %v93_v10 = vld [vmem:[%s1992_s0 + $0x258] sm:$0xff] }
  0x14   :  { %v78_v61 = vld [vmem:[%s1992_s0 + $0x1e0] sm:$0xff]  ;;  %v153_v1 = vpack.c.bf16 %v43_v60, %v38_v59  ;;  %v88_v9 = vld [vmem:[%s1992_s0 + $0x230] sm:$0xff]  ;;  %v21_v11 = vld [vmem:[%s1992_s0 + $0x18] sm:$0xff] }
  0x15   :  { %v138_v63 = vld [vmem:[%s1992_s0 + $0x3c0] sm:$0xff]  ;;  %v173_v2 = vpack.c.bf16 %v83_v62, %v78_v61  ;;  %v178_v14 = vpack.c.bf16 %v93_v10, %v88_v9  ;;  %v24_v20 = vld [vmem:[%s1992_s0 + $0x30] sm:$0xff]  ;;  %v37_v34 = vld [vmem:[%s1992_s0 + $0x98] sm:$0xff] }
  0x16   :  { %541 = vmatpush.bf16.msra.mxu0 %v1172_v5  ;;  %1221 = vmatpush.bf16.msra.mxu1 %v1172_v5  ;;  %v1186_v0 = vld [vmem:[%s1991_s1 + $0x80] sm:$0xff]  ;;  %v203_v3 = vpack.c.bf16 %v138_v63, %v138_v63  ;;  %v41_v35 = vld [vmem:[%s1992_s0 + $0xb8] sm:$0xff]  ;;  %v47_v46 = vld [vmem:[%s1992_s0 + $0xe8] sm:$0xff] }
  0x17   :  { %1223 = vmatpush.bf16.msra.mxu3 %v1172_v5  ;;  %1222 = vmatpush.bf16.msra.mxu2 %v1172_v5  ;;  %v25_v5 = vld [vmem:[%s1992_s0 + $0x38] sm:$0xff]  ;;  %v22_v21 = vld [vmem:[%s1992_s0 + $0x20] sm:$0xff]  ;;  %v51_v47 = vld [vmem:[%s1992_s0 + $0x108] sm:$0xff] }
  0x18   :  { %v46_v36 = vld [vmem:[%s1992_s0 + $0xe0] sm:$0xff]  ;;  %v61_v59 = vld [vmem:[%s1992_s0 + $0x158] sm:$0xff] }
  0x19   :  { %v156_v39 = vpack.c.bf16 %v46_v36, %v41_v35  ;;  %v66_v60 = vld [vmem:[%s1992_s0 + $0x180] sm:$0xff] }
  0x1a   :  { %542 = vmatpush.bf16.msra.mxu0 %v1171_v6  ;;  %1224 = vmatpush.bf16.msra.mxu1 %v1171_v6  ;;  %v166_v63 = vpack.c.bf16 %v66_v60, %v61_v59 }
  0x1b   :  { %1226 = vmatpush.bf16.msra.mxu3 %v1171_v6  ;;  %1225 = vmatpush.bf16.msra.mxu2 %v1171_v6  ;;  %v145_v6 = vpack.c.bf16 %v25_v5, %v20_v4  ;;  %v64_v4 = vld [vmem:[%s1992_s0 + $0x170] sm:$0xff]  ;;  %v62_v5 = vld [vmem:[%s1992_s0 + $0x160] sm:$0xff] }
  0x1e   :  { %543 = vmatpush.bf16.msra.mxu0 %v1170_v7  ;;  %1227 = vmatpush.bf16.msra.mxu1 %v1170_v7 }
  0x1f   :  { %1229 = vmatpush.bf16.msra.mxu3 %v1170_v7  ;;  %1228 = vmatpush.bf16.msra.mxu2 %v1170_v7  ;;  %v48_v7 = vld [vmem:[%s1992_s0 + $0xf0] sm:$0xff] }
  0x20   :  { %v158_v13 = vpack.c.bf16 %v53_v8, %v48_v7  ;;  %v71_v7 = vld [vmem:[%s1992_s0 + $0x1a8] sm:$0xff]  ;;  %v76_v8 = vld [vmem:[%s1992_s0 + $0x1d0] sm:$0xff] }
  0x21   :  { %544 = vmatmul.bf16.vlgmr.msra.gmra.mxu0 %v143_v17  ;;  %564 = vmatmul.bf16.vlgmr.msra.gmra.mxu1 %v163_v18  ;;  %v35_v17 = vld [vmem:[%s1992_s0 + $0x88] sm:$0xff] }
  0x22   :  { %609 = vmatpush.bf16.msrb.mxu1 %v1185_v12  ;;  %832 = vmatpush.bf16.msrb.mxu0 %v1205_v15  ;;  %v26_v12 = vld [vmem:[%s1992_s0 + $0x40] sm:$0xff] }
  0x23   :  { %755 = vmatpush.bf16.msrb.mxu3 %v1201_v16  ;;  %682 = vmatpush.bf16.msrb.mxu2 %v1193_v23  ;;  %v146_v15 = vpack.c.bf16 %v26_v12, %v21_v11  ;;  %v30_v16 = vld [vmem:[%s1992_s0 + $0x60] sm:$0xff]  ;;  %v31_v23 = vld [vmem:[%s1992_s0 + $0x68] sm:$0xff] }
  0x24   :  { %594 = vmatmul.bf16.vlgmr.msra.gmra.mxu3 %v193_v19  ;;  %584 = vmatmul.bf16.vlgmr.msra.gmra.mxu2 %v183_v26  ;;  %v150_v18 = vpack.c.bf16 %v35_v17, %v30_v16  ;;  %v19_v19 = vld [vmem:[%s1992_s0 + $0x8] sm:$0xff] }
  0x26   :  { %610 = vmatpush.bf16.msrb.mxu1 %v1184_v22  ;;  %833 = vmatpush.bf16.msrb.mxu0 %v1204_v25  ;;  %v27_v22 = vld [vmem:[%s1992_s0 + $0x48] sm:$0xff]  ;;  %v144_v25 = vpack.c.bf16 %v24_v20, %v19_v19 }
  0x27   :  { %756 = vmatpush.bf16.msrb.mxu3 %v1200_v24  ;;  %683 = vmatpush.bf16.msrb.mxu2 %v1192_v28  ;;  %v36_v24 = vld [vmem:[%s1992_s0 + $0x90] sm:$0xff]  ;;  %v147_v26 = vpack.c.bf16 %v27_v22, %v22_v21  ;;  %v69_v21 = vld [vmem:[%s1992_s0 + $0x198] sm:$0xff]  ;;  %v74_v22 = vld [vmem:[%s1992_s0 + $0x1c0] sm:$0xff] }
  0x28   :  { %v40_v28 = vld [vmem:[%s1992_s0 + $0xb0] sm:$0xff] }
  0x2a   :  { %611 = vmatpush.bf16.msrb.mxu1 %v1183_v27  ;;  %834 = vmatpush.bf16.msrb.mxu0 %v1203_v30  ;;  %v151_v27 = vpack.c.bf16 %v36_v24, %v31_v23  ;;  %v72_v23 = vld [vmem:[%s1992_s0 + $0x1b0] sm:$0xff]  ;;  %v77_v24 = vld [vmem:[%s1992_s0 + $0x1d8] sm:$0xff] }
  0x2b   :  { %757 = vmatpush.bf16.msrb.mxu3 %v1199_v29  ;;  %684 = vmatpush.bf16.msrb.mxu2 %v1191_v32  ;;  %v45_v29 = vld [vmem:[%s1992_s0 + $0xd8] sm:$0xff]  ;;  %v34_v32 = vld [vmem:[%s1992_s0 + $0x80] sm:$0xff] }
  0x2c   :  { %v155_v30 = vpack.c.bf16 %v45_v29, %v40_v28  ;;  %v172_v28 = vpack.c.bf16 %v77_v24, %v72_v23  ;;  %v99_v23 = vld [vmem:[%s1992_s0 + $0x288] sm:$0xff]  ;;  %v104_v24 = vld [vmem:[%s1992_s0 + $0x2b0] sm:$0xff] }
  0x2e   :  { %612 = vmatpush.bf16.msrb.mxu1 %v1182_v31  ;;  %835 = vmatpush.bf16.msrb.mxu0 %v1202_v54  ;;  %v29_v31 = vld [vmem:[%s1992_s0 + $0x58] sm:$0xff] }
  0x2f   :  { %758 = vmatpush.bf16.msrb.mxu3 %v1198_v33  ;;  %685 = vmatpush.bf16.msrb.mxu2 %v1190_v41  ;;  %v32_v33 = vld [vmem:[%s1992_s0 + $0x70] sm:$0xff]  ;;  %v149_v37 = vpack.c.bf16 %v34_v32, %v29_v31  ;;  %v55_v41 = vld [vmem:[%s1992_s0 + $0x128] sm:$0xff] }
  0x30   :  { %v152_v38 = vpack.c.bf16 %v37_v34, %v32_v33  ;;  %v90_v33 = vld [vmem:[%s1992_s0 + $0x240] sm:$0xff]  ;;  %v95_v34 = vld [vmem:[%s1992_s0 + $0x268] sm:$0xff] }
  0x31   :  { %549 = vmatmul.bf16.gmra.mxu0 %v148_v43  ;;  %569 = vmatmul.bf16.gmra.mxu1 %v168_v44  ;;  %v39_v43 = vld [vmem:[%s1992_s0 + $0xa8] sm:$0xff]  ;;  %v44_v44 = vld [vmem:[%s1992_s0 + $0xd0] sm:$0xff]  ;;  %v180_v36 = vpack.c.bf16 %v95_v34, %v90_v33 }
  0x32   :  { %613 = vmatpush.bf16.msrb.mxu1 %v1181_v40  ;;  %v50_v40 = vld [vmem:[%s1992_s0 + $0x100] sm:$0xff] }
  0x33   :  { %759 = vmatpush.bf16.msrb.mxu3 %v1197_v42  ;;  %686 = vmatpush.bf16.msrb.mxu2 %v1189_v48  ;;  %v160_v42 = vpack.c.bf16 %v55_v41, %v50_v40  ;;  %v56_v48 = vld [vmem:[%s1992_s0 + $0x130] sm:$0xff]  ;;  %v79_v41 = vld [vmem:[%s1992_s0 + $0x1e8] sm:$0xff] }
  0x34   :  { %599 = vmatmul.bf16.gmra.mxu3 %v198_v45  ;;  %589 = vmatmul.bf16.gmra.mxu2 %v188_v51  ;;  %v42_v45 = vld [vmem:[%s1992_s0 + $0xc0] sm:$0xff]  ;;  %v161_v51 = vpack.c.bf16 %v56_v48, %v51_v47 }
  0x36   :  { %614 = vmatpush.bf16.msrb.mxu1 %v1180_v49  ;;  %v154_v49 = vpack.c.bf16 %v44_v44, %v39_v43  ;;  %v82_v43 = vld [vmem:[%s1992_s0 + $0x200] sm:$0xff]  ;;  %v87_v44 = vld [vmem:[%s1992_s0 + $0x228] sm:$0xff] }
  0x37   :  { %760 = vmatpush.bf16.msrb.mxu3 %v1196_v50  ;;  %687 = vmatpush.bf16.msrb.mxu2 %v1188_v52  ;;  %v157_v50 = vpack.c.bf16 %v47_v46, %v42_v45  ;;  %v60_v52 = vld [vmem:[%s1992_s0 + $0x150] sm:$0xff]  ;;  %v91_v45 = vld [vmem:[%s1992_s0 + $0x248] sm:$0xff]  ;;  %v177_v48 = vpack.c.bf16 %v87_v44, %v82_v43  ;;  %v125_v44 = vld [vmem:[%s1992_s0 + $0x358] sm:$0xff] }
  0x38   :  { %v96_v46 = vld [vmem:[%s1992_s0 + $0x270] sm:$0xff] }
  0x39   :  { %v120_v43 = vld [vmem:[%s1992_s0 + $0x330] sm:$0xff] }
  0x3a   :  { %615 = vmatpush.bf16.msrb.mxu1 %v1179_v53  ;;  %v65_v53 = vld [vmem:[%s1992_s0 + $0x178] sm:$0xff] }
  0x3b   :  { %761 = vmatpush.bf16.msrb.mxu3 %v1195_v55  ;;  %688 = vmatpush.bf16.msrb.mxu2 %v1187_v56  ;;  %v165_v54 = vpack.c.bf16 %v65_v53, %v60_v52  ;;  %v49_v55 = vld [vmem:[%s1992_s0 + $0xf8] sm:$0xff]  ;;  %v54_v56 = vld [vmem:[%s1992_s0 + $0x120] sm:$0xff]  ;;  %v181_v52 = vpack.c.bf16 %v96_v46, %v91_v45  ;;  %v100_v53 = vld [vmem:[%s1992_s0 + $0x290] sm:$0xff] }
  0x3c   :  { %v159_v61 = vpack.c.bf16 %v54_v56, %v49_v55 }
  0x3e   :  { %616 = vmatpush.bf16.msrb.mxu1 %v1178_v57  ;;  %v52_v57 = vld [vmem:[%s1992_s0 + $0x110] sm:$0xff] }
  0x3f   :  { %762 = vmatpush.bf16.msrb.mxu3 %v1194_v58  ;;  %689 = vmatpush.bf16.msrb.mxu2 %v1186_v0  ;;  %v57_v58 = vld [vmem:[%s1992_s0 + $0x138] sm:$0xff]  ;;  %v70_v0 = vld [vmem:[%s1992_s0 + $0x1a0] sm:$0xff] }
  0x40   :  { %v162_v62 = vpack.c.bf16 %v57_v58, %v52_v57 }
  0x41   :  { %554 = vmatmul.bf16.gmra.mxu0 %v153_v1  ;;  %574 = vmatmul.bf16.gmra.mxu1 %v173_v2  ;;  %v75_v1 = vld [vmem:[%s1992_s0 + $0x1c8] sm:$0xff] }
  0x42   :  { %v170_v2 = vpack.c.bf16 %v75_v1, %v70_v0  ;;  %v97_v0 = vld [vmem:[%s1992_s0 + $0x278] sm:$0xff] }
  0x43   :  { %v101_v1 = vld [vmem:[%s1992_s0 + $0x298] sm:$0xff] }
  0x44   :  { %604 = vmatmul.bf16.gmra.mxu3 %v203_v3  ;;  %690 = vmatmul.bf16.vlgmr.msrb.gmra.mxu2 %v145_v6  ;;  %v59_v3 = vld [vmem:[%s1992_s0 + $0x148] sm:$0xff] }
  0x45   :  { %v67_v6 = vld [vmem:[%s1992_s0 + $0x188] sm:$0xff]  ;;  %v164_v9 = vpack.c.bf16 %v64_v4, %v59_v3 }
  0x46   :  { %v167_v10 = vpack.c.bf16 %v67_v6, %v62_v5 }
  0x51   :  { %559 = vmatmul.bf16.gmra.mxu0 %v158_v13  ;;  %579 = vmatmul.bf16.gmra.mxu1 %v178_v14  ;;  %v171_v13 = vpack.c.bf16 %v76_v8, %v71_v7  ;;  %v80_v14 = vld [vmem:[%s1992_s0 + $0x1f0] sm:$0xff] }
  0x54   :  { %763 = vmatmul.bf16.vlgmr.msrb.gmra.mxu3 %v146_v15  ;;  %695 = vmatmul.bf16.gmra.mxu2 %v150_v18  ;;  %v85_v15 = vld [vmem:[%s1992_s0 + $0x218] sm:$0xff] }
  0x55   :  { %v175_v16 = vpack.c.bf16 %v85_v15, %v80_v14 }
  0x61   :  { %617 = vmatmul.bf16.vlgmr.msrb.gmra.mxu1 %v144_v25  ;;  %1157 = vmatmul.msk.bf16.vlgmr.msrb.gmra.mxu0 %vm496_vm0, %v147_v26  ;;  %v81_v25 = vld [vmem:[%s1992_s0 + $0x1f8] sm:$0xff]  ;;  %v86_v26 = vld [vmem:[%s1992_s0 + $0x220] sm:$0xff] }
  0x62   :  { %v176_v32 = vpack.c.bf16 %v86_v26, %v81_v25  ;;  %v102_v25 = vld [vmem:[%s1992_s0 + $0x2a0] sm:$0xff]  ;;  %v107_v26 = vld [vmem:[%s1992_s0 + $0x2c8] sm:$0xff] }
  0x63   :  { %v187_v33 = vpack.c.bf16 %v107_v26, %v102_v25 }
  0x64   :  { %768 = vmatmul.bf16.gmra.mxu3 %v151_v27  ;;  %700 = vmatmul.bf16.gmra.mxu2 %v155_v30  ;;  %v169_v27 = vpack.c.bf16 %v74_v22, %v69_v21 }
  0x71   :  { %622 = vmatmul.bf16.gmra.mxu1 %v149_v37  ;;  %1158 = vmatmul.msk.bf16.gmra.mxu0 %vm496_vm0, %v152_v38 }
  0x74   :  { %773 = vmatmul.bf16.gmra.mxu3 %v156_v39  ;;  %705 = vmatmul.bf16.gmra.mxu2 %v160_v42  ;;  %v84_v42 = vld [vmem:[%s1992_s0 + $0x210] sm:$0xff] }
  0x75   :  { %v174_v47 = vpack.c.bf16 %v84_v42, %v79_v41 }
  0x81   :  { %627 = vmatmul.bf16.gmra.mxu1 %v154_v49  ;;  %1159 = vmatmul.msk.bf16.gmra.mxu0 %vm496_vm0, %v157_v50 }
  0x84   :  { %778 = vmatmul.bf16.gmra.mxu3 %v161_v51  ;;  %710 = vmatmul.bf16.gmra.mxu2 %v165_v54  ;;  %v105_v54 = vld [vmem:[%s1992_s0 + $0x2b8] sm:$0xff] }
  0x85   :  { %v185_v56 = vpack.c.bf16 %v105_v54, %v100_v53  ;;  %v1737_v53 = vld [vmem:[%s1993_s2] ss:$0 sm:$0xff] }
  0x91   :  { %632 = vmatmul.bf16.gmra.mxu1 %v159_v61  ;;  %1160 = vmatmul.msk.bf16.gmra.mxu0 %vm496_vm0, %v162_v62  ;;  %v89_v61 = vld [vmem:[%s1992_s0 + $0x238] sm:$0xff]  ;;  %v94_v62 = vld [vmem:[%s1992_s0 + $0x260] sm:$0xff] }
  0x92   :  { %v179_v3 = vpack.c.bf16 %v94_v62, %v89_v61 }
  0x94   :  { %783 = vmatmul.bf16.gmra.mxu3 %v166_v63  ;;  %715 = vmatmul.bf16.gmra.mxu2 %v170_v2  ;;  %v92_v63 = vld [vmem:[%s1992_s0 + $0x250] sm:$0xff]  ;;  %v106_v2 = vld [vmem:[%s1992_s0 + $0x2c0] sm:$0xff] }
  0x95   :  { %v182_v4 = vpack.c.bf16 %v97_v0, %v92_v63  ;;  %v186_v8 = vpack.c.bf16 %v106_v2, %v101_v1 }
  0x9e   :  { %v1576_v11 = vpop.f32.mrf.mxu0  ;;  %v1578_v12 = vpop.f32.mrf.mxu1 }
  0xa1   :  { %637 = vmatmul.bf16.gmra.mxu1 %v164_v9  ;;  %1161 = vmatmul.msk.bf16.gmra.mxu0 %vm496_vm0, %v167_v10  ;;  %v110_v9 = vld [vmem:[%s1992_s0 + $0x2e0] sm:$0xff]  ;;  %v115_v10 = vld [vmem:[%s1992_s0 + $0x308] sm:$0xff] }
  0xa2   :  { %v190_v14 = vpack.c.bf16 %v115_v10, %v110_v9  ;;  %v121_v10 = vld [vmem:[%s1992_s0 + $0x338] sm:$0xff] }
  0xa4   :  { %788 = vmatmul.bf16.gmra.mxu3 %v171_v13  ;;  %720 = vmatmul.bf16.gmra.mxu2 %v175_v16 }
  0xa6   :  { %v1589_v18 = vpop.f32.mrf.mxu0  ;;  %v1591_v19 = vpop.f32.mrf.mxu1 }
  0xa7   :  { %v1587_v17 = vpop.f32.mrf.mxu3  ;;  %v1593_v20 = vpop.f32.mrf.mxu2 }
  0xae   :  { %v1615_v30 = vpop.f32.mrf.mxu0  ;;  %v1617_v31 = vpop.f32.mrf.mxu1 }
  0xaf   :  { %v1613_v29 = vpop.f32.mrf.mxu3  ;;  %v1625_v35 = vpop.f32.mrf.mxu2 }
  0xb1   :  { %642 = vmatmul.bf16.gmra.mxu1 %v169_v27  ;;  %1162 = vmatmul.msk.bf16.gmra.mxu0 %vm496_vm0, %v172_v28  ;;  %v111_v27 = vld [vmem:[%s1992_s0 + $0x2e8] sm:$0xff]  ;;  %v116_v28 = vld [vmem:[%s1992_s0 + $0x310] sm:$0xff] }
  0xb2   :  { %v191_v42 = vpack.c.bf16 %v116_v28, %v111_v27  ;;  %v130_v28 = vld [vmem:[%s1992_s0 + $0x380] sm:$0xff] }
  0xb4   :  { %793 = vmatmul.bf16.gmra.mxu3 %v176_v32  ;;  %725 = vmatmul.bf16.gmra.mxu2 %v180_v36  ;;  %v184_v32 = vpack.c.bf16 %v104_v24, %v99_v23 }
  0xb6   :  { %v1630_v38 = vpop.f32.mrf.mxu0  ;;  %v1632_v39 = vpop.f32.mrf.mxu1 }
  0xb7   :  { %v1628_v37 = vpop.f32.mrf.mxu3  ;;  %v1634_v40 = vpop.f32.mrf.mxu2 }
  0xbe   :  { %v1656_v50 = vpop.f32.mrf.mxu0  ;;  %v1658_v51 = vpop.f32.mrf.mxu1 }
  0xbf   :  { %v1654_v49 = vpop.f32.mrf.mxu3  ;;  %v1666_v55 = vpop.f32.mrf.mxu2 }
  0xc1   :  { %647 = vmatmul.bf16.gmra.mxu1 %v174_v47  ;;  %1163 = vmatmul.msk.bf16.gmra.mxu0 %vm496_vm0, %v177_v48  ;;  %v195_v48 = vpack.c.bf16 %v125_v44, %v120_v43 }
  0xc4   :  { %798 = vmatmul.bf16.gmra.mxu3 %v181_v52  ;;  %730 = vmatmul.bf16.gmra.mxu2 %v185_v56  ;;  %v1742_v56 = vld [vmem:[%s1994_s3] ss:$0 sm:$0xff] }
  0xc6   :  { %v1671_v58 = vpop.f32.mrf.mxu0  ;;  %v1673_v59 = vpop.f32.mrf.mxu1 }
  0xc7   :  { %v1669_v57 = vpop.f32.mrf.mxu3  ;;  %v691_v60 = vpop.f32.mrf.mxu2 }
  0xce   :  { %v1693_v6 = vpop.f32.mrf.mxu0  ;;  %v1695_v7 = vpop.f32.mrf.mxu1 }
  0xcf   :  { %v607_v5 = vpop.f32.mrf.mxu3  ;;  %v693_v13 = vpop.f32.mrf.mxu2 }
  0xd0   :  { %v112_v5 = vld [vmem:[%s1992_s0 + $0x2f0] sm:$0xff] }
  0xd1   :  { %652 = vmatmul.bf16.gmra.mxu1 %v179_v3  ;;  %1164 = vmatmul.msk.bf16.gmra.mxu0 %vm496_vm0, %v182_v4  ;;  %v109_v3 = vld [vmem:[%s1992_s0 + $0x2d8] sm:$0xff]  ;;  %v114_v4 = vld [vmem:[%s1992_s0 + $0x300] sm:$0xff] }
  0xd4   :  { %803 = vmatmul.bf16.gmra.mxu3 %v186_v8  ;;  %735 = vmatmul.bf16.gmra.mxu2 %v190_v14 }
  0xd6   :  { %v1704_v16 = vpop.f32.mrf.mxu0  ;;  %v1706_v21 = vpop.f32.mrf.mxu1 }
  0xd7   :  { %v764_v15 = vpop.f32.mrf.mxu3  ;;  %v696_v22 = vpop.f32.mrf.mxu2 }
  0xde   :  { %v618_v36 = vpop.f32.mrf.mxu1  ;;  %v837_v41 = vpop.f32.mrf.mxu0 }
  0xdf   :  { %v766_v34 = vpop.f32.mrf.mxu3  ;;  %v619_v45 = vadd.f32 %v618_v36, %v1576_v11  ;;  %v698_v46 = vpop.f32.mrf.mxu2 }
  0xe1   :  { %v692_v47 = vadd.f32 %v691_v60, %v619_v45  ;;  %657 = vmatmul.bf16.gmra.mxu1 %v184_v32  ;;  %1165 = vmatmul.msk.bf16.gmra.mxu0 %vm496_vm0, %v187_v33  ;;  %v135_v32 = vld [vmem:[%s1992_s0 + $0x3a8] sm:$0xff] }
  0xe2   :  { %v200_v43 = vpack.c.bf16 %v135_v32, %v130_v28 }
  0xe3   :  { %v765_v52 = vadd.f32 %v764_v15, %v692_v47  ;;  %v189_v15 = vpack.c.bf16 %v114_v4, %v109_v3  ;;  %v136_v4 = vld [vmem:[%s1992_s0 + $0x3b0] sm:$0xff] }
  0xe4   :  { %808 = vmatmul.bf16.gmra.mxu3 %v191_v42  ;;  %740 = vmatmul.bf16.gmra.mxu2 %v195_v48 }
  0xe5   :  { %v838_v54 = vadd.f32 %v837_v41, %v765_v52 }
  0xe6   :  { %v620_v60 = vpop.f32.mrf.mxu1  ;;  %v839_v61 = vpop.f32.mrf.mxu0 }
  0xe7   :  { %v769_v11 = vpop.f32.mrf.mxu3  ;;  %v905_v62 = vmul.f32 %v1737_v53, %v838_v54  ;;  %v621_v63 = vadd.f32 %v620_v60, %v1589_v18  ;;  %v1746_v0 = vpop.f32.mrf.mxu2  ;;  %v117_v18 = vld [vmem:[%s1992_s0 + $0x318] sm:$0xff] }
  0xe8   :  { %v192_v23 = vpack.c.bf16 %v117_v18, %v112_v5 }
  0xe9   :  { %v934_v1 = vadd.f32 %v1742_v56, %v905_v62  ;;  %v694_v2 = vadd.f32 %v693_v13, %v621_v63  ;;  %v126_v13 = vld [vmem:[%s1992_s0 + $0x360] sm:$0xff]  ;;  %v124_v63 = vld [vmem:[%s1992_s0 + $0x350] sm:$0xff] }
  0xea   :  { %v196_v27 = vpack.c.bf16 %v126_v13, %v121_v10 }
  0xeb   :  { %v959_v8 = vmax.f32 %v934_v1, 0.0  ;;  %v767_v9 = vadd.f32 %v766_v34, %v694_v2  ;;  %v122_v1 = vld [vmem:[%s1992_s0 + $0x340] sm:$0xff] }
  0xed   :  { %984 = vst.msk [vmem:[%s1995_s4] sm:$0xff] %vm496_vm0, %v959_v8  ;;  %v840_v14 = vadd.f32 %v839_v61, %v767_v9 }
  0xee   :  { %v623_v25 = vpop.f32.mrf.mxu1  ;;  %v842_v26 = vpop.f32.mrf.mxu0 }
  0xef   :  { %v771_v24 = vpop.f32.mrf.mxu3  ;;  %v906_v33 = vmul.f32 %v1737_v53, %v840_v14  ;;  %v624_v34 = vadd.f32 %v623_v25, %v1615_v30  ;;  %v703_v36 = vpop.f32.mrf.mxu2 }
  0xf1   :  { %v935_v41 = vadd.f32 %v1742_v56, %v906_v33  ;;  %v697_v42 = vadd.f32 %v696_v22, %v624_v34  ;;  %662 = vmatmul.bf16.gmra.mxu1 %v189_v15  ;;  %1166 = vmatmul.msk.bf16.gmra.mxu0 %vm496_vm0, %v192_v23  ;;  %v140_v15 = vld [vmem:[%s1992_s0 + $0x3d0] sm:$0xff] }
  0xf2   :  { %v205_v28 = vpack.c.bf16 %v140_v15, %v140_v15 }
  0xf3   :  { %v960_v44 = vmax.f32 %v935_v41, 0.0  ;;  %v770_v45 = vadd.f32 %v769_v11, %v697_v42  ;;  %v119_v11 = vld [vmem:[%s1992_s0 + $0x328] sm:$0xff] }
  0xf4   :  { %813 = vmatmul.bf16.gmra.mxu3 %v196_v27  ;;  %745 = vmatmul.bf16.gmra.mxu2 %v200_v43  ;;  %v194_v18 = vpack.c.bf16 %v124_v63, %v119_v11 }
  0xf5   :  { %985 = vst.msk [vmem:[%s1995_s4 + $0x8] sm:$0xff] %vm496_vm0, %v960_v44  ;;  %v843_v47 = vadd.f32 %v842_v26, %v770_v45 }
  0xf6   :  { %v625_v30 = vpop.f32.mrf.mxu1  ;;  %v844_v52 = vpop.f32.mrf.mxu0 }
  0xf7   :  { %v774_v48 = vpop.f32.mrf.mxu3  ;;  %v907_v54 = vmul.f32 %v1737_v53, %v843_v47  ;;  %v626_v22 = vadd.f32 %v625_v30, %v1630_v38  ;;  %v706_v60 = vpop.f32.mrf.mxu2  ;;  %v127_v38 = vld [vmem:[%s1992_s0 + $0x368] sm:$0xff]  ;;  %v134_v30 = vld [vmem:[%s1992_s0 + $0x3a0] sm:$0xff] }
  0xf8   :  { %v197_v8 = vpack.c.bf16 %v127_v38, %v122_v1 }
  0xf9   :  { %v936_v61 = vadd.f32 %v1742_v56, %v907_v54  ;;  %v699_v62 = vadd.f32 %v698_v46, %v626_v22  ;;  %v131_v46 = vld [vmem:[%s1992_s0 + $0x388] sm:$0xff] }
  0xfa   :  { %v201_v14 = vpack.c.bf16 %v136_v4, %v131_v46 }
  0xfb   :  { %v961_v2 = vmax.f32 %v936_v61, 0.0  ;;  %v772_v3 = vadd.f32 %v771_v24, %v699_v62 }
  0xfd   :  { %986 = vst.msk [vmem:[%s1995_s4 + $0x10] sm:$0xff] %vm496_vm0, %v961_v2  ;;  %v845_v5 = vadd.f32 %v844_v52, %v772_v3  ;;  %v132_v52 = vld [vmem:[%s1992_s0 + $0x390] sm:$0xff] }
  0xfe   :  { %v628_v10 = vpop.f32.mrf.mxu1  ;;  %v847_v13 = vpop.f32.mrf.mxu0 }
  0xff   :  { %v776_v9 = vpop.f32.mrf.mxu3  ;;  %v908_v23 = vmul.f32 %v1737_v53, %v845_v5  ;;  %v629_v24 = vadd.f32 %v628_v10, %v1656_v50  ;;  %v708_v25 = vpop.f32.mrf.mxu2 }
 0x101   :  { %v937_v26 = vadd.f32 %v1742_v56, %v908_v23  ;;  %v702_v27 = vadd.f32 %v1746_v0, %v629_v24  ;;  %667 = vmatmul.bf16.gmra.mxu1 %v194_v18  ;;  %1167 = vmatmul.msk.bf16.gmra.mxu0 %vm496_vm0, %v197_v8 }
 0x103   :  { %v962_v32 = vmax.f32 %v937_v26, 0.0  ;;  %v775_v33 = vadd.f32 %v774_v48, %v702_v27  ;;  %v129_v48 = vld [vmem:[%s1992_s0 + $0x378] sm:$0xff]  ;;  %v139_v27 = vld [vmem:[%s1992_s0 + $0x3c8] sm:$0xff] }
 0x104   :  { %818 = vmatmul.bf16.gmra.mxu3 %v201_v14  ;;  %750 = vmatmul.bf16.gmra.mxu2 %v205_v28  ;;  %v199_v62 = vpack.c.bf16 %v134_v30, %v129_v48  ;;  %v142_v28 = vld [vmem:[%s1992_s0 + $0x3e0] sm:$0xff] }
 0x105   :  { %987 = vst.msk [vmem:[%s1995_s4 + $0x18] sm:$0xff] %vm496_vm0, %v962_v32  ;;  %v848_v34 = vadd.f32 %v847_v13, %v775_v33 }
 0x106   :  { %v630_v50 = vpop.f32.mrf.mxu1  ;;  %v849_v42 = vpop.f32.mrf.mxu0 }
 0x107   :  { %v779_v41 = vpop.f32.mrf.mxu3  ;;  %v909_v43 = vmul.f32 %v1737_v53, %v848_v34  ;;  %v631_v0 = vadd.f32 %v630_v50, %v1671_v58  ;;  %v711_v44 = vpop.f32.mrf.mxu2  ;;  %v137_v58 = vld [vmem:[%s1992_s0 + $0x3b8] sm:$0xff]  ;;  %v204_v34 = vpack.c.bf16 %v139_v27, %v139_v27 }
 0x108   :  { %v202_v11 = vpack.c.bf16 %v137_v58, %v132_v52 }
 0x109   :  { %v938_v45 = vadd.f32 %v1742_v56, %v909_v43  ;;  %v704_v47 = vadd.f32 %v703_v36, %v631_v0  ;;  %v141_v36 = vld [vmem:[%s1992_s0 + $0x3d8] sm:$0xff] }
 0x10a   :  { %v206_v2 = vpack.c.bf16 %v141_v36, %v141_v36 }
 0x10b   :  { %v963_v54 = vmax.f32 %v938_v45, 0.0  ;;  %v777_v22 = vadd.f32 %v776_v9, %v704_v47 }
 0x10d   :  { %988 = vst.msk [vmem:[%s1995_s4 + $0x20] sm:$0xff] %vm496_vm0, %v963_v54  ;;  %v850_v61 = vadd.f32 %v849_v42, %v777_v22 }
 0x10e   :  { %v633_v1 = vpop.f32.mrf.mxu1  ;;  %v852_v38 = vpop.f32.mrf.mxu0 }
 0x10f   :  { %v781_v63 = vpop.f32.mrf.mxu3  ;;  %v910_v3 = vmul.f32 %v1737_v53, %v850_v61  ;;  %v634_v46 = vadd.f32 %v633_v1, %v1693_v6  ;;  %v713_v4 = vpop.f32.mrf.mxu2 }
 0x111   :  { %v939_v5 = vadd.f32 %v1742_v56, %v910_v3  ;;  %v707_v18 = vadd.f32 %v706_v60, %v634_v46  ;;  %672 = vmatmul.bf16.gmra.mxu1 %v199_v62  ;;  %1168 = vmatmul.msk.bf16.gmra.mxu0 %vm496_vm0, %v202_v11 }
 0x113   :  { %v964_v8 = vmax.f32 %v939_v5, 0.0  ;;  %v780_v9 = vadd.f32 %v779_v41, %v707_v18  ;;  %v207_v41 = vpack.c.bf16 %v142_v28, %v142_v28 }
 0x114   :  { %823 = vmatmul.bf16.gmra.mxu3 %v206_v2 }
 0x115   :  { %989 = vst.msk [vmem:[%s1995_s4 + $0x28] sm:$0xff] %vm496_vm0, %v964_v8  ;;  %v853_v10 = vadd.f32 %v852_v38, %v780_v9 }
 0x116   :  { %v635_v14 = vpop.f32.mrf.mxu1  ;;  %v854_v15 = vpop.f32.mrf.mxu0 }
 0x117   :  { %v784_v13 = vpop.f32.mrf.mxu3  ;;  %v911_v6 = vmul.f32 %v1737_v53, %v853_v10  ;;  %v636_v23 = vadd.f32 %v635_v14, %v1704_v16  ;;  %v716_v60 = vpop.f32.mrf.mxu2 }
 0x119   :  { %v940_v24 = vadd.f32 %v1742_v56, %v911_v6  ;;  %v709_v26 = vadd.f32 %v708_v25, %v636_v23 }
 0x11b   :  { %v965_v32 = vmax.f32 %v940_v24, 0.0  ;;  %v782_v33 = vadd.f32 %v781_v63, %v709_v26 }
 0x11d   :  { %990 = vst.msk [vmem:[%s1995_s4 + $0x30] sm:$0xff] %vm496_vm0, %v965_v32  ;;  %v855_v16 = vadd.f32 %v854_v15, %v782_v33 }
 0x11e   :  { %v638_v25 = vpop.f32.mrf.mxu1  ;;  %v857_v42 = vpop.f32.mrf.mxu0 }
 0x11f   :  { %v786_v50 = vpop.f32.mrf.mxu3  ;;  %v912_v43 = vmul.f32 %v1737_v53, %v855_v16  ;;  %v639_v0 = vadd.f32 %v638_v25, %v1578_v12  ;;  %v718_v45 = vpop.f32.mrf.mxu2 }
 0x121   :  { %v941_v47 = vadd.f32 %v1742_v56, %v912_v43  ;;  %v712_v48 = vadd.f32 %v711_v44, %v639_v0  ;;  %677 = vmatmul.bf16.gmra.mxu1 %v204_v34  ;;  %1169 = vmatmul.msk.bf16.gmra.mxu0 %vm496_vm0, %v207_v41 }
 0x123   :  { %v966_v30 = vmax.f32 %v941_v47, 0.0  ;;  %v785_v52 = vadd.f32 %v784_v13, %v712_v48 }
 0x125   :  { %991 = vst.msk [vmem:[%s1995_s4 + $0x38] sm:$0xff] %vm496_vm0, %v966_v30  ;;  %v858_v58 = vadd.f32 %v857_v42, %v785_v52 }
 0x126   :  { %v640_v22 = vpop.f32.mrf.mxu1  ;;  %v859_v36 = vpop.f32.mrf.mxu0 }
 0x127   :  { %v789_v54 = vpop.f32.mrf.mxu3  ;;  %v913_v12 = vmul.f32 %v1737_v53, %v858_v58  ;;  %v641_v61 = vadd.f32 %v640_v22, %v1591_v19  ;;  %v721_v62 = vpop.f32.mrf.mxu2 }
 0x129   :  { %v942_v44 = vadd.f32 %v1742_v56, %v913_v12  ;;  %v714_v11 = vadd.f32 %v713_v4, %v641_v61 }
 0x12b   :  { %v967_v63 = vmax.f32 %v942_v44, 0.0  ;;  %v787_v1 = vadd.f32 %v786_v50, %v714_v11 }
 0x12d   :  { %992 = vst.msk [vmem:[%s1995_s4 + $0x40] sm:$0xff] %vm496_vm0, %v967_v63  ;;  %v860_v38 = vadd.f32 %v859_v36, %v787_v1 }
 0x12e   :  { %v643_v3 = vpop.f32.mrf.mxu1  ;;  %v862_v46 = vpop.f32.mrf.mxu0 }
 0x12f   :  { %v791_v2 = vpop.f32.mrf.mxu3  ;;  %v914_v5 = vmul.f32 %v1737_v53, %v860_v38  ;;  %v644_v18 = vadd.f32 %v643_v3, %v1617_v31  ;;  %v723_v19 = vpop.f32.mrf.mxu2 }
 0x131   :  { %v943_v8 = vadd.f32 %v1742_v56, %v914_v5  ;;  %v717_v9 = vadd.f32 %v716_v60, %v644_v18 }
 0x133   :  { %v968_v4 = vmax.f32 %v943_v8, 0.0  ;;  %v790_v10 = vadd.f32 %v789_v54, %v717_v9 }
 0x135   :  { %993 = vst.msk [vmem:[%s1995_s4 + $0x48] sm:$0xff] %vm496_vm0, %v968_v4  ;;  %v863_v13 = vadd.f32 %v862_v46, %v790_v10 }
 0x136   :  { %v645_v15 = vpop.f32.mrf.mxu1  ;;  %v864_v6 = vpop.f32.mrf.mxu0 }
 0x137   :  { %v794_v14 = vpop.f32.mrf.mxu3  ;;  %v915_v23 = vmul.f32 %v1737_v53, %v863_v13  ;;  %v646_v24 = vadd.f32 %v645_v15, %v1632_v39  ;;  %v726_v31 = vpop.f32.mrf.mxu2 }
 0x139   :  { %v944_v26 = vadd.f32 %v1742_v56, %v915_v23  ;;  %v719_v27 = vadd.f32 %v718_v45, %v646_v24 }
 0x13b   :  { %v969_v60 = vmax.f32 %v944_v26, 0.0  ;;  %v792_v28 = vadd.f32 %v791_v2, %v719_v27 }
 0x13d   :  { %994 = vst.msk [vmem:[%s1995_s4 + $0x50] sm:$0xff] %vm496_vm0, %v969_v60  ;;  %v865_v32 = vadd.f32 %v864_v6, %v792_v28 }
 0x13e   :  { %v648_v16 = vpop.f32.mrf.mxu1  ;;  %v867_v34 = vpop.f32.mrf.mxu0 }
 0x13f   :  { %v796_v33 = vpop.f32.mrf.mxu3  ;;  %v916_v41 = vmul.f32 %v1737_v53, %v865_v32  ;;  %v649_v50 = vadd.f32 %v648_v16, %v1658_v51  ;;  %v728_v39 = vpop.f32.mrf.mxu2 }
 0x141   :  { %v945_v25 = vadd.f32 %v1742_v56, %v916_v41  ;;  %v722_v42 = vadd.f32 %v721_v62, %v649_v50 }
 0x143   :  { %v970_v43 = vmax.f32 %v945_v25, 0.0  ;;  %v795_v0 = vadd.f32 %v794_v14, %v722_v42 }
 0x145   :  { %995 = vst.msk [vmem:[%s1995_s4 + $0x58] sm:$0xff] %vm496_vm0, %v970_v43  ;;  %v868_v45 = vadd.f32 %v867_v34, %v795_v0 }
 0x146   :  { %v650_v48 = vpop.f32.mrf.mxu1  ;;  %v869_v30 = vpop.f32.mrf.mxu0 }
 0x147   :  { %v799_v47 = vpop.f32.mrf.mxu3  ;;  %v917_v52 = vmul.f32 %v1737_v53, %v868_v45  ;;  %v651_v58 = vadd.f32 %v650_v48, %v1673_v59  ;;  %v731_v51 = vpop.f32.mrf.mxu2 }
 0x149   :  { %v946_v54 = vadd.f32 %v1742_v56, %v917_v52  ;;  %v724_v22 = vadd.f32 %v723_v19, %v651_v58 }
 0x14b   :  { %v971_v36 = vmax.f32 %v946_v54, 0.0  ;;  %v797_v12 = vadd.f32 %v796_v33, %v724_v22 }
 0x14d   :  { %996 = vst.msk [vmem:[%s1995_s4 + $0x60] sm:$0xff] %vm496_vm0, %v971_v36  ;;  %v870_v61 = vadd.f32 %v869_v30, %v797_v12 }
 0x14e   :  { %v653_v44 = vpop.f32.mrf.mxu1  ;;  %v872_v11 = vpop.f32.mrf.mxu0 }
 0x14f   :  { %v801_v62 = vpop.f32.mrf.mxu3  ;;  %v918_v63 = vmul.f32 %v1737_v53, %v870_v61  ;;  %v654_v1 = vadd.f32 %v653_v44, %v1695_v7  ;;  %v733_v59 = vpop.f32.mrf.mxu2 }
 0x151   :  { %v947_v38 = vadd.f32 %v1742_v56, %v918_v63  ;;  %v727_v2 = vadd.f32 %v726_v31, %v654_v1 }
 0x153   :  { %v972_v3 = vmax.f32 %v947_v38, 0.0  ;;  %v800_v46 = vadd.f32 %v799_v47, %v727_v2 }
 0x155   :  { %997 = vst.msk [vmem:[%s1995_s4 + $0x68] sm:$0xff] %vm496_vm0, %v972_v3  ;;  %v873_v5 = vadd.f32 %v872_v11, %v800_v46 }
 0x156   :  { %v655_v19 = vpop.f32.mrf.mxu1  ;;  %v874_v8 = vpop.f32.mrf.mxu0 }
 0x157   :  { %v804_v18 = vpop.f32.mrf.mxu3  ;;  %v919_v9 = vmul.f32 %v1737_v53, %v873_v5  ;;  %v656_v4 = vadd.f32 %v655_v19, %v1706_v21  ;;  %v736_v7 = vpop.f32.mrf.mxu2 }
 0x159   :  { %v948_v10 = vadd.f32 %v1742_v56, %v919_v9  ;;  %v729_v13 = vadd.f32 %v728_v39, %v656_v4 }
 0x15b   :  { %v973_v14 = vmax.f32 %v948_v10, 0.0  ;;  %v802_v15 = vadd.f32 %v801_v62, %v729_v13 }
 0x15d   :  { %998 = vst.msk [vmem:[%s1995_s4 + $0x70] sm:$0xff] %vm496_vm0, %v973_v14  ;;  %v875_v6 = vadd.f32 %v874_v8, %v802_v15 }
 0x15e   :  { %v658_v24 = vpop.f32.mrf.mxu1  ;;  %v877_v31 = vpop.f32.mrf.mxu0 }
 0x15f   :  { %v806_v23 = vpop.f32.mrf.mxu3  ;;  %v920_v26 = vmul.f32 %v1737_v53, %v875_v6  ;;  %v659_v27 = vadd.f32 %v658_v24, %v1593_v20  ;;  %v738_v21 = vpop.f32.mrf.mxu2 }
 0x161   :  { %v949_v60 = vadd.f32 %v1742_v56, %v920_v26  ;;  %v732_v28 = vadd.f32 %v731_v51, %v659_v27 }
 0x163   :  { %v974_v32 = vmax.f32 %v949_v60, 0.0  ;;  %v805_v33 = vadd.f32 %v804_v18, %v732_v28 }
 0x165   :  { %999 = vst.msk [vmem:[%s1995_s4 + $0x78] sm:$0xff] %vm496_vm0, %v974_v32  ;;  %v878_v16 = vadd.f32 %v877_v31, %v805_v33 }
 0x166   :  { %v660_v41 = vpop.f32.mrf.mxu1  ;;  %v879_v50 = vpop.f32.mrf.mxu0 }
 0x167   :  { %v809_v34 = vpop.f32.mrf.mxu3  ;;  %v921_v39 = vmul.f32 %v1737_v53, %v878_v16  ;;  %v661_v25 = vadd.f32 %v660_v41, %v1625_v35  ;;  %v741_v20 = vpop.f32.mrf.mxu2 }
 0x169   :  { %v950_v42 = vadd.f32 %v1742_v56, %v921_v39  ;;  %v734_v43 = vadd.f32 %v733_v59, %v661_v25 }
 0x16b   :  { %v975_v0 = vmax.f32 %v950_v42, 0.0  ;;  %v807_v45 = vadd.f32 %v806_v23, %v734_v43 }
 0x16d   :  { %1000 = vst.msk [vmem:[%s1995_s4 + $0x80] sm:$0xff] %vm496_vm0, %v975_v0  ;;  %v880_v47 = vadd.f32 %v879_v50, %v807_v45 }
 0x16e   :  { %v663_v30 = vpop.f32.mrf.mxu1  ;;  %v882_v52 = vpop.f32.mrf.mxu0 }
 0x16f   :  { %v811_v48 = vpop.f32.mrf.mxu3  ;;  %v922_v58 = vmul.f32 %v1737_v53, %v880_v47  ;;  %v664_v51 = vadd.f32 %v663_v30, %v1634_v40  ;;  %v743_v35 = vpop.f32.mrf.mxu2 }
 0x171   :  { %v951_v54 = vadd.f32 %v1742_v56, %v922_v58  ;;  %v737_v22 = vadd.f32 %v736_v7, %v664_v51 }
 0x173   :  { %v976_v36 = vmax.f32 %v951_v54, 0.0  ;;  %v810_v12 = vadd.f32 %v809_v34, %v737_v22 }
 0x175   :  { %1001 = vst.msk [vmem:[%s1995_s4 + $0x88] sm:$0xff] %vm496_vm0, %v976_v36  ;;  %v883_v61 = vadd.f32 %v882_v52, %v810_v12 }
 0x176   :  { %v665_v44 = vpop.f32.mrf.mxu1  ;;  %v884_v11 = vpop.f32.mrf.mxu0 }
 0x177   :  { %v814_v62 = vpop.f32.mrf.mxu3  ;;  %v923_v63 = vmul.f32 %v1737_v53, %v883_v61  ;;  %v666_v1 = vadd.f32 %v665_v44, %v1666_v55  ;;  %v746_v40 = vpop.f32.mrf.mxu2 }
 0x179   :  { %v952_v59 = vadd.f32 %v1742_v56, %v923_v63  ;;  %v739_v38 = vadd.f32 %v738_v21, %v666_v1 }
 0x17b   :  { %v977_v2 = vmax.f32 %v952_v59, 0.0  ;;  %v812_v3 = vadd.f32 %v811_v48, %v739_v38 }
 0x17d   :  { %1002 = vst.msk [vmem:[%s1995_s4 + $0x90] sm:$0xff] %vm496_vm0, %v977_v2  ;;  %v885_v46 = vadd.f32 %v884_v11, %v812_v3 }
 0x17e   :  { %v668_v18 = vpop.f32.mrf.mxu1  ;;  %v887_v19 = vpop.f32.mrf.mxu0 }
 0x17f   :  { %v816_v5 = vpop.f32.mrf.mxu3  ;;  %v924_v8 = vmul.f32 %v1737_v53, %v885_v46  ;;  %v669_v9 = vadd.f32 %v668_v18, %v1587_v17  ;;  %v748_v55 = vpop.f32.mrf.mxu2 }
 0x181   :  { %v953_v4 = vadd.f32 %v1742_v56, %v924_v8  ;;  %v742_v7 = vadd.f32 %v741_v20, %v669_v9 }
 0x183   :  { %v978_v10 = vmax.f32 %v953_v4, 0.0  ;;  %v815_v13 = vadd.f32 %v814_v62, %v742_v7 }
 0x185   :  { %1003 = vst.msk [vmem:[%s1995_s4 + $0x98] sm:$0xff] %vm496_vm0, %v978_v10  ;;  %v888_v14 = vadd.f32 %v887_v19, %v815_v13 }
 0x186   :  { %v670_v6 = vpop.f32.mrf.mxu1  ;;  %v889_v23 = vpop.f32.mrf.mxu0 }
 0x187   :  { %v819_v15 = vpop.f32.mrf.mxu3  ;;  %v925_v24 = vmul.f32 %v1737_v53, %v888_v14  ;;  %v671_v31 = vadd.f32 %v670_v6, %v1613_v29  ;;  %v751_v17 = vpop.f32.mrf.mxu2 }
 0x189   :  { %v954_v26 = vadd.f32 %v1742_v56, %v925_v24  ;;  %v744_v27 = vadd.f32 %v743_v35, %v671_v31 }
 0x18b   :  { %v979_v21 = vmax.f32 %v954_v26, 0.0  ;;  %v817_v60 = vadd.f32 %v816_v5, %v744_v27 }
 0x18d   :  { %1004 = vst.msk [vmem:[%s1995_s4 + $0xa0] sm:$0xff] %vm496_vm0, %v979_v21  ;;  %v890_v28 = vadd.f32 %v889_v23, %v817_v60 }
 0x18e   :  { %v673_v33 = vpop.f32.mrf.mxu1  ;;  %v892_v16 = vpop.f32.mrf.mxu0 }
 0x18f   :  { %v821_v32 = vpop.f32.mrf.mxu3  ;;  %v926_v34 = vmul.f32 %v1737_v53, %v890_v28  ;;  %v674_v41 = vadd.f32 %v673_v33, %v1628_v37  ;;  %v753_v29 = vpop.f32.mrf.mxu2 }
 0x191   :  { %v955_v50 = vadd.f32 %v1742_v56, %v926_v34  ;;  %v747_v39 = vadd.f32 %v746_v40, %v674_v41 }
 0x193   :  { %v980_v25 = vmax.f32 %v955_v50, 0.0  ;;  %v820_v20 = vadd.f32 %v819_v15, %v747_v39 }
 0x195   :  { %1005 = vst.msk [vmem:[%s1995_s4 + $0xa8] sm:$0xff] %vm496_vm0, %v980_v25  ;;  %v893_v42 = vadd.f32 %v892_v16, %v820_v20 }
 0x196   :  { %v675_v0 = vpop.f32.mrf.mxu1  ;;  %v894_v45 = vpop.f32.mrf.mxu0 }
 0x197   :  { %v824_v43 = vpop.f32.mrf.mxu3  ;;  %v927_v47 = vmul.f32 %v1737_v53, %v893_v42  ;;  %v676_v48 = vadd.f32 %v675_v0, %v1654_v49 }
 0x199   :  { %v956_v37 = vadd.f32 %v1742_v56, %v927_v47  ;;  %v749_v30 = vadd.f32 %v748_v55, %v676_v48 }
 0x19b   :  { %v981_v52 = vmax.f32 %v956_v37, 0.0  ;;  %v822_v58 = vadd.f32 %v821_v32, %v749_v30 }
 0x19d   :  { %1006 = vst.msk [vmem:[%s1995_s4 + $0xb0] sm:$0xff] %vm496_vm0, %v981_v52  ;;  %v895_v51 = vadd.f32 %v894_v45, %v822_v58 }
 0x19e   :  { %v678_v54 = vpop.f32.mrf.mxu1  ;;  %v897_v22 = vpop.f32.mrf.mxu0 }
 0x19f   :  { %v826_v35 = vpop.f32.mrf.mxu3  ;;  %v928_v36 = vmul.f32 %v1737_v53, %v895_v51  ;;  %v679_v12 = vadd.f32 %v678_v54, %v1669_v57 }
 0x1a1   :  { %v957_v49 = vadd.f32 %v1742_v56, %v928_v36  ;;  %v752_v61 = vadd.f32 %v751_v17, %v679_v12 }
 0x1a3   :  { %v982_v62 = vmax.f32 %v957_v49, 0.0  ;;  %v825_v44 = vadd.f32 %v824_v43, %v752_v61 }
 0x1a5   :  { %1007 = vst.msk [vmem:[%s1995_s4 + $0xb8] sm:$0xff] %vm496_vm0, %v982_v62  ;;  %v898_v11 = vadd.f32 %v897_v22, %v825_v44 }
 0x1a6   :  { %v680_v63 = vpop.f32.mrf.mxu1  ;;  %v899_v1 = vpop.f32.mrf.mxu0 }
 0x1a7   :  { %v929_v40 = vmul.f32 %v1737_v53, %v898_v11 }
 0x1a9   :  { %v958_v59 = vadd.f32 %v1742_v56, %v929_v40 }
 0x1ab   :  { %v983_v38 = vmax.f32 %v958_v59, 0.0 }
 0x1ad   :  { %1008 = vst.msk [vmem:[%s1995_s4 + $0xc0] sm:$0xff] %vm496_vm0, %v983_v38 }

// kernel: behavioral_net_forward.7
= control target key start
LH: loop header
LB: loop body
LE: loop exit
PB: predicated region body
PF: predicated region fallthrough
CT: control target
= control target key end

     0   :  { %14 = vsyncpa [#allocation4], 0  ;;  %s15646_s27 = smov 0   ;;  %s19834_s0 = inlined_call_operand.vmem [shape: f32[2,6400], index: 0, kind: input, shape index: {}]   ;;  %s19835_s1 = inlined_call_operand.vmem [shape: bf16[6400,512], index: 1, kind: input, shape index: {}]   ;;  %s19836_s2 = inlined_call_operand.vmem [shape: f32[1,512], index: 2, kind: input, shape index: {}]   ;;  %s19837_s3 = inlined_call_operand.vmem [shape: f32[1,512], index: 3, kind: input, shape index: {}]   ;;  %s19838_s4 = inlined_call_operand.vmem [shape: bf16[512,640], index: 4, kind: input, shape index: {}]   ;;  %s19839_s5 = inlined_call_operand.vmem [shape: f32[1,640], index: 5, kind: input, shape index: {}]   ;;  %s19840_s6 = inlined_call_operand.vmem [shape: bf16[640,640], index: 6, kind: input, shape index: {}]   ;;  %s19841_s7 = inlined_call_operand.hbm [shape: f32[2,512], index: 7, kind: output, shape index: {0}]   ;;  %s19842_s8 = inlined_call_operand.vmem [shape: f32[2,640], index: 8, kind: output, shape index: {1}]  }
   0x1 LB: > { %s15652_s28 = sadd.s32 4294967295, %s15595_s27   ;;  %p9699_p0 = scmp.ge.s32.totalorder %s15595_s27, 1  ;;  %s15595_s27 = sphi %s15646_s27, %s20_s27  }
   0x2   : > { %p269_p1 = scmp.lt.s32.totalorder %s15595_s27, 3 }
   0x4   : > { %p270_p2 = pnand %p9699_p0, %p269_p1 }
   0x5   : > { %s304_s29 = smul.u32 (!%p270_p2), 25, %s15652_s28  ;;  %p9703_p5 = scmp.ne.s32.totalorder (!%p270_p2), %s15652_s28, 0 }
   0x6   : > { %273 = sbr.rel (%p270_p2) target bundleno = 1570 (0x622), region = 48 }
   0x7   : > { %s310_s30 = smul.u32 (!%p270_p2), 400, %s15652_s28  ;;  %p305_p3 = scmp.lt.s32.totalorder (!%p270_p2), %s304_s29, 49 }
   0x9   : > { %p311_p4 = scmp.lt.s32.totalorder (!%p270_p2), %s310_s30, 799 }
   0xb   : > { %s19846_s29 = smov (!%p305_p3, %s304_s29), 49  ;;  %s19848_s30 = smov (!%p311_p4, %s310_s30), 799 }
   0xc   : > { %s9700_s9 = sshll.u32 %s19846_s29, 1  ;;  %s14374_s13 = sshll.u32 %s19848_s30, 4 }
   0xd   : > { %s15661_s12 = scalar_lea.vmem %s19834_s0, %s9700_s9  ;;  %s15666_s16 = scalar_lea.vmem %s19835_s1, %s14374_s13 }
   0xe   : > { %320 = sbr.rel (%p9703_p5) target bundleno = 21 (0x15), region = 52 }
  0x13   : > { %v15597_v0 = vmov 0.0  }
  0x14   : > { %321 = vst [vmem:[#allocation2] sm:$0xff] %v15597_v0 }
  0x15 PF: > { %v9818_v1 = vld [vmem:[%s15666_s16 + $0xe0] sm:$0xf]  ;;  %v14405_v2 = vld [vmem:[%s15666_s16 + $0xec] sm:$0xf0]  ;;  %vm6527_vm0 = vcmask 1041408   ;;  %vm6529_vm1 = vcmask 1045508  }
  0x16   : > { %v9946_v3 = vld [vmem:[%s15666_s16 + $0x1e0] sm:$0xf]  ;;  %v9819_v4 = vor.u32 %v14405_v2, %v9818_v1  ;;  %v14437_v5 = vld [vmem:[%s15666_s16 + $0x1ec] sm:$0xf0]  ;;  %vm6531_vm2 = vcmask 1043456   ;;  %p12904_p6 = scmp.ne.s32.totalorder %s15652_s28, 1 }
  0x17   : > { %v10074_v6 = vld [vmem:[%s15666_s16 + $0x2e0] sm:$0xf]  ;;  %v14469_v7 = vld [vmem:[%s15666_s16 + $0x2ec] sm:$0xf0]  ;;  %v9947_v8 = vor.u32 %v14437_v5, %v9946_v3 }
  0x18   : > { %v10075_v9 = vor.u32 %v14469_v7, %v10074_v6  ;;  %v10202_v10 = vld [vmem:[%s15666_s16 + $0x3e0] sm:$0xf]  ;;  %v14501_v11 = vld [vmem:[%s15666_s16 + $0x3ec] sm:$0xf0]  ;;  %5220 = vmatpush.bf16.msra.mxu0 %v9819_v4 }
  0x19   : > { %v9802_v12 = vld [vmem:[%s15666_s16 + $0xc0] sm:$0xf]  ;;  %v10203_v13 = vor.u32 %v14501_v11, %v10202_v10  ;;  %v14401_v14 = vld [vmem:[%s15666_s16 + $0xcc] sm:$0xf0]  ;;  %5233 = vmatpush.bf16.msra.mxu1 %v9947_v8 }
  0x1a   : > { %v9930_v15 = vld [vmem:[%s15666_s16 + $0x1c0] sm:$0xf]  ;;  %v14433_v16 = vld [vmem:[%s15666_s16 + $0x1cc] sm:$0xf0]  ;;  %5246 = vmatpush.bf16.msra.mxu2 %v10075_v9  ;;  %v9803_v17 = vor.u32 %v14401_v14, %v9802_v12 }
  0x1b   : > { %v9931_v18 = vor.u32 %v14433_v16, %v9930_v15  ;;  %v10058_v19 = vld [vmem:[%s15666_s16 + $0x2c0] sm:$0xf]  ;;  %v14465_v20 = vld [vmem:[%s15666_s16 + $0x2cc] sm:$0xf0]  ;;  %5259 = vmatpush.bf16.msra.mxu3 %v10203_v13 }
  0x1c   : > { %v10186_v21 = vld [vmem:[%s15666_s16 + $0x3c0] sm:$0xf]  ;;  %v10059_v22 = vor.u32 %v14465_v20, %v10058_v19  ;;  %v14497_v23 = vld [vmem:[%s15666_s16 + $0x3cc] sm:$0xf0]  ;;  %5221 = vmatpush.bf16.msra.mxu0 %v9803_v17 }
  0x1d   : > { %v9786_v24 = vld [vmem:[%s15666_s16 + $0xa0] sm:$0xf]  ;;  %v14397_v25 = vld [vmem:[%s15666_s16 + $0xac] sm:$0xf0]  ;;  %v10187_v26 = vor.u32 %v14497_v23, %v10186_v21  ;;  %5234 = vmatpush.bf16.msra.mxu1 %v9931_v18 }
  0x1e   : > { %v9914_v27 = vld [vmem:[%s15666_s16 + $0x1a0] sm:$0xf]  ;;  %v14429_v28 = vld [vmem:[%s15666_s16 + $0x1ac] sm:$0xf0]  ;;  %v9787_v30 = vor.u32 %v14397_v25, %v9786_v24  ;;  %5247 = vmatpush.bf16.msra.mxu2 %v10059_v22 }
  0x1f   : > { %v10042_v29 = vld [vmem:[%s15666_s16 + $0x2a0] sm:$0xf]  ;;  %v14461_v31 = vld [vmem:[%s15666_s16 + $0x2ac] sm:$0xf0]  ;;  %v9915_v34 = vor.u32 %v14429_v28, %v9914_v27  ;;  %5260 = vmatpush.bf16.msra.mxu3 %v10187_v26 }
  0x20   : > { %v10170_v32 = vld [vmem:[%s15666_s16 + $0x3a0] sm:$0xf]  ;;  %v14493_v33 = vld [vmem:[%s15666_s16 + $0x3ac] sm:$0xf0]  ;;  %v10043_v35 = vor.u32 %v14461_v31, %v10042_v29  ;;  %5222 = vmatpush.bf16.msra.mxu0 %v9787_v30 }
  0x21   : > { %v9770_v36 = vld [vmem:[%s15666_s16 + $0x80] sm:$0xf]  ;;  %v14393_v37 = vld [vmem:[%s15666_s16 + $0x8c] sm:$0xf0]  ;;  %v10171_v39 = vor.u32 %v14493_v33, %v10170_v32  ;;  %5235 = vmatpush.bf16.msra.mxu1 %v9915_v34 }
  0x22   : > { %v9898_v38 = vld [vmem:[%s15666_s16 + $0x180] sm:$0xf]  ;;  %v14425_v40 = vld [vmem:[%s15666_s16 + $0x18c] sm:$0xf0]  ;;  %v9771_v45 = vor.u32 %v14393_v37, %v9770_v36  ;;  %5248 = vmatpush.bf16.msra.mxu2 %v10043_v35 }
  0x23   : > { %v10026_v41 = vld [vmem:[%s15666_s16 + $0x280] sm:$0xf]  ;;  %v14457_v42 = vld [vmem:[%s15666_s16 + $0x28c] sm:$0xf0]  ;;  %v9899_v46 = vor.u32 %v14425_v40, %v9898_v38  ;;  %5261 = vmatpush.bf16.msra.mxu3 %v10171_v39 }
  0x24   : > { %v10154_v43 = vld [vmem:[%s15666_s16 + $0x380] sm:$0xf]  ;;  %v14489_v44 = vld [vmem:[%s15666_s16 + $0x38c] sm:$0xf0]  ;;  %v10027_v47 = vor.u32 %v14457_v42, %v10026_v41  ;;  %5223 = vmatpush.bf16.msra.mxu0 %v9771_v45 }
  0x25   : > { %v9754_v48 = vld [vmem:[%s15666_s16 + $0x60] sm:$0xf]  ;;  %v14389_v49 = vld [vmem:[%s15666_s16 + $0x6c] sm:$0xf0]  ;;  %v10155_v51 = vor.u32 %v14489_v44, %v10154_v43  ;;  %5236 = vmatpush.bf16.msra.mxu1 %v9899_v46 }
  0x26   : > { %v9882_v50 = vld [vmem:[%s15666_s16 + $0x160] sm:$0xf]  ;;  %v14421_v52 = vld [vmem:[%s15666_s16 + $0x16c] sm:$0xf0]  ;;  %v9755_v57 = vor.u32 %v14389_v49, %v9754_v48  ;;  %5249 = vmatpush.bf16.msra.mxu2 %v10027_v47 }
  0x27   : > { %v10010_v53 = vld [vmem:[%s15666_s16 + $0x260] sm:$0xf]  ;;  %v14453_v54 = vld [vmem:[%s15666_s16 + $0x26c] sm:$0xf0]  ;;  %v9883_v58 = vor.u32 %v14421_v52, %v9882_v50  ;;  %5262 = vmatpush.bf16.msra.mxu3 %v10155_v51 }
  0x28   : > { %v10138_v55 = vld [vmem:[%s15666_s16 + $0x360] sm:$0xf]  ;;  %v14485_v56 = vld [vmem:[%s15666_s16 + $0x36c] sm:$0xf0]  ;;  %v10011_v59 = vor.u32 %v14453_v54, %v10010_v53  ;;  %5224 = vmatpush.bf16.msra.mxu0 %v9755_v57 }
  0x29   : > { %v9738_v60 = vld [vmem:[%s15666_s16 + $0x40] sm:$0xf]  ;;  %v14385_v61 = vld [vmem:[%s15666_s16 + $0x4c] sm:$0xf0]  ;;  %v10139_v63 = vor.u32 %v14485_v56, %v10138_v55  ;;  %5237 = vmatpush.bf16.msra.mxu1 %v9883_v58 }
  0x2a   : > { %v9866_v62 = vld [vmem:[%s15666_s16 + $0x140] sm:$0xf]  ;;  %v14417_v0 = vld [vmem:[%s15666_s16 + $0x14c] sm:$0xf0]  ;;  %v9739_v5 = vor.u32 %v14385_v61, %v9738_v60  ;;  %5250 = vmatpush.bf16.msra.mxu2 %v10011_v59 }
  0x2b   : > { %v9994_v1 = vld [vmem:[%s15666_s16 + $0x240] sm:$0xf]  ;;  %v14449_v2 = vld [vmem:[%s15666_s16 + $0x24c] sm:$0xf0]  ;;  %v9867_v6 = vor.u32 %v14417_v0, %v9866_v62  ;;  %5263 = vmatpush.bf16.msra.mxu3 %v10139_v63 }
  0x2c   : > { %v10122_v3 = vld [vmem:[%s15666_s16 + $0x340] sm:$0xf]  ;;  %v14481_v4 = vld [vmem:[%s15666_s16 + $0x34c] sm:$0xf0]  ;;  %v9995_v7 = vor.u32 %v14449_v2, %v9994_v1  ;;  %5225 = vmatpush.bf16.msra.mxu0 %v9739_v5 }
  0x2d   : > { %v9722_v8 = vld [vmem:[%s15666_s16 + $0x20] sm:$0xf]  ;;  %v14381_v9 = vld [vmem:[%s15666_s16 + $0x2c] sm:$0xf0]  ;;  %v10123_v11 = vor.u32 %v14481_v4, %v10122_v3  ;;  %5238 = vmatpush.bf16.msra.mxu1 %v9867_v6 }
  0x2e   : > { %v9850_v10 = vld [vmem:[%s15666_s16 + $0x120] sm:$0xf]  ;;  %v14413_v12 = vld [vmem:[%s15666_s16 + $0x12c] sm:$0xf0]  ;;  %v9723_v17 = vor.u32 %v14381_v9, %v9722_v8  ;;  %5251 = vmatpush.bf16.msra.mxu2 %v9995_v7 }
  0x2f   : > { %v9978_v13 = vld [vmem:[%s15666_s16 + $0x220] sm:$0xf]  ;;  %v14445_v14 = vld [vmem:[%s15666_s16 + $0x22c] sm:$0xf0]  ;;  %v9851_v20 = vor.u32 %v14413_v12, %v9850_v10  ;;  %5264 = vmatpush.bf16.msra.mxu3 %v10123_v11 }
  0x30   : > { %v10106_v15 = vld [vmem:[%s15666_s16 + $0x320] sm:$0xf]  ;;  %v14477_v16 = vld [vmem:[%s15666_s16 + $0x32c] sm:$0xf0]  ;;  %v9979_v21 = vor.u32 %v14445_v14, %v9978_v13  ;;  %5226 = vmatpush.bf16.msra.mxu0 %v9723_v17 }
  0x31   : > { %v9706_v18 = vld [vmem:[%s15666_s16] sm:$0xf]  ;;  %v14377_v19 = vld [vmem:[%s15666_s16 + $0xc] sm:$0xf0]  ;;  %v10107_v25 = vor.u32 %v14477_v16, %v10106_v15  ;;  %5239 = vmatpush.bf16.msra.mxu1 %v9851_v20 }
  0x32   : > { %v9834_v22 = vld [vmem:[%s15666_s16 + $0x100] sm:$0xf]  ;;  %v14409_v23 = vld [vmem:[%s15666_s16 + $0x10c] sm:$0xf0]  ;;  %v9707_v32 = vor.u32 %v14377_v19, %v9706_v18  ;;  %5252 = vmatpush.bf16.msra.mxu2 %v9979_v21 }
  0x33   : > { %v9962_v24 = vld [vmem:[%s15666_s16 + $0x200] sm:$0xf]  ;;  %v14441_v26 = vld [vmem:[%s15666_s16 + $0x20c] sm:$0xf0]  ;;  %v9835_v36 = vor.u32 %v14409_v23, %v9834_v22  ;;  %5265 = vmatpush.bf16.msra.mxu3 %v10107_v25 }
  0x34   : > { %v10090_v27 = vld [vmem:[%s15666_s16 + $0x300] sm:$0xf]  ;;  %v14473_v28 = vld [vmem:[%s15666_s16 + $0x30c] sm:$0xf0]  ;;  %v9963_v37 = vor.u32 %v14441_v26, %v9962_v24  ;;  %5227 = vmatpush.bf16.msra.mxu0 %v9707_v32 }
  0x35   : > { %v10330_v29 = vld [vmem:[%s15666_s16 + $0x4e0] sm:$0xf]  ;;  %v14533_v30 = vld [vmem:[%s15666_s16 + $0x4ec] sm:$0xf0]  ;;  %v10091_v40 = vor.u32 %v14473_v28, %v10090_v27  ;;  %5240 = vmatpush.bf16.msra.mxu1 %v9835_v36 }
  0x36   : > { %v10458_v31 = vld [vmem:[%s15666_s16 + $0x5e0] sm:$0xf]  ;;  %v14565_v33 = vld [vmem:[%s15666_s16 + $0x5ec] sm:$0xf0]  ;;  %v10331_v41 = vor.u32 %v14533_v30, %v10330_v29  ;;  %5253 = vmatpush.bf16.msra.mxu2 %v9963_v37 }
  0x37   : > { %v10586_v34 = vld [vmem:[%s15666_s16 + $0x6e0] sm:$0xf]  ;;  %v14597_v35 = vld [vmem:[%s15666_s16 + $0x6ec] sm:$0xf0]  ;;  %v10459_v42 = vor.u32 %v14565_v33, %v10458_v31  ;;  %5266 = vmatpush.bf16.msra.mxu3 %v10091_v40 }
  0x38   : > { %v10714_v38 = vld [vmem:[%s15666_s16 + $0x7e0] sm:$0xf]  ;;  %v14629_v39 = vld [vmem:[%s15666_s16 + $0x7ec] sm:$0xf0]  ;;  %v10587_v43 = vor.u32 %v14597_v35, %v10586_v34  ;;  %5272 = vmatpush.bf16.msrb.mxu0 %v10331_v41 }
  0x39   : > { %v10314_v44 = vld [vmem:[%s15666_s16 + $0x4c0] sm:$0xf]  ;;  %v14529_v45 = vld [vmem:[%s15666_s16 + $0x4cc] sm:$0xf0]  ;;  %v10715_v47 = vor.u32 %v14629_v39, %v10714_v38  ;;  %5285 = vmatpush.bf16.msrb.mxu1 %v10459_v42 }
  0x3a   : > { %v10442_v46 = vld [vmem:[%s15666_s16 + $0x5c0] sm:$0xf]  ;;  %v14561_v48 = vld [vmem:[%s15666_s16 + $0x5cc] sm:$0xf0]  ;;  %v10315_v53 = vor.u32 %v14529_v45, %v10314_v44  ;;  %5298 = vmatpush.bf16.msrb.mxu2 %v10587_v43 }
  0x3b   : > { %v10570_v49 = vld [vmem:[%s15666_s16 + $0x6c0] sm:$0xf]  ;;  %v14593_v50 = vld [vmem:[%s15666_s16 + $0x6cc] sm:$0xf0]  ;;  %v10443_v56 = vor.u32 %v14561_v48, %v10442_v46  ;;  %5311 = vmatpush.bf16.msrb.mxu3 %v10715_v47 }
  0x3c   : > { %v10698_v51 = vld [vmem:[%s15666_s16 + $0x7c0] sm:$0xf]  ;;  %v14625_v52 = vld [vmem:[%s15666_s16 + $0x7cc] sm:$0xf0]  ;;  %v10571_v57 = vor.u32 %v14593_v50, %v10570_v49  ;;  %5273 = vmatpush.bf16.msrb.mxu0 %v10315_v53 }
  0x3d   : > { %v10298_v54 = vld [vmem:[%s15666_s16 + $0x4a0] sm:$0xf]  ;;  %v14525_v55 = vld [vmem:[%s15666_s16 + $0x4ac] sm:$0xf0]  ;;  %v10699_v61 = vor.u32 %v14625_v52, %v10698_v51  ;;  %5286 = vmatpush.bf16.msrb.mxu1 %v10443_v56 }
  0x3e   : > { %v10426_v58 = vld [vmem:[%s15666_s16 + $0x5a0] sm:$0xf]  ;;  %v14557_v59 = vld [vmem:[%s15666_s16 + $0x5ac] sm:$0xf0]  ;;  %v10299_v2 = vor.u32 %v14525_v55, %v10298_v54  ;;  %5299 = vmatpush.bf16.msrb.mxu2 %v10571_v57 }
  0x3f   : > { %v323_v60 = vld [vmem:[%s15661_s12] sm:$0xff]  ;;  %v14589_v63 = vld [vmem:[%s15666_s16 + $0x6ac] sm:$0xf0]  ;;  %v10427_v4 = vor.u32 %v14557_v59, %v10426_v58  ;;  %5312 = vmatpush.bf16.msrb.mxu3 %v10699_v61  ;;  %v324_v58 = vld [vmem:[%s15661_s12 + $0x8] sm:$0xff] }
  0x40   : > { %v10554_v62 = vld [vmem:[%s15666_s16 + $0x6a0] sm:$0xf]  ;;  %337 = vst [vmem:[#allocation1] ss:$4 sm:$0xff] %v323_v60  ;;  %v14621_v1 = vld [vmem:[%s15666_s16 + $0x7ac] sm:$0xf0]  ;;  %5274 = vmatpush.bf16.msrb.mxu0 %v10299_v2 }
  0x41   : > { %v10682_v0 = vld [vmem:[%s15666_s16 + $0x7a0] sm:$0xf]  ;;  %v10555_v5 = vor.u32 %v14589_v63, %v10554_v62  ;;  %v14521_v6 = vld [vmem:[%s15666_s16 + $0x48c] sm:$0xf0]  ;;  %5287 = vmatpush.bf16.msrb.mxu1 %v10427_v4  ;;  %339 = vst [vmem:[#allocation1 + $0x20] ss:$4 sm:$0xff] %v324_v58 }
  0x42   : > { %v10282_v3 = vld [vmem:[%s15666_s16 + $0x480] sm:$0xf]  ;;  %v14553_v8 = vld [vmem:[%s15666_s16 + $0x58c] sm:$0xf0]  ;;  %v10683_v9 = vor.u32 %v14621_v1, %v10682_v0 }
  0x43   : > { %v10410_v7 = vld [vmem:[%s15666_s16 + $0x580] sm:$0xf]  ;;  %v14585_v11 = vld [vmem:[%s15666_s16 + $0x68c] sm:$0xf0]  ;;  %v10283_v16 = vor.u32 %v14521_v6, %v10282_v3  ;;  %5300 = vmatpush.bf16.msrb.mxu2 %v10555_v5 }
  0x44   : > { %v10538_v10 = vld [vmem:[%s15666_s16 + $0x680] sm:$0xf]  ;;  %v14617_v13 = vld [vmem:[%s15666_s16 + $0x78c] sm:$0xf0]  ;;  %v10411_v22 = vor.u32 %v14553_v8, %v10410_v7  ;;  %5313 = vmatpush.bf16.msrb.mxu3 %v10683_v9 }
  0x45   : > { %v10666_v12 = vld [vmem:[%s15666_s16 + $0x780] sm:$0xf]  ;;  %v14517_v15 = vld [vmem:[%s15666_s16 + $0x46c] sm:$0xf0]  ;;  %v10539_v23 = vor.u32 %v14585_v11, %v10538_v10  ;;  %5275 = vmatpush.bf16.msrb.mxu0 %v10283_v16 }
  0x46   : > { %v10266_v14 = vld [vmem:[%s15666_s16 + $0x460] sm:$0xf]  ;;  %v14549_v18 = vld [vmem:[%s15666_s16 + $0x56c] sm:$0xf0]  ;;  %v10667_v26 = vor.u32 %v14617_v13, %v10666_v12  ;;  %5288 = vmatpush.bf16.msrb.mxu1 %v10411_v22 }
  0x47   : > { %v10394_v17 = vld [vmem:[%s15666_s16 + $0x560] sm:$0xf]  ;;  %v14581_v20 = vld [vmem:[%s15666_s16 + $0x66c] sm:$0xf0]  ;;  %v10267_v35 = vor.u32 %v14517_v15, %v10266_v14  ;;  %5301 = vmatpush.bf16.msrb.mxu2 %v10539_v23 }
  0x48   : > { %v10522_v19 = vld [vmem:[%s15666_s16 + $0x660] sm:$0xf]  ;;  %v325_v21 = vld [vmem:[%s15661_s12 + $0x10] sm:$0xff]  ;;  %v343_v29 = vld.sshfl [vmem:[#allocation1 + $0x18] sm:$0xff pattern:$0x73625140]  ;;  %v10395_v36 = vor.u32 %v14549_v18, %v10394_v17  ;;  %5314 = vmatpush.bf16.msrb.mxu3 %v10667_v26 }
  0x49   : > { %v342_v24 = vld.sshfl [vmem:[#allocation1 + $0x10] sm:$0xff pattern:$0x73625140]  ;;  %v340_v25 = vld.sshfl [vmem:[#allocation1] sm:$0xff pattern:$0x73625140]  ;;  %v15779_v33 = vpack.c.bf16 %v343_v29, %v343_v29  ;;  %v10523_v37 = vor.u32 %v14581_v20, %v10522_v19  ;;  %5276 = vmatpush.bf16.msrb.mxu0 %v10267_v35 }
  0x4a   : > { %v15773_v27 = vpack.c.bf16 %v342_v24, %v342_v24  ;;  %v15775_v28 = vpack.c.bf16 %v340_v25, %v340_v25  ;;  %v341_v30 = vld.sshfl [vmem:[#allocation1 + $0x8] sm:$0xff pattern:$0x73625140]  ;;  %v10650_v31 = vld [vmem:[%s15666_s16 + $0x760] sm:$0xf]  ;;  %5289 = vmatpush.bf16.msrb.mxu1 %v10395_v36 }
  0x4b   : > { %v14613_v32 = vld [vmem:[%s15666_s16 + $0x76c] sm:$0xf0]  ;;  %348 = vst [vmem:[#allocation1] ss:$4 sm:$0xff] %v325_v21  ;;  %v15781_v34 = vpack.c.bf16 %v341_v30, %v341_v30  ;;  %v10250_v38 = vld [vmem:[%s15666_s16 + $0x440] sm:$0xf]  ;;  %5267 = vmatmul.bf16.vlgmr.msra.gmra.mxu3 %v15779_v33  ;;  %5302 = vmatpush.bf16.msrb.mxu2 %v10523_v37 }
  0x4c   : > { %5254 = vmatmul.bf16.vlgmr.msra.gmra.mxu2 %v15773_v27  ;;  %v14513_v39 = vld [vmem:[%s15666_s16 + $0x44c] sm:$0xf0]  ;;  %v10378_v40 = vld [vmem:[%s15666_s16 + $0x540] sm:$0xf]  ;;  %v10651_v41 = vor.u32 %v14613_v32, %v10650_v31  ;;  %5228 = vmatmul.bf16.vlgmr.msra.gmra.mxu0 %v15775_v28  ;;  %v326_v21 = vld [vmem:[%s15661_s12 + $0x18] sm:$0xff] }
  0x4d   : > { %v14545_v42 = vld [vmem:[%s15666_s16 + $0x54c] sm:$0xf0]  ;;  %v10506_v43 = vld [vmem:[%s15666_s16 + $0x640] sm:$0xf]  ;;  %5241 = vmatmul.bf16.vlgmr.msra.gmra.mxu1 %v15781_v34  ;;  %v10251_v47 = vor.u32 %v14513_v39, %v10250_v38 }
  0x4e   : > { %v14577_v44 = vld [vmem:[%s15666_s16 + $0x64c] sm:$0xf0]  ;;  %v10634_v45 = vld [vmem:[%s15666_s16 + $0x740] sm:$0xf]  ;;  %v10379_v50 = vor.u32 %v14545_v42, %v10378_v40  ;;  %5315 = vmatpush.bf16.msrb.mxu3 %v10651_v41 }
  0x4f   : > { %v14609_v46 = vld [vmem:[%s15666_s16 + $0x74c] sm:$0xf0]  ;;  %v10234_v48 = vld [vmem:[%s15666_s16 + $0x420] sm:$0xf]  ;;  %v10507_v51 = vor.u32 %v14577_v44, %v10506_v43  ;;  %5277 = vmatpush.bf16.msrb.mxu0 %v10251_v47 }
  0x50   : > { %v14509_v49 = vld [vmem:[%s15666_s16 + $0x42c] sm:$0xf0]  ;;  %v10362_v52 = vld [vmem:[%s15666_s16 + $0x520] sm:$0xf]  ;;  %v10635_v55 = vor.u32 %v14609_v46, %v10634_v45  ;;  %5290 = vmatpush.bf16.msrb.mxu1 %v10379_v50 }
  0x51   : > { %v14541_v53 = vld [vmem:[%s15666_s16 + $0x52c] sm:$0xf0]  ;;  %v10490_v54 = vld [vmem:[%s15666_s16 + $0x620] sm:$0xf]  ;;  %v10235_v61 = vor.u32 %v14509_v49, %v10234_v48  ;;  %5303 = vmatpush.bf16.msrb.mxu2 %v10507_v51 }
  0x52   : > { %v14573_v56 = vld [vmem:[%s15666_s16 + $0x62c] sm:$0xf0]  ;;  %v10618_v57 = vld [vmem:[%s15666_s16 + $0x720] sm:$0xf]  ;;  %v10363_v1 = vor.u32 %v14541_v53, %v10362_v52  ;;  %5316 = vmatpush.bf16.msrb.mxu3 %v10635_v55 }
  0x53   : > { %v14605_v59 = vld [vmem:[%s15666_s16 + $0x72c] sm:$0xf0]  ;;  %v10218_v60 = vld [vmem:[%s15666_s16 + $0x400] sm:$0xf]  ;;  %v10491_v2 = vor.u32 %v14573_v56, %v10490_v54  ;;  %5278 = vmatpush.bf16.msrb.mxu0 %v10235_v61 }
  0x54   : > { %v14505_v62 = vld [vmem:[%s15666_s16 + $0x40c] sm:$0xf0]  ;;  %v10346_v63 = vld [vmem:[%s15666_s16 + $0x500] sm:$0xf]  ;;  %v10619_v6 = vor.u32 %v14605_v59, %v10618_v57  ;;  %5291 = vmatpush.bf16.msrb.mxu1 %v10363_v1 }
  0x55   : > { %v14537_v0 = vld [vmem:[%s15666_s16 + $0x50c] sm:$0xf0]  ;;  %v10474_v3 = vld [vmem:[%s15666_s16 + $0x600] sm:$0xf]  ;;  %v10219_v13 = vor.u32 %v14505_v62, %v10218_v60  ;;  %5304 = vmatpush.bf16.msrb.mxu2 %v10491_v2 }
  0x56   : > { %v14569_v4 = vld [vmem:[%s15666_s16 + $0x60c] sm:$0xf0]  ;;  %v10602_v5 = vld [vmem:[%s15666_s16 + $0x700] sm:$0xf]  ;;  %v10347_v17 = vor.u32 %v14537_v0, %v10346_v63  ;;  %5317 = vmatpush.bf16.msrb.mxu3 %v10619_v6 }
  0x57   : > { %v14601_v7 = vld [vmem:[%s15666_s16 + $0x70c] sm:$0xf0]  ;;  %v10842_v8 = vld [vmem:[%s15666_s16 + $0x8e0] sm:$0xf]  ;;  %v10475_v18 = vor.u32 %v14569_v4, %v10474_v3  ;;  %5279 = vmatpush.bf16.msrb.mxu0 %v10219_v13 }
  0x58   : > { %v14661_v9 = vld [vmem:[%s15666_s16 + $0x8ec] sm:$0xf0]  ;;  %v10970_v10 = vld [vmem:[%s15666_s16 + $0x9e0] sm:$0xf]  ;;  %v10603_v22 = vor.u32 %v14601_v7, %v10602_v5  ;;  %5292 = vmatpush.bf16.msrb.mxu1 %v10347_v17 }
  0x59   : > { %v14693_v11 = vld [vmem:[%s15666_s16 + $0x9ec] sm:$0xf0]  ;;  %v11098_v12 = vld [vmem:[%s15666_s16 + $0xae0] sm:$0xf]  ;;  %v10843_v23 = vor.u32 %v14661_v9, %v10842_v8  ;;  %5305 = vmatpush.bf16.msrb.mxu2 %v10475_v18 }
  0x5a   : > { %v14725_v14 = vld [vmem:[%s15666_s16 + $0xaec] sm:$0xf0]  ;;  %v11226_v15 = vld [vmem:[%s15666_s16 + $0xbe0] sm:$0xf]  ;;  %v10971_v30 = vor.u32 %v14693_v11, %v10970_v10  ;;  %5318 = vmatpush.bf16.msrb.mxu3 %v10603_v22 }
  0x5b   : > { %v14757_v16 = vld [vmem:[%s15666_s16 + $0xbec] sm:$0xf0]  ;;  %v10826_v19 = vld [vmem:[%s15666_s16 + $0x8c0] sm:$0xf]  ;;  %v11099_v31 = vor.u32 %v14725_v14, %v11098_v12  ;;  %5324 = vmatpush.bf16.msra.mxu0 %v10843_v23 }
  0x5c   : > { %v14657_v20 = vld [vmem:[%s15666_s16 + $0x8cc] sm:$0xf0]  ;;  %v10954_v24 = vld [vmem:[%s15666_s16 + $0x9c0] sm:$0xf]  ;;  %v11227_v36 = vor.u32 %v14757_v16, %v11226_v15  ;;  %5337 = vmatpush.bf16.msra.mxu1 %v10971_v30 }
  0x5d   : > { %v14689_v25 = vld [vmem:[%s15666_s16 + $0x9cc] sm:$0xf0]  ;;  %v344_v29 = vld.sshfl [vmem:[#allocation1 + $0x20] sm:$0xff pattern:$0x73625140]  ;;  %v10827_v44 = vor.u32 %v14657_v20, %v10826_v19  ;;  %5350 = vmatpush.bf16.msra.mxu2 %v11099_v31 }
  0x5e   : > { %v346_v26 = vld.sshfl [vmem:[#allocation1 + $0x30] sm:$0xff pattern:$0x73625140]  ;;  %v347_v32 = vld.sshfl [vmem:[#allocation1 + $0x38] sm:$0xff pattern:$0x73625140]  ;;  %v15831_v42 = vpack.c.bf16 %v344_v29, %v344_v29  ;;  %v10955_v46 = vor.u32 %v14689_v25, %v10954_v24  ;;  %5363 = vmatpush.bf16.msra.mxu3 %v11227_v36 }
  0x5f   : > { %v345_v35 = vld.sshfl [vmem:[#allocation1 + $0x28] sm:$0xff pattern:$0x73625140]  ;;  %v11082_v37 = vld [vmem:[%s15666_s16 + $0xac0] sm:$0xf]  ;;  %v15827_v39 = vpack.c.bf16 %v346_v26, %v346_v26  ;;  %v15833_v43 = vpack.c.bf16 %v347_v32, %v347_v32  ;;  %5325 = vmatpush.bf16.msra.mxu0 %v10827_v44 }
  0x60   : > { %v14721_v38 = vld [vmem:[%s15666_s16 + $0xacc] sm:$0xf0]  ;;  %349 = vst [vmem:[#allocation1 + $0x20] ss:$4 sm:$0xff] %v326_v21  ;;  %v11210_v40 = vld [vmem:[%s15666_s16 + $0xbc0] sm:$0xf]  ;;  %v15835_v45 = vpack.c.bf16 %v345_v35, %v345_v35  ;;  %5280 = vmatmul.bf16.vlgmr.msrb.gmra.mxu0 %v15831_v42  ;;  %5338 = vmatpush.bf16.msra.mxu1 %v10955_v46 }
  0x61   : > { %v14753_v41 = vld [vmem:[%s15666_s16 + $0xbcc] sm:$0xf0]  ;;  %v11083_v47 = vor.u32 %v14721_v38, %v11082_v37  ;;  %v10810_v48 = vld [vmem:[%s15666_s16 + $0x8a0] sm:$0xf]  ;;  %5306 = vmatmul.bf16.vlgmr.msrb.gmra.mxu2 %v15827_v39  ;;  %5319 = vmatmul.bf16.vlgmr.msrb.gmra.mxu3 %v15833_v43 }
  0x62   : > { %v14653_v49 = vld [vmem:[%s15666_s16 + $0x8ac] sm:$0xf0]  ;;  %v10938_v50 = vld [vmem:[%s15666_s16 + $0x9a0] sm:$0xf]  ;;  %v11211_v51 = vor.u32 %v14753_v41, %v11210_v40  ;;  %5293 = vmatmul.bf16.vlgmr.msrb.gmra.mxu1 %v15835_v45 }
  0x63   : > { %v14685_v52 = vld [vmem:[%s15666_s16 + $0x9ac] sm:$0xf0]  ;;  %v11066_v53 = vld [vmem:[%s15666_s16 + $0xaa0] sm:$0xf]  ;;  %v10811_v57 = vor.u32 %v14653_v49, %v10810_v48  ;;  %5351 = vmatpush.bf16.msra.mxu2 %v11083_v47 }
  0x64   : > { %v14717_v54 = vld [vmem:[%s15666_s16 + $0xaac] sm:$0xf0]  ;;  %v11194_v55 = vld [vmem:[%s15666_s16 + $0xba0] sm:$0xf]  ;;  %v10939_v58 = vor.u32 %v14685_v52, %v10938_v50  ;;  %5364 = vmatpush.bf16.msra.mxu3 %v11211_v51 }
  0x65   : > { %v14749_v56 = vld [vmem:[%s15666_s16 + $0xbac] sm:$0xf0]  ;;  %v11067_v59 = vor.u32 %v14717_v54, %v11066_v53  ;;  %v10794_v60 = vld [vmem:[%s15666_s16 + $0x880] sm:$0xf]  ;;  %5326 = vmatpush.bf16.msra.mxu0 %v10811_v57 }
  0x66   : > { %v14649_v61 = vld [vmem:[%s15666_s16 + $0x88c] sm:$0xf0]  ;;  %v10922_v62 = vld [vmem:[%s15666_s16 + $0x980] sm:$0xf]  ;;  %v11195_v63 = vor.u32 %v14749_v56, %v11194_v55  ;;  %5339 = vmatpush.bf16.msra.mxu1 %v10939_v58 }
  0x67   : > { %v14681_v0 = vld [vmem:[%s15666_s16 + $0x98c] sm:$0xf0]  ;;  %v11050_v1 = vld [vmem:[%s15666_s16 + $0xa80] sm:$0xf]  ;;  %v10795_v5 = vor.u32 %v14649_v61, %v10794_v60  ;;  %5352 = vmatpush.bf16.msra.mxu2 %v11067_v59 }
  0x68   : > { %v14713_v2 = vld [vmem:[%s15666_s16 + $0xa8c] sm:$0xf0]  ;;  %v11178_v3 = vld [vmem:[%s15666_s16 + $0xb80] sm:$0xf]  ;;  %v10923_v9 = vor.u32 %v14681_v0, %v10922_v62  ;;  %5365 = vmatpush.bf16.msra.mxu3 %v11195_v63 }
  0x69   : > { %v14745_v4 = vld [vmem:[%s15666_s16 + $0xb8c] sm:$0xf0]  ;;  %v10778_v6 = vld [vmem:[%s15666_s16 + $0x860] sm:$0xf]  ;;  %v11051_v10 = vor.u32 %v14713_v2, %v11050_v1  ;;  %5327 = vmatpush.bf16.msra.mxu0 %v10795_v5 }
  0x6a   : > { %v14645_v7 = vld [vmem:[%s15666_s16 + $0x86c] sm:$0xf0]  ;;  %v10906_v8 = vld [vmem:[%s15666_s16 + $0x960] sm:$0xf]  ;;  %v11179_v14 = vor.u32 %v14745_v4, %v11178_v3  ;;  %5340 = vmatpush.bf16.msra.mxu1 %v10923_v9 }
  0x6b   : > { %v14677_v11 = vld [vmem:[%s15666_s16 + $0x96c] sm:$0xf0]  ;;  %v11034_v12 = vld [vmem:[%s15666_s16 + $0xa60] sm:$0xf]  ;;  %v10779_v21 = vor.u32 %v14645_v7, %v10778_v6  ;;  %5353 = vmatpush.bf16.msra.mxu2 %v11051_v10 }
  0x6c   : > { %v14709_v13 = vld [vmem:[%s15666_s16 + $0xa6c] sm:$0xf0]  ;;  %v11162_v15 = vld [vmem:[%s15666_s16 + $0xb60] sm:$0xf]  ;;  %v10907_v24 = vor.u32 %v14677_v11, %v10906_v8  ;;  %5366 = vmatpush.bf16.msra.mxu3 %v11179_v14 }
  0x6d   : > { %v14741_v16 = vld [vmem:[%s15666_s16 + $0xb6c] sm:$0xf0]  ;;  %v327_v17 = vld [vmem:[%s15661_s12 + $0x20] sm:$0xff]  ;;  %v15871_v22 = vld.sshfl [vmem:[#allocation1 + $0x8] sm:$0xff pattern:$0x73625140]  ;;  %v11035_v25 = vor.u32 %v14709_v13, %v11034_v12  ;;  %5328 = vmatpush.bf16.msra.mxu0 %v10779_v21 }
  0x6e   : > { %v10762_v18 = vld [vmem:[%s15666_s16 + $0x840] sm:$0xf]  ;;  %v15869_v20 = vld.sshfl [vmem:[#allocation1 + $0x10] sm:$0xff pattern:$0x73625140]  ;;  %v11163_v30 = vor.u32 %v14741_v16, %v11162_v15  ;;  %5341 = vmatpush.bf16.msra.mxu1 %v10907_v24 }
  0x6f   : > { %v15867_v19 = vld.sshfl [vmem:[#allocation1] sm:$0xff pattern:$0x73625140]  ;;  %v15873_v23 = vld.sshfl [vmem:[#allocation1 + $0x18] sm:$0xff pattern:$0x73625140]  ;;  %5354 = vmatpush.bf16.msra.mxu2 %v11035_v25 }
  0x70   : > { %v14641_v26 = vld [vmem:[%s15666_s16 + $0x84c] sm:$0xf0]  ;;  %v10890_v29 = vld [vmem:[%s15666_s16 + $0x940] sm:$0xf]  ;;  %358 = vst [vmem:[#allocation1] ss:$4 sm:$0xff] %v327_v17  ;;  %5367 = vmatpush.bf16.msra.mxu3 %v11163_v30  ;;  %v15911_v25 = vpack.c.bf16 %v15867_v19, %v15867_v19  ;;  %v15928_v19 = vpack.c.bf16 %v15873_v23, %v15873_v23 }
  0x71   : > { %v14673_v31 = vld [vmem:[%s15666_s16 + $0x94c] sm:$0xf0]  ;;  %v11018_v32 = vld [vmem:[%s15666_s16 + $0xa40] sm:$0xf]  ;;  %v10763_v38 = vor.u32 %v14641_v26, %v10762_v18 }
  0x72   : > { %v14705_v35 = vld [vmem:[%s15666_s16 + $0xa4c] sm:$0xf0]  ;;  %v11146_v36 = vld [vmem:[%s15666_s16 + $0xb40] sm:$0xf]  ;;  %v10891_v40 = vor.u32 %v14673_v31, %v10890_v29  ;;  %v15918_v31 = vpack.c.bf16 %v15869_v20, %v15869_v20 }
  0x73   : > { %v14737_v37 = vld [vmem:[%s15666_s16 + $0xb4c] sm:$0xf0]  ;;  %v11019_v41 = vor.u32 %v14705_v35, %v11018_v32  ;;  %v10746_v44 = vld [vmem:[%s15666_s16 + $0x820] sm:$0xf]  ;;  %5329 = vmatpush.bf16.msra.mxu0 %v10763_v38  ;;  %v15922_v32 = vpack.c.bf16 %v15871_v22, %v15871_v22 }
  0x74   : > { %v14637_v46 = vld [vmem:[%s15666_s16 + $0x82c] sm:$0xf0]  ;;  %v10874_v47 = vld [vmem:[%s15666_s16 + $0x920] sm:$0xf]  ;;  %v11147_v48 = vor.u32 %v14737_v37, %v11146_v36  ;;  %5342 = vmatpush.bf16.msra.mxu1 %v10891_v40 }
  0x75   : > { %v14669_v49 = vld [vmem:[%s15666_s16 + $0x92c] sm:$0xf0]  ;;  %v11002_v50 = vld [vmem:[%s15666_s16 + $0xa20] sm:$0xf]  ;;  %v10747_v54 = vor.u32 %v14637_v46, %v10746_v44  ;;  %5355 = vmatpush.bf16.msra.mxu2 %v11019_v41 }
  0x76   : > { %v14701_v51 = vld [vmem:[%s15666_s16 + $0xa2c] sm:$0xf0]  ;;  %v11130_v52 = vld [vmem:[%s15666_s16 + $0xb20] sm:$0xf]  ;;  %v10875_v57 = vor.u32 %v14669_v49, %v10874_v47  ;;  %5368 = vmatpush.bf16.msra.mxu3 %v11147_v48 }
  0x77   : > { %v14733_v53 = vld [vmem:[%s15666_s16 + $0xb2c] sm:$0xf0]  ;;  %v10730_v55 = vld [vmem:[%s15666_s16 + $0x800] sm:$0xf]  ;;  %v11003_v58 = vor.u32 %v14701_v51, %v11002_v50  ;;  %5330 = vmatpush.bf16.msra.mxu0 %v10747_v54 }
  0x78   : > { %v14633_v56 = vld [vmem:[%s15666_s16 + $0x80c] sm:$0xf0]  ;;  %v10858_v59 = vld [vmem:[%s15666_s16 + $0x900] sm:$0xf]  ;;  %v11131_v62 = vor.u32 %v14733_v53, %v11130_v52  ;;  %5343 = vmatpush.bf16.msra.mxu1 %v10875_v57  ;;  %v328_v57 = vld [vmem:[%s15661_s12 + $0x28] sm:$0xff] }
  0x79   : > { %v14665_v60 = vld [vmem:[%s15666_s16 + $0x90c] sm:$0xf0]  ;;  %v10986_v61 = vld [vmem:[%s15666_s16 + $0xa00] sm:$0xf]  ;;  %v10731_v5 = vor.u32 %v14633_v56, %v10730_v55  ;;  %5356 = vmatpush.bf16.msra.mxu2 %v11003_v58 }
  0x7a   : > { %v14697_v63 = vld [vmem:[%s15666_s16 + $0xa0c] sm:$0xf0]  ;;  %v11114_v0 = vld [vmem:[%s15666_s16 + $0xb00] sm:$0xf]  ;;  %v10859_v9 = vor.u32 %v14665_v60, %v10858_v59  ;;  %5369 = vmatpush.bf16.msra.mxu3 %v11131_v62 }
  0x7b   : > { %v14729_v1 = vld [vmem:[%s15666_s16 + $0xb0c] sm:$0xf0]  ;;  %v11354_v2 = vld [vmem:[%s15666_s16 + $0xce0] sm:$0xf]  ;;  %v10987_v10 = vor.u32 %v14697_v63, %v10986_v61  ;;  %5331 = vmatpush.bf16.msra.mxu0 %v10731_v5 }
  0x7c   : > { %v14789_v3 = vld [vmem:[%s15666_s16 + $0xcec] sm:$0xf0]  ;;  %v11482_v4 = vld [vmem:[%s15666_s16 + $0xde0] sm:$0xf]  ;;  %v11115_v13 = vor.u32 %v14729_v1, %v11114_v0  ;;  %5344 = vmatpush.bf16.msra.mxu1 %v10859_v9 }
  0x7d   : > { %v14821_v6 = vld [vmem:[%s15666_s16 + $0xdec] sm:$0xf0]  ;;  %v11610_v7 = vld [vmem:[%s15666_s16 + $0xee0] sm:$0xf]  ;;  %v11355_v14 = vor.u32 %v14789_v3, %v11354_v2  ;;  %5357 = vmatpush.bf16.msra.mxu2 %v10987_v10 }
  0x7e   : > { %v14853_v8 = vld [vmem:[%s15666_s16 + $0xeec] sm:$0xf0]  ;;  %v11738_v11 = vld [vmem:[%s15666_s16 + $0xfe0] sm:$0xf]  ;;  %v11483_v15 = vor.u32 %v14821_v6, %v11482_v4  ;;  %5370 = vmatpush.bf16.msra.mxu3 %v11115_v13  ;;  %5332 = vmatmul.bf16.vlgmr.msra.gmra.mxu0 %v15911_v25 }
  0x7f   : > { %v14885_v12 = vld [vmem:[%s15666_s16 + $0xfec] sm:$0xf0]  ;;  %v11611_v16 = vor.u32 %v14853_v8, %v11610_v7  ;;  %v11338_v17 = vld [vmem:[%s15666_s16 + $0xcc0] sm:$0xf]  ;;  %5376 = vmatpush.bf16.msrb.mxu0 %v11355_v14  ;;  %5345 = vmatmul.bf16.vlgmr.msra.gmra.mxu1 %v15922_v32 }
  0x80   : > { %v14785_v18 = vld [vmem:[%s15666_s16 + $0xccc] sm:$0xf0]  ;;  %v11466_v21 = vld [vmem:[%s15666_s16 + $0xdc0] sm:$0xf]  ;;  %v11739_v24 = vor.u32 %v14885_v12, %v11738_v11  ;;  %5389 = vmatpush.bf16.msrb.mxu1 %v11483_v15  ;;  %5358 = vmatmul.bf16.vlgmr.msra.gmra.mxu2 %v15918_v31 }
  0x81   : > { %v14817_v26 = vld [vmem:[%s15666_s16 + $0xdcc] sm:$0xf0]  ;;  %v11594_v29 = vld [vmem:[%s15666_s16 + $0xec0] sm:$0xf]  ;;  %v11339_v37 = vor.u32 %v14785_v18, %v11338_v17  ;;  %5402 = vmatpush.bf16.msrb.mxu2 %v11611_v16  ;;  %5371 = vmatmul.bf16.vlgmr.msra.gmra.mxu3 %v15928_v19 }
  0x82   : > { %v14849_v30 = vld [vmem:[%s15666_s16 + $0xecc] sm:$0xf0]  ;;  %v11722_v35 = vld [vmem:[%s15666_s16 + $0xfc0] sm:$0xf]  ;;  %v11467_v20 = vor.u32 %v14817_v26, %v11466_v21  ;;  %5415 = vmatpush.bf16.msrb.mxu3 %v11739_v24 }
  0x83   : > { %v14881_v36 = vld [vmem:[%s15666_s16 + $0xfcc] sm:$0xf0]  ;;  %v11322_v38 = vld [vmem:[%s15666_s16 + $0xca0] sm:$0xf]  ;;  %v11595_v22 = vor.u32 %v14849_v30, %v11594_v29  ;;  %5377 = vmatpush.bf16.msrb.mxu0 %v11339_v37 }
  0x84   : > { %v14781_v40 = vld [vmem:[%s15666_s16 + $0xcac] sm:$0xf0]  ;;  %v11450_v41 = vld [vmem:[%s15666_s16 + $0xda0] sm:$0xf]  ;;  %v11723_v23 = vor.u32 %v14881_v36, %v11722_v35  ;;  %5390 = vmatpush.bf16.msrb.mxu1 %v11467_v20 }
  0x85   : > { %v14813_v44 = vld [vmem:[%s15666_s16 + $0xdac] sm:$0xf0]  ;;  %v11578_v46 = vld [vmem:[%s15666_s16 + $0xea0] sm:$0xf]  ;;  %v11323_v52 = vor.u32 %v14781_v40, %v11322_v38  ;;  %5403 = vmatpush.bf16.msrb.mxu2 %v11595_v22 }
  0x86   : > { %v14845_v47 = vld [vmem:[%s15666_s16 + $0xeac] sm:$0xf0]  ;;  %v11706_v48 = vld [vmem:[%s15666_s16 + $0xfa0] sm:$0xf]  ;;  %v11451_v58 = vor.u32 %v14813_v44, %v11450_v41  ;;  %5416 = vmatpush.bf16.msrb.mxu3 %v11723_v23 }
  0x87   : > { %v14877_v49 = vld [vmem:[%s15666_s16 + $0xfac] sm:$0xf0]  ;;  %v11306_v50 = vld [vmem:[%s15666_s16 + $0xc80] sm:$0xf]  ;;  %v11579_v59 = vor.u32 %v14845_v47, %v11578_v46  ;;  %5378 = vmatpush.bf16.msrb.mxu0 %v11323_v52 }
  0x88   : > { %v14777_v51 = vld [vmem:[%s15666_s16 + $0xc8c] sm:$0xf0]  ;;  %v11434_v53 = vld [vmem:[%s15666_s16 + $0xd80] sm:$0xf]  ;;  %v11707_v62 = vor.u32 %v14877_v49, %v11706_v48  ;;  %5391 = vmatpush.bf16.msrb.mxu1 %v11451_v58 }
  0x89   : > { %v14809_v54 = vld [vmem:[%s15666_s16 + $0xd8c] sm:$0xf0]  ;;  %v11562_v55 = vld [vmem:[%s15666_s16 + $0xe80] sm:$0xf]  ;;  %v11307_v3 = vor.u32 %v14777_v51, %v11306_v50  ;;  %5404 = vmatpush.bf16.msrb.mxu2 %v11579_v59 }
  0x8a   : > { %v14841_v56 = vld [vmem:[%s15666_s16 + $0xe8c] sm:$0xf0]  ;;  %v15949_v60 = vld.sshfl [vmem:[#allocation1 + $0x20] sm:$0xff pattern:$0x73625140]  ;;  %v11435_v4 = vor.u32 %v14809_v54, %v11434_v53  ;;  %5417 = vmatpush.bf16.msrb.mxu3 %v11707_v62 }
  0x8b   : > { %v15951_v61 = vld.sshfl [vmem:[#allocation1 + $0x30] sm:$0xff pattern:$0x73625140]  ;;  %v15953_v63 = vld.sshfl [vmem:[#allocation1 + $0x28] sm:$0xff pattern:$0x73625140]  ;;  %v11563_v5 = vor.u32 %v14841_v56, %v11562_v55  ;;  %5379 = vmatpush.bf16.msrb.mxu0 %v11307_v3 }
  0x8c   : > { %v15955_v0 = vld.sshfl [vmem:[#allocation1 + $0x38] sm:$0xff pattern:$0x73625140]  ;;  %v11690_v1 = vld [vmem:[%s15666_s16 + $0xf80] sm:$0xf]  ;;  %5392 = vmatpush.bf16.msrb.mxu1 %v11435_v4 }
  0x8d   : > { %v14873_v2 = vld [vmem:[%s15666_s16 + $0xf8c] sm:$0xf0]  ;;  %359 = vst [vmem:[#allocation1 + $0x20] ss:$4 sm:$0xff] %v328_v57  ;;  %v11290_v6 = vld [vmem:[%s15666_s16 + $0xc60] sm:$0xf]  ;;  %5405 = vmatpush.bf16.msrb.mxu2 %v11563_v5 }
  0x8e   : > { %v14773_v7 = vld [vmem:[%s15666_s16 + $0xc6c] sm:$0xf0]  ;;  %v11418_v8 = vld [vmem:[%s15666_s16 + $0xd60] sm:$0xf]  ;;  %v11691_v9 = vor.u32 %v14873_v2, %v11690_v1 }
  0x8f   : > { %v14805_v10 = vld [vmem:[%s15666_s16 + $0xd6c] sm:$0xf0]  ;;  %v11546_v11 = vld [vmem:[%s15666_s16 + $0xe60] sm:$0xf]  ;;  %v11291_v15 = vor.u32 %v14773_v7, %v11290_v6 }
  0x90   : > { %v14837_v12 = vld [vmem:[%s15666_s16 + $0xe6c] sm:$0xf0]  ;;  %v11674_v13 = vld [vmem:[%s15666_s16 + $0xf60] sm:$0xf]  ;;  %v11419_v16 = vor.u32 %v14805_v10, %v11418_v8  ;;  %5418 = vmatpush.bf16.msrb.mxu3 %v11691_v9 }
  0x91   : > { %v14869_v14 = vld [vmem:[%s15666_s16 + $0xf6c] sm:$0xf0]  ;;  %v11547_v17 = vor.u32 %v14837_v12, %v11546_v11  ;;  %v11274_v18 = vld [vmem:[%s15666_s16 + $0xc40] sm:$0xf]  ;;  %5380 = vmatpush.bf16.msrb.mxu0 %v11291_v15 }
  0x92   : > { %v14769_v21 = vld [vmem:[%s15666_s16 + $0xc4c] sm:$0xf0]  ;;  %v11402_v24 = vld [vmem:[%s15666_s16 + $0xd40] sm:$0xf]  ;;  %v11675_v26 = vor.u32 %v14869_v14, %v11674_v13  ;;  %5393 = vmatpush.bf16.msrb.mxu1 %v11419_v16 }
  0x93   : > { %v14801_v29 = vld [vmem:[%s15666_s16 + $0xd4c] sm:$0xf0]  ;;  %v11530_v30 = vld [vmem:[%s15666_s16 + $0xe40] sm:$0xf]  ;;  %v11275_v38 = vor.u32 %v14769_v21, %v11274_v18  ;;  %5406 = vmatpush.bf16.msrb.mxu2 %v11547_v17 }
  0x94   : > { %v14833_v35 = vld [vmem:[%s15666_s16 + $0xe4c] sm:$0xf0]  ;;  %v11658_v36 = vld [vmem:[%s15666_s16 + $0xf40] sm:$0xf]  ;;  %v11403_v20 = vor.u32 %v14801_v29, %v11402_v24  ;;  %5419 = vmatpush.bf16.msrb.mxu3 %v11675_v26  ;;  %v16004_v29 = vpack.c.bf16 %v15949_v60, %v15949_v60 }
  0x95   : > { %v14865_v37 = vld [vmem:[%s15666_s16 + $0xf4c] sm:$0xf0]  ;;  %v11531_v22 = vor.u32 %v14833_v35, %v11530_v30  ;;  %v11258_v40 = vld [vmem:[%s15666_s16 + $0xc20] sm:$0xf]  ;;  %5381 = vmatpush.bf16.msrb.mxu0 %v11275_v38  ;;  %v16015_v38 = vpack.c.bf16 %v15953_v63, %v15953_v63 }
  0x96   : > { %v14765_v41 = vld [vmem:[%s15666_s16 + $0xc2c] sm:$0xf0]  ;;  %v11386_v44 = vld [vmem:[%s15666_s16 + $0xd20] sm:$0xf]  ;;  %v11659_v23 = vor.u32 %v14865_v37, %v11658_v36  ;;  %5394 = vmatpush.bf16.msrb.mxu1 %v11403_v20  ;;  %v16011_v37 = vpack.c.bf16 %v15951_v61, %v15951_v61 }
  0x97   : > { %v14797_v46 = vld [vmem:[%s15666_s16 + $0xd2c] sm:$0xf0]  ;;  %v11514_v47 = vld [vmem:[%s15666_s16 + $0xe20] sm:$0xf]  ;;  %v11259_v51 = vor.u32 %v14765_v41, %v11258_v40  ;;  %5407 = vmatpush.bf16.msrb.mxu2 %v11531_v22  ;;  %v16021_v22 = vpack.c.bf16 %v15955_v0, %v15955_v0 }
  0x98   : > { %v14829_v48 = vld [vmem:[%s15666_s16 + $0xe2c] sm:$0xf0]  ;;  %v11642_v49 = vld [vmem:[%s15666_s16 + $0xf20] sm:$0xf]  ;;  %v11387_v54 = vor.u32 %v14797_v46, %v11386_v44  ;;  %5420 = vmatpush.bf16.msrb.mxu3 %v11659_v23 }
  0x99   : > { %v14861_v50 = vld [vmem:[%s15666_s16 + $0xf2c] sm:$0xf0]  ;;  %v11242_v52 = vld [vmem:[%s15666_s16 + $0xc00] sm:$0xf]  ;;  %v11515_v55 = vor.u32 %v14829_v48, %v11514_v47  ;;  %5382 = vmatpush.bf16.msrb.mxu0 %v11259_v51 }
  0x9a   : > { %v14761_v53 = vld [vmem:[%s15666_s16 + $0xc0c] sm:$0xf0]  ;;  %v11370_v56 = vld [vmem:[%s15666_s16 + $0xd00] sm:$0xf]  ;;  %v11643_v59 = vor.u32 %v14861_v50, %v11642_v49  ;;  %5395 = vmatpush.bf16.msrb.mxu1 %v11387_v54 }
  0x9b   : > { %v14793_v57 = vld [vmem:[%s15666_s16 + $0xd0c] sm:$0xf0]  ;;  %v11498_v58 = vld [vmem:[%s15666_s16 + $0xe00] sm:$0xf]  ;;  %v11243_v6 = vor.u32 %v14761_v53, %v11242_v52  ;;  %5408 = vmatpush.bf16.msrb.mxu2 %v11515_v55 }
  0x9c   : > { %v14825_v62 = vld [vmem:[%s15666_s16 + $0xe0c] sm:$0xf0]  ;;  %v11626_v1 = vld [vmem:[%s15666_s16 + $0xf00] sm:$0xf]  ;;  %v11371_v10 = vor.u32 %v14793_v57, %v11370_v56  ;;  %5421 = vmatpush.bf16.msrb.mxu3 %v11643_v59 }
  0x9d   : > { %v14857_v2 = vld [vmem:[%s15666_s16 + $0xf0c] sm:$0xf0]  ;;  %v11866_v3 = vld [vmem:[%s15666_s16 + $0x10e0] sm:$0xf]  ;;  %v11499_v11 = vor.u32 %v14825_v62, %v11498_v58  ;;  %5383 = vmatpush.bf16.msrb.mxu0 %v11243_v6 }
  0x9e   : > { %v14917_v4 = vld [vmem:[%s15666_s16 + $0x10ec] sm:$0xf0]  ;;  %v11994_v5 = vld [vmem:[%s15666_s16 + $0x11e0] sm:$0xf]  ;;  %v11627_v14 = vor.u32 %v14857_v2, %v11626_v1  ;;  %5396 = vmatpush.bf16.msrb.mxu1 %v11371_v10 }
  0x9f   : > { %v14949_v7 = vld [vmem:[%s15666_s16 + $0x11ec] sm:$0xf0]  ;;  %v12122_v8 = vld [vmem:[%s15666_s16 + $0x12e0] sm:$0xf]  ;;  %v11867_v15 = vor.u32 %v14917_v4, %v11866_v3  ;;  %5409 = vmatpush.bf16.msrb.mxu2 %v11499_v11 }
  0xa0   : > { %v14981_v9 = vld [vmem:[%s15666_s16 + $0x12ec] sm:$0xf0]  ;;  %v12250_v12 = vld [vmem:[%s15666_s16 + $0x13e0] sm:$0xf]  ;;  %v11995_v16 = vor.u32 %v14949_v7, %v11994_v5  ;;  %5422 = vmatpush.bf16.msrb.mxu3 %v11627_v14  ;;  %5384 = vmatmul.bf16.vlgmr.msrb.gmra.mxu0 %v16004_v29 }
  0xa1   : > { %v15013_v13 = vld [vmem:[%s15666_s16 + $0x13ec] sm:$0xf0]  ;;  %v12123_v17 = vor.u32 %v14981_v9, %v12122_v8  ;;  %v11850_v18 = vld [vmem:[%s15666_s16 + $0x10c0] sm:$0xf]  ;;  %5428 = vmatpush.bf16.msra.mxu0 %v11867_v15  ;;  %5397 = vmatmul.bf16.vlgmr.msrb.gmra.mxu1 %v16015_v38 }
  0xa2   : > { %v14913_v21 = vld [vmem:[%s15666_s16 + $0x10cc] sm:$0xf0]  ;;  %v11978_v24 = vld [vmem:[%s15666_s16 + $0x11c0] sm:$0xf]  ;;  %v12251_v26 = vor.u32 %v15013_v13, %v12250_v12  ;;  %5441 = vmatpush.bf16.msra.mxu1 %v11995_v16  ;;  %5410 = vmatmul.bf16.vlgmr.msrb.gmra.mxu2 %v16011_v37 }
  0xa3   : > { %v14945_v30 = vld [vmem:[%s15666_s16 + $0x11cc] sm:$0xf0]  ;;  %v12106_v35 = vld [vmem:[%s15666_s16 + $0x12c0] sm:$0xf]  ;;  %v11851_v40 = vor.u32 %v14913_v21, %v11850_v18  ;;  %5454 = vmatpush.bf16.msra.mxu2 %v12123_v17  ;;  %5423 = vmatmul.bf16.vlgmr.msrb.gmra.mxu3 %v16021_v22 }
  0xa4   : > { %v14977_v36 = vld [vmem:[%s15666_s16 + $0x12cc] sm:$0xf0]  ;;  %v12234_v20 = vld [vmem:[%s15666_s16 + $0x13c0] sm:$0xf]  ;;  %v11979_v61 = vor.u32 %v14945_v30, %v11978_v24  ;;  %5467 = vmatpush.bf16.msra.mxu3 %v12251_v26 }
  0xa5   : > { %v15009_v60 = vld [vmem:[%s15666_s16 + $0x13cc] sm:$0xf0]  ;;  %v12107_v41 = vor.u32 %v14977_v36, %v12106_v35  ;;  %v11834_v63 = vld [vmem:[%s15666_s16 + $0x10a0] sm:$0xf]  ;;  %5429 = vmatpush.bf16.msra.mxu0 %v11851_v40 }
  0xa6   : > { %v14909_v44 = vld [vmem:[%s15666_s16 + $0x10ac] sm:$0xf0]  ;;  %v11962_v23 = vld [vmem:[%s15666_s16 + $0x11a0] sm:$0xf]  ;;  %v12235_v46 = vor.u32 %v15009_v60, %v12234_v20  ;;  %5442 = vmatpush.bf16.msra.mxu1 %v11979_v61 }
  0xa7   : > { %v14941_v47 = vld [vmem:[%s15666_s16 + $0x11ac] sm:$0xf0]  ;;  %v12090_v0 = vld [vmem:[%s15666_s16 + $0x12a0] sm:$0xf]  ;;  %v11835_v51 = vor.u32 %v14909_v44, %v11834_v63  ;;  %5455 = vmatpush.bf16.msra.mxu2 %v12107_v41 }
  0xa8   : > { %v14973_v48 = vld [vmem:[%s15666_s16 + $0x12ac] sm:$0xf0]  ;;  %v12218_v49 = vld [vmem:[%s15666_s16 + $0x13a0] sm:$0xf]  ;;  %v11963_v52 = vor.u32 %v14941_v47, %v11962_v23  ;;  %5468 = vmatpush.bf16.msra.mxu3 %v12235_v46 }
  0xa9   : > { %v15005_v50 = vld [vmem:[%s15666_s16 + $0x13ac] sm:$0xf0]  ;;  %v12091_v53 = vor.u32 %v14973_v48, %v12090_v0  ;;  %v11818_v54 = vld [vmem:[%s15666_s16 + $0x1080] sm:$0xf]  ;;  %5430 = vmatpush.bf16.msra.mxu0 %v11835_v51 }
  0xaa   : > { %v14905_v55 = vld [vmem:[%s15666_s16 + $0x108c] sm:$0xf0]  ;;  %v11946_v56 = vld [vmem:[%s15666_s16 + $0x1180] sm:$0xf]  ;;  %v12219_v57 = vor.u32 %v15005_v50, %v12218_v49  ;;  %5443 = vmatpush.bf16.msra.mxu1 %v11963_v52 }
  0xab   : > { %v14937_v58 = vld [vmem:[%s15666_s16 + $0x118c] sm:$0xf0]  ;;  %v12074_v59 = vld [vmem:[%s15666_s16 + $0x1280] sm:$0xf]  ;;  %v11819_v3 = vor.u32 %v14905_v55, %v11818_v54  ;;  %5456 = vmatpush.bf16.msra.mxu2 %v12091_v53 }
  0xac   : > { %v14969_v62 = vld [vmem:[%s15666_s16 + $0x128c] sm:$0xf0]  ;;  %v12202_v1 = vld [vmem:[%s15666_s16 + $0x1380] sm:$0xf]  ;;  %v11947_v4 = vor.u32 %v14937_v58, %v11946_v56  ;;  %5469 = vmatpush.bf16.msra.mxu3 %v12219_v57 }
  0xad   : > { %v15001_v2 = vld [vmem:[%s15666_s16 + $0x138c] sm:$0xf0]  ;;  %v12075_v5 = vor.u32 %v14969_v62, %v12074_v59  ;;  %v11802_v6 = vld [vmem:[%s15666_s16 + $0x1060] sm:$0xf]  ;;  %5431 = vmatpush.bf16.msra.mxu0 %v11819_v3 }
  0xae   : > { %v14901_v7 = vld [vmem:[%s15666_s16 + $0x106c] sm:$0xf0]  ;;  %v11930_v8 = vld [vmem:[%s15666_s16 + $0x1160] sm:$0xf]  ;;  %v12203_v9 = vor.u32 %v15001_v2, %v12202_v1  ;;  %5444 = vmatpush.bf16.msra.mxu1 %v11947_v4 }
  0xaf   : > { %v14933_v10 = vld [vmem:[%s15666_s16 + $0x116c] sm:$0xf0]  ;;  %v12058_v11 = vld [vmem:[%s15666_s16 + $0x1260] sm:$0xf]  ;;  %v11803_v15 = vor.u32 %v14901_v7, %v11802_v6  ;;  %5457 = vmatpush.bf16.msra.mxu2 %v12075_v5 }
  0xb0   : > { %v14965_v12 = vld [vmem:[%s15666_s16 + $0x126c] sm:$0xf0]  ;;  %v12186_v13 = vld [vmem:[%s15666_s16 + $0x1360] sm:$0xf]  ;;  %v11931_v16 = vor.u32 %v14933_v10, %v11930_v8  ;;  %5470 = vmatpush.bf16.msra.mxu3 %v12203_v9 }
  0xb1   : > { %v14997_v14 = vld [vmem:[%s15666_s16 + $0x136c] sm:$0xf0]  ;;  %v12059_v17 = vor.u32 %v14965_v12, %v12058_v11  ;;  %v11786_v18 = vld [vmem:[%s15666_s16 + $0x1040] sm:$0xf]  ;;  %5432 = vmatpush.bf16.msra.mxu0 %v11803_v15 }
  0xb2   : > { %v14897_v21 = vld [vmem:[%s15666_s16 + $0x104c] sm:$0xf0]  ;;  %v11914_v24 = vld [vmem:[%s15666_s16 + $0x1140] sm:$0xf]  ;;  %v12187_v26 = vor.u32 %v14997_v14, %v12186_v13  ;;  %5445 = vmatpush.bf16.msra.mxu1 %v11931_v16 }
  0xb3   : > { %v14929_v30 = vld [vmem:[%s15666_s16 + $0x114c] sm:$0xf0]  ;;  %v12042_v35 = vld [vmem:[%s15666_s16 + $0x1240] sm:$0xf]  ;;  %v11787_v40 = vor.u32 %v14897_v21, %v11786_v18  ;;  %5458 = vmatpush.bf16.msra.mxu2 %v12059_v17 }
  0xb4   : > { %v14961_v36 = vld [vmem:[%s15666_s16 + $0x124c] sm:$0xf0]  ;;  %v12170_v20 = vld [vmem:[%s15666_s16 + $0x1340] sm:$0xf]  ;;  %v11915_v61 = vor.u32 %v14929_v30, %v11914_v24  ;;  %5471 = vmatpush.bf16.msra.mxu3 %v12187_v26 }
  0xb5   : > { %v14993_v60 = vld [vmem:[%s15666_s16 + $0x134c] sm:$0xf0]  ;;  %v12043_v41 = vor.u32 %v14961_v36, %v12042_v35  ;;  %v11770_v63 = vld [vmem:[%s15666_s16 + $0x1020] sm:$0xf]  ;;  %5433 = vmatpush.bf16.msra.mxu0 %v11787_v40 }
  0xb6   : > { %v14893_v44 = vld [vmem:[%s15666_s16 + $0x102c] sm:$0xf0]  ;;  %v11898_v23 = vld [vmem:[%s15666_s16 + $0x1120] sm:$0xf]  ;;  %v12171_v46 = vor.u32 %v14993_v60, %v12170_v20  ;;  %5446 = vmatpush.bf16.msra.mxu1 %v11915_v61 }
  0xb7   : > { %v14925_v47 = vld [vmem:[%s15666_s16 + $0x112c] sm:$0xf0]  ;;  %v12026_v0 = vld [vmem:[%s15666_s16 + $0x1220] sm:$0xf]  ;;  %v11771_v52 = vor.u32 %v14893_v44, %v11770_v63  ;;  %5459 = vmatpush.bf16.msra.mxu2 %v12043_v41 }
  0xb8   : > { %v14957_v48 = vld [vmem:[%s15666_s16 + $0x122c] sm:$0xf0]  ;;  %v12154_v49 = vld [vmem:[%s15666_s16 + $0x1320] sm:$0xf]  ;;  %v11899_v56 = vor.u32 %v14925_v47, %v11898_v23  ;;  %5472 = vmatpush.bf16.msra.mxu3 %v12171_v46 }
  0xb9   : > { %v14989_v50 = vld [vmem:[%s15666_s16 + $0x132c] sm:$0xf0]  ;;  %v11754_v51 = vld [vmem:[%s15666_s16 + $0x1000] sm:$0xf]  ;;  %v12027_v57 = vor.u32 %v14957_v48, %v12026_v0  ;;  %5434 = vmatpush.bf16.msra.mxu0 %v11771_v52 }
  0xba   : > { %v14889_v53 = vld [vmem:[%s15666_s16 + $0x100c] sm:$0xf0]  ;;  %v11882_v54 = vld [vmem:[%s15666_s16 + $0x1100] sm:$0xf]  ;;  %v12155_v1 = vor.u32 %v14989_v50, %v12154_v49  ;;  %5447 = vmatpush.bf16.msra.mxu1 %v11899_v56 }
  0xbb   : > { %v14921_v55 = vld [vmem:[%s15666_s16 + $0x110c] sm:$0xf0]  ;;  %v12010_v58 = vld [vmem:[%s15666_s16 + $0x1200] sm:$0xf]  ;;  %v11755_v8 = vor.u32 %v14889_v53, %v11754_v51  ;;  %5460 = vmatpush.bf16.msra.mxu2 %v12027_v57 }
  0xbc   : > { %v14953_v59 = vld [vmem:[%s15666_s16 + $0x120c] sm:$0xf0]  ;;  %v12138_v62 = vld [vmem:[%s15666_s16 + $0x1300] sm:$0xf]  ;;  %v11883_v12 = vor.u32 %v14921_v55, %v11882_v54  ;;  %5473 = vmatpush.bf16.msra.mxu3 %v12155_v1 }
  0xbd   : > { %v14985_v2 = vld [vmem:[%s15666_s16 + $0x130c] sm:$0xf0]  ;;  %v12378_v3 = vld [vmem:[%s15666_s16 + $0x14e0] sm:$0xf]  ;;  %v12011_v13 = vor.u32 %v14953_v59, %v12010_v58  ;;  %5435 = vmatpush.bf16.msra.mxu0 %v11755_v8 }
  0xbe   : > { %v15045_v4 = vld [vmem:[%s15666_s16 + $0x14ec] sm:$0xf0]  ;;  %v12506_v5 = vld [vmem:[%s15666_s16 + $0x15e0] sm:$0xf]  ;;  %v12139_v16 = vor.u32 %v14985_v2, %v12138_v62  ;;  %5448 = vmatpush.bf16.msra.mxu1 %v11883_v12 }
  0xbf   : > { %v15077_v6 = vld [vmem:[%s15666_s16 + $0x15ec] sm:$0xf0]  ;;  %v12634_v7 = vld [vmem:[%s15666_s16 + $0x16e0] sm:$0xf]  ;;  %v12379_v17 = vor.u32 %v15045_v4, %v12378_v3  ;;  %5461 = vmatpush.bf16.msra.mxu2 %v12011_v13 }
  0xc0   : > { %v15109_v9 = vld [vmem:[%s15666_s16 + $0x16ec] sm:$0xf0]  ;;  %v12762_v10 = vld [vmem:[%s15666_s16 + $0x17e0] sm:$0xf]  ;;  %v12507_v24 = vor.u32 %v15077_v6, %v12506_v5  ;;  %5474 = vmatpush.bf16.msra.mxu3 %v12139_v16 }
  0xc1   : > { %v15141_v11 = vld [vmem:[%s15666_s16 + $0x17ec] sm:$0xf0]  ;;  %v360_v14 = vld.sshfl [vmem:[#allocation1] sm:$0xff pattern:$0x73625140]  ;;  %v12635_v26 = vor.u32 %v15109_v9, %v12634_v7  ;;  %5480 = vmatpush.bf16.msrb.mxu0 %v12379_v17 }
  0xc2   : > { %v362_v15 = vld.sshfl [vmem:[#allocation1 + $0x10] sm:$0xff pattern:$0x73625140]  ;;  %v361_v18 = vld.sshfl [vmem:[#allocation1 + $0x8] sm:$0xff pattern:$0x73625140]  ;;  %v12763_v20 = vor.u32 %v15141_v11, %v12762_v10  ;;  %v16086_v60 = vpack.c.bf16 %v360_v14, %v360_v14  ;;  %5493 = vmatpush.bf16.msrb.mxu1 %v12507_v24 }
  0xc3   : > { %v363_v21 = vld.sshfl [vmem:[#allocation1 + $0x18] sm:$0xff pattern:$0x73625140]  ;;  %v12362_v30 = vld [vmem:[%s15666_s16 + $0x14c0] sm:$0xf]  ;;  %v16091_v63 = vpack.c.bf16 %v362_v15, %v362_v15  ;;  %v16093_v44 = vpack.c.bf16 %v361_v18, %v361_v18  ;;  %5506 = vmatpush.bf16.msrb.mxu2 %v12635_v26 }
  0xc4   : > { %v15041_v35 = vld [vmem:[%s15666_s16 + $0x14cc] sm:$0xf0]  ;;  %v12490_v36 = vld [vmem:[%s15666_s16 + $0x15c0] sm:$0xf]  ;;  %v16097_v47 = vpack.c.bf16 %v363_v21, %v363_v21  ;;  %5519 = vmatpush.bf16.msrb.mxu3 %v12763_v20  ;;  %5436 = vmatmul.bf16.vlgmr.msra.gmra.mxu0 %v16086_v60 }
  0xc5   : > { %v15073_v40 = vld [vmem:[%s15666_s16 + $0x15cc] sm:$0xf0]  ;;  %v12618_v61 = vld [vmem:[%s15666_s16 + $0x16c0] sm:$0xf]  ;;  %v12363_v0 = vor.u32 %v15041_v35, %v12362_v30  ;;  %5462 = vmatmul.bf16.vlgmr.msra.gmra.mxu2 %v16091_v63  ;;  %5449 = vmatmul.bf16.vlgmr.msra.gmra.mxu1 %v16093_v44 }
  0xc6   : > { %v15105_v41 = vld [vmem:[%s15666_s16 + $0x16cc] sm:$0xf0]  ;;  %v12746_v23 = vld [vmem:[%s15666_s16 + $0x17c0] sm:$0xf]  ;;  %v12491_v48 = vor.u32 %v15073_v40, %v12490_v36  ;;  %5475 = vmatmul.bf16.vlgmr.msra.gmra.mxu3 %v16097_v47 }
  0xc7   : > { %v15137_v46 = vld [vmem:[%s15666_s16 + $0x17cc] sm:$0xf0]  ;;  %v12619_v49 = vor.u32 %v15105_v41, %v12618_v61  ;;  %v12346_v50 = vld [vmem:[%s15666_s16 + $0x14a0] sm:$0xf]  ;;  %5481 = vmatpush.bf16.msrb.mxu0 %v12363_v0 }
  0xc8   : > { %v15037_v51 = vld [vmem:[%s15666_s16 + $0x14ac] sm:$0xf0]  ;;  %v12474_v52 = vld [vmem:[%s15666_s16 + $0x15a0] sm:$0xf]  ;;  %v12747_v53 = vor.u32 %v15137_v46, %v12746_v23  ;;  %5494 = vmatpush.bf16.msrb.mxu1 %v12491_v48 }
  0xc9   : > { %v15069_v54 = vld [vmem:[%s15666_s16 + $0x15ac] sm:$0xf0]  ;;  %v12602_v55 = vld [vmem:[%s15666_s16 + $0x16a0] sm:$0xf]  ;;  %v12347_v59 = vor.u32 %v15037_v51, %v12346_v50  ;;  %5507 = vmatpush.bf16.msrb.mxu2 %v12619_v49 }
  0xca   : > { %v15101_v56 = vld [vmem:[%s15666_s16 + $0x16ac] sm:$0xf0]  ;;  %v12730_v57 = vld [vmem:[%s15666_s16 + $0x17a0] sm:$0xf]  ;;  %v12475_v62 = vor.u32 %v15069_v54, %v12474_v52  ;;  %5520 = vmatpush.bf16.msrb.mxu3 %v12747_v53 }
  0xcb   : > { %v15133_v58 = vld [vmem:[%s15666_s16 + $0x17ac] sm:$0xf0]  ;;  %v12603_v1 = vor.u32 %v15101_v56, %v12602_v55  ;;  %v12330_v2 = vld [vmem:[%s15666_s16 + $0x1480] sm:$0xf]  ;;  %5482 = vmatpush.bf16.msrb.mxu0 %v12347_v59 }
  0xcc   : > { %v15033_v3 = vld [vmem:[%s15666_s16 + $0x148c] sm:$0xf0]  ;;  %v12458_v4 = vld [vmem:[%s15666_s16 + $0x1580] sm:$0xf]  ;;  %v12731_v5 = vor.u32 %v15133_v58, %v12730_v57  ;;  %5495 = vmatpush.bf16.msrb.mxu1 %v12475_v62 }
  0xcd   : > { %v15065_v6 = vld [vmem:[%s15666_s16 + $0x158c] sm:$0xf0]  ;;  %v12586_v7 = vld [vmem:[%s15666_s16 + $0x1680] sm:$0xf]  ;;  %v12331_v11 = vor.u32 %v15033_v3, %v12330_v2  ;;  %5508 = vmatpush.bf16.msrb.mxu2 %v12603_v1 }
  0xce   : > { %v15097_v8 = vld [vmem:[%s15666_s16 + $0x168c] sm:$0xf0]  ;;  %v12714_v9 = vld [vmem:[%s15666_s16 + $0x1780] sm:$0xf]  ;;  %v12459_v12 = vor.u32 %v15065_v6, %v12458_v4  ;;  %5521 = vmatpush.bf16.msrb.mxu3 %v12731_v5  ;;  %v5229_v5 = vpop.f32.mrf.mxu0 }
  0xcf   : > { %v15129_v10 = vld [vmem:[%s15666_s16 + $0x178c] sm:$0xf0]  ;;  %v12587_v13 = vor.u32 %v15097_v8, %v12586_v7  ;;  %v12314_v14 = vld [vmem:[%s15666_s16 + $0x1460] sm:$0xf]  ;;  %5483 = vmatpush.bf16.msrb.mxu0 %v12331_v11  ;;  %v5242_v11 = vpop.f32.mrf.mxu1 }
  0xd0   : > { %v15029_v15 = vld [vmem:[%s15666_s16 + $0x146c] sm:$0xf0]  ;;  %v12442_v16 = vld [vmem:[%s15666_s16 + $0x1560] sm:$0xf]  ;;  %v12715_v17 = vor.u32 %v15129_v10, %v12714_v9  ;;  %5496 = vmatpush.bf16.msrb.mxu1 %v12459_v12 }
  0xd1   : > { %v15061_v18 = vld [vmem:[%s15666_s16 + $0x156c] sm:$0xf0]  ;;  %v12570_v21 = vld [vmem:[%s15666_s16 + $0x1660] sm:$0xf]  ;;  %v12315_v35 = vor.u32 %v15029_v15, %v12314_v14  ;;  %5509 = vmatpush.bf16.msrb.mxu2 %v12587_v13 }
  0xd2   : > { %v15093_v24 = vld [vmem:[%s15666_s16 + $0x166c] sm:$0xf0]  ;;  %v12698_v26 = vld [vmem:[%s15666_s16 + $0x1760] sm:$0xf]  ;;  %v12443_v36 = vor.u32 %v15061_v18, %v12442_v16  ;;  %5522 = vmatpush.bf16.msrb.mxu3 %v12715_v17  ;;  %v5243_v17 = vadd.f32 %v5242_v11, %v5229_v5  ;;  %v14431_v5 = vld [vmem:[%s15666_s16 + $0x1c4] sm:$0xf] }
  0xd3   : > { %v15125_v30 = vld [vmem:[%s15666_s16 + $0x176c] sm:$0xf0]  ;;  %v12571_v20 = vor.u32 %v15093_v24, %v12570_v21  ;;  %v12298_v40 = vld [vmem:[%s15666_s16 + $0x1440] sm:$0xf]  ;;  %5484 = vmatpush.bf16.msrb.mxu0 %v12315_v35  ;;  %v14403_v24 = vld [vmem:[%s15666_s16 + $0xe4] sm:$0xf] }
  0xd4   : > { %v15025_v61 = vld [vmem:[%s15666_s16 + $0x144c] sm:$0xf0]  ;;  %v12426_v41 = vld [vmem:[%s15666_s16 + $0x1540] sm:$0xf]  ;;  %v12699_v23 = vor.u32 %v15125_v30, %v12698_v26  ;;  %5497 = vmatpush.bf16.msrb.mxu1 %v12443_v36  ;;  %v9820_v26 = vld [vmem:[%s15666_s16 + $0xf0] sm:$0xf0]  ;;  %v5255_v36 = vpop.f32.mrf.mxu2 }
  0xd5   : > { %v15057_v46 = vld [vmem:[%s15666_s16 + $0x154c] sm:$0xf0]  ;;  %v12554_v0 = vld [vmem:[%s15666_s16 + $0x1640] sm:$0xf]  ;;  %v12299_v51 = vor.u32 %v15025_v61, %v12298_v40  ;;  %5510 = vmatpush.bf16.msrb.mxu2 %v12571_v20  ;;  %v14435_v30 = vld [vmem:[%s15666_s16 + $0x1e4] sm:$0xf] }
  0xd6   : > { %v15089_v48 = vld [vmem:[%s15666_s16 + $0x164c] sm:$0xf0]  ;;  %v12682_v49 = vld [vmem:[%s15666_s16 + $0x1740] sm:$0xf]  ;;  %v12427_v53 = vor.u32 %v15057_v46, %v12426_v41  ;;  %5523 = vmatpush.bf16.msrb.mxu3 %v12699_v23  ;;  %v9948_v35 = vld [vmem:[%s15666_s16 + $0x1f0] sm:$0xf0]  ;;  %v5256_v23 = vadd.f32 %v5255_v36, %v5243_v17 }
  0xd7   : > { %v15121_v50 = vld [vmem:[%s15666_s16 + $0x174c] sm:$0xf0]  ;;  %v12282_v52 = vld [vmem:[%s15666_s16 + $0x1420] sm:$0xf]  ;;  %v12555_v54 = vor.u32 %v15089_v48, %v12554_v0  ;;  %5485 = vmatpush.bf16.msrb.mxu0 %v12299_v51  ;;  %v14467_v61 = vld [vmem:[%s15666_s16 + $0x2e4] sm:$0xf] }
  0xd8   : > { %v15021_v55 = vld [vmem:[%s15666_s16 + $0x142c] sm:$0xf0]  ;;  %v12410_v56 = vld [vmem:[%s15666_s16 + $0x1520] sm:$0xf]  ;;  %v12683_v58 = vor.u32 %v15121_v50, %v12682_v49  ;;  %5498 = vmatpush.bf16.msrb.mxu1 %v12427_v53  ;;  %v10076_v41 = vld [vmem:[%s15666_s16 + $0x2f0] sm:$0xf0] }
  0xd9   : > { %v15053_v57 = vld [vmem:[%s15666_s16 + $0x152c] sm:$0xf0]  ;;  %v12538_v59 = vld [vmem:[%s15666_s16 + $0x1620] sm:$0xf]  ;;  %v12283_v6 = vor.u32 %v15021_v55, %v12282_v52  ;;  %5511 = vmatpush.bf16.msrb.mxu2 %v12555_v54  ;;  %v5268_v54 = vpop.f32.mrf.mxu3  ;;  %v9823_v55 = vor.u32 %v14403_v24, %v9820_v26  ;;  %v10060_v11 = vld [vmem:[%s15666_s16 + $0x2d0] sm:$0xf0] }
  0xda   : > { %v15085_v62 = vld [vmem:[%s15666_s16 + $0x162c] sm:$0xf0]  ;;  %v12666_v1 = vld [vmem:[%s15666_s16 + $0x1720] sm:$0xf]  ;;  %v12411_v12 = vor.u32 %v15053_v57, %v12410_v56  ;;  %5524 = vmatpush.bf16.msrb.mxu3 %v12683_v58  ;;  %v9951_v56 = vor.u32 %v14435_v30, %v9948_v35  ;;  %v9788_v26 = vld [vmem:[%s15666_s16 + $0xb0] sm:$0xf0] }
  0xdb   : > { %v15117_v2 = vld [vmem:[%s15666_s16 + $0x172c] sm:$0xf0]  ;;  %v12266_v3 = vld [vmem:[%s15666_s16 + $0x1400] sm:$0xf]  ;;  %v12539_v13 = vor.u32 %v15085_v62, %v12538_v59  ;;  %5486 = vmatpush.bf16.msrb.mxu0 %v12283_v6  ;;  %v14399_v59 = vld [vmem:[%s15666_s16 + $0xc4] sm:$0xf]  ;;  %v16163_v62 = vadd.f32 %v5268_v54, %v5256_v23 }
  0xdc   : > { %v15017_v4 = vld [vmem:[%s15666_s16 + $0x140c] sm:$0xf0]  ;;  %v12394_v7 = vld [vmem:[%s15666_s16 + $0x1500] sm:$0xf]  ;;  %v12667_v18 = vor.u32 %v15117_v2, %v12666_v1  ;;  %5499 = vmatpush.bf16.msrb.mxu1 %v12411_v12  ;;  %v5231_v1 = vpop.f32.mrf.mxu0  ;;  %v10079_v2 = vor.u32 %v14467_v61, %v10076_v41  ;;  %v9932_v6 = vld [vmem:[%s15666_s16 + $0x1d0] sm:$0xf0] }
  0xdd   : > { %v15049_v8 = vld [vmem:[%s15666_s16 + $0x150c] sm:$0xf0]  ;;  %v12522_v9 = vld [vmem:[%s15666_s16 + $0x1600] sm:$0xf]  ;;  %v12267_v40 = vor.u32 %v15017_v4, %v12266_v3  ;;  %5512 = vmatpush.bf16.msrb.mxu2 %v12539_v13  ;;  %v9804_v4 = vld [vmem:[%s15666_s16 + $0xd0] sm:$0xf0] }
  0xde   : > { %v15081_v10 = vld [vmem:[%s15666_s16 + $0x160c] sm:$0xf0]  ;;  %v12650_v14 = vld [vmem:[%s15666_s16 + $0x1700] sm:$0xf]  ;;  %v12395_v46 = vor.u32 %v15049_v8, %v12394_v7  ;;  %5525 = vmatpush.bf16.msrb.mxu3 %v12667_v18  ;;  %v5244_v7 = vpop.f32.mrf.mxu1  ;;  %v14395_v18 = vld [vmem:[%s15666_s16 + $0xa4] sm:$0xf] }
  0xdf   : > { %v15113_v15 = vld [vmem:[%s15666_s16 + $0x170c] sm:$0xf0]  ;;  %v12890_v16 = vld [vmem:[%s15666_s16 + $0x18e0] sm:$0xf]  ;;  %v12523_v0 = vor.u32 %v15081_v10, %v12522_v9  ;;  %5487 = vmatpush.bf16.msrb.mxu0 %v12267_v40  ;;  %v14463_v10 = vld [vmem:[%s15666_s16 + $0x2c4] sm:$0xf]  ;;  %v9791_v41 = vor.u32 %v14395_v18, %v9788_v26 }
  0xe0   : > { %v15173_v21 = vld [vmem:[%s15666_s16 + $0x18ec] sm:$0xf0]  ;;  %v364_v48 = vld.sshfl [vmem:[#allocation1 + $0x20] sm:$0xff pattern:$0x73625140]  ;;  %v12651_v50 = vor.u32 %v15113_v15, %v12650_v14  ;;  %5500 = vmatpush.bf16.msrb.mxu1 %v12395_v46  ;;  %v9807_v14 = vor.u32 %v14399_v59, %v9804_v4  ;;  %v9935_v15 = vor.u32 %v14431_v5, %v9932_v6  ;;  %v10063_v24 = vor.u32 %v14463_v10, %v10060_v11 }
  0xe1   : > { %v329_v20 = vld [vmem:[%s15661_s12 + $0x30] sm:$0x3]  ;;  %v12891_v51 = vor.u32 %v15173_v21, %v12890_v16  ;;  %v365_v52 = vld.sshfl [vmem:[#allocation1 + $0x28] sm:$0xff pattern:$0x73625140]  ;;  %v16165_v3 = vpack.c.bf16 %v364_v48, %v364_v48  ;;  %5513 = vmatpush.bf16.msrb.mxu2 %v12523_v0  ;;  %v5257_v21 = vpop.f32.mrf.mxu2  ;;  %v5270_v61 = vpop.f32.mrf.mxu3 }
  0xe2   : > { %368 = vst [vmem:[#allocation1] ss:$4 sm:$0xff] %v329_v20  ;;  %v366_v49 = vld.sshfl [vmem:[#allocation1 + $0x30] sm:$0xff pattern:$0x73625140]  ;;  %v16172_v9 = vpack.c.bf16 %v365_v52, %v365_v52  ;;  %5526 = vmatpush.bf16.msrb.mxu3 %v12651_v50 }
  0xe3   : > { %v367_v53 = vld.sshfl [vmem:[#allocation1 + $0x38] sm:$0xff pattern:$0x73625140]  ;;  %v12874_v57 = vld [vmem:[%s15666_s16 + $0x18c0] sm:$0xf]  ;;  %v16170_v8 = vpack.c.bf16 %v366_v49, %v366_v49  ;;  %5532 = vmatpush.bf16.msra.mxu0 %v12891_v51 }
  0xe4   : > { %v15169_v58 = vld [vmem:[%s15666_s16 + $0x18cc] sm:$0xf0]  ;;  %v16176_v12 = vpack.c.bf16 %v367_v53, %v367_v53  ;;  %5545 = vmatpush.bf16.msra.mxu1 %v9823_v55  ;;  %v12858_v16 = vld [vmem:[%s15666_s16 + $0x18a0] sm:$0xf]  ;;  %5488 = vmatmul.bf16.vlgmr.msrb.gmra.mxu0 %v16165_v3  ;;  %v14427_v30 = vld [vmem:[%s15666_s16 + $0x1a4] sm:$0xf] }
  0xe5   : > { %v12875_v13 = vor.u32 %v15169_v58, %v12874_v57  ;;  %5558 = vmatpush.bf16.msra.mxu2 %v9951_v56  ;;  %v15165_v17 = vld [vmem:[%s15666_s16 + $0x18ac] sm:$0xf0]  ;;  %v9916_v35 = vld [vmem:[%s15666_s16 + $0x1b0] sm:$0xf0]  ;;  %5501 = vmatmul.bf16.vlgmr.msrb.gmra.mxu1 %v16172_v9  ;;  %v14459_v36 = vld [vmem:[%s15666_s16 + $0x2a4] sm:$0xf]  ;;  %v5281_v56 = vpop.f32.mrf.mxu0 }
  0xe6   : > { %5571 = vmatpush.bf16.msra.mxu3 %v10079_v2  ;;  %5514 = vmatmul.bf16.vlgmr.msrb.gmra.mxu2 %v16170_v8  ;;  %v10044_v20 = vld [vmem:[%s15666_s16 + $0x2b0] sm:$0xf0]  ;;  %v12859_v40 = vor.u32 %v15165_v17, %v12858_v16  ;;  %v9919_v23 = vor.u32 %v14427_v30, %v9916_v35  ;;  %v12842_v46 = vld [vmem:[%s15666_s16 + $0x1880] sm:$0xf]  ;;  %v15161_v0 = vld [vmem:[%s15666_s16 + $0x188c] sm:$0xf0]  ;;  %v5282_v4 = vadd.f32 %v5281_v56, %v16163_v62  ;;  %v5294_v5 = vpop.f32.mrf.mxu1 }
  0xe7   : > { %5527 = vmatmul.bf16.vlgmr.msrb.gmra.mxu3 %v16176_v12  ;;  %5533 = vmatpush.bf16.msra.mxu0 %v12875_v13  ;;  %v14391_v48 = vld [vmem:[%s15666_s16 + $0x84] sm:$0xf]  ;;  %v10047_v49 = vor.u32 %v14459_v36, %v10044_v20  ;;  %v9772_v50 = vld [vmem:[%s15666_s16 + $0x90] sm:$0xf0]  ;;  %v12843_v55 = vor.u32 %v15161_v0, %v12842_v46  ;;  %v12826_v59 = vld [vmem:[%s15666_s16 + $0x1860] sm:$0xf] }
  0xe8   : > { %5546 = vmatpush.bf16.msra.mxu1 %v9807_v14  ;;  %v14423_v51 = vld [vmem:[%s15666_s16 + $0x184] sm:$0xf]  ;;  %v9900_v52 = vld [vmem:[%s15666_s16 + $0x190] sm:$0xf0]  ;;  %v9775_v57 = vor.u32 %v14391_v48, %v9772_v50  ;;  %v15157_v1 = vld [vmem:[%s15666_s16 + $0x186c] sm:$0xf0] }
  0xe9   : > { %5559 = vmatpush.bf16.msra.mxu2 %v9935_v15  ;;  %v14455_v53 = vld [vmem:[%s15666_s16 + $0x284] sm:$0xf]  ;;  %v10028_v54 = vld [vmem:[%s15666_s16 + $0x290] sm:$0xf0]  ;;  %v9903_v58 = vor.u32 %v14423_v51, %v9900_v52  ;;  %v5295_v15 = vadd.f32 %v5294_v5, %v5282_v4  ;;  %v12827_v16 = vor.u32 %v15157_v1, %v12826_v59  ;;  %v12810_v18 = vld [vmem:[%s15666_s16 + $0x1840] sm:$0xf]  ;;  %v5307_v26 = vpop.f32.mrf.mxu2  ;;  %v5320_v61 = vpop.f32.mrf.mxu3 }
  0xea   : > { %5572 = vmatpush.bf16.msra.mxu3 %v10063_v24  ;;  %v14387_v2 = vld [vmem:[%s15666_s16 + $0x64] sm:$0xf]  ;;  %v10031_v6 = vor.u32 %v14455_v53, %v10028_v54  ;;  %v9756_v7 = vld [vmem:[%s15666_s16 + $0x70] sm:$0xf0]  ;;  %v15153_v21 = vld [vmem:[%s15666_s16 + $0x184c] sm:$0xf0] }
  0xeb   : > { %5534 = vmatpush.bf16.msra.mxu0 %v12859_v40  ;;  %v14419_v10 = vld [vmem:[%s15666_s16 + $0x164] sm:$0xf]  ;;  %v9884_v11 = vld [vmem:[%s15666_s16 + $0x170] sm:$0xf0]  ;;  %v9759_v62 = vor.u32 %v14387_v2, %v9756_v7  ;;  %v5308_v40 = vadd.f32 %v5307_v26, %v5295_v15  ;;  %v12811_v46 = vor.u32 %v15153_v21, %v12810_v18  ;;  %v12794_v51 = vld [vmem:[%s15666_s16 + $0x1820] sm:$0xf] }
  0xec   : > { %5547 = vmatpush.bf16.msra.mxu1 %v9791_v41  ;;  %v14451_v13 = vld [vmem:[%s15666_s16 + $0x264] sm:$0xf]  ;;  %v10012_v14 = vld [vmem:[%s15666_s16 + $0x270] sm:$0xf0]  ;;  %v9887_v17 = vor.u32 %v14419_v10, %v9884_v11  ;;  %v15149_v52 = vld [vmem:[%s15666_s16 + $0x182c] sm:$0xf0] }
  0xed   : > { %5560 = vmatpush.bf16.msra.mxu2 %v9919_v23  ;;  %v14383_v24 = vld [vmem:[%s15666_s16 + $0x44] sm:$0xf]  ;;  %v10015_v30 = vor.u32 %v14451_v13, %v10012_v14  ;;  %v9740_v35 = vld [vmem:[%s15666_s16 + $0x50] sm:$0xf0]  ;;  %v16215_v0 = vadd.f32 %v5320_v61, %v5308_v40  ;;  %v5283_v48 = vpop.f32.mrf.mxu0  ;;  %v12795_v2 = vor.u32 %v15149_v52, %v12794_v51  ;;  %v12778_v4 = vld [vmem:[%s15666_s16 + $0x1800] sm:$0xf] }
  0xee   : > { %5573 = vmatpush.bf16.msra.mxu3 %v10047_v49  ;;  %v14415_v36 = vld [vmem:[%s15666_s16 + $0x144] sm:$0xf]  ;;  %v9868_v20 = vld [vmem:[%s15666_s16 + $0x150] sm:$0xf0]  ;;  %v9743_v49 = vor.u32 %v14383_v24, %v9740_v35  ;;  %v5296_v54 = vpop.f32.mrf.mxu1  ;;  %v15145_v5 = vld [vmem:[%s15666_s16 + $0x180c] sm:$0xf0] }
  0xef   : > { %5535 = vmatpush.bf16.msra.mxu0 %v12843_v55  ;;  %v14447_v41 = vld [vmem:[%s15666_s16 + $0x244] sm:$0xf]  ;;  %v9996_v23 = vld [vmem:[%s15666_s16 + $0x250] sm:$0xf0]  ;;  %v9871_v50 = vor.u32 %v14415_v36, %v9868_v20  ;;  %v12779_v35 = vor.u32 %v15145_v5, %v12778_v4 }
  0xf0   : > { %5548 = vmatpush.bf16.msra.mxu1 %v9775_v57  ;;  %v14379_v53 = vld [vmem:[%s15666_s16 + $0x24] sm:$0xf]  ;;  %v9999_v55 = vor.u32 %v14447_v41, %v9996_v23  ;;  %v9724_v56 = vld [vmem:[%s15666_s16 + $0x30] sm:$0xf0] }
  0xf1   : > { %5561 = vmatpush.bf16.msra.mxu2 %v9903_v58  ;;  %v14411_v57 = vld [vmem:[%s15666_s16 + $0x124] sm:$0xf]  ;;  %v9852_v58 = vld [vmem:[%s15666_s16 + $0x130] sm:$0xf0]  ;;  %v9727_v7 = vor.u32 %v14379_v53, %v9724_v56  ;;  %v5309_v15 = vpop.f32.mrf.mxu2  ;;  %v5322_v21 = vpop.f32.mrf.mxu3 }
  0xf2   : > { %5574 = vmatpush.bf16.msra.mxu3 %v10031_v6  ;;  %v14443_v59 = vld [vmem:[%s15666_s16 + $0x224] sm:$0xf]  ;;  %v9980_v1 = vld [vmem:[%s15666_s16 + $0x230] sm:$0xf0]  ;;  %v9855_v10 = vor.u32 %v14411_v57, %v9852_v58 }
  0xf3   : > { %5536 = vmatpush.bf16.msra.mxu0 %v12827_v16  ;;  %v14375_v6 = vld [vmem:[%s15666_s16 + $0x4] sm:$0xf]  ;;  %v9708_v11 = vld [vmem:[%s15666_s16 + $0x10] sm:$0xf0]  ;;  %v9983_v16 = vor.u32 %v14443_v59, %v9980_v1 }
  0xf4   : > { %5549 = vmatpush.bf16.msra.mxu1 %v9759_v62  ;;  %v14407_v13 = vld [vmem:[%s15666_s16 + $0x104] sm:$0xf]  ;;  %v9836_v14 = vld [vmem:[%s15666_s16 + $0x110] sm:$0xf0]  ;;  %v9711_v61 = vor.u32 %v14375_v6, %v9708_v11 }
  0xf5   : > { %5562 = vmatpush.bf16.msra.mxu2 %v9887_v17  ;;  %v14439_v62 = vld [vmem:[%s15666_s16 + $0x204] sm:$0xf]  ;;  %v9964_v17 = vld [vmem:[%s15666_s16 + $0x210] sm:$0xf0]  ;;  %v9839_v41 = vor.u32 %v14407_v13, %v9836_v14 }
  0xf6   : > { %5575 = vmatpush.bf16.msra.mxu3 %v10015_v30  ;;  %v14499_v18 = vld [vmem:[%s15666_s16 + $0x3e4] sm:$0xf]  ;;  %v10204_v24 = vld [vmem:[%s15666_s16 + $0x3f0] sm:$0xf0]  ;;  %v9967_v48 = vor.u32 %v14439_v62, %v9964_v17 }
  0xf7   : > { %5537 = vmatpush.bf16.msra.mxu0 %v12811_v46  ;;  %v14531_v26 = vld [vmem:[%s15666_s16 + $0x4e4] sm:$0xf]  ;;  %v10332_v30 = vld [vmem:[%s15666_s16 + $0x4f0] sm:$0xf0] }
  0xf8   : > { %5550 = vmatpush.bf16.msra.mxu1 %v9743_v49  ;;  %v14563_v36 = vld [vmem:[%s15666_s16 + $0x5e4] sm:$0xf]  ;;  %v10460_v20 = vld [vmem:[%s15666_s16 + $0x5f0] sm:$0xf0]  ;;  %v10207_v49 = vor.u32 %v14499_v18, %v10204_v24 }
  0xf9   : > { %5563 = vmatpush.bf16.msra.mxu2 %v9871_v50  ;;  %v14595_v40 = vld [vmem:[%s15666_s16 + $0x6e4] sm:$0xf]  ;;  %v10588_v23 = vld [vmem:[%s15666_s16 + $0x6f0] sm:$0xf0]  ;;  %v10335_v50 = vor.u32 %v14531_v26, %v10332_v30  ;;  %v10463_v51 = vor.u32 %v14563_v36, %v10460_v20 }
  0xfa   : > { %5576 = vmatpush.bf16.msra.mxu3 %v9999_v55  ;;  %v369_v46 = vld.sshfl [vmem:[#allocation1] sm:$0xff pattern:$0x73625140]  ;;  %v10188_v53 = vld [vmem:[%s15666_s16 + $0x3d0] sm:$0xf0]  ;;  %v10591_v55 = vor.u32 %v14595_v40, %v10588_v23 }
  0xfb   : > { %5538 = vmatpush.bf16.msra.mxu0 %v12795_v2  ;;  %v14495_v52 = vld [vmem:[%s15666_s16 + $0x3c4] sm:$0xf]  ;;  %v16244_v56 = vpack.c.bf16 %v369_v46, %v369_v46  ;;  %v10316_v57 = vld [vmem:[%s15666_s16 + $0x4d0] sm:$0xf0] }
  0xfc   : > { %5551 = vmatpush.bf16.msra.mxu1 %v9727_v7  ;;  %v14527_v54 = vld [vmem:[%s15666_s16 + $0x4c4] sm:$0xf]  ;;  %v10444_v59 = vld [vmem:[%s15666_s16 + $0x5d0] sm:$0xf0]  ;;  %v10191_v4 = vor.u32 %v14495_v52, %v10188_v53 }
  0xfd   : > { %5564 = vmatpush.bf16.msra.mxu2 %v9855_v10  ;;  %v14559_v58 = vld [vmem:[%s15666_s16 + $0x5c4] sm:$0xf]  ;;  %v10572_v2 = vld [vmem:[%s15666_s16 + $0x6d0] sm:$0xf0]  ;;  %v10319_v5 = vor.u32 %v14527_v54, %v10316_v57 }
  0xfe   : > { %5577 = vmatpush.bf16.msra.mxu3 %v9983_v16  ;;  %v14591_v1 = vld [vmem:[%s15666_s16 + $0x6c4] sm:$0xf]  ;;  %v10447_v6 = vor.u32 %v14559_v58, %v10444_v59  ;;  %v10172_v10 = vld [vmem:[%s15666_s16 + $0x3b0] sm:$0xf0] }
  0xff   : > { %5539 = vmatpush.bf16.msra.mxu0 %v12779_v35  ;;  %v14491_v7 = vld [vmem:[%s15666_s16 + $0x3a4] sm:$0xf]  ;;  %v10575_v13 = vor.u32 %v14591_v1, %v10572_v2  ;;  %v10300_v14 = vld [vmem:[%s15666_s16 + $0x4b0] sm:$0xf0] }
 0x100   : > { %5552 = vmatpush.bf16.msra.mxu1 %v9711_v61  ;;  %v14523_v11 = vld [vmem:[%s15666_s16 + $0x4a4] sm:$0xf]  ;;  %v10428_v16 = vld [vmem:[%s15666_s16 + $0x5b0] sm:$0xf0]  ;;  %v10175_v18 = vor.u32 %v14491_v7, %v10172_v10 }
 0x101   : > { %5565 = vmatpush.bf16.msra.mxu2 %v9839_v41  ;;  %v14555_v15 = vld [vmem:[%s15666_s16 + $0x5a4] sm:$0xf]  ;;  %v10556_v17 = vld [vmem:[%s15666_s16 + $0x6b0] sm:$0xf0]  ;;  %v10303_v21 = vor.u32 %v14523_v11, %v10300_v14  ;;  %v5333_v41 = vpop.f32.mrf.mxu0 }
 0x102   : > { %5578 = vmatpush.bf16.msra.mxu3 %v9967_v48  ;;  %5540 = vmatmul.bf16.vlgmr.msra.gmra.mxu0 %v16244_v56  ;;  %v14587_v62 = vld [vmem:[%s15666_s16 + $0x6a4] sm:$0xf]  ;;  %v10431_v24 = vor.u32 %v14555_v15, %v10428_v16  ;;  %v10156_v30 = vld [vmem:[%s15666_s16 + $0x390] sm:$0xf0]  ;;  %v5334_v48 = vadd.f32 %v5333_v41, %v16215_v0 }
 0x103   : > { %5584 = vmatpush.bf16.msrb.mxu0 %v10207_v49  ;;  %5553 = vmatmul.bf16.vlgmr.msra.gmra.mxu1 %v15775_v28  ;;  %v14487_v26 = vld [vmem:[%s15666_s16 + $0x384] sm:$0xf]  ;;  %v10559_v36 = vor.u32 %v14587_v62, %v10556_v17  ;;  %v10284_v20 = vld [vmem:[%s15666_s16 + $0x490] sm:$0xf0]  ;;  %v5359_v15 = vpop.f32.mrf.mxu2 }
 0x104   : > { %5597 = vmatpush.bf16.msrb.mxu1 %v10335_v50  ;;  %5566 = vmatmul.bf16.vlgmr.msra.gmra.mxu2 %v15781_v34  ;;  %v14519_v35 = vld [vmem:[%s15666_s16 + $0x484] sm:$0xf]  ;;  %v10412_v61 = vld [vmem:[%s15666_s16 + $0x590] sm:$0xf0]  ;;  %v10159_v49 = vor.u32 %v14487_v26, %v10156_v30  ;;  %v5346_v50 = vpop.f32.mrf.mxu1 }
 0x105   : > { %5610 = vmatpush.bf16.msrb.mxu2 %v10463_v51  ;;  %5579 = vmatmul.bf16.vlgmr.msra.gmra.mxu3 %v15773_v27  ;;  %v14551_v40 = vld [vmem:[%s15666_s16 + $0x584] sm:$0xf]  ;;  %v10540_v46 = vld [vmem:[%s15666_s16 + $0x690] sm:$0xf0]  ;;  %v10287_v51 = vor.u32 %v14519_v35, %v10284_v20  ;;  %v5347_v58 = vadd.f32 %v5346_v50, %v5334_v48 }
 0x106   : > { %5623 = vmatpush.bf16.msrb.mxu3 %v10591_v55  ;;  %v14583_v23 = vld [vmem:[%s15666_s16 + $0x684] sm:$0xf]  ;;  %v10415_v52 = vor.u32 %v14551_v40, %v10412_v61  ;;  %v10140_v54 = vld [vmem:[%s15666_s16 + $0x370] sm:$0xf0] }
 0x107   : > { %5585 = vmatpush.bf16.msrb.mxu0 %v10191_v4  ;;  %v14483_v53 = vld [vmem:[%s15666_s16 + $0x364] sm:$0xf]  ;;  %v10543_v57 = vor.u32 %v14583_v23, %v10540_v46  ;;  %v10268_v59 = vld [vmem:[%s15666_s16 + $0x470] sm:$0xf0] }
 0x108   : > { %5598 = vmatpush.bf16.msrb.mxu1 %v10319_v5  ;;  %v14515_v55 = vld [vmem:[%s15666_s16 + $0x464] sm:$0xf]  ;;  %v10396_v0 = vld [vmem:[%s15666_s16 + $0x570] sm:$0xf0]  ;;  %v10143_v5 = vor.u32 %v14483_v53, %v10140_v54 }
 0x109   : > { %5611 = vmatpush.bf16.msrb.mxu2 %v10447_v6  ;;  %v14547_v1 = vld [vmem:[%s15666_s16 + $0x564] sm:$0xf]  ;;  %v10524_v4 = vld [vmem:[%s15666_s16 + $0x670] sm:$0xf0]  ;;  %v10271_v6 = vor.u32 %v14515_v55, %v10268_v59  ;;  %v5335_v30 = vpop.f32.mrf.mxu0 }
 0x10a   : > { %5624 = vmatpush.bf16.msrb.mxu3 %v10575_v13  ;;  %v14579_v2 = vld [vmem:[%s15666_s16 + $0x664] sm:$0xf]  ;;  %v10399_v7 = vor.u32 %v14547_v1, %v10396_v0  ;;  %v10124_v11 = vld [vmem:[%s15666_s16 + $0x350] sm:$0xf0] }
 0x10b   : > { %5586 = vmatpush.bf16.msrb.mxu0 %v10175_v18  ;;  %v14479_v10 = vld [vmem:[%s15666_s16 + $0x344] sm:$0xf]  ;;  %v10527_v14 = vor.u32 %v14579_v2, %v10524_v4  ;;  %v10252_v16 = vld [vmem:[%s15666_s16 + $0x450] sm:$0xf0]  ;;  %v5360_v18 = vadd.f32 %v5359_v15, %v5347_v58 }
 0x10c   : > { %5599 = vmatpush.bf16.msrb.mxu1 %v10303_v21  ;;  %v14511_v13 = vld [vmem:[%s15666_s16 + $0x444] sm:$0xf]  ;;  %v10380_v17 = vld [vmem:[%s15666_s16 + $0x550] sm:$0xf0]  ;;  %v5372_v21 = vpop.f32.mrf.mxu3  ;;  %v10127_v35 = vor.u32 %v14479_v10, %v10124_v11  ;;  %v5361_v10 = vpop.f32.mrf.mxu2 }
 0x10d   : > { %5612 = vmatpush.bf16.msrb.mxu2 %v10431_v24  ;;  %v14543_v62 = vld [vmem:[%s15666_s16 + $0x544] sm:$0xf]  ;;  %v10508_v26 = vld [vmem:[%s15666_s16 + $0x650] sm:$0xf0]  ;;  %v16288_v20 = vadd.f32 %v5372_v21, %v5360_v18  ;;  %v10255_v40 = vor.u32 %v14511_v13, %v10252_v16 }
 0x10e   : > { %5625 = vmatpush.bf16.msrb.mxu3 %v10559_v36  ;;  %v14575_v24 = vld [vmem:[%s15666_s16 + $0x644] sm:$0xf]  ;;  %v5348_v36 = vpop.f32.mrf.mxu1  ;;  %v10383_v61 = vor.u32 %v14543_v62, %v10380_v17  ;;  %v10108_v23 = vld [vmem:[%s15666_s16 + $0x330] sm:$0xf0] }
 0x10f   : > { %5587 = vmatpush.bf16.msrb.mxu0 %v10159_v49  ;;  %v14475_v41 = vld [vmem:[%s15666_s16 + $0x324] sm:$0xf]  ;;  %v10511_v48 = vor.u32 %v14575_v24, %v10508_v26  ;;  %v10236_v49 = vld [vmem:[%s15666_s16 + $0x430] sm:$0xf0] }
 0x110   : > { %5600 = vmatpush.bf16.msrb.mxu1 %v10287_v51  ;;  %v14507_v46 = vld [vmem:[%s15666_s16 + $0x424] sm:$0xf]  ;;  %v10364_v51 = vld [vmem:[%s15666_s16 + $0x530] sm:$0xf0]  ;;  %v10111_v54 = vor.u32 %v14475_v41, %v10108_v23 }
 0x111   : > { %5613 = vmatpush.bf16.msrb.mxu2 %v10415_v52  ;;  %v14539_v50 = vld [vmem:[%s15666_s16 + $0x524] sm:$0xf]  ;;  %v10492_v53 = vld [vmem:[%s15666_s16 + $0x630] sm:$0xf0]  ;;  %v10239_v58 = vor.u32 %v14507_v46, %v10236_v49 }
 0x112   : > { %5626 = vmatpush.bf16.msrb.mxu3 %v10543_v57  ;;  %v14571_v52 = vld [vmem:[%s15666_s16 + $0x624] sm:$0xf]  ;;  %v10092_v57 = vld [vmem:[%s15666_s16 + $0x310] sm:$0xf0]  ;;  %v10367_v59 = vor.u32 %v14539_v50, %v10364_v51 }
 0x113   : > { %5588 = vmatpush.bf16.msrb.mxu0 %v10143_v5  ;;  %v14471_v55 = vld [vmem:[%s15666_s16 + $0x304] sm:$0xf]  ;;  %v10220_v0 = vld [vmem:[%s15666_s16 + $0x410] sm:$0xf0]  ;;  %v10495_v4 = vor.u32 %v14571_v52, %v10492_v53 }
 0x114   : > { %5601 = vmatpush.bf16.msrb.mxu1 %v10271_v6  ;;  %v14503_v1 = vld [vmem:[%s15666_s16 + $0x404] sm:$0xf]  ;;  %v10348_v5 = vld [vmem:[%s15666_s16 + $0x510] sm:$0xf0]  ;;  %v5374_v15 = vpop.f32.mrf.mxu3  ;;  %v10095_v16 = vor.u32 %v14471_v55, %v10092_v57 }
 0x115   : > { %5614 = vmatpush.bf16.msrb.mxu2 %v10399_v7  ;;  %v14535_v2 = vld [vmem:[%s15666_s16 + $0x504] sm:$0xf]  ;;  %v10476_v7 = vld [vmem:[%s15666_s16 + $0x610] sm:$0xf0]  ;;  %v10223_v21 = vor.u32 %v14503_v1, %v10220_v0 }
 0x116   : > { %5627 = vmatpush.bf16.msrb.mxu3 %v10527_v14  ;;  %v14567_v6 = vld [vmem:[%s15666_s16 + $0x604] sm:$0xf]  ;;  %v10716_v13 = vld [vmem:[%s15666_s16 + $0x7f0] sm:$0xf0]  ;;  %v10351_v24 = vor.u32 %v14535_v2, %v10348_v5 }
 0x117   : > { %5589 = vmatpush.bf16.msrb.mxu0 %v10127_v35  ;;  %v14627_v11 = vld [vmem:[%s15666_s16 + $0x7e4] sm:$0xf]  ;;  %v10844_v62 = vld [vmem:[%s15666_s16 + $0x8f0] sm:$0xf0]  ;;  %v10479_v35 = vor.u32 %v14567_v6, %v10476_v7 }
 0x118   : > { %5602 = vmatpush.bf16.msrb.mxu1 %v10255_v40  ;;  %v14659_v14 = vld [vmem:[%s15666_s16 + $0x8e4] sm:$0xf]  ;;  %v10972_v18 = vld [vmem:[%s15666_s16 + $0x9f0] sm:$0xf0]  ;;  %v10719_v36 = vor.u32 %v14627_v11, %v10716_v13 }
 0x119   : > { %5615 = vmatpush.bf16.msrb.mxu2 %v10383_v61  ;;  %v14691_v17 = vld [vmem:[%s15666_s16 + $0x9e4] sm:$0xf]  ;;  %v11100_v30 = vld [vmem:[%s15666_s16 + $0xaf0] sm:$0xf0]  ;;  %v10847_v40 = vor.u32 %v14659_v14, %v10844_v62 }
 0x11a   : > { %5628 = vmatpush.bf16.msrb.mxu3 %v10511_v48  ;;  %v14723_v26 = vld [vmem:[%s15666_s16 + $0xae4] sm:$0xf]  ;;  %v10975_v61 = vor.u32 %v14691_v17, %v10972_v18  ;;  %v10700_v23 = vld [vmem:[%s15666_s16 + $0x7d0] sm:$0xf0] }
 0x11b   : > { %5590 = vmatpush.bf16.msrb.mxu0 %v10111_v54  ;;  %v14623_v41 = vld [vmem:[%s15666_s16 + $0x7c4] sm:$0xf]  ;;  %v11103_v48 = vor.u32 %v14723_v26, %v11100_v30  ;;  %v10828_v49 = vld [vmem:[%s15666_s16 + $0x8d0] sm:$0xf0] }
 0x11c   : > { %5603 = vmatpush.bf16.msrb.mxu1 %v10239_v58  ;;  %v14655_v46 = vld [vmem:[%s15666_s16 + $0x8c4] sm:$0xf]  ;;  %v10956_v51 = vld [vmem:[%s15666_s16 + $0x9d0] sm:$0xf0]  ;;  %v10703_v54 = vor.u32 %v14623_v41, %v10700_v23 }
 0x11d   : > { %5616 = vmatpush.bf16.msrb.mxu2 %v10367_v59  ;;  %v14687_v50 = vld [vmem:[%s15666_s16 + $0x9c4] sm:$0xf]  ;;  %v11084_v53 = vld [vmem:[%s15666_s16 + $0xad0] sm:$0xf0]  ;;  %v10831_v55 = vor.u32 %v14655_v46, %v10828_v49 }
 0x11e   : > { %5629 = vmatpush.bf16.msrb.mxu3 %v10495_v4  ;;  %v14719_v52 = vld [vmem:[%s15666_s16 + $0xac4] sm:$0xf]  ;;  %v10959_v57 = vor.u32 %v14687_v50, %v10956_v51  ;;  %v10684_v59 = vld [vmem:[%s15666_s16 + $0x7b0] sm:$0xf0] }
 0x11f   : > { %5591 = vmatpush.bf16.msrb.mxu0 %v10095_v16  ;;  %v14619_v58 = vld [vmem:[%s15666_s16 + $0x7a4] sm:$0xf]  ;;  %v11087_v0 = vor.u32 %v14719_v52, %v11084_v53  ;;  %v10812_v2 = vld [vmem:[%s15666_s16 + $0x8b0] sm:$0xf0] }
 0x120   : > { %5604 = vmatpush.bf16.msrb.mxu1 %v10223_v21  ;;  %v14651_v1 = vld [vmem:[%s15666_s16 + $0x8a4] sm:$0xf]  ;;  %v10940_v5 = vld [vmem:[%s15666_s16 + $0x9b0] sm:$0xf0]  ;;  %v10687_v10 = vor.u32 %v14619_v58, %v10684_v59 }
 0x121   : > { %5617 = vmatpush.bf16.msrb.mxu2 %v10351_v24  ;;  %v14683_v4 = vld [vmem:[%s15666_s16 + $0x9a4] sm:$0xf]  ;;  %v11068_v7 = vld [vmem:[%s15666_s16 + $0xab0] sm:$0xf0]  ;;  %v10815_v11 = vor.u32 %v14651_v1, %v10812_v2  ;;  %v5385_v24 = vpop.f32.mrf.mxu0 }
 0x122   : > { %5630 = vmatpush.bf16.msrb.mxu3 %v10479_v35  ;;  %5592 = vmatmul.bf16.vlgmr.msrb.gmra.mxu0 %v15779_v33  ;;  %v14715_v6 = vld [vmem:[%s15666_s16 + $0xaa4] sm:$0xf]  ;;  %v10943_v13 = vor.u32 %v14683_v4, %v10940_v5  ;;  %v10668_v15 = vld [vmem:[%s15666_s16 + $0x790] sm:$0xf0]  ;;  %v5386_v35 = vadd.f32 %v5385_v24, %v16288_v20 }
 0x123   : > { %5636 = vmatpush.bf16.msra.mxu0 %v10719_v36  ;;  %5605 = vmatmul.bf16.vlgmr.msrb.gmra.mxu1 %v15831_v42  ;;  %v14615_v14 = vld [vmem:[%s15666_s16 + $0x784] sm:$0xf]  ;;  %v11071_v62 = vor.u32 %v14715_v6, %v11068_v7  ;;  %v10796_v17 = vld [vmem:[%s15666_s16 + $0x890] sm:$0xf0] }
 0x124   : > { %5649 = vmatpush.bf16.msra.mxu1 %v10847_v40  ;;  %5618 = vmatmul.bf16.vlgmr.msrb.gmra.mxu2 %v15835_v45  ;;  %v14647_v16 = vld [vmem:[%s15666_s16 + $0x884] sm:$0xf]  ;;  %v10924_v21 = vld [vmem:[%s15666_s16 + $0x990] sm:$0xf0]  ;;  %v10671_v36 = vor.u32 %v14615_v14, %v10668_v15  ;;  %v5398_v40 = vpop.f32.mrf.mxu1 }
 0x125   : > { %5662 = vmatpush.bf16.msra.mxu2 %v10975_v61  ;;  %5631 = vmatmul.bf16.vlgmr.msrb.gmra.mxu3 %v15827_v39  ;;  %v14679_v18 = vld [vmem:[%s15666_s16 + $0x984] sm:$0xf]  ;;  %v11052_v30 = vld [vmem:[%s15666_s16 + $0xa90] sm:$0xf0]  ;;  %v10799_v61 = vor.u32 %v14647_v16, %v10796_v17  ;;  %v5399_v50 = vadd.f32 %v5398_v40, %v5386_v35  ;;  %v5411_v4 = vpop.f32.mrf.mxu2 }
 0x126   : > { %5675 = vmatpush.bf16.msra.mxu3 %v11103_v48  ;;  %v14711_v26 = vld [vmem:[%s15666_s16 + $0xa84] sm:$0xf]  ;;  %v10927_v41 = vor.u32 %v14679_v18, %v10924_v21  ;;  %v10652_v46 = vld [vmem:[%s15666_s16 + $0x770] sm:$0xf0] }
 0x127   : > { %5637 = vmatpush.bf16.msra.mxu0 %v10703_v54  ;;  %v14611_v23 = vld [vmem:[%s15666_s16 + $0x764] sm:$0xf]  ;;  %v11055_v49 = vor.u32 %v14711_v26, %v11052_v30  ;;  %v10780_v51 = vld [vmem:[%s15666_s16 + $0x870] sm:$0xf0] }
 0x128   : > { %5650 = vmatpush.bf16.msra.mxu1 %v10831_v55  ;;  %v14643_v48 = vld [vmem:[%s15666_s16 + $0x864] sm:$0xf]  ;;  %v10908_v20 = vld [vmem:[%s15666_s16 + $0x970] sm:$0xf0]  ;;  %v10655_v55 = vor.u32 %v14611_v23, %v10652_v46 }
 0x129   : > { %5663 = vmatpush.bf16.msra.mxu2 %v10959_v57  ;;  %v14675_v52 = vld [vmem:[%s15666_s16 + $0x964] sm:$0xf]  ;;  %v11036_v54 = vld [vmem:[%s15666_s16 + $0xa70] sm:$0xf0]  ;;  %v10783_v57 = vor.u32 %v14643_v48, %v10780_v51  ;;  %v5387_v15 = vpop.f32.mrf.mxu0 }
 0x12a   : > { %5676 = vmatpush.bf16.msra.mxu3 %v11087_v0  ;;  %v14707_v53 = vld [vmem:[%s15666_s16 + $0xa64] sm:$0xf]  ;;  %v10911_v58 = vor.u32 %v14675_v52, %v10908_v20  ;;  %v10636_v1 = vld [vmem:[%s15666_s16 + $0x750] sm:$0xf0] }
 0x12b   : > { %5638 = vmatpush.bf16.msra.mxu0 %v10687_v10  ;;  %v14607_v59 = vld [vmem:[%s15666_s16 + $0x744] sm:$0xf]  ;;  %v11039_v2 = vor.u32 %v14707_v53, %v11036_v54  ;;  %v10764_v5 = vld [vmem:[%s15666_s16 + $0x850] sm:$0xf0]  ;;  %v5412_v10 = vadd.f32 %v5411_v4, %v5399_v50 }
 0x12c   : > { %5651 = vmatpush.bf16.msra.mxu1 %v10815_v11  ;;  %v14639_v0 = vld [vmem:[%s15666_s16 + $0x844] sm:$0xf]  ;;  %v10892_v7 = vld [vmem:[%s15666_s16 + $0x950] sm:$0xf0]  ;;  %v5424_v11 = vpop.f32.mrf.mxu3  ;;  %v10639_v16 = vor.u32 %v14607_v59, %v10636_v1 }
 0x12d   : > { %5664 = vmatpush.bf16.msra.mxu2 %v10943_v13  ;;  %v14671_v6 = vld [vmem:[%s15666_s16 + $0x944] sm:$0xf]  ;;  %v11020_v14 = vld [vmem:[%s15666_s16 + $0xa50] sm:$0xf0]  ;;  %v16359_v17 = vadd.f32 %v5424_v11, %v5412_v10  ;;  %v10767_v18 = vor.u32 %v14639_v0, %v10764_v5  ;;  %v5413_v59 = vpop.f32.mrf.mxu2 }
 0x12e   : > { %5677 = vmatpush.bf16.msra.mxu3 %v11071_v62  ;;  %v14703_v13 = vld [vmem:[%s15666_s16 + $0xa44] sm:$0xf]  ;;  %v5400_v62 = vpop.f32.mrf.mxu1  ;;  %v10895_v21 = vor.u32 %v14671_v6, %v10892_v7  ;;  %v10620_v26 = vld [vmem:[%s15666_s16 + $0x730] sm:$0xf0] }
 0x12f   : > { %5639 = vmatpush.bf16.msra.mxu0 %v10671_v36  ;;  %v14603_v24 = vld [vmem:[%s15666_s16 + $0x724] sm:$0xf]  ;;  %v11023_v35 = vor.u32 %v14703_v13, %v11020_v14  ;;  %v10748_v36 = vld [vmem:[%s15666_s16 + $0x830] sm:$0xf0] }
 0x130   : > { %5652 = vmatpush.bf16.msra.mxu1 %v10799_v61  ;;  %v14635_v30 = vld [vmem:[%s15666_s16 + $0x824] sm:$0xf]  ;;  %v10876_v61 = vld [vmem:[%s15666_s16 + $0x930] sm:$0xf0]  ;;  %v10623_v46 = vor.u32 %v14603_v24, %v10620_v26 }
 0x131   : > { %5665 = vmatpush.bf16.msra.mxu2 %v10927_v41  ;;  %v14667_v40 = vld [vmem:[%s15666_s16 + $0x924] sm:$0xf]  ;;  %v11004_v23 = vld [vmem:[%s15666_s16 + $0xa30] sm:$0xf0]  ;;  %v10751_v50 = vor.u32 %v14635_v30, %v10748_v36 }
 0x132   : > { %5678 = vmatpush.bf16.msra.mxu3 %v11055_v49  ;;  %v14699_v41 = vld [vmem:[%s15666_s16 + $0xa24] sm:$0xf]  ;;  %v10604_v49 = vld [vmem:[%s15666_s16 + $0x710] sm:$0xf0]  ;;  %v10879_v51 = vor.u32 %v14667_v40, %v10876_v61 }
 0x133   : > { %5640 = vmatpush.bf16.msra.mxu0 %v10655_v55  ;;  %v14599_v48 = vld [vmem:[%s15666_s16 + $0x704] sm:$0xf]  ;;  %v10732_v20 = vld [vmem:[%s15666_s16 + $0x810] sm:$0xf0]  ;;  %v11007_v54 = vor.u32 %v14699_v41, %v11004_v23 }
 0x134   : > { %5653 = vmatpush.bf16.msra.mxu1 %v10783_v57  ;;  %v14631_v52 = vld [vmem:[%s15666_s16 + $0x804] sm:$0xf]  ;;  %v10860_v55 = vld [vmem:[%s15666_s16 + $0x910] sm:$0xf0]  ;;  %v5426_v4 = vpop.f32.mrf.mxu3  ;;  %v10607_v5 = vor.u32 %v14599_v48, %v10604_v49 }
 0x135   : > { %5666 = vmatpush.bf16.msra.mxu2 %v10911_v58  ;;  %v14663_v53 = vld [vmem:[%s15666_s16 + $0x904] sm:$0xf]  ;;  %v10988_v58 = vld [vmem:[%s15666_s16 + $0xa10] sm:$0xf0]  ;;  %v10735_v11 = vor.u32 %v14631_v52, %v10732_v20 }
 0x136   : > { %5679 = vmatpush.bf16.msra.mxu3 %v11039_v2  ;;  %v14695_v57 = vld [vmem:[%s15666_s16 + $0xa04] sm:$0xf]  ;;  %v11228_v0 = vld [vmem:[%s15666_s16 + $0xbf0] sm:$0xf0]  ;;  %v10863_v13 = vor.u32 %v14663_v53, %v10860_v55 }
 0x137   : > { %5641 = vmatpush.bf16.msra.mxu0 %v10639_v16  ;;  %v14755_v1 = vld [vmem:[%s15666_s16 + $0xbe4] sm:$0xf]  ;;  %v11356_v6 = vld [vmem:[%s15666_s16 + $0xcf0] sm:$0xf0]  ;;  %v10991_v16 = vor.u32 %v14695_v57, %v10988_v58 }
 0x138   : > { %5654 = vmatpush.bf16.msra.mxu1 %v10767_v18  ;;  %v14787_v2 = vld [vmem:[%s15666_s16 + $0xce4] sm:$0xf]  ;;  %v11484_v10 = vld [vmem:[%s15666_s16 + $0xdf0] sm:$0xf0]  ;;  %v11231_v62 = vor.u32 %v14755_v1, %v11228_v0 }
 0x139   : > { %5667 = vmatpush.bf16.msra.mxu2 %v10895_v21  ;;  %v14819_v7 = vld [vmem:[%s15666_s16 + $0xde4] sm:$0xf]  ;;  %v11612_v15 = vld [vmem:[%s15666_s16 + $0xef0] sm:$0xf0]  ;;  %v11359_v18 = vor.u32 %v14787_v2, %v11356_v6 }
 0x13a   : > { %5680 = vmatpush.bf16.msra.mxu3 %v11023_v35  ;;  %v14851_v14 = vld [vmem:[%s15666_s16 + $0xee4] sm:$0xf]  ;;  %v11487_v21 = vor.u32 %v14819_v7, %v11484_v10  ;;  %v11212_v26 = vld [vmem:[%s15666_s16 + $0xbd0] sm:$0xf0] }
 0x13b   : > { %5642 = vmatpush.bf16.msra.mxu0 %v10623_v46  ;;  %v14751_v24 = vld [vmem:[%s15666_s16 + $0xbc4] sm:$0xf]  ;;  %v11615_v35 = vor.u32 %v14851_v14, %v11612_v15  ;;  %v11340_v36 = vld [vmem:[%s15666_s16 + $0xcd0] sm:$0xf0] }
 0x13c   : > { %5655 = vmatpush.bf16.msra.mxu1 %v10751_v50  ;;  %v14783_v30 = vld [vmem:[%s15666_s16 + $0xcc4] sm:$0xf]  ;;  %v11468_v61 = vld [vmem:[%s15666_s16 + $0xdd0] sm:$0xf0]  ;;  %v11215_v46 = vor.u32 %v14751_v24, %v11212_v26 }
 0x13d   : > { %5668 = vmatpush.bf16.msra.mxu2 %v10879_v51  ;;  %v14815_v40 = vld [vmem:[%s15666_s16 + $0xdc4] sm:$0xf]  ;;  %v11596_v23 = vld [vmem:[%s15666_s16 + $0xed0] sm:$0xf0]  ;;  %v11343_v48 = vor.u32 %v14783_v30, %v11340_v36 }
 0x13e   : > { %5681 = vmatpush.bf16.msra.mxu3 %v11007_v54  ;;  %v14847_v41 = vld [vmem:[%s15666_s16 + $0xec4] sm:$0xf]  ;;  %v11471_v49 = vor.u32 %v14815_v40, %v11468_v61  ;;  %v11196_v51 = vld [vmem:[%s15666_s16 + $0xbb0] sm:$0xf0] }
 0x13f   : > { %5643 = vmatpush.bf16.msra.mxu0 %v10607_v5  ;;  %v14747_v50 = vld [vmem:[%s15666_s16 + $0xba4] sm:$0xf]  ;;  %v11599_v20 = vor.u32 %v14847_v41, %v11596_v23  ;;  %v11324_v53 = vld [vmem:[%s15666_s16 + $0xcb0] sm:$0xf0] }
 0x140   : > { %5656 = vmatpush.bf16.msra.mxu1 %v10735_v11  ;;  %v14779_v52 = vld [vmem:[%s15666_s16 + $0xca4] sm:$0xf]  ;;  %v11452_v55 = vld [vmem:[%s15666_s16 + $0xdb0] sm:$0xf0]  ;;  %v11199_v59 = vor.u32 %v14747_v50, %v11196_v51 }
 0x141   : > { %5669 = vmatpush.bf16.msra.mxu2 %v10863_v13  ;;  %v14811_v54 = vld [vmem:[%s15666_s16 + $0xda4] sm:$0xf]  ;;  %v11580_v58 = vld [vmem:[%s15666_s16 + $0xeb0] sm:$0xf0]  ;;  %v11327_v1 = vor.u32 %v14779_v52, %v11324_v53  ;;  %v5437_v13 = vpop.f32.mrf.mxu0 }
 0x142   : > { %5682 = vmatpush.bf16.msra.mxu3 %v10991_v16  ;;  %5644 = vmatmul.bf16.vlgmr.msra.gmra.mxu0 %v15833_v43  ;;  %v14843_v57 = vld [vmem:[%s15666_s16 + $0xea4] sm:$0xf]  ;;  %v11455_v0 = vor.u32 %v14811_v54, %v11452_v55  ;;  %v11180_v4 = vld [vmem:[%s15666_s16 + $0xb90] sm:$0xf0]  ;;  %v5438_v16 = vadd.f32 %v5437_v13, %v16359_v17 }
 0x143   : > { %5688 = vmatpush.bf16.msrb.mxu0 %v11231_v62  ;;  %5657 = vmatmul.bf16.vlgmr.msra.gmra.mxu1 %v15911_v25  ;;  %v14743_v2 = vld [vmem:[%s15666_s16 + $0xb84] sm:$0xf]  ;;  %v11583_v6 = vor.u32 %v14843_v57, %v11580_v58  ;;  %v11308_v7 = vld [vmem:[%s15666_s16 + $0xc90] sm:$0xf0] }
 0x144   : > { %5701 = vmatpush.bf16.msrb.mxu1 %v11359_v18  ;;  %5670 = vmatmul.bf16.vlgmr.msra.gmra.mxu2 %v15922_v32  ;;  %v14775_v5 = vld [vmem:[%s15666_s16 + $0xc84] sm:$0xf]  ;;  %v11436_v11 = vld [vmem:[%s15666_s16 + $0xd90] sm:$0xf0]  ;;  %v11183_v62 = vor.u32 %v14743_v2, %v11180_v4  ;;  %v5450_v18 = vpop.f32.mrf.mxu1 }
 0x145   : > { %5714 = vmatpush.bf16.msrb.mxu2 %v11487_v21  ;;  %5683 = vmatmul.bf16.vlgmr.msra.gmra.mxu3 %v15918_v31  ;;  %v14807_v10 = vld [vmem:[%s15666_s16 + $0xd84] sm:$0xf]  ;;  %v11564_v15 = vld [vmem:[%s15666_s16 + $0xe90] sm:$0xf0]  ;;  %v11311_v21 = vor.u32 %v14775_v5, %v11308_v7  ;;  %v5451_v40 = vadd.f32 %v5450_v18, %v5438_v16 }
 0x146   : > { %5727 = vmatpush.bf16.msrb.mxu3 %v11615_v35  ;;  %v14839_v14 = vld [vmem:[%s15666_s16 + $0xe84] sm:$0xf]  ;;  %v11439_v24 = vor.u32 %v14807_v10, %v11436_v11  ;;  %v11164_v30 = vld [vmem:[%s15666_s16 + $0xb70] sm:$0xf0] }
 0x147   : > { %5689 = vmatpush.bf16.msrb.mxu0 %v11215_v46  ;;  %v14739_v26 = vld [vmem:[%s15666_s16 + $0xb64] sm:$0xf]  ;;  %v11567_v36 = vor.u32 %v14839_v14, %v11564_v15  ;;  %v11292_v61 = vld [vmem:[%s15666_s16 + $0xc70] sm:$0xf0] }
 0x148   : > { %5702 = vmatpush.bf16.msrb.mxu1 %v11343_v48  ;;  %v14771_v35 = vld [vmem:[%s15666_s16 + $0xc64] sm:$0xf]  ;;  %v11420_v17 = vld [vmem:[%s15666_s16 + $0xd70] sm:$0xf0]  ;;  %v11167_v48 = vor.u32 %v14739_v26, %v11164_v30  ;;  %v5463_v54 = vpop.f32.mrf.mxu2 }
 0x149   : > { %5715 = vmatpush.bf16.msrb.mxu2 %v11471_v49  ;;  %v14803_v41 = vld [vmem:[%s15666_s16 + $0xd64] sm:$0xf]  ;;  %v11548_v46 = vld [vmem:[%s15666_s16 + $0xe70] sm:$0xf0]  ;;  %v11295_v49 = vor.u32 %v14771_v35, %v11292_v61  ;;  %v5439_v4 = vpop.f32.mrf.mxu0 }
 0x14a   : > { %5728 = vmatpush.bf16.msrb.mxu3 %v11599_v20  ;;  %v14835_v23 = vld [vmem:[%s15666_s16 + $0xe64] sm:$0xf]  ;;  %v11423_v50 = vor.u32 %v14803_v41, %v11420_v17  ;;  %v11148_v52 = vld [vmem:[%s15666_s16 + $0xb50] sm:$0xf0] }
 0x14b   : > { %5690 = vmatpush.bf16.msrb.mxu0 %v11199_v59  ;;  %v14735_v51 = vld [vmem:[%s15666_s16 + $0xb44] sm:$0xf]  ;;  %v11551_v53 = vor.u32 %v14835_v23, %v11548_v46  ;;  %v11276_v55 = vld [vmem:[%s15666_s16 + $0xc50] sm:$0xf0]  ;;  %v5464_v59 = vadd.f32 %v5463_v54, %v5451_v40 }
 0x14c   : > { %5703 = vmatpush.bf16.msrb.mxu1 %v11327_v1  ;;  %v14767_v20 = vld [vmem:[%s15666_s16 + $0xc44] sm:$0xf]  ;;  %v11404_v58 = vld [vmem:[%s15666_s16 + $0xd50] sm:$0xf0]  ;;  %v5476_v1 = vpop.f32.mrf.mxu3  ;;  %v11151_v5 = vor.u32 %v14735_v51, %v11148_v52 }
 0x14d   : > { %5716 = vmatpush.bf16.msrb.mxu2 %v11455_v0  ;;  %v14799_v57 = vld [vmem:[%s15666_s16 + $0xd44] sm:$0xf]  ;;  %v11532_v2 = vld [vmem:[%s15666_s16 + $0xe50] sm:$0xf0]  ;;  %v16430_v7 = vadd.f32 %v5476_v1, %v5464_v59  ;;  %v11279_v10 = vor.u32 %v14767_v20, %v11276_v55 }
 0x14e   : > { %5729 = vmatpush.bf16.msrb.mxu3 %v11583_v6  ;;  %v14831_v0 = vld [vmem:[%s15666_s16 + $0xe44] sm:$0xf]  ;;  %v5452_v6 = vpop.f32.mrf.mxu1  ;;  %v11407_v11 = vor.u32 %v14799_v57, %v11404_v58  ;;  %v11132_v14 = vld [vmem:[%s15666_s16 + $0xb30] sm:$0xf0] }
 0x14f   : > { %5691 = vmatpush.bf16.msrb.mxu0 %v11183_v62  ;;  %v14731_v13 = vld [vmem:[%s15666_s16 + $0xb24] sm:$0xf]  ;;  %v11535_v16 = vor.u32 %v14831_v0, %v11532_v2  ;;  %v11260_v62 = vld [vmem:[%s15666_s16 + $0xc30] sm:$0xf0] }
 0x150   : > { %5704 = vmatpush.bf16.msrb.mxu1 %v11311_v21  ;;  %v14763_v15 = vld [vmem:[%s15666_s16 + $0xc24] sm:$0xf]  ;;  %v11388_v21 = vld [vmem:[%s15666_s16 + $0xd30] sm:$0xf0]  ;;  %v11135_v30 = vor.u32 %v14731_v13, %v11132_v14  ;;  %v5465_v51 = vpop.f32.mrf.mxu2 }
 0x151   : > { %5717 = vmatpush.bf16.msrb.mxu2 %v11439_v24  ;;  %v14795_v18 = vld [vmem:[%s15666_s16 + $0xd24] sm:$0xf]  ;;  %v11516_v26 = vld [vmem:[%s15666_s16 + $0xe30] sm:$0xf0]  ;;  %v11263_v40 = vor.u32 %v14763_v15, %v11260_v62 }
 0x152   : > { %5730 = vmatpush.bf16.msrb.mxu3 %v11567_v36  ;;  %v14827_v24 = vld [vmem:[%s15666_s16 + $0xe24] sm:$0xf]  ;;  %v11116_v36 = vld [vmem:[%s15666_s16 + $0xb10] sm:$0xf0]  ;;  %v11391_v61 = vor.u32 %v14795_v18, %v11388_v21 }
 0x153   : > { %5692 = vmatpush.bf16.msrb.mxu0 %v11167_v48  ;;  %v14727_v35 = vld [vmem:[%s15666_s16 + $0xb04] sm:$0xf]  ;;  %v11244_v17 = vld [vmem:[%s15666_s16 + $0xc10] sm:$0xf0]  ;;  %v11519_v46 = vor.u32 %v14827_v24, %v11516_v26 }
 0x154   : > { %5705 = vmatpush.bf16.msrb.mxu1 %v11295_v49  ;;  %v14759_v41 = vld [vmem:[%s15666_s16 + $0xc04] sm:$0xf]  ;;  %v11372_v48 = vld [vmem:[%s15666_s16 + $0xd10] sm:$0xf0]  ;;  %v5478_v54 = vpop.f32.mrf.mxu3  ;;  %v11119_v55 = vor.u32 %v14727_v35, %v11116_v36 }
 0x155   : > { %5718 = vmatpush.bf16.msrb.mxu2 %v11423_v50  ;;  %v14791_v23 = vld [vmem:[%s15666_s16 + $0xd04] sm:$0xf]  ;;  %v11500_v50 = vld [vmem:[%s15666_s16 + $0xe10] sm:$0xf0]  ;;  %v11247_v1 = vor.u32 %v14759_v41, %v11244_v17 }
 0x156   : > { %5731 = vmatpush.bf16.msrb.mxu3 %v11551_v53  ;;  %v14823_v49 = vld [vmem:[%s15666_s16 + $0xe04] sm:$0xf]  ;;  %v11740_v20 = vld [vmem:[%s15666_s16 + $0xff0] sm:$0xf0]  ;;  %v11375_v0 = vor.u32 %v14791_v23, %v11372_v48 }
 0x157   : > { %5693 = vmatpush.bf16.msrb.mxu0 %v11151_v5  ;;  %v14883_v52 = vld [vmem:[%s15666_s16 + $0xfe4] sm:$0xf]  ;;  %v11868_v57 = vld [vmem:[%s15666_s16 + $0x10f0] sm:$0xf0]  ;;  %v11503_v5 = vor.u32 %v14823_v49, %v11500_v50 }
 0x158   : > { %5706 = vmatpush.bf16.msrb.mxu1 %v11279_v10  ;;  %v14915_v53 = vld [vmem:[%s15666_s16 + $0x10e4] sm:$0xf]  ;;  %v11996_v59 = vld [vmem:[%s15666_s16 + $0x11f0] sm:$0xf0]  ;;  %v11743_v6 = vor.u32 %v14883_v52, %v11740_v20 }
 0x159   : > { %5719 = vmatpush.bf16.msrb.mxu2 %v11407_v11  ;;  %v14947_v58 = vld [vmem:[%s15666_s16 + $0x11e4] sm:$0xf]  ;;  %v12124_v4 = vld [vmem:[%s15666_s16 + $0x12f0] sm:$0xf0]  ;;  %v11871_v10 = vor.u32 %v14915_v53, %v11868_v57 }
 0x15a   : > { %5732 = vmatpush.bf16.msrb.mxu3 %v11535_v16  ;;  %v14979_v2 = vld [vmem:[%s15666_s16 + $0x12e4] sm:$0xf]  ;;  %v11999_v11 = vor.u32 %v14947_v58, %v11996_v59  ;;  %v11724_v14 = vld [vmem:[%s15666_s16 + $0xfd0] sm:$0xf0] }
 0x15b   : > { %5694 = vmatpush.bf16.msrb.mxu0 %v11135_v30  ;;  %v14879_v13 = vld [vmem:[%s15666_s16 + $0xfc4] sm:$0xf]  ;;  %v12127_v16 = vor.u32 %v14979_v2, %v12124_v4  ;;  %v11852_v62 = vld [vmem:[%s15666_s16 + $0x10d0] sm:$0xf0] }
 0x15c   : > { %5707 = vmatpush.bf16.msrb.mxu1 %v11263_v40  ;;  %v14911_v15 = vld [vmem:[%s15666_s16 + $0x10c4] sm:$0xf]  ;;  %v11980_v21 = vld [vmem:[%s15666_s16 + $0x11d0] sm:$0xf0]  ;;  %v11727_v30 = vor.u32 %v14879_v13, %v11724_v14 }
 0x15d   : > { %5720 = vmatpush.bf16.msrb.mxu2 %v11391_v61  ;;  %v14943_v18 = vld [vmem:[%s15666_s16 + $0x11c4] sm:$0xf]  ;;  %v12108_v26 = vld [vmem:[%s15666_s16 + $0x12d0] sm:$0xf0]  ;;  %v11855_v35 = vor.u32 %v14911_v15, %v11852_v62 }
 0x15e   : > { %5733 = vmatpush.bf16.msrb.mxu3 %v11519_v46  ;;  %v14975_v24 = vld [vmem:[%s15666_s16 + $0x12c4] sm:$0xf]  ;;  %v11983_v36 = vor.u32 %v14943_v18, %v11980_v21  ;;  %v11708_v61 = vld [vmem:[%s15666_s16 + $0xfb0] sm:$0xf0] }
 0x15f   : > { %5695 = vmatpush.bf16.msrb.mxu0 %v11119_v55  ;;  %v14875_v40 = vld [vmem:[%s15666_s16 + $0xfa4] sm:$0xf]  ;;  %v12111_v17 = vor.u32 %v14975_v24, %v12108_v26  ;;  %v11836_v23 = vld [vmem:[%s15666_s16 + $0x10b0] sm:$0xf0] }
 0x160   : > { %5708 = vmatpush.bf16.msrb.mxu1 %v11247_v1  ;;  %v14907_v41 = vld [vmem:[%s15666_s16 + $0x10a4] sm:$0xf]  ;;  %v11964_v48 = vld [vmem:[%s15666_s16 + $0x11b0] sm:$0xf0]  ;;  %v11711_v51 = vor.u32 %v14875_v40, %v11708_v61 }
 0x161   : > { %5721 = vmatpush.bf16.msrb.mxu2 %v11375_v0  ;;  %v14939_v46 = vld [vmem:[%s15666_s16 + $0x11a4] sm:$0xf]  ;;  %v12092_v50 = vld [vmem:[%s15666_s16 + $0x12b0] sm:$0xf0]  ;;  %v11839_v52 = vor.u32 %v14907_v41, %v11836_v23  ;;  %v5489_v0 = vpop.f32.mrf.mxu0 }
 0x162   : > { %5734 = vmatpush.bf16.msrb.mxu3 %v11503_v5  ;;  %5696 = vmatmul.bf16.vlgmr.msrb.gmra.mxu0 %v15928_v19  ;;  %v14971_v49 = vld [vmem:[%s15666_s16 + $0x12a4] sm:$0xf]  ;;  %v11967_v20 = vor.u32 %v14939_v46, %v11964_v48  ;;  %v11692_v54 = vld [vmem:[%s15666_s16 + $0xf90] sm:$0xf0]  ;;  %v5490_v5 = vadd.f32 %v5489_v0, %v16430_v7 }
 0x163   : > { %5740 = vmatpush.bf16.msra.mxu0 %v11743_v6  ;;  %5709 = vmatmul.bf16.vlgmr.msrb.gmra.mxu1 %v16004_v29  ;;  %v14871_v53 = vld [vmem:[%s15666_s16 + $0xf84] sm:$0xf]  ;;  %v12095_v57 = vor.u32 %v14971_v49, %v12092_v50  ;;  %v11820_v58 = vld [vmem:[%s15666_s16 + $0x1090] sm:$0xf0] }
 0x164   : > { %5753 = vmatpush.bf16.msra.mxu1 %v11871_v10  ;;  %5722 = vmatmul.bf16.vlgmr.msrb.gmra.mxu2 %v16015_v38  ;;  %v14903_v55 = vld [vmem:[%s15666_s16 + $0x1084] sm:$0xf]  ;;  %v11948_v1 = vld [vmem:[%s15666_s16 + $0x1190] sm:$0xf0]  ;;  %v11695_v6 = vor.u32 %v14871_v53, %v11692_v54  ;;  %v5502_v10 = vpop.f32.mrf.mxu1 }
 0x165   : > { %5766 = vmatpush.bf16.msra.mxu2 %v11999_v11  ;;  %5735 = vmatmul.bf16.vlgmr.msrb.gmra.mxu3 %v16011_v37  ;;  %v14935_v59 = vld [vmem:[%s15666_s16 + $0x1184] sm:$0xf]  ;;  %v12076_v4 = vld [vmem:[%s15666_s16 + $0x1290] sm:$0xf0]  ;;  %v11823_v11 = vor.u32 %v14903_v55, %v11820_v58  ;;  %v5503_v18 = vadd.f32 %v5502_v10, %v5490_v5 }
 0x166   : > { %5779 = vmatpush.bf16.msra.mxu3 %v12127_v16  ;;  %v14967_v2 = vld [vmem:[%s15666_s16 + $0x1284] sm:$0xf]  ;;  %v11951_v13 = vor.u32 %v14935_v59, %v11948_v1  ;;  %v11676_v15 = vld [vmem:[%s15666_s16 + $0xf70] sm:$0xf0] }
 0x167   : > { %5741 = vmatpush.bf16.msra.mxu0 %v11727_v30  ;;  %v14867_v14 = vld [vmem:[%s15666_s16 + $0xf64] sm:$0xf]  ;;  %v12079_v62 = vor.u32 %v14967_v2, %v12076_v4  ;;  %v11804_v21 = vld [vmem:[%s15666_s16 + $0x1070] sm:$0xf0] }
 0x168   : > { %5754 = vmatpush.bf16.msra.mxu1 %v11855_v35  ;;  %v14899_v16 = vld [vmem:[%s15666_s16 + $0x1064] sm:$0xf]  ;;  %v11932_v7 = vld [vmem:[%s15666_s16 + $0x1170] sm:$0xf0]  ;;  %v11679_v35 = vor.u32 %v14867_v14, %v11676_v15 }
 0x169   : > { %5767 = vmatpush.bf16.msra.mxu2 %v11983_v36  ;;  %v14931_v24 = vld [vmem:[%s15666_s16 + $0x1164] sm:$0xf]  ;;  %v12060_v30 = vld [vmem:[%s15666_s16 + $0x1270] sm:$0xf0]  ;;  %v11807_v36 = vor.u32 %v14899_v16, %v11804_v21  ;;  %v5515_v46 = vpop.f32.mrf.mxu2  ;;  %v5491_v54 = vpop.f32.mrf.mxu0 }
 0x16a   : > { %5780 = vmatpush.bf16.msra.mxu3 %v12111_v17  ;;  %v14963_v26 = vld [vmem:[%s15666_s16 + $0x1264] sm:$0xf]  ;;  %v11935_v40 = vor.u32 %v14931_v24, %v11932_v7  ;;  %v11660_v41 = vld [vmem:[%s15666_s16 + $0xf50] sm:$0xf0] }
 0x16b   : > { %5742 = vmatpush.bf16.msra.mxu0 %v11711_v51  ;;  %v14863_v61 = vld [vmem:[%s15666_s16 + $0xf44] sm:$0xf]  ;;  %v12063_v23 = vor.u32 %v14963_v26, %v12060_v30  ;;  %v11788_v48 = vld [vmem:[%s15666_s16 + $0x1050] sm:$0xf0]  ;;  %v5516_v51 = vadd.f32 %v5515_v46, %v5503_v18 }
 0x16c   : > { %5755 = vmatpush.bf16.msra.mxu1 %v11839_v52  ;;  %v14895_v17 = vld [vmem:[%s15666_s16 + $0x1044] sm:$0xf]  ;;  %v11916_v50 = vld [vmem:[%s15666_s16 + $0x1150] sm:$0xf0]  ;;  %v5528_v52 = vpop.f32.mrf.mxu3  ;;  %v11663_v55 = vor.u32 %v14863_v61, %v11660_v41 }
 0x16d   : > { %5768 = vmatpush.bf16.msra.mxu2 %v11967_v20  ;;  %v14927_v49 = vld [vmem:[%s15666_s16 + $0x1144] sm:$0xf]  ;;  %v12044_v53 = vld [vmem:[%s15666_s16 + $0x1250] sm:$0xf0]  ;;  %v16501_v58 = vadd.f32 %v5528_v52, %v5516_v51  ;;  %v11791_v59 = vor.u32 %v14895_v17, %v11788_v48 }
 0x16e   : > { %5781 = vmatpush.bf16.msra.mxu3 %v12095_v57  ;;  %v14959_v20 = vld [vmem:[%s15666_s16 + $0x1244] sm:$0xf]  ;;  %v5504_v57 = vpop.f32.mrf.mxu1  ;;  %v11919_v1 = vor.u32 %v14927_v49, %v11916_v50  ;;  %v11644_v2 = vld [vmem:[%s15666_s16 + $0xf30] sm:$0xf0] }
 0x16f   : > { %5743 = vmatpush.bf16.msra.mxu0 %v11695_v6  ;;  %v14859_v0 = vld [vmem:[%s15666_s16 + $0xf24] sm:$0xf]  ;;  %v12047_v5 = vor.u32 %v14959_v20, %v12044_v53  ;;  %v11772_v6 = vld [vmem:[%s15666_s16 + $0x1030] sm:$0xf0] }
 0x170   : > { %5756 = vmatpush.bf16.msra.mxu1 %v11823_v11  ;;  %v14891_v4 = vld [vmem:[%s15666_s16 + $0x1024] sm:$0xf]  ;;  %v11900_v11 = vld [vmem:[%s15666_s16 + $0x1130] sm:$0xf0]  ;;  %v11647_v15 = vor.u32 %v14859_v0, %v11644_v2 }
 0x171   : > { %5769 = vmatpush.bf16.msra.mxu2 %v11951_v13  ;;  %v14923_v10 = vld [vmem:[%s15666_s16 + $0x1124] sm:$0xf]  ;;  %v12028_v14 = vld [vmem:[%s15666_s16 + $0x1230] sm:$0xf0]  ;;  %v11775_v18 = vor.u32 %v14891_v4, %v11772_v6  ;;  %v5517_v61 = vpop.f32.mrf.mxu2 }
 0x172   : > { %5782 = vmatpush.bf16.msra.mxu3 %v12079_v62  ;;  %v14955_v13 = vld [vmem:[%s15666_s16 + $0x1224] sm:$0xf]  ;;  %v11628_v62 = vld [vmem:[%s15666_s16 + $0xf10] sm:$0xf0]  ;;  %v11903_v21 = vor.u32 %v14923_v10, %v11900_v11 }
 0x173   : > { %5744 = vmatpush.bf16.msra.mxu0 %v11679_v35  ;;  %v14855_v16 = vld [vmem:[%s15666_s16 + $0xf04] sm:$0xf]  ;;  %v11756_v7 = vld [vmem:[%s15666_s16 + $0x1010] sm:$0xf0]  ;;  %v12031_v30 = vor.u32 %v14955_v13, %v12028_v14 }
 0x174   : > { %5757 = vmatpush.bf16.msra.mxu1 %v11807_v36  ;;  %v14887_v24 = vld [vmem:[%s15666_s16 + $0x1004] sm:$0xf]  ;;  %v11884_v35 = vld [vmem:[%s15666_s16 + $0x1110] sm:$0xf0]  ;;  %v5530_v46 = vpop.f32.mrf.mxu3  ;;  %v11631_v48 = vor.u32 %v14855_v16, %v11628_v62 }
 0x175   : > { %5770 = vmatpush.bf16.msra.mxu2 %v11935_v40  ;;  %v14919_v26 = vld [vmem:[%s15666_s16 + $0x1104] sm:$0xf]  ;;  %v12012_v40 = vld [vmem:[%s15666_s16 + $0x1210] sm:$0xf0]  ;;  %v11759_v52 = vor.u32 %v14887_v24, %v11756_v7 }
 0x176   : > { %5783 = vmatpush.bf16.msra.mxu3 %v12063_v23  ;;  %v14951_v36 = vld [vmem:[%s15666_s16 + $0x1204] sm:$0xf]  ;;  %v12252_v17 = vld [vmem:[%s15666_s16 + $0x13f0] sm:$0xf0]  ;;  %v11887_v20 = vor.u32 %v14919_v26, %v11884_v35 }
 0x177   : > { %5745 = vmatpush.bf16.msra.mxu0 %v11663_v55  ;;  %v15011_v41 = vld [vmem:[%s15666_s16 + $0x13e4] sm:$0xf]  ;;  %v12380_v49 = vld [vmem:[%s15666_s16 + $0x14f0] sm:$0xf0]  ;;  %v12015_v55 = vor.u32 %v14951_v36, %v12012_v40 }
 0x178   : > { %5758 = vmatpush.bf16.msra.mxu1 %v11791_v59  ;;  %v15043_v23 = vld [vmem:[%s15666_s16 + $0x14e4] sm:$0xf]  ;;  %v12508_v51 = vld [vmem:[%s15666_s16 + $0x15f0] sm:$0xf0]  ;;  %v12255_v57 = vor.u32 %v15011_v41, %v12252_v17 }
 0x179   : > { %5771 = vmatpush.bf16.msra.mxu2 %v11919_v1  ;;  %v15075_v50 = vld [vmem:[%s15666_s16 + $0x15e4] sm:$0xf]  ;;  %v12636_v54 = vld [vmem:[%s15666_s16 + $0x16f0] sm:$0xf0]  ;;  %v12383_v59 = vor.u32 %v15043_v23, %v12380_v49 }
 0x17a   : > { %5784 = vmatpush.bf16.msra.mxu3 %v12047_v5  ;;  %v15107_v53 = vld [vmem:[%s15666_s16 + $0x16e4] sm:$0xf]  ;;  %v12511_v1 = vor.u32 %v15075_v50, %v12508_v51  ;;  %v12236_v2 = vld [vmem:[%s15666_s16 + $0x13d0] sm:$0xf0] }
 0x17b   : > { %5746 = vmatpush.bf16.msra.mxu0 %v11647_v15  ;;  %v15007_v0 = vld [vmem:[%s15666_s16 + $0x13c4] sm:$0xf]  ;;  %v12639_v5 = vor.u32 %v15107_v53, %v12636_v54  ;;  %v12364_v6 = vld [vmem:[%s15666_s16 + $0x14d0] sm:$0xf0] }
 0x17c   : > { %5759 = vmatpush.bf16.msra.mxu1 %v11775_v18  ;;  %v15039_v4 = vld [vmem:[%s15666_s16 + $0x14c4] sm:$0xf]  ;;  %v12492_v11 = vld [vmem:[%s15666_s16 + $0x15d0] sm:$0xf0]  ;;  %v12239_v15 = vor.u32 %v15007_v0, %v12236_v2 }
 0x17d   : > { %5772 = vmatpush.bf16.msra.mxu2 %v11903_v21  ;;  %v15071_v10 = vld [vmem:[%s15666_s16 + $0x15c4] sm:$0xf]  ;;  %v12620_v14 = vld [vmem:[%s15666_s16 + $0x16d0] sm:$0xf0]  ;;  %v12367_v16 = vor.u32 %v15039_v4, %v12364_v6 }
 0x17e   : > { %5785 = vmatpush.bf16.msra.mxu3 %v12031_v30  ;;  %v15103_v13 = vld [vmem:[%s15666_s16 + $0x16c4] sm:$0xf]  ;;  %v12495_v62 = vor.u32 %v15071_v10, %v12492_v11  ;;  %v12220_v21 = vld [vmem:[%s15666_s16 + $0x13b0] sm:$0xf0] }
 0x17f   : > { %5747 = vmatpush.bf16.msra.mxu0 %v11631_v48  ;;  %v15003_v18 = vld [vmem:[%s15666_s16 + $0x13a4] sm:$0xf]  ;;  %v12623_v7 = vor.u32 %v15103_v13, %v12620_v14  ;;  %v12348_v26 = vld [vmem:[%s15666_s16 + $0x14b0] sm:$0xf0] }
 0x180   : > { %5760 = vmatpush.bf16.msra.mxu1 %v11759_v52  ;;  %v15035_v24 = vld [vmem:[%s15666_s16 + $0x14a4] sm:$0xf]  ;;  %v12476_v35 = vld [vmem:[%s15666_s16 + $0x15b0] sm:$0xf0]  ;;  %v12223_v61 = vor.u32 %v15003_v18, %v12220_v21 }
 0x181   : > { %5773 = vmatpush.bf16.msra.mxu2 %v11887_v20  ;;  %v15067_v30 = vld [vmem:[%s15666_s16 + $0x15a4] sm:$0xf]  ;;  %v12604_v40 = vld [vmem:[%s15666_s16 + $0x16b0] sm:$0xf0]  ;;  %v12351_v41 = vor.u32 %v15035_v24, %v12348_v26  ;;  %v5541_v20 = vpop.f32.mrf.mxu0 }
 0x182   : > { %5786 = vmatpush.bf16.msra.mxu3 %v12015_v55  ;;  %5748 = vmatmul.bf16.vlgmr.msra.gmra.mxu0 %v16021_v22  ;;  %v15099_v36 = vld [vmem:[%s15666_s16 + $0x16a4] sm:$0xf]  ;;  %v12479_v17 = vor.u32 %v15067_v30, %v12476_v35  ;;  %v12204_v46 = vld [vmem:[%s15666_s16 + $0x1390] sm:$0xf0]  ;;  %v16556_v55 = vadd.f32 %v5541_v20, %v16501_v58 }
 0x183   : > { %5792 = vmatpush.bf16.msrb.mxu0 %v12255_v57  ;;  %5761 = vmatmul.bf16.vlgmr.msra.gmra.mxu1 %v16086_v60  ;;  %v14999_v23 = vld [vmem:[%s15666_s16 + $0x1384] sm:$0xf]  ;;  %v12607_v49 = vor.u32 %v15099_v36, %v12604_v40  ;;  %v12332_v50 = vld [vmem:[%s15666_s16 + $0x1490] sm:$0xf0] }
 0x184   : > { %5805 = vmatpush.bf16.msrb.mxu1 %v12383_v59  ;;  %5774 = vmatmul.bf16.vlgmr.msra.gmra.mxu2 %v16093_v44  ;;  %v15031_v48 = vld [vmem:[%s15666_s16 + $0x1484] sm:$0xf]  ;;  %v12460_v52 = vld [vmem:[%s15666_s16 + $0x1590] sm:$0xf0]  ;;  %v12207_v57 = vor.u32 %v14999_v23, %v12204_v46 }
 0x185   : > { %5818 = vmatpush.bf16.msrb.mxu2 %v12511_v1  ;;  %5787 = vmatmul.bf16.vlgmr.msra.gmra.mxu3 %v16091_v63  ;;  %v15063_v51 = vld [vmem:[%s15666_s16 + $0x1584] sm:$0xf]  ;;  %v12588_v54 = vld [vmem:[%s15666_s16 + $0x1690] sm:$0xf0]  ;;  %v12335_v59 = vor.u32 %v15031_v48, %v12332_v50 }
 0x186   : > { %5831 = vmatpush.bf16.msrb.mxu3 %v12639_v5  ;;  %v15095_v53 = vld [vmem:[%s15666_s16 + $0x1684] sm:$0xf]  ;;  %v12463_v1 = vor.u32 %v15063_v51, %v12460_v52  ;;  %v12188_v2 = vld [vmem:[%s15666_s16 + $0x1370] sm:$0xf0]  ;;  %v5554_v5 = vpop.f32.mrf.mxu1 }
 0x187   : > { %5793 = vmatpush.bf16.msrb.mxu0 %v12239_v15  ;;  %v14995_v0 = vld [vmem:[%s15666_s16 + $0x1364] sm:$0xf]  ;;  %v12591_v6 = vor.u32 %v15095_v53, %v12588_v54  ;;  %v12316_v10 = vld [vmem:[%s15666_s16 + $0x1470] sm:$0xf0]  ;;  %v5567_v36 = vpop.f32.mrf.mxu2 }
 0x188   : > { %5806 = vmatpush.bf16.msrb.mxu1 %v12367_v16  ;;  %v15027_v4 = vld [vmem:[%s15666_s16 + $0x1464] sm:$0xf]  ;;  %v12444_v58 = vld [vmem:[%s15666_s16 + $0x1570] sm:$0xf0]  ;;  %v12191_v15 = vor.u32 %v14995_v0, %v12188_v2  ;;  %v5580_v40 = vpop.f32.mrf.mxu3 }
 0x189   : > { %5819 = vmatpush.bf16.msrb.mxu2 %v12495_v62  ;;  %v15059_v11 = vld [vmem:[%s15666_s16 + $0x1564] sm:$0xf]  ;;  %v12572_v14 = vld [vmem:[%s15666_s16 + $0x1670] sm:$0xf0]  ;;  %v12319_v16 = vor.u32 %v15027_v4, %v12316_v10  ;;  %v5543_v23 = vpop.f32.mrf.mxu0 }
 0x18a   : > { %5832 = vmatpush.bf16.msrb.mxu3 %v12623_v7  ;;  %v15091_v13 = vld [vmem:[%s15666_s16 + $0x1664] sm:$0xf]  ;;  %v12447_v62 = vor.u32 %v15059_v11, %v12444_v58  ;;  %v12172_v21 = vld [vmem:[%s15666_s16 + $0x1350] sm:$0xf0]  ;;  %v9954_v23 = vld [vmem:[%s15666_s16 + $0x1e8] sm:$0xf] }
 0x18b   : > { %5794 = vmatpush.bf16.msrb.mxu0 %v12223_v61  ;;  %v14991_v18 = vld [vmem:[%s15666_s16 + $0x1344] sm:$0xf]  ;;  %v12575_v7 = vor.u32 %v15091_v13, %v12572_v14  ;;  %v12300_v26 = vld [vmem:[%s15666_s16 + $0x1450] sm:$0xf0] }
 0x18c   : > { %5807 = vmatpush.bf16.msrb.mxu1 %v12351_v41  ;;  %v15023_v24 = vld [vmem:[%s15666_s16 + $0x1444] sm:$0xf]  ;;  %v12428_v35 = vld [vmem:[%s15666_s16 + $0x1550] sm:$0xf0]  ;;  %v12175_v46 = vor.u32 %v14991_v18, %v12172_v21 }
 0x18d   : > { %5820 = vmatpush.bf16.msrb.mxu2 %v12479_v17  ;;  %v15055_v30 = vld [vmem:[%s15666_s16 + $0x1544] sm:$0xf]  ;;  %v12556_v41 = vld [vmem:[%s15666_s16 + $0x1650] sm:$0xf0]  ;;  %v5568_v17 = vadd.f32 %v5567_v36, %v5554_v5  ;;  %v12303_v48 = vor.u32 %v15023_v24, %v12300_v26 }
 0x18e   : > { %5833 = vmatpush.bf16.msrb.mxu3 %v12607_v49  ;;  %v15087_v61 = vld [vmem:[%s15666_s16 + $0x1644] sm:$0xf]  ;;  %v12431_v49 = vor.u32 %v15055_v30, %v12428_v35  ;;  %v12156_v51 = vld [vmem:[%s15666_s16 + $0x1330] sm:$0xf0]  ;;  %v5556_v53 = vpop.f32.mrf.mxu1 }
 0x18f   : > { %5795 = vmatpush.bf16.msrb.mxu0 %v12207_v57  ;;  %v14987_v50 = vld [vmem:[%s15666_s16 + $0x1324] sm:$0xf]  ;;  %v16577_v20 = vadd.f32 %v5580_v40, %v5568_v17  ;;  %v12559_v54 = vor.u32 %v15087_v61, %v12556_v41  ;;  %v12284_v57 = vld [vmem:[%s15666_s16 + $0x1430] sm:$0xf0]  ;;  %v5569_v21 = vpop.f32.mrf.mxu2  ;;  %v9826_v40 = vld [vmem:[%s15666_s16 + $0xe8] sm:$0xf] }
 0x190   : > { %5808 = vmatpush.bf16.msrb.mxu1 %v12335_v59  ;;  %v15019_v52 = vld [vmem:[%s15666_s16 + $0x1424] sm:$0xf]  ;;  %v12540_v2 = vld [vmem:[%s15666_s16 + $0x1630] sm:$0xf0]  ;;  %v12159_v4 = vor.u32 %v14987_v50, %v12156_v51  ;;  %v5582_v24 = vpop.f32.mrf.mxu3  ;;  %v14406_v61 = vld [vmem:[%s15666_s16 + $0xf4] sm:$0xf0] }
 0x191   : > { %5821 = vmatpush.bf16.msrb.mxu2 %v12463_v1  ;;  %v15051_v59 = vld [vmem:[%s15666_s16 + $0x1524] sm:$0xf]  ;;  %v12412_v1 = vld [vmem:[%s15666_s16 + $0x1530] sm:$0xf0]  ;;  %v12287_v10 = vor.u32 %v15019_v52, %v12284_v57  ;;  %v9827_v51 = vor.u32 %v14406_v61, %v9826_v40  ;;  %v14430_v21 = vld [vmem:[%s15666_s16 + $0x1b4] sm:$0xf0] }
 0x192   : > { %5834 = vmatpush.bf16.msrb.mxu3 %v12591_v6  ;;  %v15083_v0 = vld [vmem:[%s15666_s16 + $0x1624] sm:$0xf]  ;;  %v12140_v6 = vld [vmem:[%s15666_s16 + $0x1310] sm:$0xf0]  ;;  %v12415_v11 = vor.u32 %v15051_v59, %v12412_v1  ;;  %v9810_v1 = vld [vmem:[%s15666_s16 + $0xc8] sm:$0xf] }
 0x193   : > { %5796 = vmatpush.bf16.msrb.mxu0 %v12191_v15  ;;  %v14983_v5 = vld [vmem:[%s15666_s16 + $0x1304] sm:$0xf]  ;;  %v12268_v13 = vld [vmem:[%s15666_s16 + $0x1410] sm:$0xf0]  ;;  %v12543_v15 = vor.u32 %v15083_v0, %v12540_v2  ;;  %v14402_v0 = vld [vmem:[%s15666_s16 + $0xd4] sm:$0xf0] }
 0x194   : > { %5809 = vmatpush.bf16.msrb.mxu1 %v12319_v16  ;;  %v15015_v58 = vld [vmem:[%s15666_s16 + $0x1404] sm:$0xf]  ;;  %v12396_v16 = vld [vmem:[%s15666_s16 + $0x1510] sm:$0xf0]  ;;  %v12143_v35 = vor.u32 %v14983_v5, %v12140_v6  ;;  %v9938_v2 = vld [vmem:[%s15666_s16 + $0x1c8] sm:$0xf] }
 0x195   : > { %5822 = vmatpush.bf16.msrb.mxu2 %v12447_v62  ;;  %v15047_v14 = vld [vmem:[%s15666_s16 + $0x1504] sm:$0xf]  ;;  %v12524_v18 = vld [vmem:[%s15666_s16 + $0x1610] sm:$0xf0]  ;;  %v12271_v41 = vor.u32 %v15015_v58, %v12268_v13 }
 0x196   : > { %5835 = vmatpush.bf16.msrb.mxu3 %v12575_v7  ;;  %v15079_v62 = vld [vmem:[%s15666_s16 + $0x1604] sm:$0xf]  ;;  %v12764_v26 = vld [vmem:[%s15666_s16 + $0x17f0] sm:$0xf0]  ;;  %v12399_v17 = vor.u32 %v15047_v14, %v12396_v16  ;;  %v9794_v16 = vld [vmem:[%s15666_s16 + $0xa8] sm:$0xf] }
 0x197   : > { %5797 = vmatpush.bf16.msrb.mxu0 %v12175_v46  ;;  %v15139_v7 = vld [vmem:[%s15666_s16 + $0x17e4] sm:$0xf]  ;;  %v12892_v36 = vld [vmem:[%s15666_s16 + $0x18f0] sm:$0xf0]  ;;  %v14438_v46 = vld [vmem:[%s15666_s16 + $0x1f4] sm:$0xf0] }
 0x198   : > { %5810 = vmatpush.bf16.msrb.mxu1 %v12303_v48  ;;  %v15171_v30 = vld [vmem:[%s15666_s16 + $0x18e4] sm:$0xf]  ;;  %v12527_v48 = vor.u32 %v15079_v62, %v12524_v18  ;;  %v12748_v53 = vld [vmem:[%s15666_s16 + $0x17d0] sm:$0xf0]  ;;  %v9955_v57 = vor.u32 %v14438_v46, %v9954_v23  ;;  %v14398_v62 = vld [vmem:[%s15666_s16 + $0xb4] sm:$0xf0] }
 0x199   : > { %5823 = vmatpush.bf16.msrb.mxu2 %v12431_v49  ;;  %v12767_v49 = vor.u32 %v15139_v7, %v12764_v26  ;;  %v12895_v50 = vor.u32 %v15171_v30, %v12892_v36  ;;  %v15135_v52 = vld [vmem:[%s15666_s16 + $0x17c4] sm:$0xf]  ;;  %v12876_v59 = vld [vmem:[%s15666_s16 + $0x18d0] sm:$0xf0]  ;;  %v9922_v18 = vld [vmem:[%s15666_s16 + $0x1a8] sm:$0xf]  ;;  %v9795_v26 = vor.u32 %v14398_v62, %v9794_v16 }
 0x19a   : > { %5836 = vmatpush.bf16.msrb.mxu3 %v12559_v54  ;;  %v15167_v54 = vld [vmem:[%s15666_s16 + $0x18c4] sm:$0xf]  ;;  %v12751_v5 = vor.u32 %v15135_v52, %v12748_v53  ;;  %v12732_v58 = vld [vmem:[%s15666_s16 + $0x17b0] sm:$0xf0]  ;;  %v9923_v40 = vor.u32 %v14430_v21, %v9922_v18  ;;  %v9906_v23 = vld [vmem:[%s15666_s16 + $0x188] sm:$0xf] }
 0x19b   : > { %5798 = vmatpush.bf16.msrb.mxu0 %v12159_v4  ;;  %v14434_v4 = vld [vmem:[%s15666_s16 + $0x1d4] sm:$0xf0]  ;;  %v12879_v6 = vor.u32 %v15167_v54, %v12876_v59  ;;  %v15163_v13 = vld [vmem:[%s15666_s16 + $0x18a4] sm:$0xf]  ;;  %v12844_v61 = vld [vmem:[%s15666_s16 + $0x1890] sm:$0xf0] }
 0x19c   : > { %5811 = vmatpush.bf16.msrb.mxu1 %v12287_v10  ;;  %v9811_v10 = vor.u32 %v14402_v0, %v9810_v1  ;;  %v9939_v14 = vor.u32 %v14434_v4, %v9938_v2  ;;  %v15127_v30 = vld [vmem:[%s15666_s16 + $0x1784] sm:$0xf]  ;;  %v14426_v46 = vld [vmem:[%s15666_s16 + $0x194] sm:$0xf0]  ;;  %v12700_v53 = vld [vmem:[%s15666_s16 + $0x1770] sm:$0xf0] }
 0x19d   : > { %5824 = vmatpush.bf16.msrb.mxu2 %v12415_v11  ;;  %v15131_v11 = vld [vmem:[%s15666_s16 + $0x17a4] sm:$0xf]  ;;  %v9907_v1 = vor.u32 %v14426_v46, %v9906_v23  ;;  %v12828_v0 = vld [vmem:[%s15666_s16 + $0x1870] sm:$0xf0]  ;;  %v9762_v2 = vld [vmem:[%s15666_s16 + $0x68] sm:$0xf] }
 0x19e   : > { %5837 = vmatpush.bf16.msrb.mxu3 %v12543_v15  ;;  %v12860_v15 = vld [vmem:[%s15666_s16 + $0x18b0] sm:$0xf0]  ;;  %v12735_v24 = vor.u32 %v15131_v11, %v12732_v58  ;;  %v15159_v36 = vld [vmem:[%s15666_s16 + $0x1884] sm:$0xf]  ;;  %v14390_v4 = vld [vmem:[%s15666_s16 + $0x74] sm:$0xf0] }
 0x19f   : > { %5799 = vmatpush.bf16.msrb.mxu0 %v12143_v35  ;;  %v12863_v7 = vor.u32 %v15163_v13, %v12860_v15  ;;  %v12716_v35 = vld [vmem:[%s15666_s16 + $0x1790] sm:$0xf0]  ;;  %v15123_v52 = vld [vmem:[%s15666_s16 + $0x1764] sm:$0xf]  ;;  %v9763_v58 = vor.u32 %v14390_v4, %v9762_v2  ;;  %v9746_v21 = vld [vmem:[%s15666_s16 + $0x48] sm:$0xf] }
 0x1a0   : > { %5812 = vmatpush.bf16.msrb.mxu1 %v12271_v41  ;;  %v9778_v41 = vld [vmem:[%s15666_s16 + $0x88] sm:$0xf]  ;;  %v15155_v54 = vld [vmem:[%s15666_s16 + $0x1864] sm:$0xf]  ;;  %v5606_v59 = vpop.f32.mrf.mxu1  ;;  %v12703_v11 = vor.u32 %v15123_v52, %v12700_v53  ;;  %v12812_v18 = vld [vmem:[%s15666_s16 + $0x1850] sm:$0xf0] }
 0x1a1   : > { %5825 = vmatpush.bf16.msrb.mxu2 %v12399_v17  ;;  %v14394_v17 = vld [vmem:[%s15666_s16 + $0x94] sm:$0xf0]  ;;  %v15119_v13 = vld [vmem:[%s15666_s16 + $0x1744] sm:$0xf]  ;;  %v12668_v46 = vld [vmem:[%s15666_s16 + $0x1730] sm:$0xf0] }
 0x1a2   : > { %5838 = vmatpush.bf16.msrb.mxu3 %v12527_v48  ;;  %5800 = vmatmul.bf16.vlgmr.msrb.gmra.mxu0 %v16097_v47  ;;  %v12719_v48 = vor.u32 %v15127_v30, %v12716_v35  ;;  %v15151_v15 = vld [vmem:[%s15666_s16 + $0x1844] sm:$0xf]  ;;  %v9874_v30 = vld [vmem:[%s15666_s16 + $0x148] sm:$0xf]  ;;  %v14418_v35 = vld [vmem:[%s15666_s16 + $0x154] sm:$0xf0] }
 0x1a3   : > { %5844 = vmatpush.bf16.msra.mxu0 %v12767_v49  ;;  %5813 = vmatmul.bf16.vlgmr.msrb.gmra.mxu1 %v16165_v3  ;;  %v5593_v49 = vpop.f32.mrf.mxu0  ;;  %v15115_v23 = vld [vmem:[%s15666_s16 + $0x1724] sm:$0xf]  ;;  %v9730_v52 = vld [vmem:[%s15666_s16 + $0x28] sm:$0xf]  ;;  %v14382_v53 = vld [vmem:[%s15666_s16 + $0x34] sm:$0xf0] }
 0x1a4   : > { %5857 = vmatpush.bf16.msra.mxu1 %v12895_v50  ;;  %5826 = vmatmul.bf16.vlgmr.msrb.gmra.mxu2 %v16172_v9  ;;  %v12847_v50 = vor.u32 %v15159_v36, %v12844_v61  ;;  %v9731_v4 = vor.u32 %v14382_v53, %v9730_v52  ;;  %v14498_v52 = vld [vmem:[%s15666_s16 + $0x3d4] sm:$0xf0]  ;;  %v10322_v53 = vld [vmem:[%s15666_s16 + $0x4c8] sm:$0xf] }
 0x1a5   : > { %5870 = vmatpush.bf16.msra.mxu2 %v9827_v51  ;;  %5839 = vmatmul.bf16.vlgmr.msrb.gmra.mxu3 %v16170_v8  ;;  %v9779_v51 = vor.u32 %v14394_v17, %v9778_v41  ;;  %v12815_v41 = vor.u32 %v15151_v15, %v12812_v18  ;;  %v10210_v18 = vld [vmem:[%s15666_s16 + $0x3e8] sm:$0xf] }
 0x1a6   : > { %5883 = vmatpush.bf16.msra.mxu3 %v9955_v57  ;;  %v5594_v57 = vadd.f32 %v5593_v49, %v16577_v20  ;;  %v12831_v20 = vor.u32 %v15155_v54, %v12828_v0  ;;  %v9858_v54 = vld [vmem:[%s15666_s16 + $0x128] sm:$0xf]  ;;  %v12652_v0 = vld [vmem:[%s15666_s16 + $0x1710] sm:$0xf0] }
 0x1a7   : > { %5845 = vmatpush.bf16.msra.mxu0 %v12751_v5  ;;  %v9890_v5 = vld [vmem:[%s15666_s16 + $0x168] sm:$0xf]  ;;  %v5619_v16 = vpop.f32.mrf.mxu2 }
 0x1a8   : > { %5858 = vmatpush.bf16.msra.mxu1 %v12879_v6  ;;  %v14422_v6 = vld [vmem:[%s15666_s16 + $0x174] sm:$0xf0]  ;;  %v5608_v49 = vpop.f32.mrf.mxu1 }
 0x1a9   : > { %5871 = vmatpush.bf16.msra.mxu2 %v9811_v10  ;;  %v5607_v10 = vadd.f32 %v5606_v59, %v5594_v57  ;;  %v9891_v62 = vor.u32 %v14422_v6, %v9890_v5  ;;  %v14414_v57 = vld [vmem:[%s15666_s16 + $0x134] sm:$0xf0]  ;;  %v12671_v59 = vor.u32 %v15115_v23, %v12668_v46  ;;  %v15143_v5 = vld [vmem:[%s15666_s16 + $0x1804] sm:$0xf]  ;;  %v12780_v6 = vld [vmem:[%s15666_s16 + $0x1810] sm:$0xf0] }
 0x1aa   : > { %5884 = vmatpush.bf16.msra.mxu3 %v9939_v14  ;;  %v12684_v14 = vld [vmem:[%s15666_s16 + $0x1750] sm:$0xf0]  ;;  %v14466_v49 = vld [vmem:[%s15666_s16 + $0x2d4] sm:$0xf0] }
 0x1ab   : > { %5846 = vmatpush.bf16.msra.mxu0 %v12735_v24  ;;  %v14386_v24 = vld [vmem:[%s15666_s16 + $0x54] sm:$0xf0]  ;;  %v12687_v36 = vor.u32 %v15119_v13, %v12684_v14  ;;  %v5595_v61 = vpop.f32.mrf.mxu0  ;;  %v9842_v13 = vld [vmem:[%s15666_s16 + $0x108] sm:$0xf] }
 0x1ac   : > { %5859 = vmatpush.bf16.msra.mxu1 %v12863_v7  ;;  %v5620_v7 = vadd.f32 %v5619_v16, %v5607_v10  ;;  %v9747_v17 = vor.u32 %v14386_v24, %v9746_v21  ;;  %v9714_v10 = vld [vmem:[%s15666_s16 + $0x8] sm:$0xf]  ;;  %v14410_v14 = vld [vmem:[%s15666_s16 + $0x114] sm:$0xf0] }
 0x1ad   : > { %5872 = vmatpush.bf16.msra.mxu2 %v9795_v26  ;;  %v5632_v26 = vpop.f32.mrf.mxu3  ;;  %v10082_v16 = vld [vmem:[%s15666_s16 + $0x2e8] sm:$0xf]  ;;  %v14502_v24 = vld [vmem:[%s15666_s16 + $0x3f4] sm:$0xf0] }
 0x1ae   : > { %5885 = vmatpush.bf16.msra.mxu3 %v9923_v40  ;;  %v16645_v40 = vadd.f32 %v5632_v26, %v5620_v7  ;;  %v10338_v7 = vld [vmem:[%s15666_s16 + $0x4e8] sm:$0xf]  ;;  %v14534_v26 = vld [vmem:[%s15666_s16 + $0x4f4] sm:$0xf0]  ;;  %v10211_v23 = vor.u32 %v14502_v24, %v10210_v18 }
 0x1af   : > { %5847 = vmatpush.bf16.msra.mxu0 %v12719_v48  ;;  %v15147_v48 = vld [vmem:[%s15666_s16 + $0x1824] sm:$0xf]  ;;  %v14566_v61 = vld [vmem:[%s15666_s16 + $0x5f4] sm:$0xf0]  ;;  %v10339_v46 = vor.u32 %v14534_v26, %v10338_v7  ;;  %v10034_v18 = vld [vmem:[%s15666_s16 + $0x288] sm:$0xf] }
 0x1b0   : > { %5860 = vmatpush.bf16.msra.mxu1 %v12847_v50  ;;  %v9875_v50 = vor.u32 %v14418_v35, %v9874_v30  ;;  %v12783_v30 = vor.u32 %v15143_v5, %v12780_v6  ;;  %v14462_v5 = vld [vmem:[%s15666_s16 + $0x2b4] sm:$0xf0]  ;;  %v10178_v6 = vld [vmem:[%s15666_s16 + $0x3a8] sm:$0xf] }
 0x1b1   : > { %5873 = vmatpush.bf16.msra.mxu2 %v9779_v51  ;;  %v12796_v51 = vld [vmem:[%s15666_s16 + $0x1830] sm:$0xf0]  ;;  %v10162_v24 = vld [vmem:[%s15666_s16 + $0x388] sm:$0xf]  ;;  %v14490_v26 = vld [vmem:[%s15666_s16 + $0x394] sm:$0xf0] }
 0x1b2   : > { %5886 = vmatpush.bf16.msra.mxu3 %v9907_v1  ;;  %v15111_v1 = vld [vmem:[%s15666_s16 + $0x1704] sm:$0xf]  ;;  %v12799_v2 = vor.u32 %v15147_v48, %v12796_v51  ;;  %v10066_v48 = vld [vmem:[%s15666_s16 + $0x2c8] sm:$0xf] }
 0x1b3   : > { %5848 = vmatpush.bf16.msra.mxu0 %v12703_v11  ;;  %v5621_v11 = vpop.f32.mrf.mxu2  ;;  %v12655_v21 = vor.u32 %v15111_v1, %v12652_v0  ;;  %v10067_v1 = vor.u32 %v14466_v49, %v10066_v48  ;;  %v10163_v48 = vor.u32 %v14490_v26, %v10162_v24 }
 0x1b4   : > { %5861 = vmatpush.bf16.msra.mxu1 %v12831_v20  ;;  %v9859_v20 = vor.u32 %v14414_v57, %v9858_v54  ;;  %v14530_v54 = vld [vmem:[%s15666_s16 + $0x4d4] sm:$0xf0]  ;;  %v10450_v57 = vld [vmem:[%s15666_s16 + $0x5c8] sm:$0xf] }
 0x1b5   : > { %5874 = vmatpush.bf16.msra.mxu2 %v9763_v58  ;;  %v14378_v58 = vld [vmem:[%s15666_s16 + $0x14] sm:$0xf0]  ;;  %v5634_v15 = vpop.f32.mrf.mxu3 }
 0x1b6   : > { %5887 = vmatpush.bf16.msra.mxu3 %v9891_v62  ;;  %v14470_v62 = vld [vmem:[%s15666_s16 + $0x2f4] sm:$0xf0]  ;;  %v9715_v35 = vor.u32 %v14378_v58, %v9714_v10 }
 0x1b7   : > { %5849 = vmatpush.bf16.msra.mxu0 %v12687_v36  ;;  %v10466_v36 = vld [vmem:[%s15666_s16 + $0x5e8] sm:$0xf]  ;;  %v14494_v11 = vld [vmem:[%s15666_s16 + $0x3b4] sm:$0xf0] }
 0x1b8   : > { %5862 = vmatpush.bf16.msra.mxu1 %v12815_v41  ;;  %v9843_v41 = vor.u32 %v14410_v14, %v9842_v13  ;;  %v10467_v51 = vor.u32 %v14566_v61, %v10466_v36  ;;  %v14526_v58 = vld [vmem:[%s15666_s16 + $0x4b4] sm:$0xf0]  ;;  %v10434_v13 = vld [vmem:[%s15666_s16 + $0x5a8] sm:$0xf] }
 0x1b9   : > { %5875 = vmatpush.bf16.msra.mxu2 %v9747_v17  ;;  %v10083_v17 = vor.u32 %v14470_v62, %v10082_v16  ;;  %v14558_v14 = vld [vmem:[%s15666_s16 + $0x5b4] sm:$0xf0]  ;;  %v10179_v16 = vor.u32 %v14494_v11, %v10178_v6  ;;  %v10418_v61 = vld [vmem:[%s15666_s16 + $0x588] sm:$0xf] }
 0x1ba   : > { %5888 = vmatpush.bf16.msra.mxu3 %v9875_v50  ;;  %v10194_v50 = vld [vmem:[%s15666_s16 + $0x3c8] sm:$0xf]  ;;  %v10435_v7 = vor.u32 %v14558_v14, %v10434_v13  ;;  %v14482_v13 = vld [vmem:[%s15666_s16 + $0x354] sm:$0xf0] }
 0x1bb   : > { %5850 = vmatpush.bf16.msra.mxu0 %v12671_v59  ;;  %v14562_v59 = vld [vmem:[%s15666_s16 + $0x5d4] sm:$0xf0]  ;;  %v10195_v0 = vor.u32 %v14498_v52, %v10194_v50  ;;  %v10018_v50 = vld [vmem:[%s15666_s16 + $0x268] sm:$0xf] }
 0x1bc   : > { %5863 = vmatpush.bf16.msra.mxu1 %v12799_v2  ;;  %v10323_v2 = vor.u32 %v14530_v54, %v10322_v53  ;;  %v10451_v10 = vor.u32 %v14562_v59, %v10450_v57  ;;  %v10146_v52 = vld [vmem:[%s15666_s16 + $0x368] sm:$0xf]  ;;  %v14486_v57 = vld [vmem:[%s15666_s16 + $0x374] sm:$0xf0] }
 0x1bd   : > { %5876 = vmatpush.bf16.msra.mxu2 %v9731_v4  ;;  %v10050_v4 = vld [vmem:[%s15666_s16 + $0x2a8] sm:$0xf] }
 0x1be   : > { %5889 = vmatpush.bf16.msra.mxu3 %v9859_v20  ;;  %v10306_v20 = vld [vmem:[%s15666_s16 + $0x4a8] sm:$0xf]  ;;  %v10051_v15 = vor.u32 %v14462_v5, %v10050_v4  ;;  %v10147_v4 = vor.u32 %v14486_v57, %v10146_v52 }
 0x1bf   : > { %5851 = vmatpush.bf16.msra.mxu0 %v12655_v21  ;;  %v10307_v62 = vor.u32 %v14526_v58, %v10306_v20  ;;  %v14458_v21 = vld [vmem:[%s15666_s16 + $0x294] sm:$0xf0]  ;;  %v5645_v36 = vpop.f32.mrf.mxu0  ;;  %v10274_v59 = vld [vmem:[%s15666_s16 + $0x468] sm:$0xf] }
 0x1c0   : > { %5864 = vmatpush.bf16.msra.mxu1 %v12783_v30  ;;  %v10290_v30 = vld [vmem:[%s15666_s16 + $0x488] sm:$0xf] }
 0x1c1   : > { %5877 = vmatpush.bf16.msra.mxu2 %v9715_v35  ;;  %v14522_v35 = vld [vmem:[%s15666_s16 + $0x494] sm:$0xf0]  ;;  %v10002_v6 = vld [vmem:[%s15666_s16 + $0x248] sm:$0xf] }
 0x1c2   : > { %5890 = vmatpush.bf16.msra.mxu3 %v9843_v41  ;;  %5852 = vmatmul.bf16.vlgmr.msra.gmra.mxu0 %v16176_v12  ;;  %v14554_v41 = vld [vmem:[%s15666_s16 + $0x594] sm:$0xf0]  ;;  %v10291_v49 = vor.u32 %v14522_v35, %v10290_v30  ;;  %v10130_v11 = vld [vmem:[%s15666_s16 + $0x348] sm:$0xf] }
 0x1c3   : > { %5896 = vmatpush.bf16.msrb.mxu0 %v10083_v17  ;;  %5865 = vmatmul.bf16.vlgmr.msra.gmra.mxu1 %v16244_v56  ;;  %v5646_v17 = vadd.f32 %v5645_v36, %v16645_v40  ;;  %v10419_v53 = vor.u32 %v14554_v41, %v10418_v61  ;;  %v14518_v40 = vld [vmem:[%s15666_s16 + $0x474] sm:$0xf0]  ;;  %v10258_v14 = vld [vmem:[%s15666_s16 + $0x448] sm:$0xf]  ;;  %v10131_v35 = vor.u32 %v14482_v13, %v10130_v11 }
 0x1c4   : > { %5909 = vmatpush.bf16.msrb.mxu1 %v10211_v23  ;;  %5878 = vmatmul.bf16.vlgmr.msra.gmra.mxu2 %v15775_v28  ;;  %v10035_v23 = vor.u32 %v14458_v21, %v10034_v18  ;;  %v10275_v5 = vor.u32 %v14518_v40, %v10274_v59  ;;  %v10386_v18 = vld [vmem:[%s15666_s16 + $0x548] sm:$0xf]  ;;  %v14546_v21 = vld [vmem:[%s15666_s16 + $0x554] sm:$0xf0] }
 0x1c5   : > { %5922 = vmatpush.bf16.msrb.mxu2 %v10339_v46  ;;  %5891 = vmatmul.bf16.vlgmr.msra.gmra.mxu3 %v15781_v34  ;;  %v5658_v46 = vpop.f32.mrf.mxu1  ;;  %v9986_v61 = vld [vmem:[%s15666_s16 + $0x228] sm:$0xf]  ;;  %v14446_v41 = vld [vmem:[%s15666_s16 + $0x234] sm:$0xf0] }
 0x1c6   : > { %5935 = vmatpush.bf16.msrb.mxu3 %v10467_v51  ;;  %v14454_v51 = vld [vmem:[%s15666_s16 + $0x274] sm:$0xf0]  ;;  %v5659_v54 = vadd.f32 %v5658_v46, %v5646_v17  ;;  %v10114_v17 = vld [vmem:[%s15666_s16 + $0x328] sm:$0xf]  ;;  %v9987_v52 = vor.u32 %v14446_v41, %v9986_v61 }
 0x1c7   : > { %5897 = vmatpush.bf16.msrb.mxu0 %v10067_v1  ;;  %v10402_v1 = vld [vmem:[%s15666_s16 + $0x568] sm:$0xf]  ;;  %v5671_v58 = vpop.f32.mrf.mxu2  ;;  %v5647_v24 = vpop.f32.mrf.mxu0  ;;  %v14478_v46 = vld [vmem:[%s15666_s16 + $0x334] sm:$0xf0] }
 0x1c8   : > { %5910 = vmatpush.bf16.msrb.mxu1 %v10195_v0  ;;  %v14550_v0 = vld [vmem:[%s15666_s16 + $0x574] sm:$0xf0]  ;;  %v10115_v57 = vor.u32 %v14478_v46, %v10114_v17  ;;  %v10098_v40 = vld [vmem:[%s15666_s16 + $0x308] sm:$0xf] }
 0x1c9   : > { %5923 = vmatpush.bf16.msrb.mxu2 %v10323_v2  ;;  %v10019_v2 = vor.u32 %v14454_v51, %v10018_v50  ;;  %v10403_v20 = vor.u32 %v14550_v0, %v10402_v1  ;;  %v10370_v50 = vld [vmem:[%s15666_s16 + $0x528] sm:$0xf]  ;;  %v14542_v51 = vld [vmem:[%s15666_s16 + $0x534] sm:$0xf0] }
 0x1ca   : > { %5936 = vmatpush.bf16.msrb.mxu3 %v10451_v10  ;;  %v14450_v10 = vld [vmem:[%s15666_s16 + $0x254] sm:$0xf0]  ;;  %v10226_v0 = vld [vmem:[%s15666_s16 + $0x408] sm:$0xf] }
 0x1cb   : > { %5898 = vmatpush.bf16.msrb.mxu0 %v10051_v15  ;;  %v14514_v15 = vld [vmem:[%s15666_s16 + $0x454] sm:$0xf0]  ;;  %v10594_v11 = vld [vmem:[%s15666_s16 + $0x6e8] sm:$0xf] }
 0x1cc   : > { %5911 = vmatpush.bf16.msrb.mxu1 %v10179_v16  ;;  %v5672_v16 = vadd.f32 %v5671_v58, %v5659_v54  ;;  %v10259_v36 = vor.u32 %v14514_v15, %v10258_v14  ;;  %v14442_v54 = vld [vmem:[%s15666_s16 + $0x214] sm:$0xf0]  ;;  %v10722_v58 = vld [vmem:[%s15666_s16 + $0x7e8] sm:$0xf] }
 0x1cd   : > { %5924 = vmatpush.bf16.msrb.mxu2 %v10307_v62  ;;  %v5684_v62 = vpop.f32.mrf.mxu3  ;;  %v5660_v26 = vpop.f32.mrf.mxu1  ;;  %v14474_v1 = vld [vmem:[%s15666_s16 + $0x314] sm:$0xf0]  ;;  %v10978_v24 = vld [vmem:[%s15666_s16 + $0x9e8] sm:$0xf] }
 0x1ce   : > { %5937 = vmatpush.bf16.msrb.mxu3 %v10435_v7  ;;  %v10003_v7 = vor.u32 %v14450_v10, %v10002_v6  ;;  %v16716_v30 = vadd.f32 %v5684_v62, %v5672_v16  ;;  %v14538_v6 = vld [vmem:[%s15666_s16 + $0x514] sm:$0xf0]  ;;  %v10850_v16 = vld [vmem:[%s15666_s16 + $0x8e8] sm:$0xf] }
 0x1cf   : > { %5899 = vmatpush.bf16.msrb.mxu0 %v10035_v23  ;;  %v10387_v23 = vor.u32 %v14546_v21, %v10386_v18  ;;  %v5673_v10 = vpop.f32.mrf.mxu2  ;;  %v14630_v15 = vld [vmem:[%s15666_s16 + $0x7f4] sm:$0xf0]  ;;  %v10099_v18 = vor.u32 %v14474_v1, %v10098_v40  ;;  %v10578_v41 = vld [vmem:[%s15666_s16 + $0x6c8] sm:$0xf] }
 0x1d0   : > { %5912 = vmatpush.bf16.msrb.mxu1 %v10163_v48  ;;  %v10242_v48 = vld [vmem:[%s15666_s16 + $0x428] sm:$0xf]  ;;  %v14662_v62 = vld [vmem:[%s15666_s16 + $0x8f4] sm:$0xf0] }
 0x1d1   : > { %5925 = vmatpush.bf16.msrb.mxu2 %v10291_v49  ;;  %v14510_v49 = vld [vmem:[%s15666_s16 + $0x434] sm:$0xf0]  ;;  %v10851_v61 = vor.u32 %v14662_v62, %v10850_v16  ;;  %v10690_v1 = vld [vmem:[%s15666_s16 + $0x7a8] sm:$0xf] }
 0x1d2   : > { %5938 = vmatpush.bf16.msrb.mxu3 %v10419_v53  ;;  %v9970_v53 = vld [vmem:[%s15666_s16 + $0x208] sm:$0xf]  ;;  %v10243_v59 = vor.u32 %v14510_v49, %v10242_v48  ;;  %v14594_v17 = vld [vmem:[%s15666_s16 + $0x6d4] sm:$0xf0] }
 0x1d3   : > { %5900 = vmatpush.bf16.msrb.mxu0 %v10019_v2  ;;  %v10371_v2 = vor.u32 %v14542_v51, %v10370_v50  ;;  %v9971_v14 = vor.u32 %v14442_v54, %v9970_v53  ;;  %v14626_v48 = vld [vmem:[%s15666_s16 + $0x7d4] sm:$0xf0]  ;;  %v10834_v49 = vld [vmem:[%s15666_s16 + $0x8c8] sm:$0xf]  ;;  %v10579_v53 = vor.u32 %v14594_v17, %v10578_v41 }
 0x1d4   : > { %5913 = vmatpush.bf16.msrb.mxu1 %v10147_v4  ;;  %v14506_v4 = vld [vmem:[%s15666_s16 + $0x414] sm:$0xf0]  ;;  %v10962_v51 = vld [vmem:[%s15666_s16 + $0x9c8] sm:$0xf] }
 0x1d5   : > { %5926 = vmatpush.bf16.msrb.mxu2 %v10275_v5  ;;  %v10354_v5 = vld [vmem:[%s15666_s16 + $0x508] sm:$0xf]  ;;  %v5686_v13 = vpop.f32.mrf.mxu3  ;;  %v10227_v21 = vor.u32 %v14506_v4, %v10226_v0  ;;  %v14658_v50 = vld [vmem:[%s15666_s16 + $0x8d4] sm:$0xf0] }
 0x1d6   : > { %5939 = vmatpush.bf16.msrb.mxu3 %v10403_v20  ;;  %v14598_v20 = vld [vmem:[%s15666_s16 + $0x6f4] sm:$0xf0]  ;;  %v10355_v26 = vor.u32 %v14538_v6, %v10354_v5  ;;  %v10818_v4 = vld [vmem:[%s15666_s16 + $0x8a8] sm:$0xf] }
 0x1d7   : > { %5901 = vmatpush.bf16.msrb.mxu0 %v10003_v7  ;;  %v14694_v7 = vld [vmem:[%s15666_s16 + $0x9f4] sm:$0xf0]  ;;  %v10946_v6 = vld [vmem:[%s15666_s16 + $0x9a8] sm:$0xf] }
 0x1d8   : > { %5914 = vmatpush.bf16.msrb.mxu1 %v10131_v35  ;;  %v10595_v35 = vor.u32 %v14598_v20, %v10594_v11  ;;  %v10979_v46 = vor.u32 %v14694_v7, %v10978_v24  ;;  %v14590_v40 = vld [vmem:[%s15666_s16 + $0x6b4] sm:$0xf0]  ;;  %v10546_v13 = vld [vmem:[%s15666_s16 + $0x688] sm:$0xf] }
 0x1d9   : > { %5927 = vmatpush.bf16.msrb.mxu2 %v10259_v36  ;;  %v10723_v36 = vor.u32 %v14630_v15, %v10722_v58  ;;  %v14654_v5 = vld [vmem:[%s15666_s16 + $0x8b4] sm:$0xf0]  ;;  %v10674_v15 = vld [vmem:[%s15666_s16 + $0x788] sm:$0xf] }
 0x1da   : > { %5940 = vmatpush.bf16.msrb.mxu3 %v10387_v23  ;;  %v10706_v23 = vld [vmem:[%s15666_s16 + $0x7c8] sm:$0xf]  ;;  %v14686_v10 = vld [vmem:[%s15666_s16 + $0x9b4] sm:$0xf0]  ;;  %v10819_v58 = vor.u32 %v14654_v5, %v10818_v4 }
 0x1db   : > { %5902 = vmatpush.bf16.msrb.mxu0 %v9987_v52  ;;  %v14690_v52 = vld [vmem:[%s15666_s16 + $0x9d4] sm:$0xf0]  ;;  %v10707_v54 = vor.u32 %v14626_v48, %v10706_v23  ;;  %v10947_v16 = vor.u32 %v14686_v10, %v10946_v6  ;;  %v10930_v7 = vld [vmem:[%s15666_s16 + $0x988] sm:$0xf] }
 0x1dc   : > { %5915 = vmatpush.bf16.msrb.mxu1 %v10115_v57  ;;  %v10835_v57 = vor.u32 %v14658_v50, %v10834_v49  ;;  %v10963_v0 = vor.u32 %v14690_v52, %v10962_v51  ;;  %v14618_v62 = vld [vmem:[%s15666_s16 + $0x794] sm:$0xf0]  ;;  %v10530_v23 = vld [vmem:[%s15666_s16 + $0x668] sm:$0xf] }
 0x1dd   : > { %5928 = vmatpush.bf16.msrb.mxu2 %v10243_v59  ;;  %v10562_v59 = vld [vmem:[%s15666_s16 + $0x6a8] sm:$0xf]  ;;  %v10675_v41 = vor.u32 %v14618_v62, %v10674_v15  ;;  %v14614_v51 = vld [vmem:[%s15666_s16 + $0x774] sm:$0xf0] }
 0x1de   : > { %5941 = vmatpush.bf16.msrb.mxu3 %v10371_v2  ;;  %v14622_v2 = vld [vmem:[%s15666_s16 + $0x7b4] sm:$0xf0]  ;;  %v10563_v11 = vor.u32 %v14590_v40, %v10562_v59  ;;  %v10658_v48 = vld [vmem:[%s15666_s16 + $0x768] sm:$0xf] }
 0x1df   : > { %5903 = vmatpush.bf16.msrb.mxu0 %v9971_v14  ;;  %v10691_v20 = vor.u32 %v14622_v2, %v10690_v1  ;;  %v14586_v14 = vld [vmem:[%s15666_s16 + $0x694] sm:$0xf0]  ;;  %v5697_v24 = vpop.f32.mrf.mxu0  ;;  %v10786_v52 = vld [vmem:[%s15666_s16 + $0x868] sm:$0xf]  ;;  %v10659_v59 = vor.u32 %v14614_v51, %v10658_v48 }
 0x1e0   : > { %5916 = vmatpush.bf16.msrb.mxu1 %v10099_v18  ;;  %v10802_v18 = vld [vmem:[%s15666_s16 + $0x888] sm:$0xf]  ;;  %v14610_v6 = vld [vmem:[%s15666_s16 + $0x754] sm:$0xf0] }
 0x1e1   : > { %5929 = vmatpush.bf16.msrb.mxu2 %v10227_v21  ;;  %v14650_v21 = vld [vmem:[%s15666_s16 + $0x894] sm:$0xf0]  ;;  %v10514_v1 = vld [vmem:[%s15666_s16 + $0x648] sm:$0xf] }
 0x1e2   : > { %5942 = vmatpush.bf16.msrb.mxu3 %v10355_v26  ;;  %5904 = vmatmul.bf16.vlgmr.msrb.gmra.mxu0 %v15773_v27  ;;  %v14682_v26 = vld [vmem:[%s15666_s16 + $0x994] sm:$0xf0]  ;;  %v10803_v17 = vor.u32 %v14650_v21, %v10802_v18  ;;  %v10642_v2 = vld [vmem:[%s15666_s16 + $0x748] sm:$0xf] }
 0x1e3   : > { %5948 = vmatpush.bf16.msra.mxu0 %v10595_v35  ;;  %5917 = vmatmul.bf16.vlgmr.msrb.gmra.mxu1 %v15779_v33  ;;  %v5698_v35 = vadd.f32 %v5697_v24, %v16716_v30  ;;  %v10931_v49 = vor.u32 %v14682_v26, %v10930_v7  ;;  %v14646_v30 = vld [vmem:[%s15666_s16 + $0x874] sm:$0xf0]  ;;  %v10770_v10 = vld [vmem:[%s15666_s16 + $0x848] sm:$0xf]  ;;  %v10643_v21 = vor.u32 %v14610_v6, %v10642_v2 }
 0x1e4   : > { %5961 = vmatpush.bf16.msra.mxu1 %v10723_v36  ;;  %5930 = vmatmul.bf16.vlgmr.msrb.gmra.mxu2 %v15831_v42  ;;  %v10547_v36 = vor.u32 %v14586_v14, %v10546_v13  ;;  %v10787_v40 = vor.u32 %v14646_v30, %v10786_v52  ;;  %v10898_v13 = vld [vmem:[%s15666_s16 + $0x948] sm:$0xf]  ;;  %v14674_v14 = vld [vmem:[%s15666_s16 + $0x954] sm:$0xf0] }
 0x1e5   : > { %5974 = vmatpush.bf16.msra.mxu2 %v10851_v61  ;;  %5943 = vmatmul.bf16.vlgmr.msrb.gmra.mxu3 %v15835_v45  ;;  %v5710_v61 = vpop.f32.mrf.mxu1  ;;  %v10498_v7 = vld [vmem:[%s15666_s16 + $0x628] sm:$0xf]  ;;  %v14574_v26 = vld [vmem:[%s15666_s16 + $0x634] sm:$0xf0] }
 0x1e6   : > { %5987 = vmatpush.bf16.msra.mxu3 %v10979_v46  ;;  %v14582_v46 = vld [vmem:[%s15666_s16 + $0x674] sm:$0xf0]  ;;  %v5711_v50 = vadd.f32 %v5710_v61, %v5698_v35  ;;  %v10626_v35 = vld [vmem:[%s15666_s16 + $0x728] sm:$0xf]  ;;  %v10499_v48 = vor.u32 %v14574_v26, %v10498_v7 }
 0x1e7   : > { %5949 = vmatpush.bf16.msra.mxu0 %v10579_v53  ;;  %v10914_v53 = vld [vmem:[%s15666_s16 + $0x968] sm:$0xf]  ;;  %v5723_v5 = vpop.f32.mrf.mxu2  ;;  %v5699_v15 = vpop.f32.mrf.mxu0  ;;  %v14606_v61 = vld [vmem:[%s15666_s16 + $0x734] sm:$0xf0] }
 0x1e8   : > { %5962 = vmatpush.bf16.msra.mxu1 %v10707_v54  ;;  %v14678_v54 = vld [vmem:[%s15666_s16 + $0x974] sm:$0xf0]  ;;  %v10627_v51 = vor.u32 %v14606_v61, %v10626_v35  ;;  %v10610_v30 = vld [vmem:[%s15666_s16 + $0x708] sm:$0xf] }
 0x1e9   : > { %5975 = vmatpush.bf16.msra.mxu2 %v10835_v57  ;;  %v10531_v57 = vor.u32 %v14582_v46, %v10530_v23  ;;  %v10915_v4 = vor.u32 %v14678_v54, %v10914_v53  ;;  %v10882_v23 = vld [vmem:[%s15666_s16 + $0x928] sm:$0xf]  ;;  %v14670_v46 = vld [vmem:[%s15666_s16 + $0x934] sm:$0xf0] }
 0x1ea   : > { %5988 = vmatpush.bf16.msra.mxu3 %v10963_v0  ;;  %v14578_v0 = vld [vmem:[%s15666_s16 + $0x654] sm:$0xf0]  ;;  %v10738_v54 = vld [vmem:[%s15666_s16 + $0x808] sm:$0xf] }
 0x1eb   : > { %5950 = vmatpush.bf16.msra.mxu0 %v10563_v11  ;;  %v14642_v11 = vld [vmem:[%s15666_s16 + $0x854] sm:$0xf0]  ;;  %v11106_v2 = vld [vmem:[%s15666_s16 + $0xae8] sm:$0xf] }
 0x1ec   : > { %5963 = vmatpush.bf16.msra.mxu1 %v10691_v20  ;;  %v5724_v20 = vadd.f32 %v5723_v5, %v5711_v50  ;;  %v10771_v24 = vor.u32 %v14642_v11, %v10770_v10  ;;  %v14570_v50 = vld [vmem:[%s15666_s16 + $0x614] sm:$0xf0]  ;;  %v11234_v5 = vld [vmem:[%s15666_s16 + $0xbe8] sm:$0xf] }
 0x1ed   : > { %5976 = vmatpush.bf16.msra.mxu2 %v10819_v58  ;;  %v5736_v58 = vpop.f32.mrf.mxu3  ;;  %v5712_v62 = vpop.f32.mrf.mxu1  ;;  %v14602_v53 = vld [vmem:[%s15666_s16 + $0x714] sm:$0xf0]  ;;  %v11490_v15 = vld [vmem:[%s15666_s16 + $0xde8] sm:$0xf] }
 0x1ee   : > { %5989 = vmatpush.bf16.msra.mxu3 %v10947_v16  ;;  %v10515_v16 = vor.u32 %v14578_v0, %v10514_v1  ;;  %v16787_v18 = vadd.f32 %v5736_v58, %v5724_v20  ;;  %v14666_v1 = vld [vmem:[%s15666_s16 + $0x914] sm:$0xf0]  ;;  %v11362_v20 = vld [vmem:[%s15666_s16 + $0xce8] sm:$0xf] }
 0x1ef   : > { %5951 = vmatpush.bf16.msra.mxu0 %v10547_v36  ;;  %v10899_v36 = vor.u32 %v14674_v14, %v10898_v13  ;;  %v5725_v0 = vpop.f32.mrf.mxu2  ;;  %v14758_v11 = vld [vmem:[%s15666_s16 + $0xbf4] sm:$0xf0]  ;;  %v10611_v13 = vor.u32 %v14602_v53, %v10610_v30  ;;  %v11090_v26 = vld [vmem:[%s15666_s16 + $0xac8] sm:$0xf] }
 0x1f0   : > { %5964 = vmatpush.bf16.msra.mxu1 %v10675_v41  ;;  %v10754_v41 = vld [vmem:[%s15666_s16 + $0x828] sm:$0xf]  ;;  %v14790_v58 = vld [vmem:[%s15666_s16 + $0xcf4] sm:$0xf0] }
 0x1f1   : > { %5977 = vmatpush.bf16.msra.mxu2 %v10803_v17  ;;  %v14638_v17 = vld [vmem:[%s15666_s16 + $0x834] sm:$0xf0]  ;;  %v11363_v7 = vor.u32 %v14790_v58, %v11362_v20  ;;  %v11202_v53 = vld [vmem:[%s15666_s16 + $0xba8] sm:$0xf] }
 0x1f2   : > { %5990 = vmatpush.bf16.msra.mxu3 %v10931_v49  ;;  %v10482_v49 = vld [vmem:[%s15666_s16 + $0x608] sm:$0xf]  ;;  %v10755_v52 = vor.u32 %v14638_v17, %v10754_v41  ;;  %v14722_v35 = vld [vmem:[%s15666_s16 + $0xad4] sm:$0xf0] }
 0x1f3   : > { %5952 = vmatpush.bf16.msra.mxu0 %v10531_v57  ;;  %v10883_v57 = vor.u32 %v14670_v46, %v10882_v23  ;;  %v10483_v10 = vor.u32 %v14570_v50, %v10482_v49  ;;  %v14754_v41 = vld [vmem:[%s15666_s16 + $0xbd4] sm:$0xf0]  ;;  %v11346_v17 = vld [vmem:[%s15666_s16 + $0xcc8] sm:$0xf]  ;;  %v11091_v49 = vor.u32 %v14722_v35, %v11090_v26 }
 0x1f4   : > { %5965 = vmatpush.bf16.msra.mxu1 %v10659_v59  ;;  %v14634_v59 = vld [vmem:[%s15666_s16 + $0x814] sm:$0xf0]  ;;  %v11474_v46 = vld [vmem:[%s15666_s16 + $0xdc8] sm:$0xf] }
 0x1f5   : > { %5978 = vmatpush.bf16.msra.mxu2 %v10787_v40  ;;  %v10866_v40 = vld [vmem:[%s15666_s16 + $0x908] sm:$0xf]  ;;  %v5738_v6 = vpop.f32.mrf.mxu3  ;;  %v10739_v14 = vor.u32 %v14634_v59, %v10738_v54  ;;  %v14786_v23 = vld [vmem:[%s15666_s16 + $0xcd4] sm:$0xf0] }
 0x1f6   : > { %5991 = vmatpush.bf16.msra.mxu3 %v10915_v4  ;;  %v14726_v4 = vld [vmem:[%s15666_s16 + $0xaf4] sm:$0xf0]  ;;  %v10867_v62 = vor.u32 %v14666_v1, %v10866_v40  ;;  %v11330_v59 = vld [vmem:[%s15666_s16 + $0xca8] sm:$0xf] }
 0x1f7   : > { %5953 = vmatpush.bf16.msra.mxu0 %v10515_v16  ;;  %v14822_v16 = vld [vmem:[%s15666_s16 + $0xdf4] sm:$0xf0]  ;;  %v11458_v1 = vld [vmem:[%s15666_s16 + $0xda8] sm:$0xf] }
 0x1f8   : > { %5966 = vmatpush.bf16.msra.mxu1 %v10643_v21  ;;  %v11107_v21 = vor.u32 %v14726_v4, %v11106_v2  ;;  %v11491_v61 = vor.u32 %v14822_v16, %v11490_v15  ;;  %v14718_v30 = vld [vmem:[%s15666_s16 + $0xab4] sm:$0xf0]  ;;  %v11058_v6 = vld [vmem:[%s15666_s16 + $0xa88] sm:$0xf] }
 0x1f9   : > { %5979 = vmatpush.bf16.msra.mxu2 %v10771_v24  ;;  %v11235_v24 = vor.u32 %v14758_v11, %v11234_v5  ;;  %v14782_v40 = vld [vmem:[%s15666_s16 + $0xcb4] sm:$0xf0]  ;;  %v11186_v11 = vld [vmem:[%s15666_s16 + $0xb88] sm:$0xf] }
 0x1fa   : > { %5992 = vmatpush.bf16.msra.mxu3 %v10899_v36  ;;  %v11218_v36 = vld [vmem:[%s15666_s16 + $0xbc8] sm:$0xf]  ;;  %v14814_v0 = vld [vmem:[%s15666_s16 + $0xdb4] sm:$0xf0]  ;;  %v11331_v5 = vor.u32 %v14782_v40, %v11330_v59 }
 0x1fb   : > { %5954 = vmatpush.bf16.msra.mxu0 %v10499_v48  ;;  %v14818_v48 = vld [vmem:[%s15666_s16 + $0xdd4] sm:$0xf0]  ;;  %v11219_v50 = vor.u32 %v14754_v41, %v11218_v36  ;;  %v11459_v20 = vor.u32 %v14814_v0, %v11458_v1  ;;  %v11442_v16 = vld [vmem:[%s15666_s16 + $0xd88] sm:$0xf] }
 0x1fc   : > { %5967 = vmatpush.bf16.msra.mxu1 %v10627_v51  ;;  %v11347_v51 = vor.u32 %v14786_v23, %v11346_v17  ;;  %v11475_v54 = vor.u32 %v14818_v48, %v11474_v46  ;;  %v14746_v58 = vld [vmem:[%s15666_s16 + $0xb94] sm:$0xf0]  ;;  %v11042_v36 = vld [vmem:[%s15666_s16 + $0xa68] sm:$0xf] }
 0x1fd   : > { %5980 = vmatpush.bf16.msra.mxu2 %v10755_v52  ;;  %v11074_v52 = vld [vmem:[%s15666_s16 + $0xaa8] sm:$0xf]  ;;  %v11187_v26 = vor.u32 %v14746_v58, %v11186_v11  ;;  %v14742_v46 = vld [vmem:[%s15666_s16 + $0xb74] sm:$0xf0] }
 0x1fe   : > { %5993 = vmatpush.bf16.msra.mxu3 %v10883_v57  ;;  %v14750_v57 = vld [vmem:[%s15666_s16 + $0xbb4] sm:$0xf0]  ;;  %v11075_v2 = vor.u32 %v14718_v30, %v11074_v52  ;;  %v11170_v41 = vld [vmem:[%s15666_s16 + $0xb68] sm:$0xf] }
 0x1ff   : > { %5955 = vmatpush.bf16.msra.mxu0 %v10483_v10  ;;  %v11203_v4 = vor.u32 %v14750_v57, %v11202_v53  ;;  %v14714_v10 = vld [vmem:[%s15666_s16 + $0xa94] sm:$0xf0]  ;;  %v5749_v15 = vpop.f32.mrf.mxu0  ;;  %v11298_v48 = vld [vmem:[%s15666_s16 + $0xc68] sm:$0xf]  ;;  %v11171_v52 = vor.u32 %v14742_v46, %v11170_v41 }
 0x200   : > { %5968 = vmatpush.bf16.msra.mxu1 %v10611_v13  ;;  %v11314_v13 = vld [vmem:[%s15666_s16 + $0xc88] sm:$0xf]  ;;  %v14738_v1 = vld [vmem:[%s15666_s16 + $0xb54] sm:$0xf0] }
 0x201   : > { %5981 = vmatpush.bf16.msra.mxu2 %v10739_v14  ;;  %v14778_v14 = vld [vmem:[%s15666_s16 + $0xc94] sm:$0xf0]  ;;  %v11026_v53 = vld [vmem:[%s15666_s16 + $0xa48] sm:$0xf] }
 0x202   : > { %5994 = vmatpush.bf16.msra.mxu3 %v10867_v62  ;;  %5956 = vmatmul.bf16.vlgmr.msra.gmra.mxu0 %v15827_v39  ;;  %v14810_v62 = vld [vmem:[%s15666_s16 + $0xd94] sm:$0xf0]  ;;  %v11315_v35 = vor.u32 %v14778_v14, %v11314_v13  ;;  %v11154_v57 = vld [vmem:[%s15666_s16 + $0xb48] sm:$0xf] }
 0x203   : > { %6000 = vmatpush.bf16.msrb.mxu0 %v11107_v21  ;;  %5969 = vmatmul.bf16.vlgmr.msra.gmra.mxu1 %v15833_v43  ;;  %v5750_v21 = vadd.f32 %v5749_v15, %v16787_v18  ;;  %v11443_v17 = vor.u32 %v14810_v62, %v11442_v16  ;;  %v14774_v18 = vld [vmem:[%s15666_s16 + $0xc74] sm:$0xf0]  ;;  %v11282_v0 = vld [vmem:[%s15666_s16 + $0xc48] sm:$0xf]  ;;  %v11155_v14 = vor.u32 %v14738_v1, %v11154_v57 }
 0x204   : > { %6013 = vmatpush.bf16.msrb.mxu1 %v11235_v24  ;;  %5982 = vmatmul.bf16.vlgmr.msra.gmra.mxu2 %v15911_v25  ;;  %v11059_v24 = vor.u32 %v14714_v10, %v11058_v6  ;;  %v11299_v30 = vor.u32 %v14774_v18, %v11298_v48  ;;  %v11410_v6 = vld [vmem:[%s15666_s16 + $0xd48] sm:$0xf]  ;;  %v14802_v10 = vld [vmem:[%s15666_s16 + $0xd54] sm:$0xf0] }
 0x205   : > { %6026 = vmatpush.bf16.msrb.mxu2 %v11363_v7  ;;  %5995 = vmatmul.bf16.vlgmr.msra.gmra.mxu3 %v15922_v32  ;;  %v5762_v7 = vpop.f32.mrf.mxu1  ;;  %v11010_v16 = vld [vmem:[%s15666_s16 + $0xa28] sm:$0xf]  ;;  %v14702_v62 = vld [vmem:[%s15666_s16 + $0xa34] sm:$0xf0] }
 0x206   : > { %6039 = vmatpush.bf16.msrb.mxu3 %v11491_v61  ;;  %v14710_v61 = vld [vmem:[%s15666_s16 + $0xa74] sm:$0xf0]  ;;  %v5763_v23 = vadd.f32 %v5762_v7, %v5750_v21  ;;  %v11138_v21 = vld [vmem:[%s15666_s16 + $0xb28] sm:$0xf]  ;;  %v11011_v41 = vor.u32 %v14702_v62, %v11010_v16 }
 0x207   : > { %6001 = vmatpush.bf16.msrb.mxu0 %v11091_v49  ;;  %v11426_v49 = vld [vmem:[%s15666_s16 + $0xd68] sm:$0xf]  ;;  %v5775_v40 = vpop.f32.mrf.mxu2  ;;  %v5751_v11 = vpop.f32.mrf.mxu0  ;;  %v14734_v7 = vld [vmem:[%s15666_s16 + $0xb34] sm:$0xf0] }
 0x208   : > { %6014 = vmatpush.bf16.msrb.mxu1 %v11219_v50  ;;  %v14806_v50 = vld [vmem:[%s15666_s16 + $0xd74] sm:$0xf0]  ;;  %v11139_v46 = vor.u32 %v14734_v7, %v11138_v21  ;;  %v11122_v18 = vld [vmem:[%s15666_s16 + $0xb08] sm:$0xf] }
 0x209   : > { %6027 = vmatpush.bf16.msrb.mxu2 %v11347_v51  ;;  %v11043_v51 = vor.u32 %v14710_v61, %v11042_v36  ;;  %v11427_v59 = vor.u32 %v14806_v50, %v11426_v49  ;;  %v11394_v36 = vld [vmem:[%s15666_s16 + $0xd28] sm:$0xf]  ;;  %v14798_v61 = vld [vmem:[%s15666_s16 + $0xd34] sm:$0xf0] }
 0x20a   : > { %6040 = vmatpush.bf16.msrb.mxu3 %v11475_v54  ;;  %v14706_v54 = vld [vmem:[%s15666_s16 + $0xa54] sm:$0xf0]  ;;  %v11250_v50 = vld [vmem:[%s15666_s16 + $0xc08] sm:$0xf] }
 0x20b   : > { %6002 = vmatpush.bf16.msrb.mxu0 %v11075_v2  ;;  %v14770_v2 = vld [vmem:[%s15666_s16 + $0xc54] sm:$0xf0]  ;;  %v11618_v57 = vld [vmem:[%s15666_s16 + $0xee8] sm:$0xf] }
 0x20c   : > { %6015 = vmatpush.bf16.msrb.mxu1 %v11203_v4  ;;  %v5776_v4 = vadd.f32 %v5775_v40, %v5763_v23  ;;  %v11283_v15 = vor.u32 %v14770_v2, %v11282_v0  ;;  %v14698_v23 = vld [vmem:[%s15666_s16 + $0xa14] sm:$0xf0]  ;;  %v11746_v40 = vld [vmem:[%s15666_s16 + $0xfe8] sm:$0xf] }
 0x20d   : > { %6028 = vmatpush.bf16.msrb.mxu2 %v11331_v5  ;;  %v5788_v5 = vpop.f32.mrf.mxu3  ;;  %v5764_v58 = vpop.f32.mrf.mxu1  ;;  %v14730_v49 = vld [vmem:[%s15666_s16 + $0xb14] sm:$0xf0]  ;;  %v12002_v11 = vld [vmem:[%s15666_s16 + $0x11e8] sm:$0xf] }
 0x20e   : > { %6041 = vmatpush.bf16.msrb.mxu3 %v11459_v20  ;;  %v11027_v20 = vor.u32 %v14706_v54, %v11026_v53  ;;  %v16858_v13 = vadd.f32 %v5788_v5, %v5776_v4  ;;  %v14794_v53 = vld [vmem:[%s15666_s16 + $0xd14] sm:$0xf0]  ;;  %v11874_v4 = vld [vmem:[%s15666_s16 + $0x10e8] sm:$0xf] }
 0x20f   : > { %6003 = vmatpush.bf16.msrb.mxu0 %v11059_v24  ;;  %v11411_v24 = vor.u32 %v14802_v10, %v11410_v6  ;;  %v5777_v54 = vpop.f32.mrf.mxu2  ;;  %v14886_v2 = vld [vmem:[%s15666_s16 + $0xff4] sm:$0xf0]  ;;  %v11123_v6 = vor.u32 %v14730_v49, %v11122_v18  ;;  %v11602_v62 = vld [vmem:[%s15666_s16 + $0xec8] sm:$0xf] }
 0x210   : > { %6016 = vmatpush.bf16.msrb.mxu1 %v11187_v26  ;;  %v11266_v26 = vld [vmem:[%s15666_s16 + $0xc28] sm:$0xf]  ;;  %v14918_v5 = vld [vmem:[%s15666_s16 + $0x10f4] sm:$0xf0] }
 0x211   : > { %6029 = vmatpush.bf16.msrb.mxu2 %v11315_v35  ;;  %v14766_v35 = vld [vmem:[%s15666_s16 + $0xc34] sm:$0xf0]  ;;  %v11875_v16 = vor.u32 %v14918_v5, %v11874_v4  ;;  %v11714_v49 = vld [vmem:[%s15666_s16 + $0xfa8] sm:$0xf] }
 0x212   : > { %6042 = vmatpush.bf16.msrb.mxu3 %v11443_v17  ;;  %v10994_v17 = vld [vmem:[%s15666_s16 + $0xa08] sm:$0xf]  ;;  %v11267_v48 = vor.u32 %v14766_v35, %v11266_v26  ;;  %v14850_v21 = vld [vmem:[%s15666_s16 + $0xed4] sm:$0xf0] }
 0x213   : > { %6004 = vmatpush.bf16.msrb.mxu0 %v11043_v51  ;;  %v11395_v51 = vor.u32 %v14798_v61, %v11394_v36  ;;  %v10995_v0 = vor.u32 %v14698_v23, %v10994_v17  ;;  %v14882_v26 = vld [vmem:[%s15666_s16 + $0xfd4] sm:$0xf0]  ;;  %v11858_v35 = vld [vmem:[%s15666_s16 + $0x10c8] sm:$0xf]  ;;  %v11603_v17 = vor.u32 %v14850_v21, %v11602_v62 }
 0x214   : > { %6017 = vmatpush.bf16.msrb.mxu1 %v11171_v52  ;;  %v14762_v52 = vld [vmem:[%s15666_s16 + $0xc14] sm:$0xf0]  ;;  %v11986_v61 = vld [vmem:[%s15666_s16 + $0x11c8] sm:$0xf] }
 0x215   : > { %6030 = vmatpush.bf16.msrb.mxu2 %v11299_v30  ;;  %v11378_v30 = vld [vmem:[%s15666_s16 + $0xd08] sm:$0xf]  ;;  %v5790_v1 = vpop.f32.mrf.mxu3  ;;  %v11251_v10 = vor.u32 %v14762_v52, %v11250_v50  ;;  %v14914_v36 = vld [vmem:[%s15666_s16 + $0x10d4] sm:$0xf0] }
 0x216   : > { %6043 = vmatpush.bf16.msrb.mxu3 %v11427_v59  ;;  %v14854_v59 = vld [vmem:[%s15666_s16 + $0xef4] sm:$0xf0]  ;;  %v11379_v58 = vor.u32 %v14794_v53, %v11378_v30  ;;  %v11842_v52 = vld [vmem:[%s15666_s16 + $0x10a8] sm:$0xf] }
 0x217   : > { %6005 = vmatpush.bf16.msrb.mxu0 %v11027_v20  ;;  %v14950_v20 = vld [vmem:[%s15666_s16 + $0x11f4] sm:$0xf0]  ;;  %v11970_v53 = vld [vmem:[%s15666_s16 + $0x11a8] sm:$0xf] }
 0x218   : > { %6018 = vmatpush.bf16.msrb.mxu1 %v11155_v14  ;;  %v11619_v14 = vor.u32 %v14854_v59, %v11618_v57  ;;  %v12003_v7 = vor.u32 %v14950_v20, %v12002_v11  ;;  %v14846_v18 = vld [vmem:[%s15666_s16 + $0xeb4] sm:$0xf0]  ;;  %v11570_v1 = vld [vmem:[%s15666_s16 + $0xe88] sm:$0xf] }
 0x219   : > { %6031 = vmatpush.bf16.msrb.mxu2 %v11283_v15  ;;  %v11747_v15 = vor.u32 %v14886_v2, %v11746_v40  ;;  %v14910_v30 = vld [vmem:[%s15666_s16 + $0x10b4] sm:$0xf0]  ;;  %v11698_v2 = vld [vmem:[%s15666_s16 + $0xf88] sm:$0xf] }
 0x21a   : > { %6044 = vmatpush.bf16.msrb.mxu3 %v11411_v24  ;;  %v11730_v24 = vld [vmem:[%s15666_s16 + $0xfc8] sm:$0xf]  ;;  %v14942_v54 = vld [vmem:[%s15666_s16 + $0x11b4] sm:$0xf0]  ;;  %v11843_v40 = vor.u32 %v14910_v30, %v11842_v52 }
 0x21b   : > { %6006 = vmatpush.bf16.msrb.mxu0 %v11011_v41  ;;  %v14946_v41 = vld [vmem:[%s15666_s16 + $0x11d4] sm:$0xf0]  ;;  %v11731_v23 = vor.u32 %v14882_v26, %v11730_v24  ;;  %v11971_v4 = vor.u32 %v14942_v54, %v11970_v53  ;;  %v11954_v20 = vld [vmem:[%s15666_s16 + $0x1188] sm:$0xf] }
 0x21c   : > { %6019 = vmatpush.bf16.msrb.mxu1 %v11139_v46  ;;  %v11859_v46 = vor.u32 %v14914_v36, %v11858_v35  ;;  %v11987_v50 = vor.u32 %v14946_v41, %v11986_v61  ;;  %v14874_v5 = vld [vmem:[%s15666_s16 + $0xf94] sm:$0xf0]  ;;  %v11554_v24 = vld [vmem:[%s15666_s16 + $0xe68] sm:$0xf] }
 0x21d   : > { %6032 = vmatpush.bf16.msrb.mxu2 %v11267_v48  ;;  %v11586_v48 = vld [vmem:[%s15666_s16 + $0xea8] sm:$0xf]  ;;  %v11699_v62 = vor.u32 %v14874_v5, %v11698_v2  ;;  %v14870_v61 = vld [vmem:[%s15666_s16 + $0xf74] sm:$0xf0] }
 0x21e   : > { %6045 = vmatpush.bf16.msrb.mxu3 %v11395_v51  ;;  %v14878_v51 = vld [vmem:[%s15666_s16 + $0xfb4] sm:$0xf0]  ;;  %v11587_v57 = vor.u32 %v14846_v18, %v11586_v48  ;;  %v11682_v26 = vld [vmem:[%s15666_s16 + $0xf68] sm:$0xf] }
 0x21f   : > { %6007 = vmatpush.bf16.msrb.mxu0 %v10995_v0  ;;  %v11715_v59 = vor.u32 %v14878_v51, %v11714_v49  ;;  %v14842_v0 = vld [vmem:[%s15666_s16 + $0xe94] sm:$0xf0]  ;;  %v5801_v11 = vpop.f32.mrf.mxu0  ;;  %v11810_v41 = vld [vmem:[%s15666_s16 + $0x1068] sm:$0xf]  ;;  %v11683_v48 = vor.u32 %v14870_v61, %v11682_v26 }
 0x220   : > { %6020 = vmatpush.bf16.msrb.mxu1 %v11123_v6  ;;  %v11826_v6 = vld [vmem:[%s15666_s16 + $0x1088] sm:$0xf]  ;;  %v14866_v53 = vld [vmem:[%s15666_s16 + $0xf54] sm:$0xf0] }
 0x221   : > { %6033 = vmatpush.bf16.msrb.mxu2 %v11251_v10  ;;  %v14906_v10 = vld [vmem:[%s15666_s16 + $0x1094] sm:$0xf0]  ;;  %v11538_v49 = vld [vmem:[%s15666_s16 + $0xe48] sm:$0xf] }
 0x222   : > { %6046 = vmatpush.bf16.msrb.mxu3 %v11379_v58  ;;  %6008 = vmatmul.bf16.vlgmr.msrb.gmra.mxu0 %v15918_v31  ;;  %v14938_v58 = vld [vmem:[%s15666_s16 + $0x1194] sm:$0xf0]  ;;  %v11827_v21 = vor.u32 %v14906_v10, %v11826_v6  ;;  %v11666_v51 = vld [vmem:[%s15666_s16 + $0xf48] sm:$0xf] }
 0x223   : > { %6052 = vmatpush.bf16.msra.mxu0 %v11619_v14  ;;  %6021 = vmatmul.bf16.vlgmr.msrb.gmra.mxu1 %v15928_v19  ;;  %v5802_v14 = vadd.f32 %v5801_v11, %v16858_v13  ;;  %v11955_v35 = vor.u32 %v14938_v58, %v11954_v20  ;;  %v14902_v13 = vld [vmem:[%s15666_s16 + $0x1074] sm:$0xf0]  ;;  %v11794_v54 = vld [vmem:[%s15666_s16 + $0x1048] sm:$0xf]  ;;  %v11667_v10 = vor.u32 %v14866_v53, %v11666_v51 }
 0x224   : > { %6065 = vmatpush.bf16.msra.mxu1 %v11747_v15  ;;  %6034 = vmatmul.bf16.vlgmr.msrb.gmra.mxu2 %v16004_v29  ;;  %v11571_v15 = vor.u32 %v14842_v0, %v11570_v1  ;;  %v11811_v18 = vor.u32 %v14902_v13, %v11810_v41  ;;  %v11922_v1 = vld [vmem:[%s15666_s16 + $0x1148] sm:$0xf]  ;;  %v14930_v0 = vld [vmem:[%s15666_s16 + $0x1154] sm:$0xf0] }
 0x225   : > { %6078 = vmatpush.bf16.msra.mxu2 %v11875_v16  ;;  %6047 = vmatmul.bf16.vlgmr.msrb.gmra.mxu3 %v16015_v38  ;;  %v5814_v16 = vpop.f32.mrf.mxu1  ;;  %v11522_v20 = vld [vmem:[%s15666_s16 + $0xe28] sm:$0xf]  ;;  %v14830_v58 = vld [vmem:[%s15666_s16 + $0xe34] sm:$0xf0] }
 0x226   : > { %6091 = vmatpush.bf16.msra.mxu3 %v12003_v7  ;;  %v14838_v7 = vld [vmem:[%s15666_s16 + $0xe74] sm:$0xf0]  ;;  %v5815_v36 = vadd.f32 %v5814_v16, %v5802_v14  ;;  %v11650_v14 = vld [vmem:[%s15666_s16 + $0xf28] sm:$0xf]  ;;  %v11523_v26 = vor.u32 %v14830_v58, %v11522_v20 }
 0x227   : > { %6053 = vmatpush.bf16.msra.mxu0 %v11603_v17  ;;  %v11938_v17 = vld [vmem:[%s15666_s16 + $0x1168] sm:$0xf]  ;;  %v5827_v30 = vpop.f32.mrf.mxu2  ;;  %v5803_v2 = vpop.f32.mrf.mxu0  ;;  %v14862_v16 = vld [vmem:[%s15666_s16 + $0xf34] sm:$0xf0] }
 0x228   : > { %6066 = vmatpush.bf16.msra.mxu1 %v11731_v23  ;;  %v14934_v23 = vld [vmem:[%s15666_s16 + $0x1174] sm:$0xf0]  ;;  %v11651_v61 = vor.u32 %v14862_v16, %v11650_v14  ;;  %v11634_v13 = vld [vmem:[%s15666_s16 + $0xf08] sm:$0xf] }
 0x229   : > { %6079 = vmatpush.bf16.msra.mxu2 %v11859_v46  ;;  %v11555_v46 = vor.u32 %v14838_v7, %v11554_v24  ;;  %v11939_v52 = vor.u32 %v14934_v23, %v11938_v17  ;;  %v11906_v24 = vld [vmem:[%s15666_s16 + $0x1128] sm:$0xf]  ;;  %v14926_v7 = vld [vmem:[%s15666_s16 + $0x1134] sm:$0xf0] }
 0x22a   : > { %6092 = vmatpush.bf16.msra.mxu3 %v11987_v50  ;;  %v14834_v50 = vld [vmem:[%s15666_s16 + $0xe54] sm:$0xf0]  ;;  %v11762_v23 = vld [vmem:[%s15666_s16 + $0x1008] sm:$0xf] }
 0x22b   : > { %6054 = vmatpush.bf16.msra.mxu0 %v11587_v57  ;;  %v14898_v57 = vld [vmem:[%s15666_s16 + $0x1054] sm:$0xf0]  ;;  %v12130_v51 = vld [vmem:[%s15666_s16 + $0x12e8] sm:$0xf] }
 0x22c   : > { %6067 = vmatpush.bf16.msra.mxu1 %v11715_v59  ;;  %v5828_v59 = vadd.f32 %v5827_v30, %v5815_v36  ;;  %v11795_v11 = vor.u32 %v14898_v57, %v11794_v54  ;;  %v14826_v36 = vld [vmem:[%s15666_s16 + $0xe14] sm:$0xf0]  ;;  %v12258_v30 = vld [vmem:[%s15666_s16 + $0x13e8] sm:$0xf] }
 0x22d   : > { %6080 = vmatpush.bf16.msra.mxu2 %v11843_v40  ;;  %v5840_v40 = vpop.f32.mrf.mxu3  ;;  %v5816_v5 = vpop.f32.mrf.mxu1  ;;  %v14858_v17 = vld [vmem:[%s15666_s16 + $0xf14] sm:$0xf0]  ;;  %v12514_v2 = vld [vmem:[%s15666_s16 + $0x15e8] sm:$0xf] }
 0x22e   : > { %6093 = vmatpush.bf16.msra.mxu3 %v11971_v4  ;;  %v11539_v4 = vor.u32 %v14834_v50, %v11538_v49  ;;  %v16929_v6 = vadd.f32 %v5840_v40, %v5828_v59  ;;  %v14922_v49 = vld [vmem:[%s15666_s16 + $0x1114] sm:$0xf0]  ;;  %v12386_v59 = vld [vmem:[%s15666_s16 + $0x14e8] sm:$0xf] }
 0x22f   : > { %6055 = vmatpush.bf16.msra.mxu0 %v11571_v15  ;;  %v11923_v15 = vor.u32 %v14930_v0, %v11922_v1  ;;  %v5829_v50 = vpop.f32.mrf.mxu2  ;;  %v15014_v57 = vld [vmem:[%s15666_s16 + $0x13f4] sm:$0xf0]  ;;  %v11635_v1 = vor.u32 %v14858_v17, %v11634_v13  ;;  %v12114_v58 = vld [vmem:[%s15666_s16 + $0x12c8] sm:$0xf] }
 0x230   : > { %6068 = vmatpush.bf16.msra.mxu1 %v11699_v62  ;;  %v11778_v62 = vld [vmem:[%s15666_s16 + $0x1028] sm:$0xf]  ;;  %v15046_v40 = vld [vmem:[%s15666_s16 + $0x14f4] sm:$0xf0] }
 0x231   : > { %6081 = vmatpush.bf16.msra.mxu2 %v11827_v21  ;;  %v14894_v21 = vld [vmem:[%s15666_s16 + $0x1034] sm:$0xf0]  ;;  %v12387_v20 = vor.u32 %v15046_v40, %v12386_v59  ;;  %v12226_v17 = vld [vmem:[%s15666_s16 + $0x13a8] sm:$0xf] }
 0x232   : > { %6094 = vmatpush.bf16.msra.mxu3 %v11955_v35  ;;  %v11506_v35 = vld [vmem:[%s15666_s16 + $0xe08] sm:$0xf]  ;;  %v11779_v41 = vor.u32 %v14894_v21, %v11778_v62  ;;  %v14978_v14 = vld [vmem:[%s15666_s16 + $0x12d4] sm:$0xf0] }
 0x233   : > { %6056 = vmatpush.bf16.msra.mxu0 %v11555_v46  ;;  %v11907_v46 = vor.u32 %v14926_v7, %v11906_v24  ;;  %v11507_v54 = vor.u32 %v14826_v36, %v11506_v35  ;;  %v15010_v62 = vld [vmem:[%s15666_s16 + $0x13d4] sm:$0xf0]  ;;  %v12370_v21 = vld [vmem:[%s15666_s16 + $0x14c8] sm:$0xf]  ;;  %v12115_v35 = vor.u32 %v14978_v14, %v12114_v58 }
 0x234   : > { %6069 = vmatpush.bf16.msra.mxu1 %v11683_v48  ;;  %v14890_v48 = vld [vmem:[%s15666_s16 + $0x1014] sm:$0xf0]  ;;  %v12498_v7 = vld [vmem:[%s15666_s16 + $0x15c8] sm:$0xf] }
 0x235   : > { %6082 = vmatpush.bf16.msra.mxu2 %v11811_v18  ;;  %v11890_v18 = vld [vmem:[%s15666_s16 + $0x1108] sm:$0xf]  ;;  %v5842_v53 = vpop.f32.mrf.mxu3  ;;  %v11763_v0 = vor.u32 %v14890_v48, %v11762_v23  ;;  %v15042_v24 = vld [vmem:[%s15666_s16 + $0x14d4] sm:$0xf0] }
 0x236   : > { %6095 = vmatpush.bf16.msra.mxu3 %v11939_v52  ;;  %v14982_v52 = vld [vmem:[%s15666_s16 + $0x12f4] sm:$0xf0]  ;;  %v11891_v5 = vor.u32 %v14922_v49, %v11890_v18  ;;  %v12354_v48 = vld [vmem:[%s15666_s16 + $0x14a8] sm:$0xf] }
 0x237   : > { %6057 = vmatpush.bf16.msra.mxu0 %v11539_v4  ;;  %v15078_v4 = vld [vmem:[%s15666_s16 + $0x15f4] sm:$0xf0]  ;;  %v12482_v49 = vld [vmem:[%s15666_s16 + $0x15a8] sm:$0xf] }
 0x238   : > { %6070 = vmatpush.bf16.msra.mxu1 %v11667_v10  ;;  %v12131_v10 = vor.u32 %v14982_v52, %v12130_v51  ;;  %v12515_v16 = vor.u32 %v15078_v4, %v12514_v2  ;;  %v14974_v13 = vld [vmem:[%s15666_s16 + $0x12b4] sm:$0xf0]  ;;  %v12082_v53 = vld [vmem:[%s15666_s16 + $0x1288] sm:$0xf] }
 0x239   : > { %6083 = vmatpush.bf16.msra.mxu2 %v11795_v11  ;;  %v12259_v11 = vor.u32 %v15014_v57, %v12258_v30  ;;  %v15038_v18 = vld [vmem:[%s15666_s16 + $0x14b4] sm:$0xf0]  ;;  %v12210_v57 = vld [vmem:[%s15666_s16 + $0x1388] sm:$0xf] }
 0x23a   : > { %6096 = vmatpush.bf16.msra.mxu3 %v11923_v15  ;;  %v12242_v15 = vld [vmem:[%s15666_s16 + $0x13c8] sm:$0xf]  ;;  %v15070_v50 = vld [vmem:[%s15666_s16 + $0x15b4] sm:$0xf0]  ;;  %v12355_v30 = vor.u32 %v15038_v18, %v12354_v48 }
 0x23b   : > { %6058 = vmatpush.bf16.msra.mxu0 %v11523_v26  ;;  %v15074_v26 = vld [vmem:[%s15666_s16 + $0x15d4] sm:$0xf0]  ;;  %v12243_v36 = vor.u32 %v15010_v62, %v12242_v15  ;;  %v12483_v59 = vor.u32 %v15070_v50, %v12482_v49  ;;  %v12466_v4 = vld [vmem:[%s15666_s16 + $0x1588] sm:$0xf] }
 0x23c   : > { %6071 = vmatpush.bf16.msra.mxu1 %v11651_v61  ;;  %v12371_v61 = vor.u32 %v15042_v24, %v12370_v21  ;;  %v12499_v23 = vor.u32 %v15074_v26, %v12498_v7  ;;  %v15002_v40 = vld [vmem:[%s15666_s16 + $0x1394] sm:$0xf0]  ;;  %v12066_v15 = vld [vmem:[%s15666_s16 + $0x1268] sm:$0xf] }
 0x23d   : > { %6084 = vmatpush.bf16.msra.mxu2 %v11779_v41  ;;  %v12098_v41 = vld [vmem:[%s15666_s16 + $0x12a8] sm:$0xf]  ;;  %v12211_v58 = vor.u32 %v15002_v40, %v12210_v57  ;;  %v14998_v7 = vld [vmem:[%s15666_s16 + $0x1374] sm:$0xf0] }
 0x23e   : > { %6097 = vmatpush.bf16.msra.mxu3 %v11907_v46  ;;  %v15006_v46 = vld [vmem:[%s15666_s16 + $0x13b4] sm:$0xf0]  ;;  %v12099_v51 = vor.u32 %v14974_v13, %v12098_v41  ;;  %v12194_v62 = vld [vmem:[%s15666_s16 + $0x1368] sm:$0xf] }
 0x23f   : > { %6059 = vmatpush.bf16.msra.mxu0 %v11507_v54  ;;  %v12227_v52 = vor.u32 %v15006_v46, %v12226_v17  ;;  %v14970_v54 = vld [vmem:[%s15666_s16 + $0x1294] sm:$0xf0]  ;;  %v5853_v2 = vpop.f32.mrf.mxu0  ;;  %v12322_v26 = vld [vmem:[%s15666_s16 + $0x1468] sm:$0xf]  ;;  %v12195_v13 = vor.u32 %v14998_v7, %v12194_v62 }
 0x240   : > { %6072 = vmatpush.bf16.msra.mxu1 %v11635_v1  ;;  %v12338_v1 = vld [vmem:[%s15666_s16 + $0x1488] sm:$0xf]  ;;  %v14962_v46 = vld [vmem:[%s15666_s16 + $0x1254] sm:$0xf0] }
 0x241   : > { %6085 = vmatpush.bf16.msra.mxu2 %v11763_v0  ;;  %v15034_v0 = vld [vmem:[%s15666_s16 + $0x1494] sm:$0xf0]  ;;  %v12178_v48 = vld [vmem:[%s15666_s16 + $0x1348] sm:$0xf] }
 0x242   : > { %6098 = vmatpush.bf16.msra.mxu3 %v11891_v5  ;;  %6060 = vmatmul.bf16.vlgmr.msra.gmra.mxu0 %v16011_v37  ;;  %v15066_v5 = vld [vmem:[%s15666_s16 + $0x1594] sm:$0xf0]  ;;  %v12339_v14 = vor.u32 %v15034_v0, %v12338_v1 }
 0x243   : > { %6104 = vmatpush.bf16.msrb.mxu0 %v12131_v10  ;;  %6073 = vmatmul.bf16.vlgmr.msra.gmra.mxu1 %v16021_v22  ;;  %v5854_v10 = vadd.f32 %v5853_v2, %v16929_v6  ;;  %v12467_v21 = vor.u32 %v15066_v5, %v12466_v4  ;;  %v15030_v6 = vld [vmem:[%s15666_s16 + $0x1474] sm:$0xf0]  ;;  %v12034_v4 = vld [vmem:[%s15666_s16 + $0x1228] sm:$0xf] }
 0x244   : > { %6117 = vmatpush.bf16.msrb.mxu1 %v12259_v11  ;;  %6086 = vmatmul.bf16.vlgmr.msra.gmra.mxu2 %v16086_v60  ;;  %v12083_v11 = vor.u32 %v14970_v54, %v12082_v53  ;;  %v12323_v17 = vor.u32 %v15030_v6, %v12322_v26  ;;  %v14994_v50 = vld [vmem:[%s15666_s16 + $0x1354] sm:$0xf0]  ;;  %v12434_v53 = vld [vmem:[%s15666_s16 + $0x1548] sm:$0xf] }
 0x245   : > { %6130 = vmatpush.bf16.msrb.mxu2 %v12387_v20  ;;  %6099 = vmatmul.bf16.vlgmr.msra.gmra.mxu3 %v16093_v44  ;;  %v5866_v20 = vpop.f32.mrf.mxu1  ;;  %v15058_v54 = vld [vmem:[%s15666_s16 + $0x1554] sm:$0xf0]  ;;  %v12179_v0 = vor.u32 %v14994_v50, %v12178_v48  ;;  %v12146_v6 = vld [vmem:[%s15666_s16 + $0x1308] sm:$0xf] }
 0x246   : > { %6143 = vmatpush.bf16.msrb.mxu3 %v12515_v16  ;;  %v14966_v16 = vld [vmem:[%s15666_s16 + $0x1274] sm:$0xf0]  ;;  %v5867_v24 = vadd.f32 %v5866_v20, %v5854_v10  ;;  %v12162_v10 = vld [vmem:[%s15666_s16 + $0x1328] sm:$0xf] }
 0x247   : > { %6105 = vmatpush.bf16.msrb.mxu0 %v12115_v35  ;;  %v12450_v35 = vld [vmem:[%s15666_s16 + $0x1568] sm:$0xf]  ;;  %v12067_v41 = vor.u32 %v14966_v16, %v12066_v15  ;;  %v14958_v5 = vld [vmem:[%s15666_s16 + $0x1234] sm:$0xf0] }
 0x248   : > { %6118 = vmatpush.bf16.msrb.mxu1 %v12243_v36  ;;  %v15062_v36 = vld [vmem:[%s15666_s16 + $0x1574] sm:$0xf0]  ;;  %v5892_v57 = vpop.f32.mrf.mxu3  ;;  %v12418_v15 = vld [vmem:[%s15666_s16 + $0x1528] sm:$0xf]  ;;  %v12035_v62 = vor.u32 %v14958_v5, %v12034_v4 }
 0x249   : > { %6131 = vmatpush.bf16.msrb.mxu2 %v12371_v61  ;;  %v6524_v61 = vrot.slane %v5867_v24, 6  ;;  %v12451_v49 = vor.u32 %v15062_v36, %v12450_v35  ;;  %v14990_v20 = vld [vmem:[%s15666_s16 + $0x1334] sm:$0xf0]  ;;  %v12274_v36 = vld [vmem:[%s15666_s16 + $0x1408] sm:$0xf] }
 0x24a   : > { %6144 = vmatpush.bf16.msrb.mxu3 %v12499_v23  ;;  %v12050_v23 = vld [vmem:[%s15666_s16 + $0x1248] sm:$0xf]  ;;  %v15054_v16 = vld [vmem:[%s15666_s16 + $0x1534] sm:$0xf0]  ;;  %v12163_v7 = vor.u32 %v14990_v20, %v12162_v10 }
 0x24b   : > { %6106 = vmatpush.bf16.msrb.mxu0 %v12099_v51  ;;  %v16997_v18 = vsel %vm6527_vm0, %v16556_v55, %v6524_v61  ;;  %v12306_v51 = vld [vmem:[%s15666_s16 + $0x1448] sm:$0xf]  ;;  %v12051_v40 = vor.u32 %v14962_v46, %v12050_v23  ;;  %v14954_v24 = vld [vmem:[%s15666_s16 + $0x1214] sm:$0xf0]  ;;  %v12419_v61 = vor.u32 %v15054_v16, %v12418_v15  ;;  %v14400_v16 = vld [vmem:[%s15666_s16 + $0xcc] sm:$0xf] }
 0x24c   : > { %6119 = vmatpush.bf16.msrb.mxu1 %v12227_v52  ;;  %v15026_v52 = vld [vmem:[%s15666_s16 + $0x1454] sm:$0xf0]  ;;  %v12642_v46 = vld [vmem:[%s15666_s16 + $0x16e8] sm:$0xf] }
 0x24d   : > { %6132 = vmatpush.bf16.msrb.mxu2 %v12355_v30  ;;  %v5879_v30 = vpop.f32.mrf.mxu2  ;;  %v5868_v1 = vpop.f32.mrf.mxu1  ;;  %v12307_v2 = vor.u32 %v15026_v52, %v12306_v51  ;;  %v14986_v35 = vld [vmem:[%s15666_s16 + $0x1314] sm:$0xf0]  ;;  %v12626_v5 = vld [vmem:[%s15666_s16 + $0x16c8] sm:$0xf] }
 0x24e   : > { %6145 = vmatpush.bf16.msrb.mxu3 %v12483_v59  ;;  %v5855_v59 = vpop.f32.mrf.mxu0  ;;  %v17004_v55 = vadd.f32 %v5892_v57, %v5879_v30  ;;  %v15110_v48 = vld [vmem:[%s15666_s16 + $0x16f4] sm:$0xf0]  ;;  %v12898_v30 = vld [vmem:[%s15666_s16 + $0x18e8] sm:$0xf] }
 0x24f   : > { %6107 = vmatpush.bf16.msrb.mxu0 %v12083_v11  ;;  %v12435_v11 = vor.u32 %v15058_v54, %v12434_v53  ;;  %v15142_v52 = vld [vmem:[%s15666_s16 + $0x17f4] sm:$0xf0]  ;;  %v12147_v54 = vor.u32 %v14986_v35, %v12146_v6  ;;  %v14404_v59 = vld [vmem:[%s15666_s16 + $0xec] sm:$0xf]  ;;  %v12738_v35 = vld [vmem:[%s15666_s16 + $0x17a8] sm:$0xf] }
 0x250   : > { %6120 = vmatpush.bf16.msrb.mxu1 %v12211_v58  ;;  %v12290_v58 = vld [vmem:[%s15666_s16 + $0x1428] sm:$0xf]  ;;  %v5894_v50 = vpop.f32.mrf.mxu3  ;;  %v15174_v53 = vld [vmem:[%s15666_s16 + $0x18f4] sm:$0xf0] }
 0x251   : > { %6133 = vmatpush.bf16.msrb.mxu2 %v12339_v14  ;;  %v15022_v14 = vld [vmem:[%s15666_s16 + $0x1434] sm:$0xf0]  ;;  %v12899_v4 = vor.u32 %v15174_v53, %v12898_v30  ;;  %v12594_v50 = vld [vmem:[%s15666_s16 + $0x1688] sm:$0xf] }
 0x252   : > { %6146 = vmatpush.bf16.msrb.mxu3 %v12467_v21  ;;  %v12018_v21 = vld [vmem:[%s15666_s16 + $0x1208] sm:$0xf]  ;;  %v12291_v26 = vor.u32 %v15022_v14, %v12290_v58  ;;  %v15106_v10 = vld [vmem:[%s15666_s16 + $0x16d4] sm:$0xf0] }
 0x253   : > { %6108 = vmatpush.bf16.msrb.mxu0 %v12067_v41  ;;  %v15018_v41 = vld [vmem:[%s15666_s16 + $0x1414] sm:$0xf0]  ;;  %v12019_v51 = vor.u32 %v14954_v24, %v12018_v21  ;;  %v12882_v14 = vld [vmem:[%s15666_s16 + $0x18c8] sm:$0xf]  ;;  %v12627_v21 = vor.u32 %v15106_v10, %v12626_v5 }
 0x254   : > { %6121 = vmatpush.bf16.msrb.mxu1 %v12195_v13  ;;  %v12402_v13 = vld [vmem:[%s15666_s16 + $0x1508] sm:$0xf]  ;;  %v12275_v57 = vor.u32 %v15018_v41, %v12274_v36  ;;  %v15138_v58 = vld [vmem:[%s15666_s16 + $0x17d4] sm:$0xf0] }
 0x255   : > { %6134 = vmatpush.bf16.msrb.mxu2 %v12323_v17  ;;  %v15050_v17 = vld [vmem:[%s15666_s16 + $0x1514] sm:$0xf0]  ;;  %v5881_v23 = vpop.f32.mrf.mxu2  ;;  %v12866_v41 = vld [vmem:[%s15666_s16 + $0x18a8] sm:$0xf] }
 0x256   : > { %6147 = vmatpush.bf16.msrb.mxu3 %v12451_v49  ;;  %v12770_v49 = vld [vmem:[%s15666_s16 + $0x17e8] sm:$0xf]  ;;  %v12403_v1 = vor.u32 %v15050_v17, %v12402_v13  ;;  %v15170_v15 = vld [vmem:[%s15666_s16 + $0x18d4] sm:$0xf0]  ;;  %v14396_v17 = vld [vmem:[%s15666_s16 + $0xac] sm:$0xf] }
 0x257   : > { %6109 = vmatpush.bf16.msrb.mxu0 %v12051_v40  ;;  %v9828_v40 = vld [vmem:[%s15666_s16 + $0xf8] sm:$0xf0]  ;;  %v15102_v6 = vld [vmem:[%s15666_s16 + $0x16b4] sm:$0xf0]  ;;  %v12578_v5 = vld [vmem:[%s15666_s16 + $0x1668] sm:$0xf] }
 0x258   : > { %6122 = vmatpush.bf16.msrb.mxu1 %v12179_v0  ;;  %v12643_v0 = vor.u32 %v15110_v48, %v12642_v46  ;;  %v9831_v20 = vor.u32 %v14404_v59, %v9828_v40  ;;  %v15166_v13 = vld [vmem:[%s15666_s16 + $0x18b4] sm:$0xf0]  ;;  %v9796_v23 = vld [vmem:[%s15666_s16 + $0xb8] sm:$0xf0]  ;;  %v14392_v59 = vld [vmem:[%s15666_s16 + $0x8c] sm:$0xf] }
 0x259   : > { %6135 = vmatpush.bf16.msrb.mxu2 %v12307_v2  ;;  %v12771_v2 = vor.u32 %v15142_v52, %v12770_v49  ;;  %v12867_v49 = vor.u32 %v15166_v13, %v12866_v41  ;;  %v12722_v52 = vld [vmem:[%s15666_s16 + $0x1788] sm:$0xf]  ;;  %v9799_v30 = vor.u32 %v14396_v17, %v9796_v23  ;;  %v15130_v53 = vld [vmem:[%s15666_s16 + $0x1794] sm:$0xf0]  ;;  %v9780_v40 = vld [vmem:[%s15666_s16 + $0x98] sm:$0xf0] }
 0x25a   : > { %6148 = vmatpush.bf16.msrb.mxu3 %v12435_v11  ;;  %v12754_v11 = vld [vmem:[%s15666_s16 + $0x17c8] sm:$0xf]  ;;  %v15094_v10 = vld [vmem:[%s15666_s16 + $0x1674] sm:$0xf0] }
 0x25b   : > { %6110 = vmatpush.bf16.msrb.mxu0 %v12035_v62  ;;  %v9812_v62 = vld [vmem:[%s15666_s16 + $0xd8] sm:$0xf0]  ;;  %v12755_v24 = vor.u32 %v15138_v58, %v12754_v11  ;;  %v12706_v11 = vld [vmem:[%s15666_s16 + $0x1768] sm:$0xf]  ;;  %v15122_v17 = vld [vmem:[%s15666_s16 + $0x1754] sm:$0xf0] }
 0x25c   : > { %6123 = vmatpush.bf16.msrb.mxu1 %v12163_v7  ;;  %v12883_v7 = vor.u32 %v15170_v15, %v12882_v14  ;;  %v9815_v36 = vor.u32 %v14400_v16, %v9812_v62  ;;  %v9783_v14 = vor.u32 %v14392_v59, %v9780_v40  ;;  %v15126_v15 = vld [vmem:[%s15666_s16 + $0x1774] sm:$0xf0]  ;;  %v12834_v16 = vld [vmem:[%s15666_s16 + $0x1868] sm:$0xf] }
 0x25d   : > { %6136 = vmatpush.bf16.msrb.mxu2 %v12291_v26  ;;  %v12610_v26 = vld [vmem:[%s15666_s16 + $0x16a8] sm:$0xf]  ;;  %v15158_v62 = vld [vmem:[%s15666_s16 + $0x1874] sm:$0xf0] }
 0x25e   : > { %6149 = vmatpush.bf16.msrb.mxu3 %v12419_v61  ;;  %v15134_v61 = vld [vmem:[%s15666_s16 + $0x17b4] sm:$0xf0]  ;;  %v12611_v46 = vor.u32 %v15102_v6, %v12610_v26  ;;  %v12579_v26 = vor.u32 %v15094_v10, %v12578_v5  ;;  %v12835_v6 = vor.u32 %v15158_v62, %v12834_v16  ;;  %v12818_v23 = vld [vmem:[%s15666_s16 + $0x1848] sm:$0xf] }
 0x25f   : > { %6111 = vmatpush.bf16.msrb.mxu0 %v12019_v51  ;;  %v12739_v48 = vor.u32 %v15134_v61, %v12738_v35  ;;  %v15098_v51 = vld [vmem:[%s15666_s16 + $0x1694] sm:$0xf0]  ;;  %v12562_v35 = vld [vmem:[%s15666_s16 + $0x1648] sm:$0xf] }
 0x260   : > { %6124 = vmatpush.bf16.msrb.mxu1 %v12147_v54  ;;  %v12850_v54 = vld [vmem:[%s15666_s16 + $0x1888] sm:$0xf]  ;;  %v5918_v58 = vpop.f32.mrf.mxu1  ;;  %v15086_v40 = vld [vmem:[%s15666_s16 + $0x1634] sm:$0xf0] }
 0x261   : > { %6137 = vmatpush.bf16.msrb.mxu2 %v12275_v57  ;;  %v15162_v57 = vld [vmem:[%s15666_s16 + $0x1894] sm:$0xf0]  ;;  %v12690_v61 = vld [vmem:[%s15666_s16 + $0x1748] sm:$0xf] }
 0x262   : > { %6150 = vmatpush.bf16.msrb.mxu3 %v12403_v1  ;;  %6112 = vmatmul.bf16.vlgmr.msrb.gmra.mxu0 %v16091_v63  ;;  %v12595_v1 = vor.u32 %v15098_v51, %v12594_v50  ;;  %v14384_v50 = vld [vmem:[%s15666_s16 + $0x4c] sm:$0xf]  ;;  %v9748_v51 = vld [vmem:[%s15666_s16 + $0x58] sm:$0xf0]  ;;  %v12546_v59 = vld [vmem:[%s15666_s16 + $0x1628] sm:$0xf] }
 0x263   : > { %6156 = vmatpush.bf16.msra.mxu0 %v12643_v0  ;;  %6125 = vmatmul.bf16.vlgmr.msrb.gmra.mxu1 %v16097_v47  ;;  %v5905_v0 = vpop.f32.mrf.mxu0  ;;  %v12802_v5 = vld [vmem:[%s15666_s16 + $0x1828] sm:$0xf]  ;;  %v15150_v10 = vld [vmem:[%s15666_s16 + $0x1834] sm:$0xf0] }
 0x264   : > { %6169 = vmatpush.bf16.msra.mxu1 %v12771_v2  ;;  %6138 = vmatmul.bf16.vlgmr.msrb.gmra.mxu2 %v16165_v3  ;;  %v12723_v2 = vor.u32 %v15130_v53, %v12722_v52  ;;  %v12803_v62 = vor.u32 %v15150_v10, %v12802_v5  ;;  %v10068_v5 = vld [vmem:[%s15666_s16 + $0x2d8] sm:$0xf0]  ;;  %v14496_v10 = vld [vmem:[%s15666_s16 + $0x3cc] sm:$0xf] }
 0x265   : > { %6182 = vmatpush.bf16.msra.mxu2 %v12899_v4  ;;  %6151 = vmatmul.bf16.vlgmr.msrb.gmra.mxu3 %v16172_v9  ;;  %v12851_v4 = vor.u32 %v15162_v57, %v12850_v54  ;;  %v12691_v54 = vor.u32 %v15122_v17, %v12690_v61  ;;  %v14468_v17 = vld [vmem:[%s15666_s16 + $0x2ec] sm:$0xf] }
 0x266   : > { %6195 = vmatpush.bf16.msra.mxu3 %v9831_v20  ;;  %v5906_v20 = vadd.f32 %v5905_v0, %v17004_v55  ;;  %v12707_v55 = vor.u32 %v15126_v15, %v12706_v11  ;;  %v14380_v11 = vld [vmem:[%s15666_s16 + $0x2c] sm:$0xf]  ;;  %v15082_v15 = vld [vmem:[%s15666_s16 + $0x1614] sm:$0xf0] }
 0x267   : > { %6157 = vmatpush.bf16.msra.mxu0 %v12627_v21  ;;  %v14388_v21 = vld [vmem:[%s15666_s16 + $0x6c] sm:$0xf]  ;;  %v5931_v41 = vpop.f32.mrf.mxu2 }
 0x268   : > { %6170 = vmatpush.bf16.msra.mxu1 %v12755_v24  ;;  %v9764_v24 = vld [vmem:[%s15666_s16 + $0x78] sm:$0xf0]  ;;  %v5920_v0 = vpop.f32.mrf.mxu1 }
 0x269   : > { %6183 = vmatpush.bf16.msra.mxu2 %v12883_v7  ;;  %v5919_v7 = vadd.f32 %v5918_v58, %v5906_v20  ;;  %v9767_v13 = vor.u32 %v14388_v21, %v9764_v24  ;;  %v9732_v20 = vld [vmem:[%s15666_s16 + $0x38] sm:$0xf0]  ;;  %v12547_v58 = vor.u32 %v15086_v40, %v12546_v59  ;;  %v12658_v21 = vld [vmem:[%s15666_s16 + $0x1708] sm:$0xf]  ;;  %v15114_v24 = vld [vmem:[%s15666_s16 + $0x1714] sm:$0xf0] }
 0x26a   : > { %6196 = vmatpush.bf16.msra.mxu3 %v9815_v36  ;;  %v15090_v36 = vld [vmem:[%s15666_s16 + $0x1654] sm:$0xf0]  ;;  %v9940_v0 = vld [vmem:[%s15666_s16 + $0x1d8] sm:$0xf0] }
 0x26b   : > { %6158 = vmatpush.bf16.msra.mxu0 %v12611_v46  ;;  %v15154_v46 = vld [vmem:[%s15666_s16 + $0x1854] sm:$0xf0]  ;;  %v12563_v52 = vor.u32 %v15090_v36, %v12562_v35  ;;  %v5907_v53 = vpop.f32.mrf.mxu0  ;;  %v14376_v35 = vld [vmem:[%s15666_s16 + $0xc] sm:$0xf]  ;;  %v9716_v36 = vld [vmem:[%s15666_s16 + $0x18] sm:$0xf0] }
 0x26c   : > { %6171 = vmatpush.bf16.msra.mxu1 %v12739_v48  ;;  %v5932_v48 = vadd.f32 %v5931_v41, %v5919_v7  ;;  %v12819_v57 = vor.u32 %v15154_v46, %v12818_v23  ;;  %v12786_v7 = vld [vmem:[%s15666_s16 + $0x1808] sm:$0xf]  ;;  %v14436_v41 = vld [vmem:[%s15666_s16 + $0x1ec] sm:$0xf]  ;;  %v10084_v46 = vld [vmem:[%s15666_s16 + $0x2f8] sm:$0xf0] }
 0x26d   : > { %6184 = vmatpush.bf16.msra.mxu2 %v12867_v49  ;;  %v5944_v49 = vpop.f32.mrf.mxu3  ;;  %v10340_v53 = vld [vmem:[%s15666_s16 + $0x4f8] sm:$0xf0]  ;;  %v10087_v59 = vor.u32 %v14468_v17, %v10084_v46  ;;  %v14424_v17 = vld [vmem:[%s15666_s16 + $0x18c] sm:$0xf] }
 0x26e   : > { %6197 = vmatpush.bf16.msra.mxu3 %v9799_v30  ;;  %v17075_v30 = vadd.f32 %v5944_v49, %v5932_v48  ;;  %v14500_v48 = vld [vmem:[%s15666_s16 + $0x3ec] sm:$0xf]  ;;  %v10212_v49 = vld [vmem:[%s15666_s16 + $0x3f8] sm:$0xf0] }
 0x26f   : > { %6159 = vmatpush.bf16.msra.mxu0 %v12595_v1  ;;  %v12674_v1 = vld [vmem:[%s15666_s16 + $0x1728] sm:$0xf]  ;;  %v10215_v40 = vor.u32 %v14500_v48, %v10212_v49  ;;  %v14456_v46 = vld [vmem:[%s15666_s16 + $0x28c] sm:$0xf]  ;;  %v10036_v49 = vld [vmem:[%s15666_s16 + $0x298] sm:$0xf0] }
 0x270   : > { %6172 = vmatpush.bf16.msra.mxu1 %v12723_v2  ;;  %v9751_v2 = vor.u32 %v14384_v50, %v9748_v51  ;;  %v12659_v50 = vor.u32 %v15114_v24, %v12658_v21  ;;  %v9924_v21 = vld [vmem:[%s15666_s16 + $0x1b8] sm:$0xf0]  ;;  %v14460_v24 = vld [vmem:[%s15666_s16 + $0x2ac] sm:$0xf] }
 0x271   : > { %6185 = vmatpush.bf16.msra.mxu2 %v12851_v4  ;;  %v15118_v4 = vld [vmem:[%s15666_s16 + $0x1734] sm:$0xf0] }
 0x272   : > { %6198 = vmatpush.bf16.msra.mxu3 %v9783_v14  ;;  %v12530_v14 = vld [vmem:[%s15666_s16 + $0x1608] sm:$0xf]  ;;  %v12675_v16 = vor.u32 %v15118_v4, %v12674_v1  ;;  %v14432_v1 = vld [vmem:[%s15666_s16 + $0x1cc] sm:$0xf] }
 0x273   : > { %6160 = vmatpush.bf16.msra.mxu0 %v12579_v26  ;;  %v5933_v26 = vpop.f32.mrf.mxu2  ;;  %v12531_v23 = vor.u32 %v15082_v15, %v12530_v14  ;;  %v9943_v14 = vor.u32 %v14432_v1, %v9940_v0  ;;  %v14420_v0 = vld [vmem:[%s15666_s16 + $0x16c] sm:$0xf] }
 0x274   : > { %6173 = vmatpush.bf16.msra.mxu1 %v12707_v55  ;;  %v9735_v55 = vor.u32 %v14380_v11, %v9732_v20  ;;  %v10196_v11 = vld [vmem:[%s15666_s16 + $0x3d8] sm:$0xf0]  ;;  %v14528_v20 = vld [vmem:[%s15666_s16 + $0x4cc] sm:$0xf] }
 0x275   : > { %6186 = vmatpush.bf16.msra.mxu2 %v12835_v6  ;;  %v15146_v6 = vld [vmem:[%s15666_s16 + $0x1814] sm:$0xf0]  ;;  %v5946_v61 = vpop.f32.mrf.mxu3  ;;  %v10052_v26 = vld [vmem:[%s15666_s16 + $0x2b8] sm:$0xf0] }
 0x276   : > { %6199 = vmatpush.bf16.msra.mxu3 %v9767_v13  ;;  %v9956_v13 = vld [vmem:[%s15666_s16 + $0x1f8] sm:$0xf0]  ;;  %v12787_v51 = vor.u32 %v15146_v6, %v12786_v7 }
 0x277   : > { %6161 = vmatpush.bf16.msra.mxu0 %v12563_v52  ;;  %v14532_v52 = vld [vmem:[%s15666_s16 + $0x4ec] sm:$0xf]  ;;  %v10180_v6 = vld [vmem:[%s15666_s16 + $0x3b8] sm:$0xf0] }
 0x278   : > { %6174 = vmatpush.bf16.msra.mxu1 %v12691_v54  ;;  %v9719_v54 = vor.u32 %v14376_v35, %v9716_v36  ;;  %v10343_v4 = vor.u32 %v14532_v52, %v10340_v53  ;;  %v14524_v35 = vld [vmem:[%s15666_s16 + $0x4ac] sm:$0xf]  ;;  %v10308_v36 = vld [vmem:[%s15666_s16 + $0x4b8] sm:$0xf0] }
 0x279   : > { %6187 = vmatpush.bf16.msra.mxu2 %v12819_v57  ;;  %v9959_v57 = vor.u32 %v14436_v41, %v9956_v13  ;;  %v10055_v41 = vor.u32 %v14460_v24, %v10052_v26  ;;  %v10311_v48 = vor.u32 %v14524_v35, %v10308_v36  ;;  %v14520_v53 = vld [vmem:[%s15666_s16 + $0x48c] sm:$0xf]  ;;  %v9876_v24 = vld [vmem:[%s15666_s16 + $0x158] sm:$0xf0] }
 0x27a   : > { %6200 = vmatpush.bf16.msra.mxu3 %v9751_v2  ;;  %v14464_v2 = vld [vmem:[%s15666_s16 + $0x2cc] sm:$0xf]  ;;  %v10132_v36 = vld [vmem:[%s15666_s16 + $0x358] sm:$0xf0] }
 0x27b   : > { %6162 = vmatpush.bf16.msra.mxu0 %v12547_v58  ;;  %v10324_v58 = vld [vmem:[%s15666_s16 + $0x4d8] sm:$0xf0]  ;;  %v10071_v15 = vor.u32 %v14464_v2, %v10068_v5  ;;  %v14480_v35 = vld [vmem:[%s15666_s16 + $0x34c] sm:$0xf] }
 0x27c   : > { %6175 = vmatpush.bf16.msra.mxu1 %v12675_v16  ;;  %v10199_v16 = vor.u32 %v14496_v10, %v10196_v11  ;;  %v10327_v7 = vor.u32 %v14528_v20, %v10324_v58  ;;  %v9892_v2 = vld [vmem:[%s15666_s16 + $0x178] sm:$0xf0]  ;;  %v14484_v20 = vld [vmem:[%s15666_s16 + $0x36c] sm:$0xf] }
 0x27d   : > { %6188 = vmatpush.bf16.msra.mxu2 %v12803_v62  ;;  %v14428_v62 = vld [vmem:[%s15666_s16 + $0x1ac] sm:$0xf]  ;;  %v10020_v11 = vld [vmem:[%s15666_s16 + $0x278] sm:$0xf0] }
 0x27e   : > { %6201 = vmatpush.bf16.msra.mxu3 %v9735_v55  ;;  %v14492_v55 = vld [vmem:[%s15666_s16 + $0x3ac] sm:$0xf]  ;;  %v9927_v61 = vor.u32 %v14428_v62, %v9924_v21 }
 0x27f   : > { %6163 = vmatpush.bf16.msra.mxu0 %v12531_v23  ;;  %v10183_v13 = vor.u32 %v14492_v55, %v10180_v6  ;;  %v9908_v23 = vld [vmem:[%s15666_s16 + $0x198] sm:$0xf0]  ;;  %v5957_v52 = vpop.f32.mrf.mxu0  ;;  %v14516_v58 = vld [vmem:[%s15666_s16 + $0x46c] sm:$0xf] }
 0x280   : > { %6176 = vmatpush.bf16.msra.mxu1 %v12659_v50  ;;  %v14488_v50 = vld [vmem:[%s15666_s16 + $0x38c] sm:$0xf]  ;;  %v10004_v6 = vld [vmem:[%s15666_s16 + $0x258] sm:$0xf0] }
 0x281   : > { %6189 = vmatpush.bf16.msra.mxu2 %v12787_v51  ;;  %v10164_v51 = vld [vmem:[%s15666_s16 + $0x398] sm:$0xf0]  ;;  %v14416_v21 = vld [vmem:[%s15666_s16 + $0x14c] sm:$0xf] }
 0x282   : > { %6202 = vmatpush.bf16.msra.mxu3 %v9719_v54  ;;  %6164 = vmatmul.bf16.vlgmr.msra.gmra.mxu0 %v16170_v8  ;;  %v10292_v54 = vld [vmem:[%s15666_s16 + $0x498] sm:$0xf0]  ;;  %v10167_v1 = vor.u32 %v14488_v50, %v10164_v51  ;;  %v10135_v51 = vor.u32 %v14480_v35, %v10132_v36  ;;  %v14628_v36 = vld [vmem:[%s15666_s16 + $0x7ec] sm:$0xf] }
 0x283   : > { %6208 = vmatpush.bf16.msrb.mxu0 %v9959_v57  ;;  %6177 = vmatmul.bf16.vlgmr.msra.gmra.mxu1 %v16176_v12  ;;  %v9911_v57 = vor.u32 %v14424_v17, %v9908_v23  ;;  %v10295_v5 = vor.u32 %v14520_v53, %v10292_v54  ;;  %v10260_v17 = vld [vmem:[%s15666_s16 + $0x458] sm:$0xf0]  ;;  %v14444_v54 = vld [vmem:[%s15666_s16 + $0x22c] sm:$0xf] }
 0x284   : > { %6221 = vmatpush.bf16.msrb.mxu1 %v10087_v59  ;;  %6190 = vmatmul.bf16.vlgmr.msra.gmra.mxu2 %v16244_v56  ;;  %v5970_v59 = vpop.f32.mrf.mxu1  ;;  %v9860_v53 = vld [vmem:[%s15666_s16 + $0x138] sm:$0xf0] }
 0x285   : > { %6234 = vmatpush.bf16.msrb.mxu2 %v10215_v40  ;;  %6203 = vmatmul.bf16.vlgmr.msra.gmra.mxu3 %v15775_v28  ;;  %v5958_v28 = vadd.f32 %v5957_v52, %v17075_v30  ;;  %v10039_v40 = vor.u32 %v14456_v46, %v10036_v49  ;;  %v10148_v30 = vld [vmem:[%s15666_s16 + $0x378] sm:$0xf0]  ;;  %v9879_v46 = vor.u32 %v14416_v21, %v9876_v24  ;;  %v14412_v52 = vld [vmem:[%s15666_s16 + $0x12c] sm:$0xf] }
 0x286   : > { %6247 = vmatpush.bf16.msrb.mxu3 %v10343_v4  ;;  %v14452_v4 = vld [vmem:[%s15666_s16 + $0x26c] sm:$0xf]  ;;  %v10151_v62 = vor.u32 %v14484_v20, %v10148_v30  ;;  %v9972_v30 = vld [vmem:[%s15666_s16 + $0x218] sm:$0xf0] }
 0x287   : > { %6209 = vmatpush.bf16.msrb.mxu0 %v9943_v14  ;;  %v5971_v10 = vadd.f32 %v5970_v59, %v5958_v28  ;;  %v10276_v14 = vld [vmem:[%s15666_s16 + $0x478] sm:$0xf0]  ;;  %v5983_v55 = vpop.f32.mrf.mxu2  ;;  %v5959_v23 = vpop.f32.mrf.mxu0  ;;  %v14476_v59 = vld [vmem:[%s15666_s16 + $0x32c] sm:$0xf] }
 0x288   : > { %6222 = vmatpush.bf16.msrb.mxu1 %v10071_v15  ;;  %v9895_v15 = vor.u32 %v14420_v0, %v9892_v2  ;;  %v10279_v26 = vor.u32 %v14516_v58, %v10276_v14  ;;  %v10244_v0 = vld [vmem:[%s15666_s16 + $0x438] sm:$0xf0]  ;;  %v9863_v2 = vor.u32 %v14412_v52, %v9860_v53  ;;  %v14440_v20 = vld [vmem:[%s15666_s16 + $0x20c] sm:$0xf] }
 0x289   : > { %6235 = vmatpush.bf16.msrb.mxu2 %v10199_v16  ;;  %v10023_v16 = vor.u32 %v14452_v4, %v10020_v11  ;;  %v14408_v4 = vld [vmem:[%s15666_s16 + $0x10c] sm:$0xf]  ;;  %v10596_v35 = vld [vmem:[%s15666_s16 + $0x6f8] sm:$0xf0] }
 0x28a   : > { %6248 = vmatpush.bf16.msrb.mxu3 %v10327_v7  ;;  %v14448_v7 = vld [vmem:[%s15666_s16 + $0x24c] sm:$0xf]  ;;  %v10852_v23 = vld [vmem:[%s15666_s16 + $0x8f8] sm:$0xf0] }
 0x28b   : > { %6210 = vmatpush.bf16.msrb.mxu0 %v9927_v61  ;;  %v5984_v61 = vadd.f32 %v5983_v55, %v5971_v10  ;;  %v10007_v50 = vor.u32 %v14448_v7, %v10004_v6  ;;  %v14472_v58 = vld [vmem:[%s15666_s16 + $0x30c] sm:$0xf]  ;;  %v10468_v7 = vld [vmem:[%s15666_s16 + $0x5f8] sm:$0xf0] }
 0x28c   : > { %6223 = vmatpush.bf16.msrb.mxu1 %v10055_v41  ;;  %v5996_v41 = vpop.f32.mrf.mxu3  ;;  %v14564_v24 = vld [vmem:[%s15666_s16 + $0x5ec] sm:$0xf]  ;;  %v10452_v53 = vld [vmem:[%s15666_s16 + $0x5d8] sm:$0xf0] }
 0x28d   : > { %6236 = vmatpush.bf16.msrb.mxu2 %v10183_v13  ;;  %v14512_v13 = vld [vmem:[%s15666_s16 + $0x44c] sm:$0xf]  ;;  %v17146_v49 = vadd.f32 %v5996_v41, %v5984_v61  ;;  %v10724_v61 = vld [vmem:[%s15666_s16 + $0x7f8] sm:$0xf0]  ;;  %v9975_v41 = vor.u32 %v14440_v20, %v9972_v30 }
 0x28e   : > { %6249 = vmatpush.bf16.msrb.mxu3 %v10311_v48  ;;  %v5972_v48 = vpop.f32.mrf.mxu1  ;;  %v10263_v28 = vor.u32 %v14512_v13, %v10260_v17  ;;  %v14660_v17 = vld [vmem:[%s15666_s16 + $0x8ec] sm:$0xf] }
 0x28f   : > { %6211 = vmatpush.bf16.msrb.mxu0 %v9911_v57  ;;  %v9988_v57 = vld [vmem:[%s15666_s16 + $0x238] sm:$0xf0]  ;;  %v5985_v21 = vpop.f32.mrf.mxu2  ;;  %v10471_v48 = vor.u32 %v14564_v24, %v10468_v7  ;;  %v14560_v52 = vld [vmem:[%s15666_s16 + $0x5cc] sm:$0xf] }
 0x290   : > { %6224 = vmatpush.bf16.msrb.mxu1 %v10039_v40  ;;  %v10116_v40 = vld [vmem:[%s15666_s16 + $0x338] sm:$0xf0]  ;;  %v9991_v10 = vor.u32 %v14444_v54, %v9988_v57  ;;  %v14592_v54 = vld [vmem:[%s15666_s16 + $0x6cc] sm:$0xf] }
 0x291   : > { %6237 = vmatpush.bf16.msrb.mxu2 %v10167_v1  ;;  %v14508_v1 = vld [vmem:[%s15666_s16 + $0x42c] sm:$0xf]  ;;  %v10119_v11 = vor.u32 %v14476_v59, %v10116_v40  ;;  %v10580_v57 = vld [vmem:[%s15666_s16 + $0x6d8] sm:$0xf0] }
 0x292   : > { %6250 = vmatpush.bf16.msrb.mxu3 %v10295_v5  ;;  %v9844_v5 = vld [vmem:[%s15666_s16 + $0x118] sm:$0xf0]  ;;  %v10247_v14 = vor.u32 %v14508_v1, %v10244_v0  ;;  %v14624_v59 = vld [vmem:[%s15666_s16 + $0x7cc] sm:$0xf] }
 0x293   : > { %6212 = vmatpush.bf16.msrb.mxu0 %v9895_v15  ;;  %v10100_v15 = vld [vmem:[%s15666_s16 + $0x318] sm:$0xf0]  ;;  %v9847_v6 = vor.u32 %v14408_v4, %v9844_v5  ;;  %v14656_v1 = vld [vmem:[%s15666_s16 + $0x8cc] sm:$0xf]  ;;  %v10583_v4 = vor.u32 %v14592_v54, %v10580_v57 }
 0x294   : > { %6225 = vmatpush.bf16.msrb.mxu1 %v10023_v16  ;;  %v14504_v16 = vld [vmem:[%s15666_s16 + $0x40c] sm:$0xf]  ;;  %v5998_v55 = vpop.f32.mrf.mxu3  ;;  %v10103_v13 = vor.u32 %v14472_v58, %v10100_v15  ;;  %v10708_v40 = vld [vmem:[%s15666_s16 + $0x7d8] sm:$0xf0] }
 0x295   : > { %6238 = vmatpush.bf16.msrb.mxu2 %v10151_v62  ;;  %v10228_v62 = vld [vmem:[%s15666_s16 + $0x418] sm:$0xf0]  ;;  %v10711_v5 = vor.u32 %v14624_v59, %v10708_v40  ;;  %v14588_v20 = vld [vmem:[%s15666_s16 + $0x6ac] sm:$0xf] }
 0x296   : > { %6251 = vmatpush.bf16.msrb.mxu3 %v10279_v26  ;;  %v14596_v26 = vld [vmem:[%s15666_s16 + $0x6ec] sm:$0xf]  ;;  %v10836_v0 = vld [vmem:[%s15666_s16 + $0x8d8] sm:$0xf0] }
 0x297   : > { %6213 = vmatpush.bf16.msrb.mxu0 %v9879_v46  ;;  %v10231_v46 = vor.u32 %v14504_v16, %v10228_v62  ;;  %v10839_v30 = vor.u32 %v14656_v1, %v10836_v0  ;;  %v10564_v58 = vld [vmem:[%s15666_s16 + $0x6b8] sm:$0xf0]  ;;  %v14652_v16 = vld [vmem:[%s15666_s16 + $0x8ac] sm:$0xf] }
 0x298   : > { %6226 = vmatpush.bf16.msrb.mxu1 %v10007_v50  ;;  %v10599_v50 = vor.u32 %v14596_v26, %v10596_v35  ;;  %v10692_v15 = vld [vmem:[%s15666_s16 + $0x7b8] sm:$0xf0]  ;;  %v14552_v7 = vld [vmem:[%s15666_s16 + $0x58c] sm:$0xf] }
 0x299   : > { %6239 = vmatpush.bf16.msrb.mxu2 %v10135_v51  ;;  %v10727_v51 = vor.u32 %v14628_v36, %v10724_v61  ;;  %v10820_v62 = vld [vmem:[%s15666_s16 + $0x8b8] sm:$0xf0]  ;;  %v14648_v61 = vld [vmem:[%s15666_s16 + $0x88c] sm:$0xf] }
 0x29a   : > { %6252 = vmatpush.bf16.msrb.mxu3 %v10263_v28  ;;  %v10855_v28 = vor.u32 %v14660_v17, %v10852_v23  ;;  %v10420_v26 = vld [vmem:[%s15666_s16 + $0x598] sm:$0xf0]  ;;  %v14644_v57 = vld [vmem:[%s15666_s16 + $0x86c] sm:$0xf] }
 0x29b   : > { %6214 = vmatpush.bf16.msrb.mxu0 %v9863_v2  ;;  %v10455_v2 = vor.u32 %v14560_v52, %v10452_v53  ;;  %v10548_v55 = vld [vmem:[%s15666_s16 + $0x698] sm:$0xf0] }
 0x29c   : > { %6227 = vmatpush.bf16.msrb.mxu1 %v9991_v10  ;;  %v14556_v10 = vld [vmem:[%s15666_s16 + $0x5ac] sm:$0xf]  ;;  %v10676_v35 = vld [vmem:[%s15666_s16 + $0x798] sm:$0xf0] }
 0x29d   : > { %6240 = vmatpush.bf16.msrb.mxu2 %v10119_v11  ;;  %v10436_v11 = vld [vmem:[%s15666_s16 + $0x5b8] sm:$0xf0] }
 0x29e   : > { %6253 = vmatpush.bf16.msrb.mxu3 %v10247_v14  ;;  %v14620_v14 = vld [vmem:[%s15666_s16 + $0x7ac] sm:$0xf]  ;;  %v10439_v21 = vor.u32 %v14556_v10, %v10436_v11  ;;  %v10532_v54 = vld [vmem:[%s15666_s16 + $0x678] sm:$0xf0] }
 0x29f   : > { %6215 = vmatpush.bf16.msrb.mxu0 %v9847_v6  ;;  %v10695_v24 = vor.u32 %v14620_v14, %v10692_v15  ;;  %v14616_v6 = vld [vmem:[%s15666_s16 + $0x78c] sm:$0xf]  ;;  %v6009_v36 = vpop.f32.mrf.mxu0  ;;  %v10788_v59 = vld [vmem:[%s15666_s16 + $0x878] sm:$0xf0] }
 0x2a0   : > { %6228 = vmatpush.bf16.msrb.mxu1 %v9975_v41  ;;  %v10804_v41 = vld [vmem:[%s15666_s16 + $0x898] sm:$0xf0]  ;;  %v6022_v17 = vpop.f32.mrf.mxu1  ;;  %v10791_v10 = vor.u32 %v14644_v57, %v10788_v59 }
 0x2a1   : > { %6241 = vmatpush.bf16.msrb.mxu2 %v10103_v13  ;;  %v10423_v13 = vor.u32 %v14552_v7, %v10420_v26  ;;  %v10807_v52 = vor.u32 %v14648_v61, %v10804_v41  ;;  %v14604_v61 = vld [vmem:[%s15666_s16 + $0x72c] sm:$0xf]  ;;  %v10628_v41 = vld [vmem:[%s15666_s16 + $0x738] sm:$0xf0] }
 0x2a2   : > { %6254 = vmatpush.bf16.msrb.mxu3 %v10231_v46  ;;  %6216 = vmatmul.bf16.vlgmr.msrb.gmra.mxu0 %v15781_v34  ;;  %v14584_v34 = vld [vmem:[%s15666_s16 + $0x68c] sm:$0xf]  ;;  %v10679_v46 = vor.u32 %v14616_v6, %v10676_v35  ;;  %v10740_v57 = vld [vmem:[%s15666_s16 + $0x818] sm:$0xf0] }
 0x2a3   : > { %6260 = vmatpush.bf16.msra.mxu0 %v10471_v48  ;;  %6229 = vmatmul.bf16.vlgmr.msrb.gmra.mxu1 %v15773_v27  ;;  %v6010_v27 = vadd.f32 %v6009_v36, %v17146_v49  ;;  %v10551_v23 = vor.u32 %v14584_v34, %v10548_v55  ;;  %v14548_v48 = vld [vmem:[%s15666_s16 + $0x56c] sm:$0xf]  ;;  %v10660_v49 = vld [vmem:[%s15666_s16 + $0x778] sm:$0xf0] }
 0x2a4   : > { %6273 = vmatpush.bf16.msra.mxu1 %v10599_v50  ;;  %6242 = vmatmul.bf16.vlgmr.msrb.gmra.mxu2 %v15779_v33  ;;  %v10567_v33 = vor.u32 %v14588_v20, %v10564_v58  ;;  %v10404_v50 = vld [vmem:[%s15666_s16 + $0x578] sm:$0xf0]  ;;  %v14572_v6 = vld [vmem:[%s15666_s16 + $0x62c] sm:$0xf] }
 0x2a5   : > { %6286 = vmatpush.bf16.msra.mxu2 %v10727_v51  ;;  %6255 = vmatmul.bf16.vlgmr.msrb.gmra.mxu3 %v15831_v42  ;;  %v10823_v42 = vor.u32 %v14652_v16, %v10820_v62  ;;  %v14580_v51 = vld [vmem:[%s15666_s16 + $0x66c] sm:$0xf]  ;;  %v6023_v53 = vadd.f32 %v6022_v17, %v6010_v27  ;;  %v10407_v40 = vor.u32 %v14548_v48, %v10404_v50  ;;  %v10516_v20 = vld [vmem:[%s15666_s16 + $0x658] sm:$0xf0] }
 0x2a6   : > { %6299 = vmatpush.bf16.msra.mxu3 %v10855_v28  ;;  %v14612_v28 = vld [vmem:[%s15666_s16 + $0x76c] sm:$0xf]  ;;  %v10535_v1 = vor.u32 %v14580_v51, %v10532_v54  ;;  %v10644_v58 = vld [vmem:[%s15666_s16 + $0x758] sm:$0xf0]  ;;  %v10631_v50 = vor.u32 %v14604_v61, %v10628_v41 }
 0x2a7   : > { %6261 = vmatpush.bf16.msra.mxu0 %v10455_v2  ;;  %v10663_v0 = vor.u32 %v14612_v28, %v10660_v49  ;;  %v14544_v2 = vld [vmem:[%s15666_s16 + $0x54c] sm:$0xf]  ;;  %v6035_v11 = vpop.f32.mrf.mxu2  ;;  %v10772_v62 = vld [vmem:[%s15666_s16 + $0x858] sm:$0xf0] }
 0x2a8   : > { %6274 = vmatpush.bf16.msra.mxu1 %v10583_v4  ;;  %v10388_v4 = vld [vmem:[%s15666_s16 + $0x558] sm:$0xf0]  ;;  %v6036_v14 = vadd.f32 %v6035_v11, %v6023_v53  ;;  %v6048_v15 = vpop.f32.mrf.mxu3  ;;  %v14640_v16 = vld [vmem:[%s15666_s16 + $0x84c] sm:$0xf] }
 0x2a9   : > { %6287 = vmatpush.bf16.msra.mxu2 %v10711_v5  ;;  %v14576_v5 = vld [vmem:[%s15666_s16 + $0x64c] sm:$0xf]  ;;  %v10372_v55 = vld [vmem:[%s15666_s16 + $0x538] sm:$0xf0]  ;;  %v10775_v35 = vor.u32 %v14640_v16, %v10772_v62 }
 0x2aa   : > { %6300 = vmatpush.bf16.msra.mxu3 %v10839_v30  ;;  %v14608_v30 = vld [vmem:[%s15666_s16 + $0x74c] sm:$0xf]  ;;  %v17217_v7 = vadd.f32 %v6048_v15, %v6036_v14  ;;  %v10519_v26 = vor.u32 %v14576_v5, %v10516_v20  ;;  %v10500_v36 = vld [vmem:[%s15666_s16 + $0x638] sm:$0xf0] }
 0x2ab   : > { %6262 = vmatpush.bf16.msra.mxu0 %v10439_v21  ;;  %v6011_v21 = vpop.f32.mrf.mxu0  ;;  %v10647_v34 = vor.u32 %v14608_v30, %v10644_v58  ;;  %v14636_v27 = vld [vmem:[%s15666_s16 + $0x82c] sm:$0xf]  ;;  %v10503_v48 = vor.u32 %v14572_v6, %v10500_v36  ;;  %v10612_v28 = vld [vmem:[%s15666_s16 + $0x718] sm:$0xf0] }
 0x2ac   : > { %6275 = vmatpush.bf16.msra.mxu1 %v10567_v33  ;;  %v10391_v33 = vor.u32 %v14544_v2, %v10388_v4  ;;  %v14568_v51 = vld [vmem:[%s15666_s16 + $0x60c] sm:$0xf]  ;;  %v11108_v5 = vld [vmem:[%s15666_s16 + $0xaf8] sm:$0xf0] }
 0x2ad   : > { %6288 = vmatpush.bf16.msra.mxu2 %v10695_v24  ;;  %v6024_v24 = vpop.f32.mrf.mxu1  ;;  %v14600_v53 = vld [vmem:[%s15666_s16 + $0x70c] sm:$0xf]  ;;  %v11236_v11 = vld [vmem:[%s15666_s16 + $0xbf8] sm:$0xf0] }
 0x2ae   : > { %6301 = vmatpush.bf16.msra.mxu3 %v10823_v42  ;;  %v14540_v42 = vld [vmem:[%s15666_s16 + $0x52c] sm:$0xf]  ;;  %v10615_v30 = vor.u32 %v14600_v53, %v10612_v28  ;;  %v11364_v14 = vld [vmem:[%s15666_s16 + $0xcf8] sm:$0xf0] }
 0x2af   : > { %6263 = vmatpush.bf16.msra.mxu0 %v10423_v13  ;;  %v10756_v13 = vld [vmem:[%s15666_s16 + $0x838] sm:$0xf0]  ;;  %v10375_v17 = vor.u32 %v14540_v42, %v10372_v55  ;;  %v14632_v49 = vld [vmem:[%s15666_s16 + $0x80c] sm:$0xf]  ;;  %v6037_v59 = vpop.f32.mrf.mxu2 }
 0x2b0   : > { %6276 = vmatpush.bf16.msra.mxu1 %v10551_v23  ;;  %v14536_v23 = vld [vmem:[%s15666_s16 + $0x50c] sm:$0xf]  ;;  %v10759_v54 = vor.u32 %v14636_v27, %v10756_v13  ;;  %v6050_v2 = vpop.f32.mrf.mxu3  ;;  %v10743_v15 = vor.u32 %v14632_v49, %v10740_v57  ;;  %v10964_v24 = vld [vmem:[%s15666_s16 + $0x9d8] sm:$0xf0] }
 0x2b1   : > { %6289 = vmatpush.bf16.msra.mxu2 %v10679_v46  ;;  %v10356_v46 = vld [vmem:[%s15666_s16 + $0x518] sm:$0xf0]  ;;  %v14788_v58 = vld [vmem:[%s15666_s16 + $0xcec] sm:$0xf] }
 0x2b2   : > { %6302 = vmatpush.bf16.msra.mxu3 %v10807_v52  ;;  %v10484_v52 = vld [vmem:[%s15666_s16 + $0x618] sm:$0xf0]  ;;  %v10359_v4 = vor.u32 %v14536_v23, %v10356_v46  ;;  %v14752_v55 = vld [vmem:[%s15666_s16 + $0xbcc] sm:$0xf] }
 0x2b3   : > { %6264 = vmatpush.bf16.msra.mxu0 %v10407_v40  ;;  %v14692_v40 = vld [vmem:[%s15666_s16 + $0x9ec] sm:$0xf]  ;;  %v10487_v20 = vor.u32 %v14568_v51, %v10484_v52  ;;  %v11092_v42 = vld [vmem:[%s15666_s16 + $0xad8] sm:$0xf0] }
 0x2b4   : > { %6277 = vmatpush.bf16.msra.mxu1 %v10535_v1  ;;  %v10980_v1 = vld [vmem:[%s15666_s16 + $0x9f8] sm:$0xf0]  ;;  %v14684_v13 = vld [vmem:[%s15666_s16 + $0x9ac] sm:$0xf] }
 0x2b5   : > { %6290 = vmatpush.bf16.msra.mxu2 %v10663_v0  ;;  %v14724_v0 = vld [vmem:[%s15666_s16 + $0xaec] sm:$0xf]  ;;  %v10983_v16 = vor.u32 %v14692_v40, %v10980_v1  ;;  %v11220_v6 = vld [vmem:[%s15666_s16 + $0xbd8] sm:$0xf0] }
 0x2b6   : > { %6303 = vmatpush.bf16.msra.mxu3 %v10791_v10  ;;  %v14756_v10 = vld [vmem:[%s15666_s16 + $0xbec] sm:$0xf]  ;;  %v11111_v62 = vor.u32 %v14724_v0, %v11108_v5  ;;  %v11348_v36 = vld [vmem:[%s15666_s16 + $0xcd8] sm:$0xf0]  ;;  %v11223_v27 = vor.u32 %v14752_v55, %v11220_v6 }
 0x2b7   : > { %6265 = vmatpush.bf16.msra.mxu0 %v10391_v33  ;;  %v11239_v21 = vor.u32 %v14756_v10, %v11236_v11  ;;  %v14688_v33 = vld [vmem:[%s15666_s16 + $0x9cc] sm:$0xf]  ;;  %v11204_v51 = vld [vmem:[%s15666_s16 + $0xbb8] sm:$0xf0] }
 0x2b8   : > { %6278 = vmatpush.bf16.msra.mxu1 %v10519_v26  ;;  %v14720_v26 = vld [vmem:[%s15666_s16 + $0xacc] sm:$0xf]  ;;  %v10967_v61 = vor.u32 %v14688_v33, %v10964_v24  ;;  %v11332_v53 = vld [vmem:[%s15666_s16 + $0xcb8] sm:$0xf0] }
 0x2b9   : > { %6291 = vmatpush.bf16.msra.mxu2 %v10647_v34  ;;  %v11367_v34 = vor.u32 %v14788_v58, %v11364_v14  ;;  %v11095_v41 = vor.u32 %v14720_v26, %v11092_v42  ;;  %v14716_v23 = vld [vmem:[%s15666_s16 + $0xaac] sm:$0xf]  ;;  %v10932_v57 = vld [vmem:[%s15666_s16 + $0x998] sm:$0xf0] }
 0x2ba   : > { %6304 = vmatpush.bf16.msra.mxu3 %v10775_v35  ;;  %v14784_v35 = vld [vmem:[%s15666_s16 + $0xccc] sm:$0xf]  ;;  %v11060_v59 = vld [vmem:[%s15666_s16 + $0xa98] sm:$0xf0] }
 0x2bb   : > { %6266 = vmatpush.bf16.msra.mxu0 %v10375_v17  ;;  %v10948_v17 = vld [vmem:[%s15666_s16 + $0x9b8] sm:$0xf0]  ;;  %v11351_v46 = vor.u32 %v14784_v35, %v11348_v36  ;;  %v14780_v52 = vld [vmem:[%s15666_s16 + $0xcac] sm:$0xf] }
 0x2bc   : > { %6279 = vmatpush.bf16.msra.mxu1 %v10503_v48  ;;  %v11076_v48 = vld [vmem:[%s15666_s16 + $0xab8] sm:$0xf0]  ;;  %v14680_v49 = vld [vmem:[%s15666_s16 + $0x98c] sm:$0xf] }
 0x2bd   : > { %6292 = vmatpush.bf16.msra.mxu2 %v10631_v50  ;;  %v14748_v50 = vld [vmem:[%s15666_s16 + $0xbac] sm:$0xf]  ;;  %v11188_v1 = vld [vmem:[%s15666_s16 + $0xb98] sm:$0xf0]  ;;  %v10935_v5 = vor.u32 %v14680_v49, %v10932_v57 }
 0x2be   : > { %6305 = vmatpush.bf16.msra.mxu3 %v10759_v54  ;;  %v11079_v54 = vor.u32 %v14716_v23, %v11076_v48  ;;  %v11207_v28 = vor.u32 %v14748_v50, %v11204_v51  ;;  %v14744_v40 = vld [vmem:[%s15666_s16 + $0xb8c] sm:$0xf]  ;;  %v11316_v2 = vld [vmem:[%s15666_s16 + $0xc98] sm:$0xf0] }
 0x2bf   : > { %6267 = vmatpush.bf16.msra.mxu0 %v10359_v4  ;;  %v14776_v0 = vld [vmem:[%s15666_s16 + $0xc8c] sm:$0xf]  ;;  %v10916_v58 = vld [vmem:[%s15666_s16 + $0x978] sm:$0xf0] }
 0x2c0   : > { %6280 = vmatpush.bf16.msra.mxu1 %v10487_v20  ;;  %v6074_v10 = vpop.f32.mrf.mxu1  ;;  %v11191_v20 = vor.u32 %v14744_v40, %v11188_v1  ;;  %v14708_v14 = vld [vmem:[%s15666_s16 + $0xa6c] sm:$0xf]  ;;  %v11300_v24 = vld [vmem:[%s15666_s16 + $0xc78] sm:$0xf0] }
 0x2c1   : > { %6293 = vmatpush.bf16.msra.mxu2 %v10615_v30  ;;  %v14676_v30 = vld [vmem:[%s15666_s16 + $0x96c] sm:$0xf]  ;;  %v10900_v6 = vld [vmem:[%s15666_s16 + $0x958] sm:$0xf0] }
 0x2c2   : > { %6306 = vmatpush.bf16.msra.mxu3 %v10743_v15  ;;  %6268 = vmatmul.bf16.vlgmr.msra.gmra.mxu0 %v15835_v45  ;;  %v10951_v45 = vor.u32 %v14684_v13, %v10948_v17  ;;  %v11319_v15 = vor.u32 %v14776_v0, %v11316_v2  ;;  %v14772_v33 = vld [vmem:[%s15666_s16 + $0xc6c] sm:$0xf]  ;;  %v10919_v26 = vor.u32 %v14676_v30, %v10916_v58  ;;  %v11156_v13 = vld [vmem:[%s15666_s16 + $0xb58] sm:$0xf0] }
 0x2c3   : > { %6312 = vmatpush.bf16.msrb.mxu0 %v10983_v16  ;;  %6281 = vmatmul.bf16.vlgmr.msra.gmra.mxu1 %v15827_v39  ;;  %v11335_v39 = vor.u32 %v14780_v52, %v11332_v53  ;;  %v14672_v55 = vld [vmem:[%s15666_s16 + $0x94c] sm:$0xf]  ;;  %v11303_v36 = vor.u32 %v14772_v33, %v11300_v24  ;;  %v11284_v48 = vld [vmem:[%s15666_s16 + $0xc58] sm:$0xf0] }
 0x2c4   : > { %6325 = vmatpush.bf16.msrb.mxu1 %v11111_v62  ;;  %6294 = vmatmul.bf16.vlgmr.msra.gmra.mxu2 %v15833_v43  ;;  %v14712_v43 = vld [vmem:[%s15666_s16 + $0xa8c] sm:$0xf]  ;;  %v11044_v62 = vld [vmem:[%s15666_s16 + $0xa78] sm:$0xf0]  ;;  %v10903_v51 = vor.u32 %v14672_v55, %v10900_v6 }
 0x2c5   : > { %6338 = vmatpush.bf16.msrb.mxu2 %v11239_v21  ;;  %6307 = vmatmul.bf16.vlgmr.msra.gmra.mxu3 %v15911_v25  ;;  %v6061_v25 = vpop.f32.mrf.mxu0  ;;  %v11063_v11 = vor.u32 %v14712_v43, %v11060_v59  ;;  %v14740_v21 = vld [vmem:[%s15666_s16 + $0xb6c] sm:$0xf]  ;;  %v10884_v49 = vld [vmem:[%s15666_s16 + $0x938] sm:$0xf0] }
 0x2c6   : > { %6351 = vmatpush.bf16.msrb.mxu3 %v11367_v34  ;;  %v6062_v4 = vadd.f32 %v6061_v25, %v17217_v7  ;;  %v11172_v7 = vld [vmem:[%s15666_s16 + $0xb78] sm:$0xf0]  ;;  %v11047_v34 = vor.u32 %v14708_v14, %v11044_v62  ;;  %v14704_v35 = vld [vmem:[%s15666_s16 + $0xa4c] sm:$0xf] }
 0x2c7   : > { %6313 = vmatpush.bf16.msrb.mxu0 %v10967_v61  ;;  %v11175_v42 = vor.u32 %v14740_v21, %v11172_v7  ;;  %v6087_v61 = vpop.f32.mrf.mxu2  ;;  %v14700_v57 = vld [vmem:[%s15666_s16 + $0xa2c] sm:$0xf]  ;;  %v11140_v40 = vld [vmem:[%s15666_s16 + $0xb38] sm:$0xf0] }
 0x2c8   : > { %6326 = vmatpush.bf16.msrb.mxu1 %v11095_v41  ;;  %v6075_v16 = vadd.f32 %v6074_v10, %v6062_v4  ;;  %v11028_v41 = vld [vmem:[%s15666_s16 + $0xa58] sm:$0xf0]  ;;  %v6100_v23 = vpop.f32.mrf.mxu3  ;;  %v6076_v52 = vpop.f32.mrf.mxu1  ;;  %v14732_v59 = vld [vmem:[%s15666_s16 + $0xb2c] sm:$0xf] }
 0x2c9   : > { %6339 = vmatpush.bf16.msrb.mxu2 %v11223_v27  ;;  %v14736_v27 = vld [vmem:[%s15666_s16 + $0xb4c] sm:$0xf]  ;;  %v11268_v25 = vld [vmem:[%s15666_s16 + $0xc38] sm:$0xf0]  ;;  %v11143_v10 = vor.u32 %v14732_v59, %v11140_v40 }
 0x2ca   : > { %6352 = vmatpush.bf16.msrb.mxu3 %v11351_v46  ;;  %v6088_v17 = vadd.f32 %v6087_v61, %v6075_v16  ;;  %v14768_v46 = vld [vmem:[%s15666_s16 + $0xc4c] sm:$0xf]  ;;  %v10868_v4 = vld [vmem:[%s15666_s16 + $0x918] sm:$0xf0] }
 0x2cb   : > { %6314 = vmatpush.bf16.msrb.mxu0 %v10951_v45  ;;  %v11031_v45 = vor.u32 %v14704_v35, %v11028_v41  ;;  %v11287_v43 = vor.u32 %v14768_v46, %v11284_v48  ;;  %v14764_v1 = vld [vmem:[%s15666_s16 + $0xc2c] sm:$0xf]  ;;  %v11124_v14 = vld [vmem:[%s15666_s16 + $0xb18] sm:$0xf0] }
 0x2cc   : > { %6327 = vmatpush.bf16.msrb.mxu1 %v11079_v54  ;;  %v17288_v53 = vadd.f32 %v6100_v23, %v6088_v17  ;;  %v11159_v54 = vor.u32 %v14736_v27, %v11156_v13  ;;  %v14664_v2 = vld [vmem:[%s15666_s16 + $0x90c] sm:$0xf]  ;;  %v11271_v58 = vor.u32 %v14764_v1, %v11268_v25  ;;  %v11252_v16 = vld [vmem:[%s15666_s16 + $0xc18] sm:$0xf0] }
 0x2cd   : > { %6340 = vmatpush.bf16.msrb.mxu2 %v11207_v28  ;;  %v6063_v50 = vpop.f32.mrf.mxu0  ;;  %v14668_v28 = vld [vmem:[%s15666_s16 + $0x92c] sm:$0xf]  ;;  %v11492_v7 = vld [vmem:[%s15666_s16 + $0xdf8] sm:$0xf0] }
 0x2ce   : > { %6353 = vmatpush.bf16.msrb.mxu3 %v11335_v39  ;;  %v11012_v39 = vld [vmem:[%s15666_s16 + $0xa38] sm:$0xf0]  ;;  %v10887_v0 = vor.u32 %v14668_v28, %v10884_v49  ;;  %v14728_v30 = vld [vmem:[%s15666_s16 + $0xb0c] sm:$0xf] }
 0x2cf   : > { %6315 = vmatpush.bf16.msrb.mxu0 %v10935_v5  ;;  %v11015_v5 = vor.u32 %v14700_v57, %v11012_v39  ;;  %v6089_v62 = vpop.f32.mrf.mxu2  ;;  %v14820_v21 = vld [vmem:[%s15666_s16 + $0xdec] sm:$0xf]  ;;  %v11748_v55 = vld [vmem:[%s15666_s16 + $0xff8] sm:$0xf0]  ;;  %v11127_v35 = vor.u32 %v14728_v30, %v11124_v14 }
 0x2d0   : > { %6328 = vmatpush.bf16.msrb.mxu1 %v11063_v11  ;;  %v14696_v11 = vld [vmem:[%s15666_s16 + $0xa0c] sm:$0xf]  ;;  %v6102_v24 = vpop.f32.mrf.mxu3  ;;  %v11876_v61 = vld [vmem:[%s15666_s16 + $0x10f8] sm:$0xf0]  ;;  %v11495_v27 = vor.u32 %v14820_v21, %v11492_v7 }
 0x2d1   : > { %6341 = vmatpush.bf16.msrb.mxu2 %v11191_v20  ;;  %v10996_v20 = vld [vmem:[%s15666_s16 + $0xa18] sm:$0xf0]  ;;  %v14852_v33 = vld [vmem:[%s15666_s16 + $0xeec] sm:$0xf] }
 0x2d2   : > { %6354 = vmatpush.bf16.msrb.mxu3 %v11319_v15  ;;  %v14760_v15 = vld [vmem:[%s15666_s16 + $0xc0c] sm:$0xf]  ;;  %v10999_v6 = vor.u32 %v14696_v11, %v10996_v20  ;;  %v11476_v46 = vld [vmem:[%s15666_s16 + $0xdd8] sm:$0xf0] }
 0x2d3   : > { %6316 = vmatpush.bf16.msrb.mxu0 %v10919_v26  ;;  %v10871_v26 = vor.u32 %v14664_v2, %v10868_v4  ;;  %v11255_v41 = vor.u32 %v14760_v15, %v11252_v16  ;;  %v14816_v23 = vld [vmem:[%s15666_s16 + $0xdcc] sm:$0xf]  ;;  %v11860_v28 = vld [vmem:[%s15666_s16 + $0x10d8] sm:$0xf0] }
 0x2d4   : > { %6329 = vmatpush.bf16.msrb.mxu1 %v11047_v34  ;;  %v11620_v34 = vld [vmem:[%s15666_s16 + $0xef8] sm:$0xf0]  ;;  %v14848_v48 = vld [vmem:[%s15666_s16 + $0xecc] sm:$0xf]  ;;  %v11479_v49 = vor.u32 %v14816_v23, %v11476_v46 }
 0x2d5   : > { %6342 = vmatpush.bf16.msrb.mxu2 %v11175_v42  ;;  %v14884_v42 = vld [vmem:[%s15666_s16 + $0xfec] sm:$0xf]  ;;  %v11623_v13 = vor.u32 %v14852_v33, %v11620_v34  ;;  %v11460_v59 = vld [vmem:[%s15666_s16 + $0xdb8] sm:$0xf0] }
 0x2d6   : > { %6355 = vmatpush.bf16.msrb.mxu3 %v11303_v36  ;;  %v14916_v36 = vld [vmem:[%s15666_s16 + $0x10ec] sm:$0xf]  ;;  %v11751_v17 = vor.u32 %v14884_v42, %v11748_v55  ;;  %v11588_v25 = vld [vmem:[%s15666_s16 + $0xeb8] sm:$0xf0] }
 0x2d7   : > { %6317 = vmatpush.bf16.msrb.mxu0 %v10903_v51  ;;  %v11879_v50 = vor.u32 %v14916_v36, %v11876_v61  ;;  %v11604_v51 = vld [vmem:[%s15666_s16 + $0xed8] sm:$0xf0]  ;;  %v14880_v52 = vld [vmem:[%s15666_s16 + $0xfcc] sm:$0xf] }
 0x2d8   : > { %6330 = vmatpush.bf16.msrb.mxu1 %v11031_v45  ;;  %v11732_v45 = vld [vmem:[%s15666_s16 + $0xfd8] sm:$0xf0]  ;;  %v11607_v57 = vor.u32 %v14848_v48, %v11604_v51  ;;  %v14812_v39 = vld [vmem:[%s15666_s16 + $0xdac] sm:$0xf] }
 0x2d9   : > { %6343 = vmatpush.bf16.msrb.mxu2 %v11159_v54  ;;  %v14912_v54 = vld [vmem:[%s15666_s16 + $0x10cc] sm:$0xf]  ;;  %v11716_v2 = vld [vmem:[%s15666_s16 + $0xfb8] sm:$0xf0] }
 0x2da   : > { %6356 = vmatpush.bf16.msrb.mxu3 %v11287_v43  ;;  %v11735_v43 = vor.u32 %v14880_v52, %v11732_v45  ;;  %v14844_v40 = vld [vmem:[%s15666_s16 + $0xeac] sm:$0xf]  ;;  %v11863_v1 = vor.u32 %v14912_v54, %v11860_v28  ;;  %v11444_v30 = vld [vmem:[%s15666_s16 + $0xd98] sm:$0xf0] }
 0x2db   : > { %6318 = vmatpush.bf16.msrb.mxu0 %v10887_v0  ;;  %v14876_v0 = vld [vmem:[%s15666_s16 + $0xfac] sm:$0xf]  ;;  %v11700_v15 = vld [vmem:[%s15666_s16 + $0xf98] sm:$0xf0] }
 0x2dc   : > { %6331 = vmatpush.bf16.msrb.mxu1 %v11015_v5  ;;  %v14908_v4 = vld [vmem:[%s15666_s16 + $0x10ac] sm:$0xf]  ;;  %v11844_v5 = vld [vmem:[%s15666_s16 + $0x10b8] sm:$0xf0]  ;;  %v11719_v11 = vor.u32 %v14876_v0, %v11716_v2 }
 0x2dd   : > { %6344 = vmatpush.bf16.msrb.mxu2 %v11143_v10  ;;  %v11591_v10 = vor.u32 %v14844_v40, %v11588_v25  ;;  %v14808_v20 = vld [vmem:[%s15666_s16 + $0xd8c] sm:$0xf]  ;;  %v11828_v62 = vld [vmem:[%s15666_s16 + $0x1098] sm:$0xf0] }
 0x2de   : > { %6357 = vmatpush.bf16.msrb.mxu3 %v11271_v58  ;;  %v11572_v58 = vld [vmem:[%s15666_s16 + $0xe98] sm:$0xf0]  ;;  %v14872_v14 = vld [vmem:[%s15666_s16 + $0xf8c] sm:$0xf]  ;;  %v11447_v7 = vor.u32 %v14808_v20, %v11444_v30 }
 0x2df   : > { %6319 = vmatpush.bf16.msrb.mxu0 %v10871_v26  ;;  %v14904_v16 = vld [vmem:[%s15666_s16 + $0x108c] sm:$0xf]  ;;  %v11703_v26 = vor.u32 %v14872_v14, %v11700_v15  ;;  %v11428_v42 = vld [vmem:[%s15666_s16 + $0xd78] sm:$0xf0] }
 0x2e0   : > { %6332 = vmatpush.bf16.msrb.mxu1 %v10999_v6  ;;  %v6126_v33 = vpop.f32.mrf.mxu1  ;;  %v14804_v34 = vld [vmem:[%s15666_s16 + $0xd6c] sm:$0xf]  ;;  %v11831_v6 = vor.u32 %v14904_v16, %v11828_v62  ;;  %v11556_v36 = vld [vmem:[%s15666_s16 + $0xe78] sm:$0xf0] }
 0x2e1   : > { %6345 = vmatpush.bf16.msrb.mxu2 %v11127_v35  ;;  %v14836_v55 = vld [vmem:[%s15666_s16 + $0xe6c] sm:$0xf]  ;;  %v11412_v48 = vld [vmem:[%s15666_s16 + $0xd58] sm:$0xf0] }
 0x2e2   : > { %6358 = vmatpush.bf16.msrb.mxu3 %v11255_v41  ;;  %6320 = vmatmul.bf16.vlgmr.msrb.gmra.mxu0 %v15922_v32  ;;  %v11463_v32 = vor.u32 %v14812_v39, %v11460_v59  ;;  %v14868_v61 = vld [vmem:[%s15666_s16 + $0xf6c] sm:$0xf]  ;;  %v11540_v45 = vld [vmem:[%s15666_s16 + $0xe58] sm:$0xf0] }
 0x2e3   : > { %6364 = vmatpush.bf16.msra.mxu0 %v11495_v27  ;;  %6333 = vmatmul.bf16.vlgmr.msrb.gmra.mxu1 %v15918_v31  ;;  %v11847_v31 = vor.u32 %v14908_v4, %v11844_v5  ;;  %v14900_v41 = vld [vmem:[%s15666_s16 + $0x106c] sm:$0xf]  ;;  %v11812_v27 = vld [vmem:[%s15666_s16 + $0x1078] sm:$0xf0] }
 0x2e4   : > { %6377 = vmatpush.bf16.msra.mxu1 %v11623_v13  ;;  %6346 = vmatmul.bf16.vlgmr.msrb.gmra.mxu2 %v15928_v19  ;;  %v14840_v19 = vld [vmem:[%s15666_s16 + $0xe8c] sm:$0xf]  ;;  %v11431_v13 = vor.u32 %v14804_v34, %v11428_v42  ;;  %v11815_v51 = vor.u32 %v14900_v41, %v11812_v27  ;;  %v11668_v28 = vld [vmem:[%s15666_s16 + $0xf58] sm:$0xf0] }
 0x2e5   : > { %6390 = vmatpush.bf16.msra.mxu2 %v11751_v17  ;;  %6359 = vmatmul.bf16.vlgmr.msrb.gmra.mxu3 %v16004_v29  ;;  %v6113_v29 = vpop.f32.mrf.mxu0  ;;  %v11575_v24 = vor.u32 %v14840_v19, %v11572_v58  ;;  %v11559_v17 = vor.u32 %v14836_v55, %v11556_v36  ;;  %v14800_v46 = vld [vmem:[%s15666_s16 + $0xd4c] sm:$0xf]  ;;  %v11796_v39 = vld [vmem:[%s15666_s16 + $0x1058] sm:$0xf0] }
 0x2e6   : > { %6403 = vmatpush.bf16.msra.mxu3 %v11879_v50  ;;  %v6114_v21 = vadd.f32 %v6113_v29, %v17288_v53  ;;  %v11684_v53 = vld [vmem:[%s15666_s16 + $0xf78] sm:$0xf0]  ;;  %v14832_v50 = vld [vmem:[%s15666_s16 + $0xe4c] sm:$0xf]  ;;  %v11415_v40 = vor.u32 %v14800_v46, %v11412_v48 }
 0x2e7   : > { %6365 = vmatpush.bf16.msra.mxu0 %v11479_v49  ;;  %v11687_v23 = vor.u32 %v14868_v61, %v11684_v53  ;;  %v6139_v52 = vpop.f32.mrf.mxu2  ;;  %v14864_v54 = vld [vmem:[%s15666_s16 + $0xf4c] sm:$0xf]  ;;  %v11543_v0 = vor.u32 %v14832_v50, %v11540_v45  ;;  %v11396_v5 = vld [vmem:[%s15666_s16 + $0xd38] sm:$0xf0] }
 0x2e8   : > { %6378 = vmatpush.bf16.msra.mxu1 %v11607_v57  ;;  %v6127_v35 = vadd.f32 %v6126_v33, %v6114_v21  ;;  %v6152_v57 = vpop.f32.mrf.mxu3  ;;  %v11671_v2 = vor.u32 %v14864_v54, %v11668_v28  ;;  %v14796_v4 = vld [vmem:[%s15666_s16 + $0xd2c] sm:$0xf]  ;;  %v11652_v30 = vld [vmem:[%s15666_s16 + $0xf38] sm:$0xf0] }
 0x2e9   : > { %6391 = vmatpush.bf16.msra.mxu2 %v11735_v43  ;;  %v14896_v43 = vld [vmem:[%s15666_s16 + $0x104c] sm:$0xf]  ;;  %v11399_v58 = vor.u32 %v14796_v4, %v11396_v5  ;;  %v11380_v15 = vld [vmem:[%s15666_s16 + $0xd18] sm:$0xf0] }
 0x2ea   : > { %6404 = vmatpush.bf16.msra.mxu3 %v11863_v1  ;;  %v6140_v49 = vadd.f32 %v6139_v52, %v6127_v35  ;;  %v6128_v1 = vpop.f32.mrf.mxu1  ;;  %v14860_v20 = vld [vmem:[%s15666_s16 + $0xf2c] sm:$0xf]  ;;  %v11508_v21 = vld [vmem:[%s15666_s16 + $0xe18] sm:$0xf0] }
 0x2eb   : > { %6366 = vmatpush.bf16.msra.mxu0 %v11463_v32  ;;  %v14828_v32 = vld [vmem:[%s15666_s16 + $0xe2c] sm:$0xf]  ;;  %v11655_v16 = vor.u32 %v14860_v20, %v11652_v30  ;;  %v11764_v34 = vld [vmem:[%s15666_s16 + $0x1018] sm:$0xf0] }
 0x2ec   : > { %6379 = vmatpush.bf16.msra.mxu1 %v11591_v10  ;;  %v17359_v25 = vadd.f32 %v6152_v57, %v6140_v49  ;;  %v11799_v10 = vor.u32 %v14896_v43, %v11796_v39  ;;  %v14892_v19 = vld [vmem:[%s15666_s16 + $0x102c] sm:$0xf]  ;;  %v12132_v53 = vld [vmem:[%s15666_s16 + $0x12f8] sm:$0xf0] }
 0x2ed   : > { %6392 = vmatpush.bf16.msra.mxu2 %v11719_v11  ;;  %v6115_v59 = vpop.f32.mrf.mxu0  ;;  %v11524_v11 = vld [vmem:[%s15666_s16 + $0xe38] sm:$0xf0]  ;;  %v14792_v14 = vld [vmem:[%s15666_s16 + $0xd0c] sm:$0xf] }
 0x2ee   : > { %6405 = vmatpush.bf16.msra.mxu3 %v11847_v31  ;;  %v11780_v31 = vld [vmem:[%s15666_s16 + $0x1038] sm:$0xf0]  ;;  %v11527_v29 = vor.u32 %v14828_v32, %v11524_v11  ;;  %v14824_v62 = vld [vmem:[%s15666_s16 + $0xe0c] sm:$0xf]  ;;  %v11383_v61 = vor.u32 %v14792_v14, %v11380_v15 }
 0x2ef   : > { %6367 = vmatpush.bf16.msra.mxu0 %v11447_v7  ;;  %v14856_v7 = vld [vmem:[%s15666_s16 + $0xf0c] sm:$0xf]  ;;  %v11783_v33 = vor.u32 %v14892_v19, %v11780_v31  ;;  %v6141_v42 = vpop.f32.mrf.mxu2  ;;  %v12260_v27 = vld [vmem:[%s15666_s16 + $0x13f8] sm:$0xf0] }
 0x2f0   : > { %6380 = vmatpush.bf16.msra.mxu1 %v11575_v24  ;;  %v11636_v24 = vld [vmem:[%s15666_s16 + $0xf18] sm:$0xf0]  ;;  %v14948_v55 = vld [vmem:[%s15666_s16 + $0x11ec] sm:$0xf]  ;;  %v6154_v36 = vpop.f32.mrf.mxu3 }
 0x2f1   : > { %6393 = vmatpush.bf16.msra.mxu2 %v11703_v26  ;;  %v14888_v26 = vld [vmem:[%s15666_s16 + $0x100c] sm:$0xf]  ;;  %v12388_v46 = vld [vmem:[%s15666_s16 + $0x14f8] sm:$0xf0] }
 0x2f2   : > { %6406 = vmatpush.bf16.msra.mxu3 %v11831_v6  ;;  %v12004_v6 = vld [vmem:[%s15666_s16 + $0x11f8] sm:$0xf0]  ;;  %v14980_v35 = vld [vmem:[%s15666_s16 + $0x12ec] sm:$0xf]  ;;  %v11767_v48 = vor.u32 %v14888_v26, %v11764_v34 }
 0x2f3   : > { %6368 = vmatpush.bf16.msra.mxu0 %v11431_v13  ;;  %v15012_v41 = vld [vmem:[%s15666_s16 + $0x13ec] sm:$0xf]  ;;  %v11511_v13 = vor.u32 %v14824_v62, %v11508_v21  ;;  %v12007_v50 = vor.u32 %v14948_v55, %v12004_v6  ;;  %v11988_v54 = vld [vmem:[%s15666_s16 + $0x11d8] sm:$0xf0] }
 0x2f4   : > { %6381 = vmatpush.bf16.msra.mxu1 %v11559_v17  ;;  %v11639_v17 = vor.u32 %v14856_v7, %v11636_v24  ;;  %v12263_v52 = vor.u32 %v15012_v41, %v12260_v27  ;;  %v14944_v45 = vld [vmem:[%s15666_s16 + $0x11cc] sm:$0xf]  ;;  %v12116_v57 = vld [vmem:[%s15666_s16 + $0x12d8] sm:$0xf0] }
 0x2f5   : > { %6394 = vmatpush.bf16.msra.mxu2 %v11687_v23  ;;  %v15044_v23 = vld [vmem:[%s15666_s16 + $0x14ec] sm:$0xf]  ;;  %v12244_v39 = vld [vmem:[%s15666_s16 + $0x13d8] sm:$0xf0]  ;;  %v11991_v1 = vor.u32 %v14944_v45, %v11988_v54 }
 0x2f6   : > { %6407 = vmatpush.bf16.msra.mxu3 %v11815_v51  ;;  %v12135_v51 = vor.u32 %v14980_v35, %v12132_v53  ;;  %v14976_v28 = vld [vmem:[%s15666_s16 + $0x12cc] sm:$0xf]  ;;  %v12391_v49 = vor.u32 %v15044_v23, %v12388_v46  ;;  %v11972_v5 = vld [vmem:[%s15666_s16 + $0x11b8] sm:$0xf0] }
 0x2f7   : > { %6369 = vmatpush.bf16.msra.mxu0 %v11415_v40  ;;  %v15008_v43 = vld [vmem:[%s15666_s16 + $0x13cc] sm:$0xf]  ;;  %v12372_v40 = vld [vmem:[%s15666_s16 + $0x14d8] sm:$0xf0] }
 0x2f8   : > { %6382 = vmatpush.bf16.msra.mxu1 %v11543_v0  ;;  %v15040_v59 = vld [vmem:[%s15666_s16 + $0x14cc] sm:$0xf]  ;;  %v12119_v0 = vor.u32 %v14976_v28, %v12116_v57  ;;  %v12100_v11 = vld [vmem:[%s15666_s16 + $0x12b8] sm:$0xf0] }
 0x2f9   : > { %6395 = vmatpush.bf16.msra.mxu2 %v11671_v2  ;;  %v12247_v2 = vor.u32 %v15008_v43, %v12244_v39  ;;  %v14940_v4 = vld [vmem:[%s15666_s16 + $0x11ac] sm:$0xf]  ;;  %v12228_v30 = vld [vmem:[%s15666_s16 + $0x13b8] sm:$0xf0] }
 0x2fa   : > { %6408 = vmatpush.bf16.msra.mxu3 %v11799_v10  ;;  %v14972_v32 = vld [vmem:[%s15666_s16 + $0x12ac] sm:$0xf]  ;;  %v12375_v10 = vor.u32 %v15040_v59, %v12372_v40  ;;  %v12356_v31 = vld [vmem:[%s15666_s16 + $0x14b8] sm:$0xf0] }
 0x2fb   : > { %6370 = vmatpush.bf16.msra.mxu0 %v11399_v58  ;;  %v15004_v20 = vld [vmem:[%s15666_s16 + $0x13ac] sm:$0xf]  ;;  %v12103_v58 = vor.u32 %v14972_v32, %v12100_v11  ;;  %v12212_v21 = vld [vmem:[%s15666_s16 + $0x1398] sm:$0xf0] }
 0x2fc   : > { %6383 = vmatpush.bf16.msra.mxu1 %v11527_v29  ;;  %v15036_v19 = vld [vmem:[%s15666_s16 + $0x14ac] sm:$0xf]  ;;  %v12231_v14 = vor.u32 %v15004_v20, %v12228_v30  ;;  %v11956_v29 = vld [vmem:[%s15666_s16 + $0x1198] sm:$0xf0] }
 0x2fd   : > { %6396 = vmatpush.bf16.msra.mxu2 %v11655_v16  ;;  %v14936_v15 = vld [vmem:[%s15666_s16 + $0x118c] sm:$0xf]  ;;  %v12084_v16 = vld [vmem:[%s15666_s16 + $0x1298] sm:$0xf0] }
 0x2fe   : > { %6409 = vmatpush.bf16.msra.mxu3 %v11783_v33  ;;  %v15000_v62 = vld [vmem:[%s15666_s16 + $0x138c] sm:$0xf]  ;;  %v12340_v33 = vld [vmem:[%s15666_s16 + $0x1498] sm:$0xf0]  ;;  %v11959_v26 = vor.u32 %v14936_v15, %v11956_v29 }
 0x2ff   : > { %6371 = vmatpush.bf16.msra.mxu0 %v11383_v61  ;;  %v15032_v7 = vld [vmem:[%s15666_s16 + $0x148c] sm:$0xf]  ;;  %v12215_v55 = vor.u32 %v15000_v62, %v12212_v21  ;;  %v11940_v35 = vld [vmem:[%s15666_s16 + $0x1178] sm:$0xf0] }
 0x300   : > { %6384 = vmatpush.bf16.msra.mxu1 %v11511_v13  ;;  %v6178_v34 = vpop.f32.mrf.mxu1  ;;  %v14932_v6 = vld [vmem:[%s15666_s16 + $0x116c] sm:$0xf]  ;;  %v12343_v61 = vor.u32 %v15032_v7, %v12340_v33  ;;  %v12068_v41 = vld [vmem:[%s15666_s16 + $0x1278] sm:$0xf0] }
 0x301   : > { %6397 = vmatpush.bf16.msra.mxu2 %v11639_v17  ;;  %v14964_v36 = vld [vmem:[%s15666_s16 + $0x126c] sm:$0xf]  ;;  %v12324_v17 = vld [vmem:[%s15666_s16 + $0x1478] sm:$0xf0]  ;;  %v11943_v23 = vor.u32 %v14932_v6, %v11940_v35 }
 0x302   : > { %6410 = vmatpush.bf16.msra.mxu3 %v11767_v48  ;;  %6372 = vmatmul.bf16.vlgmr.msra.gmra.mxu0 %v16015_v38  ;;  %v11975_v38 = vor.u32 %v14940_v4, %v11972_v5  ;;  %v14996_v27 = vld [vmem:[%s15666_s16 + $0x136c] sm:$0xf]  ;;  %v12071_v46 = vor.u32 %v14964_v36, %v12068_v41  ;;  %v12052_v28 = vld [vmem:[%s15666_s16 + $0x1258] sm:$0xf0] }
 0x303   : > { %6416 = vmatpush.bf16.msrb.mxu0 %v12007_v50  ;;  %6385 = vmatmul.bf16.vlgmr.msra.gmra.mxu1 %v16011_v37  ;;  %v12359_v37 = vor.u32 %v15036_v19, %v12356_v31  ;;  %v15028_v13 = vld [vmem:[%s15666_s16 + $0x146c] sm:$0xf]  ;;  %v12180_v57 = vld [vmem:[%s15666_s16 + $0x1358] sm:$0xf0] }
 0x304   : > { %6429 = vmatpush.bf16.msrb.mxu1 %v12135_v51  ;;  %6398 = vmatmul.bf16.vlgmr.msra.gmra.mxu2 %v16021_v22  ;;  %v14968_v22 = vld [vmem:[%s15666_s16 + $0x128c] sm:$0xf]  ;;  %v11924_v51 = vld [vmem:[%s15666_s16 + $0x1158] sm:$0xf0]  ;;  %v12327_v45 = vor.u32 %v15028_v13, %v12324_v17 }
 0x305   : > { %6442 = vmatpush.bf16.msrb.mxu2 %v12263_v52  ;;  %6411 = vmatmul.bf16.vlgmr.msra.gmra.mxu3 %v16086_v60  ;;  %v6165_v60 = vpop.f32.mrf.mxu0  ;;  %v12087_v42 = vor.u32 %v14968_v22, %v12084_v16  ;;  %v14928_v50 = vld [vmem:[%s15666_s16 + $0x114c] sm:$0xf]  ;;  %v12308_v59 = vld [vmem:[%s15666_s16 + $0x1458] sm:$0xf0] }
 0x306   : > { %6455 = vmatpush.bf16.msrb.mxu3 %v12391_v49  ;;  %v6166_v24 = vadd.f32 %v6165_v60, %v17359_v25  ;;  %v12196_v25 = vld [vmem:[%s15666_s16 + $0x1378] sm:$0xf0]  ;;  %v14960_v52 = vld [vmem:[%s15666_s16 + $0x124c] sm:$0xf] }
 0x307   : > { %6417 = vmatpush.bf16.msrb.mxu0 %v11991_v1  ;;  %v12199_v48 = vor.u32 %v14996_v27, %v12196_v25  ;;  %v6191_v54 = vpop.f32.mrf.mxu2  ;;  %v14992_v49 = vld [vmem:[%s15666_s16 + $0x134c] sm:$0xf]  ;;  %v12055_v4 = vor.u32 %v14960_v52, %v12052_v28  ;;  %v12036_v30 = vld [vmem:[%s15666_s16 + $0x1238] sm:$0xf0] }
 0x308   : > { %6430 = vmatpush.bf16.msrb.mxu1 %v12119_v0  ;;  %v6179_v53 = vadd.f32 %v6178_v34, %v6166_v24  ;;  %v15024_v39 = vld [vmem:[%s15666_s16 + $0x144c] sm:$0xf]  ;;  %v17432_v40 = vpop.f32.mrf.mxu3  ;;  %v11927_v0 = vor.u32 %v14928_v50, %v11924_v51  ;;  %v12183_v5 = vor.u32 %v14992_v49, %v12180_v57  ;;  %v12164_v31 = vld [vmem:[%s15666_s16 + $0x1338] sm:$0xf0] }
 0x309   : > { %6443 = vmatpush.bf16.msrb.mxu2 %v12247_v2  ;;  %v6180_v2 = vpop.f32.mrf.mxu1  ;;  %v14924_v32 = vld [vmem:[%s15666_s16 + $0x112c] sm:$0xf]  ;;  %v12311_v20 = vor.u32 %v15024_v39, %v12308_v59  ;;  %v11892_v29 = vld [vmem:[%s15666_s16 + $0x1118] sm:$0xf0] }
 0x30a   : > { %6456 = vmatpush.bf16.msrb.mxu3 %v12375_v10  ;;  %v17428_v43 = vadd.f32 %v6191_v54, %v6179_v53  ;;  %v11908_v10 = vld [vmem:[%s15666_s16 + $0x1138] sm:$0xf0]  ;;  %v14956_v11 = vld [vmem:[%s15666_s16 + $0x122c] sm:$0xf] }
 0x30b   : > { %6418 = vmatpush.bf16.msrb.mxu0 %v11975_v38  ;;  %v14988_v19 = vld [vmem:[%s15666_s16 + $0x132c] sm:$0xf]  ;;  %v12039_v22 = vor.u32 %v14956_v11, %v12036_v30  ;;  %v12020_v62 = vld [vmem:[%s15666_s16 + $0x1218] sm:$0xf0] }
 0x30c   : > { %6431 = vmatpush.bf16.msrb.mxu1 %v12103_v58  ;;  %v15020_v38 = vld [vmem:[%s15666_s16 + $0x142c] sm:$0xf]  ;;  %v12292_v58 = vld [vmem:[%s15666_s16 + $0x1438] sm:$0xf0] }
 0x30d   : > { %6444 = vmatpush.bf16.msrb.mxu2 %v12231_v14  ;;  %v6167_v1 = vpop.f32.mrf.mxu0  ;;  %v11911_v14 = vor.u32 %v14924_v32, %v11908_v10  ;;  %v14920_v15 = vld [vmem:[%s15666_s16 + $0x110c] sm:$0xf]  ;;  %v12295_v60 = vor.u32 %v15020_v38, %v12292_v58  ;;  %v12148_v7 = vld [vmem:[%s15666_s16 + $0x1318] sm:$0xf0] }
 0x30e   : > { %6457 = vmatpush.bf16.msrb.mxu3 %v12359_v37  ;;  %v12167_v37 = vor.u32 %v14988_v19, %v12164_v31  ;;  %v14952_v16 = vld [vmem:[%s15666_s16 + $0x120c] sm:$0xf]  ;;  %v12276_v24 = vld [vmem:[%s15666_s16 + $0x1418] sm:$0xf0]  ;;  %v11895_v35 = vor.u32 %v14920_v15, %v11892_v29 }
 0x30f   : > { %6419 = vmatpush.bf16.msrb.mxu0 %v11959_v26  ;;  %v14984_v21 = vld [vmem:[%s15666_s16 + $0x130c] sm:$0xf]  ;;  %v6193_v26 = vpop.f32.mrf.mxu2  ;;  %v12644_v36 = vld [vmem:[%s15666_s16 + $0x16f8] sm:$0xf0]  ;;  %v12023_v41 = vor.u32 %v14952_v16, %v12020_v62 }
 0x310   : > { %6432 = vmatpush.bf16.msrb.mxu1 %v12087_v42  ;;  %v15016_v33 = vld [vmem:[%s15666_s16 + $0x140c] sm:$0xf]  ;;  %v12516_v42 = vld [vmem:[%s15666_s16 + $0x15f8] sm:$0xf0]  ;;  %v6206_v6 = vpop.f32.mrf.mxu3  ;;  %v12151_v27 = vor.u32 %v14984_v21, %v12148_v7 }
 0x311   : > { %6445 = vmatpush.bf16.msrb.mxu2 %v12215_v55  ;;  %v15076_v34 = vld [vmem:[%s15666_s16 + $0x15ec] sm:$0xf]  ;;  %v12772_v53 = vld [vmem:[%s15666_s16 + $0x17f8] sm:$0xf0]  ;;  %v12279_v17 = vor.u32 %v15016_v33, %v12276_v24 }
 0x312   : > { %6458 = vmatpush.bf16.msrb.mxu3 %v12343_v61  ;;  %v15108_v55 = vld [vmem:[%s15666_s16 + $0x16ec] sm:$0xf]  ;;  %v12900_v13 = vld [vmem:[%s15666_s16 + $0x18f8] sm:$0xf0] }
 0x313   : > { %6420 = vmatpush.bf16.msrb.mxu0 %v11943_v23  ;;  %v15140_v61 = vld [vmem:[%s15666_s16 + $0x17ec] sm:$0xf]  ;;  %v12519_v23 = vor.u32 %v15076_v34, %v12516_v42  ;;  %v12500_v51 = vld [vmem:[%s15666_s16 + $0x15d8] sm:$0xf0] }
 0x314   : > { %6433 = vmatpush.bf16.msrb.mxu1 %v12071_v46  ;;  %v15172_v25 = vld [vmem:[%s15666_s16 + $0x18ec] sm:$0xf]  ;;  %v12647_v46 = vor.u32 %v15108_v55, %v12644_v36  ;;  %v12628_v54 = vld [vmem:[%s15666_s16 + $0x16d8] sm:$0xf0] }
 0x315   : > { %6446 = vmatpush.bf16.msrb.mxu2 %v12199_v48  ;;  %v12775_v48 = vor.u32 %v15140_v61, %v12772_v53  ;;  %v15072_v50 = vld [vmem:[%s15666_s16 + $0x15cc] sm:$0xf]  ;;  %v12756_v49 = vld [vmem:[%s15666_s16 + $0x17d8] sm:$0xf0] }
 0x316   : > { %6459 = vmatpush.bf16.msrb.mxu3 %v12327_v45  ;;  %v15104_v52 = vld [vmem:[%s15666_s16 + $0x16cc] sm:$0xf]  ;;  %v12903_v45 = vor.u32 %v15172_v25, %v12900_v13  ;;  %v12884_v39 = vld [vmem:[%s15666_s16 + $0x18d8] sm:$0xf0]  ;;  %v12503_v59 = vor.u32 %v15072_v50, %v12500_v51 }
 0x317   : > { %6421 = vmatpush.bf16.msrb.mxu0 %v11927_v0  ;;  %v15136_v28 = vld [vmem:[%s15666_s16 + $0x17cc] sm:$0xf]  ;;  %v12631_v1 = vor.u32 %v15104_v52, %v12628_v54  ;;  %v12612_v10 = vld [vmem:[%s15666_s16 + $0x16b8] sm:$0xf0] }
 0x318   : > { %6434 = vmatpush.bf16.msrb.mxu1 %v12055_v4  ;;  %v15168_v57 = vld [vmem:[%s15666_s16 + $0x18cc] sm:$0xf]  ;;  %v12759_v0 = vor.u32 %v15136_v28, %v12756_v49  ;;  %v12484_v4 = vld [vmem:[%s15666_s16 + $0x15b8] sm:$0xf0] }
 0x319   : > { %6447 = vmatpush.bf16.msrb.mxu2 %v12183_v5  ;;  %v15068_v2 = vld [vmem:[%s15666_s16 + $0x15ac] sm:$0xf]  ;;  %v12887_v32 = vor.u32 %v15168_v57, %v12884_v39  ;;  %v12868_v19 = vld [vmem:[%s15666_s16 + $0x18b8] sm:$0xf0] }
 0x31a   : > { %6460 = vmatpush.bf16.msrb.mxu3 %v12311_v20  ;;  %v15100_v5 = vld [vmem:[%s15666_s16 + $0x16ac] sm:$0xf]  ;;  %v12740_v20 = vld [vmem:[%s15666_s16 + $0x17b8] sm:$0xf0] }
 0x31b   : > { %6422 = vmatpush.bf16.msrb.mxu0 %v11911_v14  ;;  %v15132_v11 = vld [vmem:[%s15666_s16 + $0x17ac] sm:$0xf]  ;;  %v12615_v31 = vor.u32 %v15100_v5, %v12612_v10  ;;  %v12468_v14 = vld [vmem:[%s15666_s16 + $0x1598] sm:$0xf0] }
 0x31c   : > { %6435 = vmatpush.bf16.msrb.mxu1 %v12039_v22  ;;  %v15164_v30 = vld [vmem:[%s15666_s16 + $0x18ac] sm:$0xf]  ;;  %v12743_v38 = vor.u32 %v15132_v11, %v12740_v20  ;;  %v12596_v15 = vld [vmem:[%s15666_s16 + $0x1698] sm:$0xf0] }
 0x31d   : > { %6448 = vmatpush.bf16.msrb.mxu2 %v12167_v37  ;;  %v15064_v58 = vld [vmem:[%s15666_s16 + $0x158c] sm:$0xf]  ;;  %v12724_v22 = vld [vmem:[%s15666_s16 + $0x1798] sm:$0xf0] }
 0x31e   : > { %6461 = vmatpush.bf16.msrb.mxu3 %v12295_v60  ;;  %v15128_v29 = vld [vmem:[%s15666_s16 + $0x178c] sm:$0xf]  ;;  %v12471_v16 = vor.u32 %v15064_v58, %v12468_v14  ;;  %v12452_v33 = vld [vmem:[%s15666_s16 + $0x1578] sm:$0xf0] }
 0x31f   : > { %6423 = vmatpush.bf16.msrb.mxu0 %v11895_v35  ;;  %v15160_v37 = vld [vmem:[%s15666_s16 + $0x188c] sm:$0xf]  ;;  %v6217_v62 = vpop.f32.mrf.mxu0  ;;  %v12727_v60 = vor.u32 %v15128_v29, %v12724_v22  ;;  %v12580_v55 = vld [vmem:[%s15666_s16 + $0x1678] sm:$0xf0] }
 0x320   : > { %6436 = vmatpush.bf16.msrb.mxu1 %v12023_v41  ;;  %v15060_v7 = vld [vmem:[%s15666_s16 + $0x156c] sm:$0xf]  ;;  %v6218_v26 = vadd.f32 %v6217_v62, %v17432_v40  ;;  %v6230_v34 = vpop.f32.mrf.mxu1  ;;  %v12708_v35 = vld [vmem:[%s15666_s16 + $0x1778] sm:$0xf0] }
 0x321   : > { %6449 = vmatpush.bf16.msrb.mxu2 %v12151_v27  ;;  %v15092_v24 = vld [vmem:[%s15666_s16 + $0x166c] sm:$0xf]  ;;  %v12836_v61 = vld [vmem:[%s15666_s16 + $0x1878] sm:$0xf0]  ;;  %v12455_v41 = vor.u32 %v15060_v7, %v12452_v33 }
 0x322   : > { %6462 = vmatpush.bf16.msrb.mxu3 %v12279_v17  ;;  %6424 = vmatmul.bf16.vlgmr.msrb.gmra.mxu0 %v16093_v44  ;;  %v12487_v44 = vor.u32 %v15068_v2, %v12484_v4  ;;  %v15124_v6 = vld [vmem:[%s15666_s16 + $0x176c] sm:$0xf]  ;;  %v6231_v53 = vadd.f32 %v6230_v34, %v6218_v26  ;;  %v12583_v40 = vor.u32 %v15092_v24, %v12580_v55  ;;  %v12436_v13 = vld [vmem:[%s15666_s16 + $0x1558] sm:$0xf0] }
 0x323   : > { %6468 = vmatpush.bf16.msra.mxu0 %v12519_v23  ;;  %6437 = vmatmul.bf16.vlgmr.msrb.gmra.mxu1 %v16091_v63  ;;  %v12871_v63 = vor.u32 %v15164_v30, %v12868_v19  ;;  %v15156_v36 = vld [vmem:[%s15666_s16 + $0x186c] sm:$0xf]  ;;  %v12711_v27 = vor.u32 %v15124_v6, %v12708_v35  ;;  %v12692_v51 = vld [vmem:[%s15666_s16 + $0x1758] sm:$0xf0] }
 0x324   : > { %6481 = vmatpush.bf16.msra.mxu1 %v12647_v46  ;;  %6450 = vmatmul.bf16.vlgmr.msrb.gmra.mxu2 %v16097_v47  ;;  %v15096_v47 = vld [vmem:[%s15666_s16 + $0x168c] sm:$0xf]  ;;  %v12839_v46 = vor.u32 %v15156_v36, %v12836_v61  ;;  %v12820_v28 = vld [vmem:[%s15666_s16 + $0x1858] sm:$0xf0] }
 0x325   : > { %6494 = vmatpush.bf16.msra.mxu2 %v12775_v48  ;;  %6463 = vmatmul.bf16.vlgmr.msrb.gmra.mxu3 %v16165_v3  ;;  %v12852_v3 = vld [vmem:[%s15666_s16 + $0x1898] sm:$0xf0]  ;;  %v12599_v21 = vor.u32 %v15096_v47, %v12596_v15  ;;  %v15056_v25 = vld [vmem:[%s15666_s16 + $0x154c] sm:$0xf] }
 0x326   : > { %6507 = vmatpush.bf16.msra.mxu3 %v12903_v45  ;;  %v12855_v42 = vor.u32 %v15160_v37, %v12852_v3  ;;  %v15088_v17 = vld [vmem:[%s15666_s16 + $0x164c] sm:$0xf]  ;;  %v12564_v48 = vld [vmem:[%s15666_s16 + $0x1658] sm:$0xf0]  ;;  %v12439_v49 = vor.u32 %v15056_v25, %v12436_v13 }
 0x327   : > { %6469 = vmatpush.bf16.msra.mxu0 %v12503_v59  ;;  %v6243_v23 = vpop.f32.mrf.mxu2  ;;  %v15120_v50 = vld [vmem:[%s15666_s16 + $0x174c] sm:$0xf]  ;;  %v6219_v39 = vpop.f32.mrf.mxu0  ;;  %v12567_v59 = vor.u32 %v15088_v17, %v12564_v48  ;;  %v12420_v2 = vld [vmem:[%s15666_s16 + $0x1538] sm:$0xf0] }
 0x328   : > { %6482 = vmatpush.bf16.msra.mxu1 %v12631_v1  ;;  %v6244_v52 = vadd.f32 %v6243_v23, %v6231_v53  ;;  %v6256_v45 = vpop.f32.mrf.mxu3  ;;  %v15152_v54 = vld [vmem:[%s15666_s16 + $0x184c] sm:$0xf]  ;;  %v12695_v1 = vor.u32 %v15120_v50, %v12692_v51  ;;  %v6232_v5 = vpop.f32.mrf.mxu1  ;;  %v12548_v10 = vld [vmem:[%s15666_s16 + $0x1638] sm:$0xf0] }
 0x329   : > { %6495 = vmatpush.bf16.msra.mxu2 %v12759_v0  ;;  %v15052_v0 = vld [vmem:[%s15666_s16 + $0x152c] sm:$0xf]  ;;  %v12676_v20 = vld [vmem:[%s15666_s16 + $0x1738] sm:$0xf0] }
 0x32a   : > { %6508 = vmatpush.bf16.msra.mxu3 %v12887_v32  ;;  %v6257_v57 = vadd.f32 %v6256_v45, %v6244_v52  ;;  %v15084_v4 = vld [vmem:[%s15666_s16 + $0x162c] sm:$0xf]  ;;  %v12823_v32 = vor.u32 %v15152_v54, %v12820_v28  ;;  %v12804_v19 = vld [vmem:[%s15666_s16 + $0x1838] sm:$0xf0] }
 0x32b   : > { %6470 = vmatpush.bf16.msra.mxu0 %v12487_v44  ;;  %v15116_v11 = vld [vmem:[%s15666_s16 + $0x172c] sm:$0xf]  ;;  %v12423_v44 = vor.u32 %v15052_v0, %v12420_v2  ;;  %v12404_v14 = vld [vmem:[%s15666_s16 + $0x1518] sm:$0xf0] }
 0x32c   : > { %6483 = vmatpush.bf16.msra.mxu1 %v12615_v31  ;;  %v15148_v30 = vld [vmem:[%s15666_s16 + $0x182c] sm:$0xf]  ;;  %v12551_v31 = vor.u32 %v15084_v4, %v12548_v10  ;;  %v12532_v29 = vld [vmem:[%s15666_s16 + $0x1618] sm:$0xf0] }
 0x32d   : > { %6496 = vmatpush.bf16.msra.mxu2 %v12743_v38  ;;  %v12679_v38 = vor.u32 %v15116_v11, %v12676_v20  ;;  %v15048_v58 = vld [vmem:[%s15666_s16 + $0x150c] sm:$0xf]  ;;  %v12807_v15 = vor.u32 %v15148_v30, %v12804_v19  ;;  %v12660_v37 = vld [vmem:[%s15666_s16 + $0x1718] sm:$0xf0] }
 0x32e   : > { %6509 = vmatpush.bf16.msra.mxu3 %v12871_v63  ;;  %v15080_v47 = vld [vmem:[%s15666_s16 + $0x160c] sm:$0xf]  ;;  %v12788_v62 = vld [vmem:[%s15666_s16 + $0x1818] sm:$0xf0] }
 0x32f   : > { %6471 = vmatpush.bf16.msra.mxu0 %v12471_v16  ;;  %v6245_v63 = vpop.f32.mrf.mxu2  ;;  %v15112_v22 = vld [vmem:[%s15666_s16 + $0x170c] sm:$0xf] }
 0x330   : > { %6484 = vmatpush.bf16.msra.mxu1 %v12599_v21  ;;  %v6258_v3 = vpop.f32.mrf.mxu3  ;;  %v15144_v16 = vld [vmem:[%s15666_s16 + $0x180c] sm:$0xf]  ;;  %v12407_v21 = vor.u32 %v15048_v58, %v12404_v14  ;;  %v12663_v7 = vor.u32 %v15112_v22, %v12660_v37 }
 0x331   : > { %6497 = vmatpush.bf16.msra.mxu2 %v12727_v60  ;;  %v12535_v60 = vor.u32 %v15080_v47, %v12532_v29  ;;  %v12791_v33 = vor.u32 %v15144_v16, %v12788_v62 }
 0x332   : > { %6510 = vmatpush.bf16.msra.mxu3 %v12855_v42 }
 0x333   : > { %6472 = vmatpush.bf16.msra.mxu0 %v12455_v41 }
 0x334   : > { %6485 = vmatpush.bf16.msra.mxu1 %v12583_v40 }
 0x335   : > { %6498 = vmatpush.bf16.msra.mxu2 %v12711_v27 }
 0x336   : > { %6511 = vmatpush.bf16.msra.mxu3 %v12839_v46 }
 0x337   : > { %6473 = vmatpush.bf16.msra.mxu0 %v12439_v49 }
 0x338   : > { %6486 = vmatpush.bf16.msra.mxu1 %v12567_v59 }
 0x339   : > { %6499 = vmatpush.bf16.msra.mxu2 %v12695_v1 }
 0x33a   : > { %6512 = vmatpush.bf16.msra.mxu3 %v12823_v32 }
 0x33b   : > { %6474 = vmatpush.bf16.msra.mxu0 %v12423_v44 }
 0x33c   : > { %6487 = vmatpush.bf16.msra.mxu1 %v12551_v31 }
 0x33d   : > { %6500 = vmatpush.bf16.msra.mxu2 %v12679_v38 }
 0x33e   : > { %6513 = vmatpush.bf16.msra.mxu3 %v12807_v15 }
 0x33f   : > { %6475 = vmatpush.bf16.msra.mxu0 %v12407_v21  ;;  %v6269_v24 = vpop.f32.mrf.mxu0  ;;  %v6525_v21 = vrot.slane %v17428_v43, 4 }
 0x340   : > { %6488 = vmatpush.bf16.msra.mxu1 %v12535_v60  ;;  %v6270_v26 = vadd.f32 %v6269_v24, %v6257_v57  ;;  %v6282_v34 = vpop.f32.mrf.mxu1 }
 0x341   : > { %6501 = vmatpush.bf16.msra.mxu2 %v12663_v7  ;;  %v322_v7 = vld [vmem:[#allocation2] sm:$0xff] }
 0x342   : > { %6514 = vmatpush.bf16.msra.mxu3 %v12791_v33  ;;  %6476 = vmatmul.bf16.vlgmr.msra.gmra.mxu0 %v16172_v9  ;;  %v6283_v42 = vadd.f32 %v6282_v34, %v6270_v26 }
 0x343   : > { %6489 = vmatmul.bf16.vlgmr.msra.gmra.mxu1 %v16170_v8 }
 0x344   : > { %6502 = vmatmul.bf16.vlgmr.msra.gmra.mxu2 %v16176_v12 }
 0x345   : > { %6515 = vmatmul.bf16.vlgmr.msra.gmra.mxu3 %v16244_v56 }
 0x347   : > { %v6295_v55 = vpop.f32.mrf.mxu2  ;;  %v6271_v36 = vpop.f32.mrf.mxu0 }
 0x348   : > { %v6296_v6 = vadd.f32 %v6295_v55, %v6283_v42  ;;  %v6308_v35 = vpop.f32.mrf.mxu3  ;;  %v6284_v61 = vpop.f32.mrf.mxu1 }
 0x34a   : > { %v6309_v53 = vadd.f32 %v6308_v35, %v6296_v6 }
 0x34f   : > { %v6297_v41 = vpop.f32.mrf.mxu2 }
 0x350   : > { %v6310_v40 = vpop.f32.mrf.mxu3 }
 0x35f   : > { %v6321_v27 = vpop.f32.mrf.mxu0 }
 0x360   : > { %v6322_v9 = vadd.f32 %v6321_v27, %v6309_v53  ;;  %v6334_v25 = vpop.f32.mrf.mxu1 }
 0x362   : > { %v6335_v8 = vadd.f32 %v6334_v25, %v6322_v9 }
 0x367   : > { %v6347_v13 = vpop.f32.mrf.mxu2  ;;  %v6323_v56 = vpop.f32.mrf.mxu0 }
 0x368   : > { %v6348_v12 = vadd.f32 %v6347_v13, %v6335_v8  ;;  %v6360_v17 = vpop.f32.mrf.mxu3  ;;  %v6336_v23 = vpop.f32.mrf.mxu1 }
 0x36a   : > { %v6361_v46 = vadd.f32 %v6360_v17, %v6348_v12 }
 0x36f   : > { %v6349_v48 = vpop.f32.mrf.mxu2 }
 0x370   : > { %v6362_v50 = vpop.f32.mrf.mxu3 }
 0x37f   : > { %v6373_v51 = vpop.f32.mrf.mxu0 }
 0x380   : > { %v6386_v52 = vpop.f32.mrf.mxu1  ;;  %v6374_v0 = vadd.f32 %v6373_v51, %v6361_v46 }
 0x382   : > { %v6387_v10 = vadd.f32 %v6386_v52, %v6374_v0 }
 0x387   : > { %v6399_v45 = vpop.f32.mrf.mxu2  ;;  %v6375_v28 = vpop.f32.mrf.mxu0 }
 0x388   : > { %v6412_v54 = vpop.f32.mrf.mxu3  ;;  %v6388_v49 = vpop.f32.mrf.mxu1  ;;  %v6400_v11 = vadd.f32 %v6399_v45, %v6387_v10 }
 0x38a   : > { %v6413_v19 = vadd.f32 %v6412_v54, %v6400_v11 }
 0x38f   : > { %v6401_v57 = vpop.f32.mrf.mxu2 }
 0x390   : > { %v6414_v39 = vpop.f32.mrf.mxu3 }
 0x39f   : > { %v6425_v59 = vpop.f32.mrf.mxu0 }
 0x3a0   : > { %v6438_v1 = vpop.f32.mrf.mxu1  ;;  %v6426_v44 = vadd.f32 %v6425_v59, %v6413_v19 }
 0x3a2   : > { %v6439_v31 = vadd.f32 %v6438_v1, %v6426_v44 }
 0x3a7   : > { %v6451_v2 = vpop.f32.mrf.mxu2  ;;  %v6427_v5 = vpop.f32.mrf.mxu0 }
 0x3a8   : > { %v6464_v4 = vpop.f32.mrf.mxu3  ;;  %v6440_v32 = vpop.f32.mrf.mxu1  ;;  %v6452_v38 = vadd.f32 %v6451_v2, %v6439_v31 }
 0x3aa   : > { %v6465_v58 = vadd.f32 %v6464_v4, %v6452_v38 }
 0x3af   : > { %v6453_v20 = vpop.f32.mrf.mxu2 }
 0x3b0   : > { %v6466_v30 = vpop.f32.mrf.mxu3 }
 0x3bf   : > { %v6477_v14 = vpop.f32.mrf.mxu0 }
 0x3c0   : > { %v6490_v47 = vpop.f32.mrf.mxu1  ;;  %v6478_v63 = vadd.f32 %v6477_v14, %v6465_v58 }
 0x3c2   : > { %v6491_v15 = vadd.f32 %v6490_v47, %v6478_v63 }
 0x3c7   : > { %v6503_v29 = vpop.f32.mrf.mxu2  ;;  %v6479_v3 = vpop.f32.mrf.mxu0 }
 0x3c8   : > { %v6504_v22 = vadd.f32 %v6503_v29, %v6491_v15  ;;  %v6516_v37 = vpop.f32.mrf.mxu3  ;;  %v6492_v16 = vpop.f32.mrf.mxu1 }
 0x3ca   : > { %v6517_v62 = vadd.f32 %v6516_v37, %v6504_v22 }
 0x3cc   : > { %v6526_v60 = vrot.slane %v6517_v62, 2 }
 0x3ce   : > { %v6530_v33 = vsel %vm6529_vm1, %v6525_v21, %v6526_v60  ;;  %6539 = sbr.rel (%p12904_p6) target bundleno = 1565 (0x61d), region = 56 }
 0x3cf   : > { %v6532_v24 = vsel %vm6531_vm2, %v16997_v18, %v6530_v33  ;;  %v6505_v26 = vpop.f32.mrf.mxu2 }
 0x3d0   : > { %v6534_v34 = vadd.f32 %v6532_v24, %v322_v7  ;;  %v6518_v42 = vpop.f32.mrf.mxu3 }
 0x3d2   : > { %6535 = vst [vmem:[#allocation2] sm:$0xff] %v6534_v34 }
 0x3d3   : > { %v13047_v55 = vld [vmem:[%s19838_s4 + $0x118] sm:$0xf]  ;;  %v15212_v43 = vld [vmem:[%s19838_s4 + $0x128] sm:$0xf0]  ;;  %v13027_v9 = vld [vmem:[%s19838_s4 + $0xf0] sm:$0xf] }
 0x3d4   : > { %v13207_v6 = vld [vmem:[%s19838_s4 + $0x258] sm:$0xf]  ;;  %v13048_v18 = vor.u32 %v15212_v43, %v13047_v55  ;;  %v15252_v35 = vld [vmem:[%s19838_s4 + $0x268] sm:$0xf0]  ;;  %v15207_v8 = vld [vmem:[%s19838_s4 + $0x100] sm:$0xf0] }
 0x3d5   : > { %v13367_v36 = vld [vmem:[%s19838_s4 + $0x398] sm:$0xf]  ;;  %v15292_v61 = vld [vmem:[%s19838_s4 + $0x3a8] sm:$0xf0]  ;;  %v13208_v53 = vor.u32 %v15252_v35, %v13207_v6  ;;  %v13187_v13 = vld [vmem:[%s19838_s4 + $0x230] sm:$0xf]  ;;  %v13028_v17 = vor.u32 %v15207_v8, %v13027_v9 }
 0x3d6   : > { %v13368_v41 = vor.u32 %v15292_v61, %v13367_v36  ;;  %v13527_v40 = vld [vmem:[%s19838_s4 + $0x4d8] sm:$0xf]  ;;  %v15332_v27 = vld [vmem:[%s19838_s4 + $0x4e8] sm:$0xf0]  ;;  %7621 = vmatpush.bf16.msra.mxu0 %v13048_v18  ;;  %v15247_v12 = vld [vmem:[%s19838_s4 + $0x240] sm:$0xf0] }
 0x3d7   : > { %v13528_v25 = vor.u32 %v15332_v27, %v13527_v40  ;;  %7634 = vmatpush.bf16.msra.mxu1 %v13208_v53  ;;  %v13188_v56 = vor.u32 %v15247_v12, %v13187_v13  ;;  %v13347_v23 = vld [vmem:[%s19838_s4 + $0x370] sm:$0xf]  ;;  %v15287_v46 = vld [vmem:[%s19838_s4 + $0x380] sm:$0xf0]  ;;  %v13007_v52 = vld [vmem:[%s19838_s4 + $0xc8] sm:$0xf] }
 0x3d8   : > { %7647 = vmatpush.bf16.msra.mxu2 %v13368_v41  ;;  %v13507_v48 = vld [vmem:[%s19838_s4 + $0x4b0] sm:$0xf]  ;;  %v13348_v50 = vor.u32 %v15287_v46, %v13347_v23  ;;  %v15327_v51 = vld [vmem:[%s19838_s4 + $0x4c0] sm:$0xf0]  ;;  %v15202_v45 = vld [vmem:[%s19838_s4 + $0xd8] sm:$0xf0] }
 0x3d9   : > { %7660 = vmatpush.bf16.msra.mxu3 %v13528_v25  ;;  %v13508_v54 = vor.u32 %v15327_v51, %v13507_v48  ;;  %v13167_v28 = vld [vmem:[%s19838_s4 + $0x208] sm:$0xf]  ;;  %v15242_v49 = vld [vmem:[%s19838_s4 + $0x218] sm:$0xf0]  ;;  %v13008_v39 = vor.u32 %v15202_v45, %v13007_v52  ;;  %v12987_v5 = vld [vmem:[%s19838_s4 + $0xa0] sm:$0xf] }
 0x3da   : > { %v13327_v57 = vld [vmem:[%s19838_s4 + $0x348] sm:$0xf]  ;;  %7622 = vmatpush.bf16.msra.mxu0 %v13028_v17  ;;  %v15282_v59 = vld [vmem:[%s19838_s4 + $0x358] sm:$0xf0]  ;;  %v13168_v2 = vor.u32 %v15242_v49, %v13167_v28  ;;  %v15197_v32 = vld [vmem:[%s19838_s4 + $0xb0] sm:$0xf0] }
 0x3db   : > { %v13487_v1 = vld [vmem:[%s19838_s4 + $0x488] sm:$0xf]  ;;  %v15322_v0 = vld [vmem:[%s19838_s4 + $0x498] sm:$0xf0]  ;;  %7635 = vmatpush.bf16.msra.mxu1 %v13188_v56  ;;  %v13328_v4 = vor.u32 %v15282_v59, %v13327_v57  ;;  %v13147_v10 = vld [vmem:[%s19838_s4 + $0x1e0] sm:$0xf]  ;;  %v12988_v38 = vor.u32 %v15197_v32, %v12987_v5 }
 0x3dc   : > { %7648 = vmatpush.bf16.msra.mxu2 %v13348_v50  ;;  %v13488_v11 = vor.u32 %v15322_v0, %v13487_v1  ;;  %v15237_v20 = vld [vmem:[%s19838_s4 + $0x1f0] sm:$0xf0]  ;;  %v13307_v30 = vld [vmem:[%s19838_s4 + $0x320] sm:$0xf]  ;;  %v12967_v47 = vld [vmem:[%s19838_s4 + $0x78] sm:$0xf] }
 0x3dd   : > { %7661 = vmatpush.bf16.msra.mxu3 %v13508_v54  ;;  %v15277_v19 = vld [vmem:[%s19838_s4 + $0x330] sm:$0xf0]  ;;  %v13467_v44 = vld [vmem:[%s19838_s4 + $0x460] sm:$0xf]  ;;  %v13148_v58 = vor.u32 %v15237_v20, %v13147_v10  ;;  %v15192_v63 = vld [vmem:[%s19838_s4 + $0x88] sm:$0xf0] }
 0x3de   : > { %v15317_v31 = vld [vmem:[%s19838_s4 + $0x470] sm:$0xf0]  ;;  %7623 = vmatpush.bf16.msra.mxu0 %v13008_v39  ;;  %v13308_v14 = vor.u32 %v15277_v19, %v13307_v30  ;;  %v13127_v15 = vld [vmem:[%s19838_s4 + $0x1b8] sm:$0xf]  ;;  %v15232_v22 = vld [vmem:[%s19838_s4 + $0x1c8] sm:$0xf0]  ;;  %v12968_v21 = vor.u32 %v15192_v63, %v12967_v47 }
 0x3df   : > { %7636 = vmatpush.bf16.msra.mxu1 %v13168_v2  ;;  %v13468_v29 = vor.u32 %v15317_v31, %v13467_v44  ;;  %v13287_v37 = vld [vmem:[%s19838_s4 + $0x2f8] sm:$0xf]  ;;  %v15272_v3 = vld [vmem:[%s19838_s4 + $0x308] sm:$0xf0]  ;;  %v13128_v60 = vor.u32 %v15232_v22, %v13127_v15  ;;  %v12947_v33 = vld [vmem:[%s19838_s4 + $0x50] sm:$0xf] }
 0x3e0   : > { %7649 = vmatpush.bf16.msra.mxu2 %v13328_v4  ;;  %v13447_v16 = vld [vmem:[%s19838_s4 + $0x438] sm:$0xf]  ;;  %v15312_v62 = vld [vmem:[%s19838_s4 + $0x448] sm:$0xf0]  ;;  %v13288_v7 = vor.u32 %v15272_v3, %v13287_v37  ;;  %v15187_v24 = vld [vmem:[%s19838_s4 + $0x60] sm:$0xf0] }
 0x3e1   : > { %7662 = vmatpush.bf16.msra.mxu3 %v13488_v11  ;;  %v13107_v26 = vld [vmem:[%s19838_s4 + $0x190] sm:$0xf]  ;;  %v13448_v34 = vor.u32 %v15312_v62, %v13447_v16  ;;  %v15227_v42 = vld [vmem:[%s19838_s4 + $0x1a0] sm:$0xf0]  ;;  %v12948_v35 = vor.u32 %v15187_v24, %v12947_v33  ;;  %v12927_v53 = vld [vmem:[%s19838_s4 + $0x28] sm:$0xf] }
 0x3e2   : > { %7624 = vmatpush.bf16.msra.mxu0 %v12988_v38  ;;  %v13267_v55 = vld [vmem:[%s19838_s4 + $0x2d0] sm:$0xf]  ;;  %v15267_v43 = vld [vmem:[%s19838_s4 + $0x2e0] sm:$0xf0]  ;;  %v13108_v36 = vor.u32 %v15227_v42, %v13107_v26  ;;  %v15182_v41 = vld [vmem:[%s19838_s4 + $0x38] sm:$0xf0] }
 0x3e3   : > { %7637 = vmatpush.bf16.msra.mxu1 %v13148_v58  ;;  %v13427_v6 = vld [vmem:[%s19838_s4 + $0x410] sm:$0xf]  ;;  %v15307_v18 = vld [vmem:[%s19838_s4 + $0x420] sm:$0xf0]  ;;  %v13268_v61 = vor.u32 %v15267_v43, %v13267_v55  ;;  %v13087_v40 = vld [vmem:[%s19838_s4 + $0x168] sm:$0xf]  ;;  %v12928_v17 = vor.u32 %v15182_v41, %v12927_v53 }
 0x3e4   : > { %7650 = vmatpush.bf16.msra.mxu2 %v13308_v14  ;;  %v13428_v27 = vor.u32 %v15307_v18, %v13427_v6  ;;  %v15222_v9 = vld [vmem:[%s19838_s4 + $0x178] sm:$0xf0]  ;;  %v13247_v25 = vld [vmem:[%s19838_s4 + $0x2a8] sm:$0xf]  ;;  %v12907_v56 = vld [vmem:[%s19838_s4] sm:$0xf] }
 0x3e5   : > { %7663 = vmatpush.bf16.msra.mxu3 %v13468_v29  ;;  %v15262_v8 = vld [vmem:[%s19838_s4 + $0x2b8] sm:$0xf0]  ;;  %v13407_v13 = vld [vmem:[%s19838_s4 + $0x3e8] sm:$0xf]  ;;  %v15177_v23 = vld [vmem:[%s19838_s4 + $0x10] sm:$0xf0]  ;;  %v13088_v46 = vor.u32 %v15222_v9, %v13087_v40 }
 0x3e6   : > { %7625 = vmatpush.bf16.msra.mxu0 %v12968_v21  ;;  %v15302_v12 = vld [vmem:[%s19838_s4 + $0x3f8] sm:$0xf0]  ;;  %v13248_v48 = vor.u32 %v15262_v8, %v13247_v25  ;;  %v13067_v50 = vld [vmem:[%s19838_s4 + $0x140] sm:$0xf]  ;;  %v15217_v51 = vld [vmem:[%s19838_s4 + $0x150] sm:$0xf0]  ;;  %v12908_v1 = vor.u32 %v15177_v23, %v12907_v56 }
 0x3e7   : > { %7638 = vmatpush.bf16.msra.mxu1 %v13128_v60  ;;  %v13227_v52 = vld [vmem:[%s19838_s4 + $0x280] sm:$0xf]  ;;  %v13408_v45 = vor.u32 %v15302_v12, %v13407_v13  ;;  %v15257_v54 = vld [vmem:[%s19838_s4 + $0x290] sm:$0xf0]  ;;  %v15210_v57 = vld [vmem:[%s19838_s4 + $0x11c] sm:$0xf]  ;;  %v13068_v5 = vor.u32 %v15217_v51, %v13067_v50 }
 0x3e8   : > { %7651 = vmatpush.bf16.msra.mxu2 %v13288_v7  ;;  %v13387_v28 = vld [vmem:[%s19838_s4 + $0x3c0] sm:$0xf]  ;;  %v15297_v49 = vld [vmem:[%s19838_s4 + $0x3d0] sm:$0xf0]  ;;  %v13049_v39 = vld [vmem:[%s19838_s4 + $0x12c] sm:$0xf0]  ;;  %v13228_v32 = vor.u32 %v15257_v54, %v13227_v52 }
 0x3e9   : > { %7664 = vmatpush.bf16.msra.mxu3 %v13448_v34  ;;  %v15250_v59 = vld [vmem:[%s19838_s4 + $0x25c] sm:$0xf]  ;;  %v13209_v0 = vld [vmem:[%s19838_s4 + $0x26c] sm:$0xf0]  ;;  %v13388_v20 = vor.u32 %v15297_v49, %v13387_v28  ;;  %v13052_v30 = vor.u32 %v15210_v57, %v13049_v39  ;;  %v15205_v31 = vld [vmem:[%s19838_s4 + $0xf4] sm:$0xf] }
 0x3ea   : > { %7626 = vmatpush.bf16.msra.mxu0 %v12948_v35  ;;  %v15290_v2 = vld [vmem:[%s19838_s4 + $0x39c] sm:$0xf]  ;;  %v13369_v4 = vld [vmem:[%s19838_s4 + $0x3ac] sm:$0xf0]  ;;  %v13212_v19 = vor.u32 %v15250_v59, %v13209_v0  ;;  %v13029_v38 = vld [vmem:[%s19838_s4 + $0x104] sm:$0xf0] }
 0x3eb   : > { %7639 = vmatpush.bf16.msra.mxu1 %v13108_v36  ;;  %v15330_v10 = vld [vmem:[%s19838_s4 + $0x4dc] sm:$0xf]  ;;  %v13529_v11 = vld [vmem:[%s19838_s4 + $0x4ec] sm:$0xf0]  ;;  %v13372_v44 = vor.u32 %v15290_v2, %v13369_v4  ;;  %v15245_v58 = vld [vmem:[%s19838_s4 + $0x234] sm:$0xf]  ;;  %v13032_v37 = vor.u32 %v15205_v31, %v13029_v38 }
 0x3ec   : > { %7652 = vmatpush.bf16.msra.mxu2 %v13268_v61  ;;  %v13532_v14 = vor.u32 %v15330_v10, %v13529_v11  ;;  %v13189_v47 = vld [vmem:[%s19838_s4 + $0x244] sm:$0xf0]  ;;  %v15285_v63 = vld [vmem:[%s19838_s4 + $0x374] sm:$0xf]  ;;  %v15200_v3 = vld [vmem:[%s19838_s4 + $0xcc] sm:$0xf] }
 0x3ed   : > { %7665 = vmatpush.bf16.msra.mxu3 %v13428_v27  ;;  %v13349_v15 = vld [vmem:[%s19838_s4 + $0x384] sm:$0xf0]  ;;  %v15325_v29 = vld [vmem:[%s19838_s4 + $0x4b4] sm:$0xf]  ;;  %v13009_v16 = vld [vmem:[%s19838_s4 + $0xdc] sm:$0xf0]  ;;  %v13192_v21 = vor.u32 %v15245_v58, %v13189_v47 }
 0x3ee   : > { %7627 = vmatpush.bf16.msra.mxu0 %v12928_v17  ;;  %v13509_v22 = vld [vmem:[%s19838_s4 + $0x4c4] sm:$0xf0]  ;;  %v15240_v62 = vld [vmem:[%s19838_s4 + $0x20c] sm:$0xf]  ;;  %v13352_v60 = vor.u32 %v15285_v63, %v13349_v15  ;;  %v13169_v7 = vld [vmem:[%s19838_s4 + $0x21c] sm:$0xf0]  ;;  %v13012_v6 = vor.u32 %v15200_v3, %v13009_v16 }
 0x3ef   : > { %7640 = vmatpush.bf16.msra.mxu1 %v13088_v46  ;;  %v15280_v33 = vld [vmem:[%s19838_s4 + $0x34c] sm:$0xf]  ;;  %v13329_v24 = vld [vmem:[%s19838_s4 + $0x35c] sm:$0xf0]  ;;  %v13512_v26 = vor.u32 %v15325_v29, %v13509_v22  ;;  %v15195_v55 = vld [vmem:[%s19838_s4 + $0xa4] sm:$0xf]  ;;  %v13172_v18 = vor.u32 %v15240_v62, %v13169_v7 }
 0x3f0   : > { %7653 = vmatpush.bf16.msra.mxu2 %v13248_v48  ;;  %v15320_v34 = vld [vmem:[%s19838_s4 + $0x48c] sm:$0xf]  ;;  %v13489_v42 = vld [vmem:[%s19838_s4 + $0x49c] sm:$0xf0]  ;;  %v12989_v43 = vld [vmem:[%s19838_s4 + $0xb4] sm:$0xf0]  ;;  %v13332_v35 = vor.u32 %v15280_v33, %v13329_v24 }
 0x3f1   : > { %7666 = vmatpush.bf16.msra.mxu3 %v13408_v45  ;;  %v15235_v36 = vld [vmem:[%s19838_s4 + $0x1e4] sm:$0xf]  ;;  %v13149_v61 = vld [vmem:[%s19838_s4 + $0x1f4] sm:$0xf0]  ;;  %v6541_v40 = vld [vmem:[%s19836_s2] sm:$0xf]  ;;  %v13492_v27 = vor.u32 %v15320_v34, %v13489_v42  ;;  %v12992_v45 = vor.u32 %v15195_v55, %v12989_v43 }
 0x3f2   : > { %7628 = vmatpush.bf16.msra.mxu0 %v12908_v1  ;;  %v15275_v53 = vld [vmem:[%s19838_s4 + $0x324] sm:$0xf]  ;;  %v13309_v41 = vld [vmem:[%s19838_s4 + $0x334] sm:$0xf0]  ;;  %v6543_v9 = vperm.slane %v6541_v40, 0  ;;  %v6544_v25 = vperm.slane %v6541_v40, 1  ;;  %v13152_v39 = vor.u32 %v15235_v36, %v13149_v61 }
 0x3f3   : > { %7641 = vmatpush.bf16.msra.mxu1 %v13068_v5  ;;  %v6545_v8 = vperm.slane %v6541_v40, 2  ;;  %v6555_v13 = vld [vmem:[%s19837_s3] sm:$0xf]  ;;  %v15315_v12 = vld [vmem:[%s19838_s4 + $0x464] sm:$0xf]  ;;  %v6546_v17 = vperm.slane %v6541_v40, 3  ;;  %v13312_v59 = vor.u32 %v15275_v53, %v13309_v41 }
 0x3f4   : > { %7654 = vmatpush.bf16.msra.mxu2 %v13228_v32  ;;  %v6557_v56 = vperm.slane %v6555_v13, 0  ;;  %v6558_v23 = vperm.slane %v6555_v13, 1  ;;  %v6559_v46 = vperm.slane %v6555_v13, 2  ;;  %v13469_v48 = vld [vmem:[%s19838_s4 + $0x474] sm:$0xf0]  ;;  %v6547_v50 = vrot.slane %v6544_v25, 6 }
 0x3f5   : > { %7667 = vmatpush.bf16.msra.mxu3 %v13388_v20  ;;  %v6548_v51 = vrot.slane %v6545_v8, 4  ;;  %v6560_v52 = vperm.slane %v6555_v13, 3  ;;  %v15190_v54 = vld [vmem:[%s19838_s4 + $0x7c] sm:$0xf]  ;;  %v6549_v28 = vrot.slane %v6546_v17, 2  ;;  %v6540_v2 = vld [vmem:[#allocation2] sm:$0xff]  ;;  %v13472_v32 = vor.u32 %v15315_v12, %v13469_v48 }
 0x3f6   : > { %7673 = vmatpush.bf16.msrb.mxu0 %v13052_v30  ;;  %v6561_v49 = vrot.slane %v6558_v23, 6  ;;  %v6562_v57 = vrot.slane %v6559_v46, 4  ;;  %v12969_v1 = vld [vmem:[%s19838_s4 + $0x8c] sm:$0xf0]  ;;  %v15230_v0 = vld [vmem:[%s19838_s4 + $0x1bc] sm:$0xf]  ;;  %v6550_v4 = vsel %vm6527_vm0, %v6543_v9, %v6547_v50 }
 0x3f7   : > { %7686 = vmatpush.bf16.msrb.mxu1 %v13212_v19  ;;  %v6563_v5 = vrot.slane %v6560_v52, 2  ;;  %v13129_v10 = vld [vmem:[%s19838_s4 + $0x1cc] sm:$0xf0]  ;;  %v15270_v11 = vld [vmem:[%s19838_s4 + $0x2fc] sm:$0xf]  ;;  %v6551_v30 = vsel %vm6529_vm1, %v6548_v51, %v6549_v28 }
 0x3f8   : > { %7699 = vmatpush.bf16.msrb.mxu2 %v13372_v44  ;;  %v13289_v20 = vld [vmem:[%s19838_s4 + $0x30c] sm:$0xf0]  ;;  %v6564_v19 = vsel %vm6527_vm0, %v6557_v56, %v6561_v49  ;;  %v15310_v44 = vld [vmem:[%s19838_s4 + $0x43c] sm:$0xf]  ;;  %v6552_v38 = vsel %vm6531_vm2, %v6550_v4, %v6551_v30  ;;  %v13132_v15 = vor.u32 %v15230_v0, %v13129_v10  ;;  %v15185_v22 = vld [vmem:[%s19838_s4 + $0x54] sm:$0xf] }
 0x3f9   : > { %7712 = vmatpush.bf16.msrb.mxu3 %v13532_v14  ;;  %v13449_v31 = vld [vmem:[%s19838_s4 + $0x44c] sm:$0xf0]  ;;  %v6565_v58 = vsel %vm6529_vm1, %v6562_v57, %v6563_v5  ;;  %v12972_v14 = vor.u32 %v15190_v54, %v12969_v1  ;;  %v6554_v47 = vmul.f32 %v6552_v38, %v6540_v2  ;;  %v13292_v29 = vor.u32 %v15270_v11, %v13289_v20  ;;  %v15225_v3 = vld [vmem:[%s19838_s4 + $0x194] sm:$0xf]  ;;  %v13109_v62 = vld [vmem:[%s19838_s4 + $0x1a4] sm:$0xf0] }
 0x3fa   : > { %7674 = vmatpush.bf16.msrb.mxu0 %v13032_v37  ;;  %v6566_v63 = vsel %vm6531_vm2, %v6564_v19, %v6565_v58  ;;  %v12949_v37 = vld [vmem:[%s19838_s4 + $0x64] sm:$0xf0]  ;;  %v13452_v16 = vor.u32 %v15310_v44, %v13449_v31  ;;  %v15305_v33 = vld [vmem:[%s19838_s4 + $0x414] sm:$0xf]  ;;  %v15180_v42 = vld [vmem:[%s19838_s4 + $0x2c] sm:$0xf]  ;;  %v13112_v55 = vor.u32 %v15225_v3, %v13109_v62 }
 0x3fb   : > { %7687 = vmatpush.bf16.msrb.mxu1 %v13192_v21  ;;  %v15265_v21 = vld [vmem:[%s19838_s4 + $0x2d4] sm:$0xf]  ;;  %v6568_v7 = vadd.f32 %v6566_v63, %v6554_v47  ;;  %v13429_v24 = vld [vmem:[%s19838_s4 + $0x424] sm:$0xf0]  ;;  %v15260_v61 = vld [vmem:[%s19838_s4 + $0x2ac] sm:$0xf] }
 0x3fc   : > { %7700 = vmatpush.bf16.msrb.mxu2 %v13352_v60  ;;  %v13269_v60 = vld [vmem:[%s19838_s4 + $0x2e4] sm:$0xf0]  ;;  %v13432_v36 = vor.u32 %v15305_v33, %v13429_v24  ;;  %v13249_v53 = vld [vmem:[%s19838_s4 + $0x2bc] sm:$0xf0]  ;;  %v15300_v41 = vld [vmem:[%s19838_s4 + $0x3ec] sm:$0xf] }
 0x3fd   : > { %7713 = vmatpush.bf16.msrb.mxu3 %v13512_v26  ;;  %v12952_v26 = vor.u32 %v15185_v22, %v12949_v37  ;;  %v6569_v34 = vmax.f32 %v6568_v7, 0.0  ;;  %v13272_v43 = vor.u32 %v15265_v21, %v13269_v60  ;;  %v13409_v40 = vld [vmem:[%s19838_s4 + $0x3fc] sm:$0xf0]  ;;  %v13252_v25 = vor.u32 %v15260_v61, %v13249_v53  ;;  %v15175_v8 = vld [vmem:[%s19838_s4 + $0x4] sm:$0xf] }
 0x3fe   : > { %7675 = vmatpush.bf16.msrb.mxu0 %v13012_v6  ;;  %v12929_v6 = vld [vmem:[%s19838_s4 + $0x3c] sm:$0xf0]  ;;  %v12909_v13 = vld [vmem:[%s19838_s4 + $0x14] sm:$0xf0]  ;;  %v13412_v12 = vor.u32 %v15300_v41, %v13409_v40  ;;  %v15215_v17 = vld [vmem:[%s19838_s4 + $0x144] sm:$0xf] }
 0x3ff   : > { %7688 = vmatpush.bf16.msrb.mxu1 %v13172_v18  ;;  %v15220_v18 = vld [vmem:[%s19838_s4 + $0x16c] sm:$0xf]  ;;  %6570 = vst [vmem:[#allocation3] sm:$0xff] %v6569_v34  ;;  %v13069_v56 = vld [vmem:[%s19838_s4 + $0x154] sm:$0xf0] }
 0x400   : > { %7701 = vmatpush.bf16.msrb.mxu2 %v13332_v35  ;;  %v13089_v35 = vld [vmem:[%s19838_s4 + $0x17c] sm:$0xf0]  ;;  %6572 = vst [vmem:[#allocation1] ss:$4 sm:$0xff] %v6569_v34  ;;  %v15255_v23 = vld [vmem:[%s19838_s4 + $0x284] sm:$0xf]  ;;  %v13072_v10 = vor.u32 %v15215_v17, %v13069_v56 }
 0x401   : > { %7714 = vmatpush.bf16.msrb.mxu3 %v13492_v27  ;;  %v12932_v27 = vor.u32 %v15180_v42, %v12929_v6  ;;  %v13092_v9 = vor.u32 %v15220_v18, %v13089_v35  ;;  %v13229_v46 = vld [vmem:[%s19838_s4 + $0x294] sm:$0xf0]  ;;  %v15295_v48 = vld [vmem:[%s19838_s4 + $0x3c4] sm:$0xf]  ;;  %v13055_v51 = vld [vmem:[%s19838_s4 + $0x120] sm:$0xf] }
 0x402   : > { %7676 = vmatpush.bf16.msrb.mxu0 %v12992_v45  ;;  %v13389_v50 = vld [vmem:[%s19838_s4 + $0x3d4] sm:$0xf0]  ;;  %v15213_v52 = vld [vmem:[%s19838_s4 + $0x130] sm:$0xf0]  ;;  %v12912_v45 = vor.u32 %v15175_v8, %v12909_v13  ;;  %v13215_v54 = vld [vmem:[%s19838_s4 + $0x260] sm:$0xf]  ;;  %v13232_v11 = vor.u32 %v15255_v23, %v13229_v46 }
 0x403   : > { %7689 = vmatpush.bf16.msrb.mxu1 %v13152_v39  ;;  %v15253_v28 = vld [vmem:[%s19838_s4 + $0x270] sm:$0xf0]  ;;  %v13375_v49 = vld [vmem:[%s19838_s4 + $0x3a0] sm:$0xf]  ;;  %v13392_v19 = vor.u32 %v15295_v48, %v13389_v50  ;;  %v13056_v44 = vor.u32 %v15213_v52, %v13055_v51  ;;  %v13035_v58 = vld [vmem:[%s19838_s4 + $0xf8] sm:$0xf] }
 0x404   : > { %7702 = vmatpush.bf16.msrb.mxu2 %v13312_v59  ;;  %v15293_v57 = vld [vmem:[%s19838_s4 + $0x3b0] sm:$0xf0]  ;;  %v13535_v39 = vld [vmem:[%s19838_s4 + $0x4e0] sm:$0xf]  ;;  %v13216_v31 = vor.u32 %v15253_v28, %v13215_v54  ;;  %v13195_v47 = vld [vmem:[%s19838_s4 + $0x238] sm:$0xf] }
 0x405   : > { %7715 = vmatpush.bf16.msrb.mxu3 %v13472_v32  ;;  %v15333_v59 = vld [vmem:[%s19838_s4 + $0x4f0] sm:$0xf0]  ;;  %v13376_v38 = vor.u32 %v15293_v57, %v13375_v49  ;;  %v15288_v22 = vld [vmem:[%s19838_s4 + $0x388] sm:$0xf0]  ;;  %v13515_v37 = vld [vmem:[%s19838_s4 + $0x4b8] sm:$0xf] }
 0x406   : > { %7677 = vmatpush.bf16.msrb.mxu0 %v12972_v14  ;;  %v15208_v14 = vld [vmem:[%s19838_s4 + $0x108] sm:$0xf0]  ;;  %v13536_v63 = vor.u32 %v15333_v59, %v13535_v39  ;;  %v13015_v60 = vld [vmem:[%s19838_s4 + $0xd0] sm:$0xf]  ;;  %v15203_v7 = vld [vmem:[%s19838_s4 + $0xe0] sm:$0xf0] }
 0x407   : > { %7690 = vmatpush.bf16.msrb.mxu1 %v13132_v15  ;;  %v6575_v1 = vld.sshfl [vmem:[#allocation1 + $0x10] sm:$0xff pattern:$0x73625140]  ;;  %v6573_v0 = vld.sshfl [vmem:[#allocation1] sm:$0xff pattern:$0x73625140]  ;;  %v13016_v6 = vor.u32 %v15203_v7, %v13015_v60 }
 0x408   : > { %7703 = vmatpush.bf16.msrb.mxu2 %v13292_v29  ;;  %v17948_v2 = vpack.c.bf16 %v6575_v1, %v6575_v1  ;;  %v17950_v4 = vpack.c.bf16 %v6573_v0, %v6573_v0  ;;  %v6576_v5 = vld.sshfl [vmem:[#allocation1 + $0x18] sm:$0xff pattern:$0x73625140]  ;;  %v6574_v32 = vld.sshfl [vmem:[#allocation1 + $0x8] sm:$0xff pattern:$0x73625140] }
 0x409   : > { %7716 = vmatpush.bf16.msrb.mxu3 %v13452_v16  ;;  %v17952_v20 = vpack.c.bf16 %v6576_v5, %v6576_v5  ;;  %v17954_v30 = vpack.c.bf16 %v6574_v32, %v6574_v32  ;;  %v15248_v15 = vld [vmem:[%s19838_s4 + $0x248] sm:$0xf0]  ;;  %v13355_v29 = vld [vmem:[%s19838_s4 + $0x378] sm:$0xf]  ;;  %v13036_v16 = vor.u32 %v15208_v14, %v13035_v58  ;;  %v13175_v33 = vld [vmem:[%s19838_s4 + $0x210] sm:$0xf] }
 0x40a   : > { %7678 = vmatpush.bf16.msrb.mxu0 %v12952_v26  ;;  %7655 = vmatmul.bf16.vlgmr.msra.gmra.mxu2 %v17948_v2  ;;  %v15328_v3 = vld [vmem:[%s19838_s4 + $0x4c8] sm:$0xf0]  ;;  %v13196_v62 = vor.u32 %v15248_v15, %v13195_v47  ;;  %v13356_v21 = vor.u32 %v15288_v22, %v13355_v29  ;;  %v15243_v26 = vld [vmem:[%s19838_s4 + $0x220] sm:$0xf0]  ;;  %v13335_v34 = vld [vmem:[%s19838_s4 + $0x350] sm:$0xf] }
 0x40b   : > { %7691 = vmatpush.bf16.msrb.mxu1 %v13112_v55  ;;  %7629 = vmatmul.bf16.vlgmr.msra.gmra.mxu0 %v17950_v4  ;;  %v13516_v24 = vor.u32 %v15328_v3, %v13515_v37  ;;  %v15283_v42 = vld [vmem:[%s19838_s4 + $0x360] sm:$0xf0]  ;;  %v13495_v55 = vld [vmem:[%s19838_s4 + $0x490] sm:$0xf]  ;;  %v13176_v18 = vor.u32 %v15243_v26, %v13175_v33  ;;  %v15198_v61 = vld [vmem:[%s19838_s4 + $0xb8] sm:$0xf0] }
 0x40c   : > { %7704 = vmatpush.bf16.msrb.mxu2 %v13272_v43  ;;  %7668 = vmatmul.bf16.vlgmr.msra.gmra.mxu3 %v17952_v20  ;;  %v15323_v43 = vld [vmem:[%s19838_s4 + $0x4a0] sm:$0xf0]  ;;  %v13336_v35 = vor.u32 %v15283_v42, %v13335_v34  ;;  %v13155_v53 = vld [vmem:[%s19838_s4 + $0x1e8] sm:$0xf]  ;;  %v15238_v40 = vld [vmem:[%s19838_s4 + $0x1f8] sm:$0xf0] }
 0x40d   : > { %7717 = vmatpush.bf16.msrb.mxu3 %v13432_v36  ;;  %7642 = vmatmul.bf16.vlgmr.msra.gmra.mxu1 %v17954_v30  ;;  %v12995_v36 = vld [vmem:[%s19838_s4 + $0xa8] sm:$0xf]  ;;  %v13496_v41 = vor.u32 %v15323_v43, %v13495_v55  ;;  %v15318_v8 = vld [vmem:[%s19838_s4 + $0x478] sm:$0xf0]  ;;  %v12975_v56 = vld [vmem:[%s19838_s4 + $0x80] sm:$0xf] }
 0x40e   : > { %7679 = vmatpush.bf16.msrb.mxu0 %v12932_v27  ;;  %v13315_v27 = vld [vmem:[%s19838_s4 + $0x328] sm:$0xf]  ;;  %v12996_v13 = vor.u32 %v15198_v61, %v12995_v36  ;;  %v15193_v23 = vld [vmem:[%s19838_s4 + $0x90] sm:$0xf0]  ;;  %v13135_v46 = vld [vmem:[%s19838_s4 + $0x1c0] sm:$0xf] }
 0x40f   : > { %7692 = vmatpush.bf16.msrb.mxu1 %v13092_v9  ;;  %v15278_v9 = vld [vmem:[%s19838_s4 + $0x338] sm:$0xf0]  ;;  %v15233_v50 = vld [vmem:[%s19838_s4 + $0x1d0] sm:$0xf0]  ;;  %v13295_v51 = vld [vmem:[%s19838_s4 + $0x300] sm:$0xf]  ;;  %v12976_v28 = vor.u32 %v15193_v23, %v12975_v56 }
 0x410   : > { %7705 = vmatpush.bf16.msrb.mxu2 %v13252_v25  ;;  %v13475_v25 = vld [vmem:[%s19838_s4 + $0x468] sm:$0xf]  ;;  %v13316_v17 = vor.u32 %v15278_v9, %v13315_v27  ;;  %v15273_v52 = vld [vmem:[%s19838_s4 + $0x310] sm:$0xf0]  ;;  %v13136_v49 = vor.u32 %v15233_v50, %v13135_v46  ;;  %v12955_v39 = vld [vmem:[%s19838_s4 + $0x58] sm:$0xf] }
 0x411   : > { %7718 = vmatpush.bf16.msrb.mxu3 %v13412_v12  ;;  %v13156_v12 = vor.u32 %v15238_v40, %v13155_v53  ;;  %v13476_v48 = vor.u32 %v15318_v8, %v13475_v25  ;;  %v15313_v54 = vld [vmem:[%s19838_s4 + $0x450] sm:$0xf0]  ;;  %v13296_v57 = vor.u32 %v15273_v52, %v13295_v51  ;;  %v15188_v59 = vld [vmem:[%s19838_s4 + $0x68] sm:$0xf0]  ;;  %v13115_v1 = vld [vmem:[%s19838_s4 + $0x198] sm:$0xf] }
 0x412   : > { %7680 = vmatpush.bf16.msrb.mxu0 %v12912_v45  ;;  %v13455_v45 = vld [vmem:[%s19838_s4 + $0x440] sm:$0xf]  ;;  %v15228_v5 = vld [vmem:[%s19838_s4 + $0x1a8] sm:$0xf0]  ;;  %v13275_v32 = vld [vmem:[%s19838_s4 + $0x2d8] sm:$0xf] }
 0x413   : > { %7693 = vmatpush.bf16.msrb.mxu1 %v13072_v10  ;;  %v13456_v0 = vor.u32 %v15313_v54, %v13455_v45  ;;  %v15268_v10 = vld [vmem:[%s19838_s4 + $0x2e8] sm:$0xf0]  ;;  %v12935_v58 = vld [vmem:[%s19838_s4 + $0x30] sm:$0xf]  ;;  %v15183_v14 = vld [vmem:[%s19838_s4 + $0x40] sm:$0xf0] }
 0x414   : > { %7706 = vmatpush.bf16.msrb.mxu2 %v13232_v11  ;;  %v13435_v11 = vld [vmem:[%s19838_s4 + $0x418] sm:$0xf]  ;;  %v13095_v47 = vld [vmem:[%s19838_s4 + $0x170] sm:$0xf]  ;;  %v15223_v15 = vld [vmem:[%s19838_s4 + $0x180] sm:$0xf0] }
 0x415   : > { %7719 = vmatpush.bf16.msrb.mxu3 %v13392_v19  ;;  %v15308_v19 = vld [vmem:[%s19838_s4 + $0x428] sm:$0xf0]  ;;  %v13255_v29 = vld [vmem:[%s19838_s4 + $0x2b0] sm:$0xf]  ;;  %v15263_v22 = vld [vmem:[%s19838_s4 + $0x2c0] sm:$0xf0]  ;;  %v13096_v60 = vor.u32 %v15223_v15, %v13095_v47 }
 0x416   : > { %7725 = vmatpush.bf16.msra.mxu0 %v13056_v44  ;;  %v12956_v44 = vor.u32 %v15188_v59, %v12955_v39  ;;  %v13415_v37 = vld [vmem:[%s19838_s4 + $0x3f0] sm:$0xf]  ;;  %v15303_v3 = vld [vmem:[%s19838_s4 + $0x400] sm:$0xf0]  ;;  %v13256_v7 = vor.u32 %v15263_v22, %v13255_v29  ;;  %v13075_v33 = vld [vmem:[%s19838_s4 + $0x148] sm:$0xf] }
 0x417   : > { %7738 = vmatpush.bf16.msra.mxu1 %v13216_v31  ;;  %v13116_v31 = vor.u32 %v15228_v5, %v13115_v1  ;;  %v13235_v26 = vld [vmem:[%s19838_s4 + $0x288] sm:$0xf]  ;;  %v13416_v34 = vor.u32 %v15303_v3, %v13415_v37  ;;  %v15258_v42 = vld [vmem:[%s19838_s4 + $0x298] sm:$0xf0]  ;;  %v13217_v61 = vld [vmem:[%s19838_s4 + $0x274] sm:$0xf0] }
 0x418   : > { %7751 = vmatpush.bf16.msra.mxu2 %v13376_v38  ;;  %v13276_v38 = vor.u32 %v15268_v10, %v13275_v32  ;;  %v13395_v55 = vld [vmem:[%s19838_s4 + $0x3c8] sm:$0xf]  ;;  %v15298_v43 = vld [vmem:[%s19838_s4 + $0x3d8] sm:$0xf0]  ;;  %v15291_v53 = vld [vmem:[%s19838_s4 + $0x3a4] sm:$0xf]  ;;  %v13236_v27 = vor.u32 %v15258_v42, %v13235_v26 }
 0x419   : > { %7764 = vmatpush.bf16.msra.mxu3 %v13536_v63  ;;  %v13436_v63 = vor.u32 %v15308_v19, %v13435_v11  ;;  %v15331_v9 = vld [vmem:[%s19838_s4 + $0x4e4] sm:$0xf]  ;;  %v13537_v25 = vld [vmem:[%s19838_s4 + $0x4f4] sm:$0xf0]  ;;  %v13396_v8 = vor.u32 %v15298_v43, %v13395_v55  ;;  %v15206_v56 = vld [vmem:[%s19838_s4 + $0xfc] sm:$0xf] }
 0x41a   : > { %7726 = vmatpush.bf16.msra.mxu0 %v13036_v16  ;;  %7707 = vmatmul.bf16.vlgmr.msrb.gmra.mxu2 %v17948_v2  ;;  %v12936_v16 = vor.u32 %v15183_v14, %v12935_v58  ;;  %v13037_v23 = vld [vmem:[%s19838_s4 + $0x10c] sm:$0xf0]  ;;  %v15246_v46 = vld [vmem:[%s19838_s4 + $0x23c] sm:$0xf]  ;;  %v15201_v39 = vld [vmem:[%s19838_s4 + $0xd4] sm:$0xf] }
 0x41b   : > { %7739 = vmatpush.bf16.msra.mxu1 %v13196_v62  ;;  %7681 = vmatmul.bf16.vlgmr.msrb.gmra.mxu0 %v17950_v4  ;;  %v12915_v62 = vld [vmem:[%s19838_s4 + $0x8] sm:$0xf]  ;;  %v13197_v50 = vld [vmem:[%s19838_s4 + $0x24c] sm:$0xf0]  ;;  %v15286_v51 = vld [vmem:[%s19838_s4 + $0x37c] sm:$0xf] }
 0x41c   : > { %7752 = vmatpush.bf16.msra.mxu2 %v13356_v21  ;;  %7720 = vmatmul.bf16.vlgmr.msrb.gmra.mxu3 %v17952_v20  ;;  %v15178_v21 = vld [vmem:[%s19838_s4 + $0x18] sm:$0xf0]  ;;  %v13357_v52 = vld [vmem:[%s19838_s4 + $0x38c] sm:$0xf0]  ;;  %v13017_v59 = vld [vmem:[%s19838_s4 + $0xe4] sm:$0xf0] }
 0x41d   : > { %7765 = vmatpush.bf16.msra.mxu3 %v13516_v24  ;;  %7694 = vmatmul.bf16.vlgmr.msrb.gmra.mxu1 %v17954_v30  ;;  %v15218_v24 = vld [vmem:[%s19838_s4 + $0x158] sm:$0xf0]  ;;  %v12916_v36 = vor.u32 %v15178_v21, %v12915_v62  ;;  %v13517_v54 = vld [vmem:[%s19838_s4 + $0x4cc] sm:$0xf0]  ;;  %v15241_v1 = vld [vmem:[%s19838_s4 + $0x214] sm:$0xf] }
 0x41e   : > { %7727 = vmatpush.bf16.msra.mxu0 %v13016_v6  ;;  %v15211_v6 = vld [vmem:[%s19838_s4 + $0x124] sm:$0xf]  ;;  %v13076_v40 = vor.u32 %v15218_v24, %v13075_v33  ;;  %v15326_v45 = vld [vmem:[%s19838_s4 + $0x4bc] sm:$0xf]  ;;  %v13177_v5 = vld [vmem:[%s19838_s4 + $0x224] sm:$0xf0] }
 0x41f   : > { %7740 = vmatpush.bf16.msra.mxu1 %v13176_v18  ;;  %v13057_v18 = vld [vmem:[%s19838_s4 + $0x134] sm:$0xf0]  ;;  %v15281_v32 = vld [vmem:[%s19838_s4 + $0x354] sm:$0xf]  ;;  %v13337_v10 = vld [vmem:[%s19838_s4 + $0x364] sm:$0xf0] }
 0x420   : > { %7753 = vmatpush.bf16.msra.mxu2 %v13336_v35  ;;  %v15251_v35 = vld [vmem:[%s19838_s4 + $0x264] sm:$0xf]  ;;  %v15321_v11 = vld [vmem:[%s19838_s4 + $0x494] sm:$0xf]  ;;  %v13497_v19 = vld [vmem:[%s19838_s4 + $0x4a4] sm:$0xf0] }
 0x421   : > { %7766 = vmatpush.bf16.msra.mxu3 %v13496_v41  ;;  %v13377_v41 = vld [vmem:[%s19838_s4 + $0x3b4] sm:$0xf0]  ;;  %v15196_v58 = vld [vmem:[%s19838_s4 + $0xac] sm:$0xf]  ;;  %v12997_v14 = vld [vmem:[%s19838_s4 + $0xbc] sm:$0xf0] }
 0x422   : > { %7728 = vmatpush.bf16.msra.mxu0 %v12996_v13  ;;  %v13060_v13 = vor.u32 %v15211_v6, %v13057_v18  ;;  %v15236_v47 = vld [vmem:[%s19838_s4 + $0x1ec] sm:$0xf]  ;;  %v13157_v15 = vld [vmem:[%s19838_s4 + $0x1fc] sm:$0xf0]  ;;  %v15231_v33 = vld [vmem:[%s19838_s4 + $0x1c4] sm:$0xf] }
 0x423   : > { %7741 = vmatpush.bf16.msra.mxu1 %v13156_v12  ;;  %v13220_v12 = vor.u32 %v15251_v35, %v13217_v61  ;;  %v15276_v29 = vld [vmem:[%s19838_s4 + $0x32c] sm:$0xf]  ;;  %v13317_v22 = vld [vmem:[%s19838_s4 + $0x33c] sm:$0xf0]  ;;  %v13160_v62 = vor.u32 %v15236_v47, %v13157_v15  ;;  %v13137_v26 = vld [vmem:[%s19838_s4 + $0x1d4] sm:$0xf0] }
 0x424   : > { %7754 = vmatpush.bf16.msra.mxu2 %v13316_v17  ;;  %v13380_v17 = vor.u32 %v15291_v53, %v13377_v41  ;;  %v15316_v37 = vld [vmem:[%s19838_s4 + $0x46c] sm:$0xf]  ;;  %v13477_v3 = vld [vmem:[%s19838_s4 + $0x47c] sm:$0xf0]  ;;  %v13320_v21 = vor.u32 %v15276_v29, %v13317_v22  ;;  %v13297_v42 = vld [vmem:[%s19838_s4 + $0x314] sm:$0xf0]  ;;  %v13140_v18 = vor.u32 %v15231_v33, %v13137_v26 }
 0x425   : > { %7767 = vmatpush.bf16.msra.mxu3 %v13476_v48  ;;  %v13540_v48 = vor.u32 %v15331_v9, %v13537_v25  ;;  %v13480_v24 = vor.u32 %v15316_v37, %v13477_v3  ;;  %v15311_v55 = vld [vmem:[%s19838_s4 + $0x444] sm:$0xf]  ;;  %v13457_v43 = vld [vmem:[%s19838_s4 + $0x454] sm:$0xf0]  ;;  %v12957_v61 = vld [vmem:[%s19838_s4 + $0x6c] sm:$0xf0] }
 0x426   : > { %7729 = vmatpush.bf16.msra.mxu0 %v12976_v28  ;;  %v13040_v28 = vor.u32 %v15206_v56, %v13037_v23  ;;  %v15226_v53 = vld [vmem:[%s19838_s4 + $0x19c] sm:$0xf]  ;;  %v13460_v41 = vor.u32 %v15311_v55, %v13457_v43  ;;  %v13277_v9 = vld [vmem:[%s19838_s4 + $0x2ec] sm:$0xf0]  ;;  %v15181_v56 = vld [vmem:[%s19838_s4 + $0x34] sm:$0xf] }
 0x427   : > { %7742 = vmatpush.bf16.msra.mxu1 %v13136_v49  ;;  %v13200_v49 = vor.u32 %v15246_v46, %v13197_v50  ;;  %v15306_v25 = vld [vmem:[%s19838_s4 + $0x41c] sm:$0xf]  ;;  %v12937_v23 = vld [vmem:[%s19838_s4 + $0x44] sm:$0xf0]  ;;  %v15221_v46 = vld [vmem:[%s19838_s4 + $0x174] sm:$0xf] }
 0x428   : > { %7755 = vmatpush.bf16.msra.mxu2 %v13296_v57  ;;  %v13360_v57 = vor.u32 %v15286_v51, %v13357_v52  ;;  %v13097_v50 = vld [vmem:[%s19838_s4 + $0x184] sm:$0xf0]  ;;  %v15261_v51 = vld [vmem:[%s19838_s4 + $0x2b4] sm:$0xf]  ;;  %v15334_v37 = vld [vmem:[%s19838_s4 + $0x4f8] sm:$0xf0] }
 0x429   : > { %7768 = vmatpush.bf16.msra.mxu3 %v13456_v0  ;;  %v13520_v0 = vor.u32 %v15326_v45, %v13517_v54  ;;  %v13257_v52 = vld [vmem:[%s19838_s4 + $0x2c4] sm:$0xf0]  ;;  %v15301_v45 = vld [vmem:[%s19838_s4 + $0x3f4] sm:$0xf]  ;;  %v13203_v33 = vld [vmem:[%s19838_s4 + $0x240] sm:$0xf] }
 0x42a   : > { %7730 = vmatpush.bf16.msra.mxu0 %v12956_v44  ;;  %v13020_v44 = vor.u32 %v15201_v39, %v13017_v59  ;;  %v13417_v54 = vld [vmem:[%s19838_s4 + $0x404] sm:$0xf0]  ;;  %v13100_v39 = vor.u32 %v15221_v46, %v13097_v50  ;;  %v13260_v59 = vor.u32 %v15261_v51, %v13257_v52  ;;  %v15249_v26 = vld [vmem:[%s19838_s4 + $0x250] sm:$0xf0]  ;;  %v13523_v55 = vld [vmem:[%s19838_s4 + $0x4c0] sm:$0xf] }
 0x42b   : > { %7743 = vmatpush.bf16.msra.mxu1 %v13116_v31  ;;  %v13180_v31 = vor.u32 %v15241_v1, %v13177_v5  ;;  %v15216_v1 = vld [vmem:[%s19838_s4 + $0x14c] sm:$0xf]  ;;  %v13383_v47 = vld [vmem:[%s19838_s4 + $0x3a8] sm:$0xf]  ;;  %v15329_v43 = vld [vmem:[%s19838_s4 + $0x4d0] sm:$0xf0] }
 0x42c   : > { %7756 = vmatpush.bf16.msra.mxu2 %v13276_v38  ;;  %v13340_v38 = vor.u32 %v15281_v32, %v13337_v10  ;;  %v15256_v5 = vld [vmem:[%s19838_s4 + $0x28c] sm:$0xf]  ;;  %v13420_v32 = vor.u32 %v15301_v45, %v13417_v54  ;;  %v13237_v10 = vld [vmem:[%s19838_s4 + $0x29c] sm:$0xf0]  ;;  %v13543_v22 = vld [vmem:[%s19838_s4 + $0x4e8] sm:$0xf] }
 0x42d   : > { %7769 = vmatpush.bf16.msra.mxu3 %v13436_v63  ;;  %v13500_v63 = vor.u32 %v15321_v11, %v13497_v19  ;;  %v15296_v11 = vld [vmem:[%s19838_s4 + $0x3cc] sm:$0xf]  ;;  %v13397_v19 = vld [vmem:[%s19838_s4 + $0x3dc] sm:$0xf0]  ;;  %v13240_v29 = vor.u32 %v15256_v5, %v13237_v10  ;;  %v13163_v46 = vld [vmem:[%s19838_s4 + $0x1f0] sm:$0xf] }
 0x42e   : > { %7731 = vmatpush.bf16.msra.mxu0 %v12936_v16  ;;  %v13000_v16 = vor.u32 %v15196_v58, %v12997_v14  ;;  %v15254_v14 = vld [vmem:[%s19838_s4 + $0x278] sm:$0xf0]  ;;  %v13400_v3 = vor.u32 %v15296_v11, %v13397_v19  ;;  %v15239_v50 = vld [vmem:[%s19838_s4 + $0x200] sm:$0xf0]  ;;  %v13323_v51 = vld [vmem:[%s19838_s4 + $0x330] sm:$0xf] }
 0x42f   : > { %7744 = vmatpush.bf16.msra.mxu1 %v13096_v60  ;;  %v15191_v60 = vld [vmem:[%s19838_s4 + $0x84] sm:$0xf]  ;;  %v13483_v45 = vld [vmem:[%s19838_s4 + $0x470] sm:$0xf]  ;;  %v15234_v5 = vld [vmem:[%s19838_s4 + $0x1d8] sm:$0xf0] }
 0x430   : > { %7757 = vmatpush.bf16.msra.mxu2 %v13256_v7  ;;  %v12977_v7 = vld [vmem:[%s19838_s4 + $0x94] sm:$0xf0]  ;;  %v15279_v52 = vld [vmem:[%s19838_s4 + $0x340] sm:$0xf0]  ;;  %v15274_v10 = vld [vmem:[%s19838_s4 + $0x318] sm:$0xf0] }
 0x431   : > { %7770 = vmatpush.bf16.msra.mxu3 %v13416_v34  ;;  %v15271_v34 = vld [vmem:[%s19838_s4 + $0x304] sm:$0xf]  ;;  %v12980_v6 = vor.u32 %v15191_v60, %v12977_v7  ;;  %v13043_v60 = vld [vmem:[%s19838_s4 + $0x100] sm:$0xf]  ;;  %v15209_v7 = vld [vmem:[%s19838_s4 + $0x110] sm:$0xf0] }
 0x432   : > { %7732 = vmatpush.bf16.msra.mxu0 %v12916_v36  ;;  %v13300_v35 = vor.u32 %v15271_v34, %v13297_v42  ;;  %v15186_v36 = vld [vmem:[%s19838_s4 + $0x5c] sm:$0xf]  ;;  %v13363_v34 = vld [vmem:[%s19838_s4 + $0x380] sm:$0xf]  ;;  %v15289_v42 = vld [vmem:[%s19838_s4 + $0x390] sm:$0xf0] }
 0x433   : > { %7745 = vmatpush.bf16.msra.mxu1 %v13076_v40  ;;  %v13117_v40 = vld [vmem:[%s19838_s4 + $0x1ac] sm:$0xf0]  ;;  %v15319_v54 = vld [vmem:[%s19838_s4 + $0x480] sm:$0xf0]  ;;  %v13463_v11 = vld [vmem:[%s19838_s4 + $0x448] sm:$0xf] }
 0x434   : > { %7758 = vmatpush.bf16.msra.mxu2 %v13236_v27  ;;  %v15266_v27 = vld [vmem:[%s19838_s4 + $0x2dc] sm:$0xf] }
 0x435   : > { %7771 = vmatpush.bf16.msra.mxu3 %v13396_v8  ;;  %7733 = vmatmul.bf16.vlgmr.msra.gmra.mxu0 %v17950_v4  ;;  %v13437_v8 = vld [vmem:[%s19838_s4 + $0x42c] sm:$0xf0]  ;;  %v15314_v19 = vld [vmem:[%s19838_s4 + $0x458] sm:$0xf0] }
 0x436   : > { %7777 = vmatpush.bf16.msrb.mxu0 %v13060_v13  ;;  %7746 = vmatmul.bf16.vlgmr.msra.gmra.mxu1 %v17954_v30  ;;  %v12960_v13 = vor.u32 %v15186_v36, %v12957_v61  ;;  %v13023_v36 = vld [vmem:[%s19838_s4 + $0xd8] sm:$0xf]  ;;  %v15204_v61 = vld [vmem:[%s19838_s4 + $0xe8] sm:$0xf0] }
 0x437   : > { %7790 = vmatpush.bf16.msrb.mxu1 %v13220_v12  ;;  %7759 = vmatmul.bf16.vlgmr.msra.gmra.mxu2 %v17948_v2  ;;  %v13120_v12 = vor.u32 %v15226_v53, %v13117_v40  ;;  %v13183_v53 = vld [vmem:[%s19838_s4 + $0x218] sm:$0xf]  ;;  %v15244_v40 = vld [vmem:[%s19838_s4 + $0x228] sm:$0xf0] }
 0x438   : > { %7803 = vmatpush.bf16.msrb.mxu2 %v13380_v17  ;;  %7772 = vmatmul.bf16.vlgmr.msra.gmra.mxu3 %v17952_v20  ;;  %v13280_v17 = vor.u32 %v15266_v27, %v13277_v9  ;;  %v13343_v27 = vld [vmem:[%s19838_s4 + $0x358] sm:$0xf]  ;;  %v15284_v9 = vld [vmem:[%s19838_s4 + $0x368] sm:$0xf0] }
 0x439   : > { %7816 = vmatpush.bf16.msrb.mxu3 %v13540_v48  ;;  %v13440_v48 = vor.u32 %v15306_v25, %v13437_v8  ;;  %v13503_v25 = vld [vmem:[%s19838_s4 + $0x498] sm:$0xf]  ;;  %v15324_v8 = vld [vmem:[%s19838_s4 + $0x4a8] sm:$0xf0] }
 0x43a   : > { %7778 = vmatpush.bf16.msrb.mxu0 %v13040_v28  ;;  %v12940_v28 = vor.u32 %v15181_v56, %v12937_v23  ;;  %v13003_v56 = vld [vmem:[%s19838_s4 + $0xb0] sm:$0xf]  ;;  %v15199_v23 = vld [vmem:[%s19838_s4 + $0xc0] sm:$0xf0] }
 0x43b   : > { %7791 = vmatpush.bf16.msrb.mxu1 %v13200_v49  ;;  %v15176_v49 = vld [vmem:[%s19838_s4 + $0xc] sm:$0xf] }
 0x43c   : > { %7804 = vmatpush.bf16.msrb.mxu2 %v13360_v57  ;;  %v12917_v57 = vld [vmem:[%s19838_s4 + $0x1c] sm:$0xf0] }
 0x43d   : > { %7817 = vmatpush.bf16.msrb.mxu3 %v13520_v0  ;;  %v13077_v0 = vld [vmem:[%s19838_s4 + $0x15c] sm:$0xf0]  ;;  %v12920_v58 = vor.u32 %v15176_v49, %v12917_v57  ;;  %v13164_v49 = vor.u32 %v15239_v50, %v13163_v46  ;;  %v13324_v57 = vor.u32 %v15279_v52, %v13323_v51  ;;  %v14157_v50 = vld [vmem:[%s19840_s6 + $0x4b0] sm:$0xf]  ;;  %v15487_v51 = vld [vmem:[%s19840_s6 + $0x4c0] sm:$0xf0] }
 0x43e   : > { %7779 = vmatpush.bf16.msrb.mxu0 %v13020_v44  ;;  %v13063_v44 = vld [vmem:[%s19838_s4 + $0x128] sm:$0xf]  ;;  %v13080_v15 = vor.u32 %v15216_v1, %v13077_v0  ;;  %v13484_v0 = vor.u32 %v15319_v54, %v13483_v45  ;;  %v14158_v52 = vor.u32 %v15487_v51, %v14157_v50  ;;  %v15482_v54 = vld [vmem:[%s19840_s6 + $0x498] sm:$0xf0]  ;;  %v13959_v50 = vld [vmem:[%s19840_s6 + $0x334] sm:$0xf0] }
 0x43f   : > { %7792 = vmatpush.bf16.msrb.mxu1 %v13180_v31  ;;  %v15214_v31 = vld [vmem:[%s19838_s4 + $0x138] sm:$0xf0]  ;;  %v13143_v1 = vld [vmem:[%s19838_s4 + $0x1c8] sm:$0xf] }
 0x440   : > { %7805 = vmatpush.bf16.msrb.mxu2 %v13340_v38  ;;  %v13223_v38 = vld [vmem:[%s19838_s4 + $0x268] sm:$0xf] }
 0x441   : > { %7818 = vmatpush.bf16.msrb.mxu3 %v13500_v63  ;;  %v15294_v63 = vld [vmem:[%s19838_s4 + $0x3b8] sm:$0xf0]  ;;  %v14137_v45 = vld [vmem:[%s19840_s6 + $0x488] sm:$0xf] }
 0x442   : > { %7780 = vmatpush.bf16.msrb.mxu0 %v13000_v16  ;;  %v13064_v16 = vor.u32 %v15214_v31, %v13063_v44  ;;  %v13144_v31 = vor.u32 %v15234_v5, %v13143_v1  ;;  %v15467_v5 = vld [vmem:[%s19840_s6 + $0x420] sm:$0xf0] }
 0x443   : > { %7793 = vmatpush.bf16.msrb.mxu1 %v13160_v62  ;;  %v13224_v62 = vor.u32 %v15254_v14, %v13223_v38  ;;  %v15189_v14 = vld [vmem:[%s19838_s4 + $0x70] sm:$0xf0] }
 0x444   : > { %7806 = vmatpush.bf16.msrb.mxu2 %v13320_v21  ;;  %v13384_v21 = vor.u32 %v15294_v63, %v13383_v47  ;;  %v13123_v47 = vld [vmem:[%s19838_s4 + $0x1a0] sm:$0xf]  ;;  %v13464_v63 = vor.u32 %v15314_v19, %v13463_v11  ;;  %v13977_v19 = vld [vmem:[%s19840_s6 + $0x348] sm:$0xf] }
 0x445   : > { %7819 = vmatpush.bf16.msrb.mxu3 %v13480_v24  ;;  %v13544_v24 = vor.u32 %v15334_v37, %v13543_v22  ;;  %v15269_v22 = vld [vmem:[%s19838_s4 + $0x2f0] sm:$0xf0]  ;;  %v13443_v37 = vld [vmem:[%s19838_s4 + $0x420] sm:$0xf] }
 0x446   : > { %7781 = vmatpush.bf16.msrb.mxu0 %v12980_v6  ;;  %v13044_v6 = vor.u32 %v15209_v7, %v13043_v60  ;;  %v12943_v60 = vld [vmem:[%s19838_s4 + $0x38] sm:$0xf]  ;;  %v15184_v7 = vld [vmem:[%s19838_s4 + $0x48] sm:$0xf0] }
 0x447   : > { %7794 = vmatpush.bf16.msrb.mxu1 %v13140_v18  ;;  %v13204_v18 = vor.u32 %v15249_v26, %v13203_v33  ;;  %v13103_v33 = vld [vmem:[%s19838_s4 + $0x178] sm:$0xf]  ;;  %v15224_v26 = vld [vmem:[%s19838_s4 + $0x188] sm:$0xf0] }
 0x448   : > { %7807 = vmatpush.bf16.msrb.mxu2 %v13300_v35  ;;  %v13364_v35 = vor.u32 %v15289_v42, %v13363_v34  ;;  %v13263_v34 = vld [vmem:[%s19838_s4 + $0x2b8] sm:$0xf]  ;;  %v15264_v42 = vld [vmem:[%s19838_s4 + $0x2c8] sm:$0xf0] }
 0x449   : > { %7820 = vmatpush.bf16.msrb.mxu3 %v13460_v41  ;;  %v13524_v41 = vor.u32 %v15329_v43, %v13523_v55  ;;  %v13423_v55 = vld [vmem:[%s19838_s4 + $0x3f8] sm:$0xf]  ;;  %v15304_v43 = vld [vmem:[%s19838_s4 + $0x408] sm:$0xf0] }
 0x44a   : > { %7782 = vmatpush.bf16.msrb.mxu0 %v12960_v13  ;;  %v13024_v13 = vor.u32 %v15204_v61, %v13023_v36  ;;  %v12923_v36 = vld [vmem:[%s19838_s4 + $0x10] sm:$0xf]  ;;  %v15179_v61 = vld [vmem:[%s19838_s4 + $0x20] sm:$0xf0] }
 0x44b   : > { %7795 = vmatpush.bf16.msrb.mxu1 %v13120_v12  ;;  %v13184_v12 = vor.u32 %v15244_v40, %v13183_v53  ;;  %v13083_v53 = vld [vmem:[%s19838_s4 + $0x150] sm:$0xf]  ;;  %v15219_v40 = vld [vmem:[%s19838_s4 + $0x160] sm:$0xf0] }
 0x44c   : > { %7808 = vmatpush.bf16.msrb.mxu2 %v13280_v17  ;;  %v13344_v17 = vor.u32 %v15284_v9, %v13343_v27  ;;  %v13243_v27 = vld [vmem:[%s19838_s4 + $0x290] sm:$0xf]  ;;  %v15259_v9 = vld [vmem:[%s19838_s4 + $0x2a0] sm:$0xf0] }
 0x44d   : > { %7821 = vmatpush.bf16.msrb.mxu3 %v13440_v48  ;;  %v13504_v48 = vor.u32 %v15324_v8, %v13503_v25  ;;  %v13403_v25 = vld [vmem:[%s19838_s4 + $0x3d0] sm:$0xf]  ;;  %v15299_v8 = vld [vmem:[%s19838_s4 + $0x3e0] sm:$0xf0] }
 0x44e   : > { %7783 = vmatpush.bf16.msrb.mxu0 %v12940_v28  ;;  %v13004_v28 = vor.u32 %v15199_v23, %v13003_v56  ;;  %v13084_v56 = vor.u32 %v15219_v40, %v13083_v53  ;;  %v13244_v23 = vor.u32 %v15259_v9, %v13243_v27  ;;  %v13404_v46 = vor.u32 %v15299_v8, %v13403_v25  ;;  %v13897_v53 = vld [vmem:[%s19840_s6 + $0x2a8] sm:$0xf]  ;;  %v13979_v27 = vld [vmem:[%s19840_s6 + $0x35c] sm:$0xf0]  ;;  %v13697_v9 = vld [vmem:[%s19840_s6 + $0x118] sm:$0xf] }
 0x44f   : > { %7796 = vmatpush.bf16.msrb.mxu1 %v13100_v39  ;;  %v12983_v39 = vld [vmem:[%s19838_s4 + $0x88] sm:$0xf]  ;;  %v15372_v25 = vld [vmem:[%s19840_s6 + $0x128] sm:$0xf0] }
 0x450   : > { %7809 = vmatpush.bf16.msrb.mxu2 %v13260_v59  ;;  %v15194_v59 = vld [vmem:[%s19838_s4 + $0x98] sm:$0xf0] }
 0x451   : > { %7822 = vmatpush.bf16.msrb.mxu3 %v13420_v32  ;;  %v13303_v32 = vld [vmem:[%s19838_s4 + $0x308] sm:$0xf]  ;;  %v12984_v44 = vor.u32 %v15194_v59, %v12983_v39  ;;  %v15452_v39 = vld [vmem:[%s19840_s6 + $0x3a8] sm:$0xf0] }
 0x452   : > { %7784 = vmatpush.bf16.msrb.mxu0 %v12920_v58  ;;  %v13304_v38 = vor.u32 %v15274_v10, %v13303_v32  ;;  %v12963_v58 = vld [vmem:[%s19838_s4 + $0x60] sm:$0xf]  ;;  %v13997_v32 = vld [vmem:[%s19840_s6 + $0x370] sm:$0xf]  ;;  %v15447_v10 = vld [vmem:[%s19840_s6 + $0x380] sm:$0xf0] }
 0x453   : > { %7797 = vmatpush.bf16.msrb.mxu1 %v13080_v15  ;;  %v15229_v15 = vld [vmem:[%s19838_s4 + $0x1b0] sm:$0xf0]  ;;  %v13998_v11 = vor.u32 %v15447_v10, %v13997_v32  ;;  %v15362_v32 = vld [vmem:[%s19840_s6 + $0xd8] sm:$0xf0]  ;;  %v13797_v10 = vld [vmem:[%s19840_s6 + $0x1e0] sm:$0xf] }
 0x454   : > { %7810 = vmatpush.bf16.msrb.mxu2 %v13240_v29  ;;  %v13283_v29 = vld [vmem:[%s19838_s4 + $0x2e0] sm:$0xf] }
 0x455   : > { %7823 = vmatpush.bf16.msrb.mxu3 %v13400_v3  ;;  %7785 = vmatmul.bf16.vlgmr.msrb.gmra.mxu0 %v17950_v4  ;;  %v15309_v3 = vld [vmem:[%s19838_s4 + $0x430] sm:$0xf0] }
 0x456   : > { %7829 = vmatpush.bf16.msra.mxu0 %v13064_v16  ;;  %7798 = vmatmul.bf16.vlgmr.msrb.gmra.mxu1 %v17954_v30  ;;  %v12964_v16 = vor.u32 %v15189_v14, %v12963_v58  ;;  %v15462_v14 = vld [vmem:[%s19840_s6 + $0x3f8] sm:$0xf0] }
 0x457   : > { %7842 = vmatpush.bf16.msra.mxu1 %v13224_v62  ;;  %7811 = vmatmul.bf16.vlgmr.msrb.gmra.mxu2 %v17948_v2  ;;  %v13124_v62 = vor.u32 %v15229_v15, %v13123_v47  ;;  %v13957_v47 = vld [vmem:[%s19840_s6 + $0x320] sm:$0xf] }
 0x458   : > { %7855 = vmatpush.bf16.msra.mxu2 %v13384_v21  ;;  %7824 = vmatmul.bf16.vlgmr.msrb.gmra.mxu3 %v17952_v20  ;;  %v13284_v21 = vor.u32 %v15269_v22, %v13283_v29  ;;  %v14037_v29 = vld [vmem:[%s19840_s6 + $0x3c0] sm:$0xf] }
 0x459   : > { %7868 = vmatpush.bf16.msra.mxu3 %v13544_v24  ;;  %v13444_v24 = vor.u32 %v15309_v3, %v13443_v37  ;;  %v15457_v37 = vld [vmem:[%s19840_s6 + $0x3d0] sm:$0xf0]  ;;  %v13937_v3 = vld [vmem:[%s19840_s6 + $0x2f8] sm:$0xf] }
 0x45a   : > { %7830 = vmatpush.bf16.msra.mxu0 %v13044_v6  ;;  %v12944_v6 = vor.u32 %v15184_v7, %v12943_v60  ;;  %v14038_v60 = vor.u32 %v15457_v37, %v14037_v29 }
 0x45b   : > { %7843 = vmatpush.bf16.msra.mxu1 %v13204_v18  ;;  %v13104_v18 = vor.u32 %v15224_v26, %v13103_v33  ;;  %v18615_v33 = vld [vmem:[%s19839_s5] sm:$0x1f]  ;;  %v13917_v26 = vld [vmem:[%s19840_s6 + $0x2d0] sm:$0xf] }
 0x45c   : > { %7856 = vmatpush.bf16.msra.mxu2 %v13364_v35  ;;  %v13264_v35 = vor.u32 %v15264_v42, %v13263_v34  ;;  %v15427_v34 = vld [vmem:[%s19840_s6 + $0x2e0] sm:$0xf0]  ;;  %v15445_v42 = vld [vmem:[%s19840_s6 + $0x374] sm:$0xf] }
 0x45d   : > { %7869 = vmatpush.bf16.msra.mxu3 %v13524_v41  ;;  %v13424_v41 = vor.u32 %v15304_v43, %v13423_v55  ;;  %v13999_v55 = vld [vmem:[%s19840_s6 + $0x384] sm:$0xf0]  ;;  %v13857_v43 = vld [vmem:[%s19840_s6 + $0x258] sm:$0xf] }
 0x45e   : > { %7831 = vmatpush.bf16.msra.mxu0 %v13024_v13  ;;  %v12924_v13 = vor.u32 %v15179_v61, %v12923_v36  ;;  %v14002_v36 = vor.u32 %v15445_v42, %v13999_v55  ;;  %v15440_v61 = vld [vmem:[%s19840_s6 + $0x34c] sm:$0xf]  ;;  %v13919_v42 = vld [vmem:[%s19840_s6 + $0x2e4] sm:$0xf0] }
 0x45f   : > { %7844 = vmatpush.bf16.msra.mxu1 %v13184_v12  ;;  %v14177_v12 = vld [vmem:[%s19840_s6 + $0x4d8] sm:$0xf]  ;;  %v15400_v55 = vld [vmem:[%s19840_s6 + $0x20c] sm:$0xf] }
 0x460   : > { %7857 = vmatpush.bf16.msra.mxu2 %v13344_v17  ;;  %v15492_v17 = vld [vmem:[%s19840_s6 + $0x4e8] sm:$0xf0] }
 0x461   : > { %7870 = vmatpush.bf16.msra.mxu3 %v13504_v48  ;;  %v14178_v48 = vor.u32 %v15492_v17, %v14177_v12  ;;  %v13698_v12 = vor.u32 %v15372_v25, %v13697_v9  ;;  %v13837_v17 = vld [vmem:[%s19840_s6 + $0x230] sm:$0xf]  ;;  %v15420_v9 = vld [vmem:[%s19840_s6 + $0x2ac] sm:$0xf] }
 0x462   : > { %7832 = vmatpush.bf16.msra.mxu0 %v13004_v28  ;;  %v14138_v28 = vor.u32 %v15482_v54, %v14137_v45  ;;  %v15417_v45 = vld [vmem:[%s19840_s6 + $0x290] sm:$0xf0] }
 0x463   : > { %7845 = vmatpush.bf16.msra.mxu1 %v13164_v49  ;;  %v14017_v49 = vld [vmem:[%s19840_s6 + $0x398] sm:$0xf] }
 0x464   : > { %7858 = vmatpush.bf16.msra.mxu2 %v13324_v57  ;;  %v15472_v57 = vld [vmem:[%s19840_s6 + $0x448] sm:$0xf0]  ;;  %v14018_v59 = vor.u32 %v15452_v39, %v14017_v49 }
 0x465   : > { %7871 = vmatpush.bf16.msra.mxu3 %v13484_v0  ;;  %v14077_v0 = vld [vmem:[%s19840_s6 + $0x410] sm:$0xf] }
 0x466   : > { %7833 = vmatpush.bf16.msra.mxu0 %v12984_v44  ;;  %v15442_v44 = vld [vmem:[%s19840_s6 + $0x358] sm:$0xf0] }
 0x467   : > { %7846 = vmatpush.bf16.msra.mxu1 %v13144_v31  ;;  %v14078_v31 = vor.u32 %v15467_v5, %v14077_v0  ;;  %v13978_v58 = vor.u32 %v15442_v44, %v13977_v19  ;;  %v13657_v0 = vld [vmem:[%s19840_s6 + $0xc8] sm:$0xf] }
 0x468   : > { %7859 = vmatpush.bf16.msra.mxu2 %v13304_v38  ;;  %v14057_v38 = vld [vmem:[%s19840_s6 + $0x3e8] sm:$0xf]  ;;  %v13658_v29 = vor.u32 %v15362_v32, %v13657_v0  ;;  %v15342_v32 = vld [vmem:[%s19840_s6 + $0x38] sm:$0xf0] }
 0x469   : > { %7872 = vmatpush.bf16.msra.mxu3 %v13464_v63  ;;  %v15437_v63 = vld [vmem:[%s19840_s6 + $0x330] sm:$0xf0]  ;;  %v14058_v15 = vor.u32 %v15462_v14, %v14057_v38 }
 0x46a   : > { %7834 = vmatpush.bf16.msra.mxu0 %v12964_v16  ;;  %v13958_v22 = vor.u32 %v15437_v63, %v13957_v47  ;;  %v15432_v16 = vld [vmem:[%s19840_s6 + $0x308] sm:$0xf0]  ;;  %v13939_v47 = vld [vmem:[%s19840_s6 + $0x30c] sm:$0xf0]  ;;  %v15405_v63 = vld [vmem:[%s19840_s6 + $0x234] sm:$0xf] }
 0x46b   : > { %7847 = vmatpush.bf16.msra.mxu1 %v13124_v62  ;;  %v15450_v62 = vld [vmem:[%s19840_s6 + $0x39c] sm:$0xf]  ;;  %v13938_v7 = vor.u32 %v15432_v16, %v13937_v3  ;;  %v13637_v3 = vld [vmem:[%s19840_s6 + $0xa0] sm:$0xf]  ;;  %v15357_v16 = vld [vmem:[%s19840_s6 + $0xb0] sm:$0xf0] }
 0x46c   : > { %7860 = vmatpush.bf16.msra.mxu2 %v13284_v21  ;;  %v14019_v21 = vld [vmem:[%s19840_s6 + $0x3ac] sm:$0xf0] }
 0x46d   : > { %7873 = vmatpush.bf16.msra.mxu3 %v13444_v24  ;;  %v14022_v24 = vor.u32 %v15450_v62, %v14019_v21 }
 0x46e   : > { %7835 = vmatpush.bf16.msra.mxu0 %v12944_v6  ;;  %v6779_v6 = vperm.slane %v18615_v33, 0 }
 0x46f   : > { %7848 = vmatpush.bf16.msra.mxu1 %v13104_v18  ;;  %v13918_v18 = vor.u32 %v15427_v34, %v13917_v26  ;;  %v15425_v26 = vld [vmem:[%s19840_s6 + $0x2d4] sm:$0xf] }
 0x470   : > { %7861 = vmatpush.bf16.msra.mxu2 %v13264_v35  ;;  %v15412_v35 = vld [vmem:[%s19840_s6 + $0x268] sm:$0xf0] }
 0x471   : > { %7874 = vmatpush.bf16.msra.mxu3 %v13424_v41  ;;  %v15422_v41 = vld [vmem:[%s19840_s6 + $0x2b8] sm:$0xf0]  ;;  %v13858_v40 = vor.u32 %v15412_v35, %v13857_v43  ;;  %v13819_v43 = vld [vmem:[%s19840_s6 + $0x21c] sm:$0xf0]  ;;  %v13617_v35 = vld [vmem:[%s19840_s6 + $0x78] sm:$0xf] }
 0x472   : > { %7836 = vmatpush.bf16.msra.mxu0 %v12924_v13  ;;  %v15598_v13 = vmov 0.0|0.0   ;;  %v13898_v51 = vor.u32 %v15422_v41, %v13897_v53  ;;  %v15387_v53 = vld [vmem:[%s19840_s6 + $0x1a0] sm:$0xf0]  ;;  %v13822_v25 = vor.u32 %v15400_v55, %v13819_v43  ;;  %v15532_v43 = vld [vmem:[%s19840_s6 + $0x628] sm:$0xf0] }
 0x473   : > { %7849 = vmatpush.bf16.msra.mxu1 %v13084_v56  ;;  %v15407_v56 = vld [vmem:[%s19840_s6 + $0x240] sm:$0xf0] }
 0x474   : > { %7862 = vmatpush.bf16.msra.mxu2 %v13244_v23  ;;  %v13838_v54 = vor.u32 %v15407_v56, %v13837_v17  ;;  %v15395_v17 = vld [vmem:[%s19840_s6 + $0x1e4] sm:$0xf]  ;;  %v13799_v56 = vld [vmem:[%s19840_s6 + $0x1f4] sm:$0xf0] }
 0x475   : > { %7875 = vmatpush.bf16.msra.mxu3 %v13404_v46  ;;  %7837 = vmatmul.bf16.vlgmr.msra.gmra.mxu0 %v17950_v4  ;;  %v14117_v4 = vld [vmem:[%s19840_s6 + $0x460] sm:$0xf] }
 0x476   : > { %7850 = vmatmul.bf16.vlgmr.msra.gmra.mxu1 %v17954_v30  ;;  %9277 = vmatpush.bf16.msrb.mxu0 %v13698_v12  ;;  %v13899_v12 = vld [vmem:[%s19840_s6 + $0x2bc] sm:$0xf0] }
 0x477   : > { %7863 = vmatmul.bf16.vlgmr.msra.gmra.mxu2 %v17948_v2  ;;  %v15477_v2 = vld [vmem:[%s19840_s6 + $0x470] sm:$0xf0]  ;;  %9290 = vmatpush.bf16.msrb.mxu1 %v13858_v40  ;;  %v6780_v40 = vperm.slane %v18615_v33, 1 }
 0x478   : > { %7876 = vmatmul.bf16.vlgmr.msra.gmra.mxu3 %v17952_v20  ;;  %v14118_v30 = vor.u32 %v15477_v2, %v14117_v4  ;;  %v14097_v20 = vld [vmem:[%s19840_s6 + $0x438] sm:$0xf]  ;;  %9303 = vmatpush.bf16.msrb.mxu2 %v14018_v59  ;;  %v13677_v4 = vld [vmem:[%s19840_s6 + $0xf0] sm:$0xf]  ;;  %v15367_v2 = vld [vmem:[%s19840_s6 + $0x100] sm:$0xf0] }
 0x479   : > { %9316 = vmatpush.bf16.msrb.mxu3 %v14178_v48  ;;  %v14098_v1 = vor.u32 %v15472_v57, %v14097_v20  ;;  %v15435_v48 = vld [vmem:[%s19840_s6 + $0x324] sm:$0xf]  ;;  %v15410_v20 = vld [vmem:[%s19840_s6 + $0x25c] sm:$0xf]  ;;  %v13859_v57 = vld [vmem:[%s19840_s6 + $0x26c] sm:$0xf0]  ;;  %v13678_v39 = vor.u32 %v15367_v2, %v13677_v4  ;;  %v13802_v2 = vor.u32 %v15395_v17, %v13799_v56 }
 0x47a   : > { %v15402_v59 = vld [vmem:[%s19840_s6 + $0x218] sm:$0xf0]  ;;  %v13962_v44 = vor.u32 %v15435_v48, %v13959_v50  ;;  %v13862_v38 = vor.u32 %v15410_v20, %v13859_v57  ;;  %v13597_v48 = vld [vmem:[%s19840_s6 + $0x50] sm:$0xf]  ;;  %v15347_v50 = vld [vmem:[%s19840_s6 + $0x60] sm:$0xf0] }
 0x47b   : > { %9291 = vmatpush.bf16.msrb.mxu1 %v13838_v54  ;;  %9278 = vmatpush.bf16.msrb.mxu0 %v13678_v39  ;;  %v13902_v54 = vor.u32 %v15420_v9, %v13899_v12  ;;  %v13879_v4 = vld [vmem:[%s19840_s6 + $0x294] sm:$0xf0]  ;;  %v13865_v20 = vld [vmem:[%s19840_s6 + $0x260] sm:$0xf]  ;;  %v15390_v57 = vld [vmem:[%s19840_s6 + $0x1bc] sm:$0xf] }
 0x47c   : > { %9304 = vmatpush.bf16.msrb.mxu2 %v13998_v11  ;;  %v15397_v11 = vld [vmem:[%s19840_s6 + $0x1f0] sm:$0xf0]  ;;  %v13779_v39 = vld [vmem:[%s19840_s6 + $0x1cc] sm:$0xf0]  ;;  %v15375_v12 = vld [vmem:[%s19840_s6 + $0x144] sm:$0xf] }
 0x47d   : > { %9317 = vmatpush.bf16.msrb.mxu3 %v14158_v52  ;;  %v13877_v52 = vld [vmem:[%s19840_s6 + $0x280] sm:$0xf]  ;;  %v13798_v37 = vor.u32 %v15397_v11, %v13797_v10  ;;  %v13719_v17 = vld [vmem:[%s19840_s6 + $0x154] sm:$0xf0] }
 0x47e   : > { %v13878_v5 = vor.u32 %v15417_v45, %v13877_v52  ;;  %v15382_v52 = vld [vmem:[%s19840_s6 + $0x178] sm:$0xf0]  ;;  %v13717_v11 = vld [vmem:[%s19840_s6 + $0x140] sm:$0xf] }
 0x47f   : > { %9279 = vmatpush.bf16.msrb.mxu0 %v13658_v29  ;;  %v13699_v29 = vld [vmem:[%s19840_s6 + $0x12c] sm:$0xf0] }
 0x480   : > { %9305 = vmatpush.bf16.msrb.mxu2 %v13978_v58 }
 0x481   : > { %9318 = vmatpush.bf16.msrb.mxu3 %v14138_v28  ;;  %v13982_v28 = vor.u32 %v15440_v61, %v13979_v27  ;;  %v13757_v61 = vld [vmem:[%s19840_s6 + $0x190] sm:$0xf]  ;;  %v13922_v27 = vor.u32 %v15425_v26, %v13919_v42  ;;  %v14337_v26 = vld [vmem:[%s19840_s6 + $0x618] sm:$0xf] }
 0x484   : > { %9306 = vmatpush.bf16.msrb.mxu2 %v13958_v22 }
 0x485   : > { %9319 = vmatpush.bf16.msrb.mxu3 %v14118_v30  ;;  %v13817_v30 = vld [vmem:[%s19840_s6 + $0x208] sm:$0xf] }
 0x488   : > { %9307 = vmatpush.bf16.msrb.mxu2 %v13938_v7  ;;  %v7630_v8 = vpop.f32.mrf.mxu0  ;;  %v15392_v7 = vld [vmem:[%s19840_s6 + $0x1c8] sm:$0xf0] }
 0x489   : > { %9320 = vmatpush.bf16.msrb.mxu3 %v14098_v1  ;;  %v7631_v23 = vadd.f32 %v7630_v8, %v6779_v6  ;;  %v13818_v1 = vor.u32 %v15402_v59, %v13817_v30  ;;  %v13638_v6 = vor.u32 %v15357_v16, %v13637_v3  ;;  %v13598_v59 = vor.u32 %v15347_v50, %v13597_v48  ;;  %v13845_v3 = vld [vmem:[%s19840_s6 + $0x238] sm:$0xf]  ;;  %v15408_v16 = vld [vmem:[%s19840_s6 + $0x248] sm:$0xf0]  ;;  %v15373_v48 = vld [vmem:[%s19840_s6 + $0x130] sm:$0xf0] }
 0x48a   : > { %v7643_v46 = vpop.f32.mrf.mxu1  ;;  %v6781_v50 = vperm.slane %v18615_v33, 2 }
 0x48b   : > { %v7644_v49 = vadd.f32 %v7643_v46, %v7631_v23  ;;  %9292 = vmatpush.bf16.msrb.mxu1 %v13818_v1  ;;  %9280 = vmatpush.bf16.msrb.mxu0 %v13638_v6  ;;  %v13758_v46 = vor.u32 %v15387_v53, %v13757_v61  ;;  %v15413_v1 = vld [vmem:[%s19840_s6 + $0x270] sm:$0xf0]  ;;  %v13825_v53 = vld [vmem:[%s19840_s6 + $0x210] sm:$0xf] }
 0x48c   : > { %9308 = vmatpush.bf16.msrb.mxu2 %v13918_v18 }
 0x48d   : > { %9321 = vmatpush.bf16.msrb.mxu3 %v14078_v31  ;;  %v7656_v19 = vpop.f32.mrf.mxu2  ;;  %v15430_v31 = vld [vmem:[%s19840_s6 + $0x2fc] sm:$0xf] }
 0x48e   : > { %v7657_v58 = vadd.f32 %v7656_v19, %v7644_v49  ;;  %v15377_v19 = vld [vmem:[%s19840_s6 + $0x150] sm:$0xf0] }
 0x48f   : > { %v7669_v14 = vpop.f32.mrf.mxu3  ;;  %9293 = vmatpush.bf16.msrb.mxu1 %v13798_v37 }
 0x490   : > { %9309 = vmatpush.bf16.msrb.mxu2 %v13898_v51  ;;  %v7632_v22 = vpop.f32.mrf.mxu0  ;;  %v18721_v62 = vadd.f32 %v7669_v14, %v7657_v58  ;;  %v13737_v51 = vld [vmem:[%s19840_s6 + $0x168] sm:$0xf]  ;;  %v13866_v14 = vor.u32 %v15413_v1, %v13865_v20  ;;  %v13685_v20 = vld [vmem:[%s19840_s6 + $0xf8] sm:$0xf]  ;;  %v14317_v1 = vld [vmem:[%s19840_s6 + $0x5f0] sm:$0xf] }
 0x491   : > { %9322 = vmatpush.bf16.msrb.mxu3 %v14058_v15  ;;  %v13839_v15 = vld [vmem:[%s19840_s6 + $0x244] sm:$0xf0]  ;;  %v13738_v0 = vor.u32 %v15382_v52, %v13737_v51  ;;  %v13722_v51 = vor.u32 %v15375_v12, %v13719_v17  ;;  %v13619_v12 = vld [vmem:[%s19840_s6 + $0x8c] sm:$0xf0]  ;;  %v13707_v17 = vld [vmem:[%s19840_s6 + $0x134] sm:$0xf0] }
 0x492   : > { %v7645_v21 = vpop.f32.mrf.mxu1  ;;  %v13842_v34 = vor.u32 %v15405_v63, %v13839_v15  ;;  %v15370_v15 = vld [vmem:[%s19840_s6 + $0x11c] sm:$0xf] }
 0x493   : > { %v13718_v21 = vor.u32 %v15377_v19, %v13717_v11  ;;  %v13765_v11 = vld [vmem:[%s19840_s6 + $0x198] sm:$0xf]  ;;  %v15388_v19 = vld [vmem:[%s19840_s6 + $0x1a8] sm:$0xf0] }
 0x494   : > { %9310 = vmatpush.bf16.msrb.mxu2 %v13878_v5  ;;  %v13577_v5 = vld [vmem:[%s19840_s6 + $0x28] sm:$0xf] }
 0x495   : > { %9323 = vmatpush.bf16.msrb.mxu3 %v14038_v60  ;;  %v13777_v60 = vld [vmem:[%s19840_s6 + $0x1b8] sm:$0xf]  ;;  %v7658_v41 = vpop.f32.mrf.mxu2  ;;  %v13578_v63 = vor.u32 %v15342_v32, %v13577_v5 }
 0x496   : > { %v13778_v18 = vor.u32 %v15392_v7, %v13777_v60  ;;  %v13702_v60 = vor.u32 %v15370_v15, %v13699_v29  ;;  %v13557_v7 = vld [vmem:[%s19840_s6] sm:$0xf]  ;;  %v15403_v41 = vld [vmem:[%s19840_s6 + $0x220] sm:$0xf0] }
 0x497   : > { %9311 = vmatmul.bf16.vlgmr.msrb.gmra.mxu2 %v15598_v13  ;;  %v7671_v8 = vpop.f32.mrf.mxu3 }
 0x498   : > { %9324 = vmatmul.bf16.vlgmr.msrb.gmra.mxu3 %v15598_v13  ;;  %9355 = vmatpush.bf16.msra.mxu2 %v13862_v38  ;;  %v7682_v45 = vpop.f32.mrf.mxu0  ;;  %v15385_v38 = vld [vmem:[%s19840_s6 + $0x194] sm:$0xf]  ;;  %v13805_v8 = vld [vmem:[%s19840_s6 + $0x1e8] sm:$0xf] }
 0x499   : > { %9368 = vmatpush.bf16.msra.mxu3 %v14022_v24  ;;  %v13942_v24 = vor.u32 %v15430_v31, %v13939_v47  ;;  %9294 = vmatpush.bf16.msrb.mxu1 %v13778_v18  ;;  %v7683_v30 = vadd.f32 %v7682_v45, %v6780_v40  ;;  %v13782_v31 = vor.u32 %v15390_v57, %v13779_v39  ;;  %v13759_v47 = vld [vmem:[%s19840_s6 + $0x1a4] sm:$0xf0]  ;;  %v13785_v45 = vld [vmem:[%s19840_s6 + $0x1c0] sm:$0xf]  ;;  %v15368_v57 = vld [vmem:[%s19840_s6 + $0x108] sm:$0xf0] }
 0x49a   : > { %v7695_v49 = vpop.f32.mrf.mxu1  ;;  %v13762_v55 = vor.u32 %v15385_v38, %v13759_v47  ;;  %v13846_v18 = vor.u32 %v15408_v16, %v13845_v3  ;;  %v14338_v40 = vor.u32 %v15532_v43, %v14337_v26  ;;  %v13659_v38 = vld [vmem:[%s19840_s6 + $0xdc] sm:$0xf0]  ;;  %v15355_v3 = vld [vmem:[%s19840_s6 + $0xa4] sm:$0xf]  ;;  %v13766_v16 = vor.u32 %v15388_v19, %v13765_v11  ;;  %v13639_v26 = vld [vmem:[%s19840_s6 + $0xb4] sm:$0xf0] }
 0x49b   : > { %v7696_v10 = vadd.f32 %v7695_v49, %v7683_v30  ;;  %v13642_v43 = vor.u32 %v15355_v3, %v13639_v26  ;;  %v6782_v3 = vperm.slane %v18615_v33, 3  ;;  %v15351_v26 = vld [vmem:[%s19840_s6 + $0x84] sm:$0xf] }
 0x49c   : > { %9356 = vmatpush.bf16.msra.mxu2 %v13842_v34 }
 0x49d   : > { %9369 = vmatpush.bf16.msra.mxu3 %v14002_v36  ;;  %v15352_v36 = vld [vmem:[%s19840_s6 + $0x88] sm:$0xf0]  ;;  %9295 = vmatpush.bf16.msrb.mxu1 %v13758_v46  ;;  %v7708_v58 = vpop.f32.mrf.mxu2  ;;  %v13705_v46 = vld [vmem:[%s19840_s6 + $0x120] sm:$0xf] }
 0x49e   : > { %v13618_v23 = vor.u32 %v15352_v36, %v13617_v35  ;;  %v7709_v22 = vadd.f32 %v7708_v58, %v7696_v10  ;;  %v15380_v35 = vld [vmem:[%s19840_s6 + $0x16c] sm:$0xf]  ;;  %v13739_v36 = vld [vmem:[%s19840_s6 + $0x17c] sm:$0xf0]  ;;  %v13665_v58 = vld [vmem:[%s19840_s6 + $0xd0] sm:$0xf] }
 0x49f   : > { %v7721_v37 = vpop.f32.mrf.mxu3 }
 0x4a0   : > { %9357 = vmatpush.bf16.msra.mxu2 %v13822_v25  ;;  %9281 = vmatpush.bf16.msrb.mxu0 %v13618_v23  ;;  %v18836_v34 = vadd.f32 %v7721_v37, %v7709_v22  ;;  %v7684_v42 = vpop.f32.mrf.mxu0  ;;  %v13826_v25 = vor.u32 %v15403_v41, %v13825_v53  ;;  %v15398_v23 = vld [vmem:[%s19840_s6 + $0x1f8] sm:$0xf0]  ;;  %v14297_v22 = vld [vmem:[%s19840_s6 + $0x5c8] sm:$0xf] }
 0x4a1   : > { %9370 = vmatpush.bf16.msra.mxu3 %v13982_v28  ;;  %v15415_v28 = vld [vmem:[%s19840_s6 + $0x284] sm:$0xf]  ;;  %9296 = vmatpush.bf16.msrb.mxu1 %v13738_v0  ;;  %v13806_v52 = vor.u32 %v15398_v23, %v13805_v8  ;;  %v15522_v37 = vld [vmem:[%s19840_s6 + $0x5d8] sm:$0xf0]  ;;  %v13725_v53 = vld [vmem:[%s19840_s6 + $0x148] sm:$0xf] }
 0x4a2   : > { %v7697_v6 = vpop.f32.mrf.mxu1  ;;  %v15527_v0 = vld [vmem:[%s19840_s6 + $0x600] sm:$0xf0]  ;;  %v15378_v41 = vld [vmem:[%s19840_s6 + $0x158] sm:$0xf0]  ;;  %v13625_v23 = vld [vmem:[%s19840_s6 + $0x80] sm:$0xf] }
 0x4a3   : > { %v14318_v5 = vor.u32 %v15527_v0, %v14317_v1  ;;  %v13645_v6 = vld [vmem:[%s19840_s6 + $0xa8] sm:$0xf]  ;;  %v15350_v8 = vld [vmem:[%s19840_s6 + $0x7c] sm:$0xf]  ;;  %v15507_v1 = vld [vmem:[%s19840_s6 + $0x560] sm:$0xf0] }
 0x4a4   : > { %9358 = vmatpush.bf16.msra.mxu2 %v13802_v2  ;;  %9282 = vmatpush.bf16.msrb.mxu0 %v13598_v59  ;;  %v15393_v2 = vld [vmem:[%s19840_s6 + $0x1d0] sm:$0xf0]  ;;  %v13687_v0 = vld [vmem:[%s19840_s6 + $0x10c] sm:$0xf0] }
 0x4a5   : > { %9371 = vmatpush.bf16.msra.mxu3 %v13962_v44  ;;  %v13882_v44 = vor.u32 %v15415_v28, %v13879_v4  ;;  %9297 = vmatpush.bf16.msrb.mxu1 %v13718_v21  ;;  %v7710_v9 = vpop.f32.mrf.mxu2  ;;  %v15365_v28 = vld [vmem:[%s19840_s6 + $0xf4] sm:$0xf]  ;;  %v13679_v4 = vld [vmem:[%s19840_s6 + $0x104] sm:$0xf0]  ;;  %v13786_v32 = vor.u32 %v15393_v2, %v13785_v45  ;;  %v13745_v21 = vld [vmem:[%s19840_s6 + $0x170] sm:$0xf] }
 0x4a6   : > { %v13682_v49 = vor.u32 %v15365_v28, %v13679_v4  ;;  %v15371_v9 = vld [vmem:[%s19840_s6 + $0x124] sm:$0xf]  ;;  %v13599_v28 = vld [vmem:[%s19840_s6 + $0x64] sm:$0xf0]  ;;  %v13726_v4 = vor.u32 %v15378_v41, %v13725_v53  ;;  %v15366_v2 = vld [vmem:[%s19840_s6 + $0xfc] sm:$0xf] }
 0x4a7   : > { %v7723_v56 = vpop.f32.mrf.mxu3  ;;  %v13690_v19 = vor.u32 %v15366_v2, %v13687_v0  ;;  %v14345_v53 = vld [vmem:[%s19840_s6 + $0x620] sm:$0xf]  ;;  %v15528_v2 = vld [vmem:[%s19840_s6 + $0x608] sm:$0xf0]  ;;  %v15341_v0 = vld [vmem:[%s19840_s6 + $0x34] sm:$0xf] }
 0x4a8   : > { %9359 = vmatpush.bf16.msra.mxu2 %v13782_v31  ;;  %9283 = vmatpush.bf16.msrb.mxu0 %v13578_v63  ;;  %v15360_v31 = vld [vmem:[%s19840_s6 + $0xcc] sm:$0xf]  ;;  %v15363_v63 = vld [vmem:[%s19840_s6 + $0xe0] sm:$0xf0]  ;;  %v13622_v56 = vor.u32 %v15350_v8, %v13619_v12  ;;  %v15533_v8 = vld [vmem:[%s19840_s6 + $0x630] sm:$0xf0] }
 0x4a9   : > { %9372 = vmatpush.bf16.msra.mxu3 %v13942_v24  ;;  %v15337_v24 = vld [vmem:[%s19840_s6 + $0x10] sm:$0xf0]  ;;  %9342 = vmatpush.bf16.msra.mxu1 %v13702_v60  ;;  %v13662_v47 = vor.u32 %v15360_v31, %v13659_v38  ;;  %v15383_v60 = vld [vmem:[%s19840_s6 + $0x180] sm:$0xf0]  ;;  %v13585_v31 = vld [vmem:[%s19840_s6 + $0x30] sm:$0xf] }
 0x4aa   : > { %v13558_v61 = vor.u32 %v15337_v24, %v13557_v7  ;;  %9298 = vmatmul.bf16.vlgmr.msrb.gmra.mxu1 %v15598_v13  ;;  %v13666_v7 = vor.u32 %v15363_v63, %v13665_v58  ;;  %v14298_v24 = vor.u32 %v15522_v37, %v14297_v22  ;;  %v15343_v38 = vld [vmem:[%s19840_s6 + $0x40] sm:$0xf0]  ;;  %v15361_v58 = vld [vmem:[%s19840_s6 + $0xd4] sm:$0xf]  ;;  %v14217_v22 = vld [vmem:[%s19840_s6 + $0x528] sm:$0xf] }
 0x4ab   : > { %v15502_v37 = vld [vmem:[%s19840_s6 + $0x538] sm:$0xf0] }
 0x4ac   : > { %9360 = vmatpush.bf16.msra.mxu2 %v13762_v55  ;;  %9284 = vmatpush.bf16.msrb.mxu0 %v13558_v61  ;;  %v15517_v61 = vld [vmem:[%s19840_s6 + $0x5b0] sm:$0xf0] }
 0x4ad   : > { %9373 = vmatpush.bf16.msra.mxu3 %v13922_v27  ;;  %v13742_v27 = vor.u32 %v15380_v35, %v13739_v36  ;;  %9343 = vmatpush.bf16.msra.mxu1 %v13682_v49  ;;  %v14277_v35 = vld [vmem:[%s19840_s6 + $0x5a0] sm:$0xf]  ;;  %v14237_v49 = vld [vmem:[%s19840_s6 + $0x550] sm:$0xf] }
 0x4af   : > { %9285 = vmatmul.bf16.vlgmr.msrb.gmra.mxu0 %v15598_v13 }
 0x4b0   : > { %9329 = vmatpush.bf16.msra.mxu0 %v14338_v40  ;;  %9361 = vmatpush.bf16.msra.mxu2 %v13742_v27  ;;  %v14278_v40 = vor.u32 %v15517_v61, %v14277_v35  ;;  %v13746_v27 = vor.u32 %v15383_v60, %v13745_v21  ;;  %v15335_v60 = vld [vmem:[%s19840_s6 + $0x4] sm:$0xf]  ;;  %v14339_v61 = vld [vmem:[%s19840_s6 + $0x62c] sm:$0xf0] }
 0x4b1   : > { %9374 = vmatpush.bf16.msra.mxu3 %v13902_v54  ;;  %v13706_v54 = vor.u32 %v15373_v48, %v13705_v46  ;;  %9344 = vmatpush.bf16.msra.mxu1 %v13662_v47  ;;  %v15353_v46 = vld [vmem:[%s19840_s6 + $0x90] sm:$0xf0]  ;;  %v13586_v47 = vor.u32 %v15343_v38, %v13585_v31 }
 0x4b2   : > { %v7734_v30 = vpop.f32.mrf.mxu0 }
 0x4b3   : > { %v7735_v39 = vadd.f32 %v7734_v30, %v6781_v50  ;;  %v7747_v59 = vpop.f32.mrf.mxu1  ;;  %v14257_v50 = vld [vmem:[%s19840_s6 + $0x578] sm:$0xf]  ;;  %v13626_v30 = vor.u32 %v15353_v46, %v13625_v23  ;;  %v15497_v23 = vld [vmem:[%s19840_s6 + $0x510] sm:$0xf0]  ;;  %v15490_v46 = vld [vmem:[%s19840_s6 + $0x4dc] sm:$0xf] }
 0x4b4   : > { %9362 = vmatpush.bf16.msra.mxu2 %v13722_v51  ;;  %9330 = vmatpush.bf16.msra.mxu0 %v14318_v5  ;;  %v15512_v51 = vld [vmem:[%s19840_s6 + $0x588] sm:$0xf0]  ;;  %v14238_v5 = vor.u32 %v15507_v1, %v14237_v49 }
 0x4b5   : > { %9375 = vmatpush.bf16.msra.mxu3 %v13882_v44  ;;  %v7748_v10 = vadd.f32 %v7747_v59, %v7735_v39  ;;  %v13686_v44 = vor.u32 %v15368_v57, %v13685_v20  ;;  %9345 = vmatpush.bf16.msra.mxu1 %v13642_v43  ;;  %v13710_v20 = vor.u32 %v15371_v9, %v13707_v17  ;;  %v13605_v39 = vld [vmem:[%s19840_s6 + $0x58] sm:$0xf]  ;;  %v15348_v59 = vld [vmem:[%s19840_s6 + $0x68] sm:$0xf0]  ;;  %v13607_v9 = vld [vmem:[%s19840_s6 + $0x6c] sm:$0xf0] }
 0x4b6   : > { %v13606_v11 = vor.u32 %v15348_v59, %v13605_v39  ;;  %v14346_v17 = vor.u32 %v15533_v8, %v14345_v53  ;;  %v14327_v8 = vld [vmem:[%s19840_s6 + $0x60c] sm:$0xf0] }
 0x4b7   : > { %9363 = vmatmul.bf16.vlgmr.msra.gmra.mxu2 %v15598_v13 }
 0x4b8   : > { %9376 = vmatmul.bf16.vlgmr.msra.gmra.mxu3 %v15598_v13  ;;  %9407 = vmatpush.bf16.msrb.mxu2 %v13706_v54  ;;  %v14258_v54 = vor.u32 %v15512_v51, %v14257_v50  ;;  %v14179_v51 = vld [vmem:[%s19840_s6 + $0x4ec] sm:$0xf0] }
 0x4b9   : > { %9420 = vmatpush.bf16.msrb.mxu3 %v13866_v14  ;;  %9331 = vmatpush.bf16.msra.mxu0 %v14298_v24  ;;  %v13565_v24 = vld [vmem:[%s19840_s6 + $0x8] sm:$0xf] }
 0x4ba   : > { %v7760_v14 = vpop.f32.mrf.mxu2  ;;  %v7736_v55 = vpop.f32.mrf.mxu0  ;;  %9346 = vmatpush.bf16.msra.mxu1 %v13622_v56  ;;  %v14197_v56 = vld [vmem:[%s19840_s6 + $0x500] sm:$0xf] }
 0x4bb   : > { %v7761_v15 = vadd.f32 %v7760_v14, %v7748_v10  ;;  %v7773_v29 = vpop.f32.mrf.mxu3  ;;  %v7749_v36 = vpop.f32.mrf.mxu1  ;;  %v13579_v10 = vld [vmem:[%s19840_s6 + $0x3c] sm:$0xf0]  ;;  %v13667_v14 = vld [vmem:[%s19840_s6 + $0xe4] sm:$0xf0]  ;;  %v13627_v55 = vld [vmem:[%s19840_s6 + $0x94] sm:$0xf0]  ;;  %v14198_v50 = vor.u32 %v15497_v23, %v14197_v56 }
 0x4bc   : > { %9408 = vmatpush.bf16.msrb.mxu2 %v13686_v44  ;;  %v13670_v63 = vor.u32 %v15361_v58, %v13667_v14  ;;  %v15530_v36 = vld [vmem:[%s19840_s6 + $0x61c] sm:$0xf]  ;;  %v13630_v12 = vor.u32 %v15351_v26, %v13627_v55  ;;  %v15523_v58 = vld [vmem:[%s19840_s6 + $0x5e0] sm:$0xf0] }
 0x4bd   : > { %9421 = vmatpush.bf16.msrb.mxu3 %v13846_v18  ;;  %v18936_v42 = vadd.f32 %v7773_v29, %v7761_v15  ;;  %v15358_v18 = vld [vmem:[%s19840_s6 + $0xb8] sm:$0xf0]  ;;  %9332 = vmatpush.bf16.msra.mxu0 %v14278_v40  ;;  %v15356_v15 = vld [vmem:[%s19840_s6 + $0xac] sm:$0xf]  ;;  %v13647_v29 = vld [vmem:[%s19840_s6 + $0xbc] sm:$0xf0] }
 0x4be   : > { %v13650_v21 = vor.u32 %v15356_v15, %v13647_v29  ;;  %v14139_v15 = vld [vmem:[%s19840_s6 + $0x49c] sm:$0xf0]  ;;  %v15518_v55 = vld [vmem:[%s19840_s6 + $0x5b8] sm:$0xf0] }
 0x4bf   : > { %v15470_v23 = vld [vmem:[%s19840_s6 + $0x43c] sm:$0xf] }
 0x4c0   : > { %9409 = vmatpush.bf16.msrb.mxu2 %v13666_v7  ;;  %v13559_v7 = vld [vmem:[%s19840_s6 + $0x14] sm:$0xf0] }
 0x4c1   : > { %9422 = vmatpush.bf16.msrb.mxu3 %v13826_v25  ;;  %v13646_v25 = vor.u32 %v15358_v18, %v13645_v6  ;;  %9333 = vmatpush.bf16.msra.mxu0 %v14258_v54  ;;  %v13562_v43 = vor.u32 %v15335_v60, %v13559_v7  ;;  %v15338_v6 = vld [vmem:[%s19840_s6 + $0x18] sm:$0xf0]  ;;  %v14182_v54 = vor.u32 %v15490_v46, %v14179_v51  ;;  %v14285_v60 = vld [vmem:[%s19840_s6 + $0x5a8] sm:$0xf]  ;;  %v15531_v7 = vld [vmem:[%s19840_s6 + $0x624] sm:$0xf] }
 0x4c2   : > { %v7762_v48 = vpop.f32.mrf.mxu2  ;;  %v13566_v35 = vor.u32 %v15338_v6, %v13565_v24  ;;  %v14347_v24 = vld [vmem:[%s19840_s6 + $0x634] sm:$0xf0]  ;;  %v14286_v6 = vor.u32 %v15518_v55, %v14285_v60  ;;  %v14099_v46 = vld [vmem:[%s19840_s6 + $0x44c] sm:$0xf0]  ;;  %v15505_v51 = vld [vmem:[%s19840_s6 + $0x554] sm:$0xf] }
 0x4c3   : > { %v7775_v45 = vpop.f32.mrf.mxu3  ;;  %v14267_v60 = vld [vmem:[%s19840_s6 + $0x594] sm:$0xf0] }
 0x4c4   : > { %9410 = vmatpush.bf16.msrb.mxu2 %v13646_v25  ;;  %v14342_v25 = vor.u32 %v15530_v36, %v14339_v61  ;;  %v14319_v45 = vld [vmem:[%s19840_s6 + $0x604] sm:$0xf0] }
 0x4c5   : > { %9423 = vmatpush.bf16.msrb.mxu3 %v13806_v52  ;;  %v15345_v52 = vld [vmem:[%s19840_s6 + $0x54] sm:$0xf]  ;;  %9334 = vmatpush.bf16.msra.mxu0 %v14238_v5  ;;  %v13587_v5 = vld [vmem:[%s19840_s6 + $0x44] sm:$0xf0] }
 0x4c6   : > { %v13602_v57 = vor.u32 %v15345_v52, %v13599_v28  ;;  %v15525_v52 = vld [vmem:[%s19840_s6 + $0x5f4] sm:$0xf]  ;;  %v13590_v29 = vor.u32 %v15341_v0, %v13587_v5  ;;  %v15516_v5 = vld [vmem:[%s19840_s6 + $0x5ac] sm:$0xf] }
 0x4c7   : > { %v14322_v28 = vor.u32 %v15525_v52, %v14319_v45  ;;  %v14239_v52 = vld [vmem:[%s19840_s6 + $0x564] sm:$0xf0]  ;;  %v14245_v45 = vld [vmem:[%s19840_s6 + $0x558] sm:$0xf] }
 0x4c8   : > { %9411 = vmatpush.bf16.msrb.mxu2 %v13626_v30  ;;  %9347 = vmatpush.bf16.msra.mxu1 %v13602_v57  ;;  %v14159_v57 = vld [vmem:[%s19840_s6 + $0x4c4] sm:$0xf0] }
 0x4c9   : > { %9424 = vmatpush.bf16.msrb.mxu3 %v13786_v32  ;;  %v15340_v32 = vld [vmem:[%s19840_s6 + $0x2c] sm:$0xf] }
 0x4ca   : > { %v13582_v44 = vor.u32 %v15340_v32, %v13579_v10  ;;  %v15520_v10 = vld [vmem:[%s19840_s6 + $0x5cc] sm:$0xf] }
 0x4cc   : > { %9412 = vmatpush.bf16.msrb.mxu2 %v13606_v11  ;;  %9348 = vmatpush.bf16.msra.mxu1 %v13582_v44  ;;  %v14299_v11 = vld [vmem:[%s19840_s6 + $0x5dc] sm:$0xf0] }
 0x4cd   : > { %9425 = vmatpush.bf16.msrb.mxu3 %v13766_v16  ;;  %v14218_v16 = vor.u32 %v15502_v37, %v14217_v22  ;;  %v14302_v38 = vor.u32 %v15520_v10, %v14299_v11  ;;  %v15336_v22 = vld [vmem:[%s19840_s6 + $0xc] sm:$0xf]  ;;  %v13567_v37 = vld [vmem:[%s19840_s6 + $0x1c] sm:$0xf0]  ;;  %v15503_v11 = vld [vmem:[%s19840_s6 + $0x540] sm:$0xf0] }
 0x4ce   : > { %v13570_v61 = vor.u32 %v15336_v22, %v13567_v37  ;;  %v15455_v37 = vld [vmem:[%s19840_s6 + $0x3c4] sm:$0xf] }
 0x4cf   : > { %9335 = vmatpush.bf16.msra.mxu0 %v14218_v16  ;;  %v15515_v16 = vld [vmem:[%s19840_s6 + $0x5a4] sm:$0xf] }
 0x4d0   : > { %9413 = vmatpush.bf16.msrb.mxu2 %v13586_v47  ;;  %9349 = vmatpush.bf16.msra.mxu1 %v13562_v43 }
 0x4d1   : > { %9426 = vmatpush.bf16.msrb.mxu3 %v13746_v27  ;;  %v15346_v27 = vld [vmem:[%s19840_s6 + $0x5c] sm:$0xf] }
 0x4d2   : > { %v7786_v18 = vpop.f32.mrf.mxu0  ;;  %v13610_v1 = vor.u32 %v15346_v27, %v13607_v9  ;;  %v14259_v27 = vld [vmem:[%s19840_s6 + $0x58c] sm:$0xf0]  ;;  %v14265_v9 = vld [vmem:[%s19840_s6 + $0x580] sm:$0xf] }
 0x4d3   : > { %v7787_v41 = vadd.f32 %v7786_v18, %v6782_v3  ;;  %v7799_v40 = vpop.f32.mrf.mxu1  ;;  %9350 = vmatmul.bf16.vlgmr.msra.gmra.mxu1 %v15598_v13  ;;  %9336 = vmatpush.bf16.msra.mxu0 %v14198_v50  ;;  %v15475_v18 = vld [vmem:[%s19840_s6 + $0x464] sm:$0xf] }
 0x4d4   : > { %9414 = vmatpush.bf16.msrb.mxu2 %v13566_v35  ;;  %9394 = vmatpush.bf16.msrb.mxu1 %v14342_v25  ;;  %v14119_v35 = vld [vmem:[%s19840_s6 + $0x474] sm:$0xf0]  ;;  %v15526_v25 = vld [vmem:[%s19840_s6 + $0x5fc] sm:$0xf] }
 0x4d5   : > { %9427 = vmatpush.bf16.msrb.mxu3 %v13726_v4  ;;  %v7800_v48 = vadd.f32 %v7799_v40, %v7787_v41  ;;  %v14325_v4 = vld [vmem:[%s19840_s6 + $0x5f8] sm:$0xf]  ;;  %v14122_v53 = vor.u32 %v15475_v18, %v14119_v35  ;;  %v14350_v41 = vor.u32 %v15531_v7, %v14347_v24  ;;  %v15510_v40 = vld [vmem:[%s19840_s6 + $0x57c] sm:$0xf]  ;;  %v14330_v50 = vor.u32 %v15526_v25, %v14327_v8  ;;  %v14247_v35 = vld [vmem:[%s19840_s6 + $0x56c] sm:$0xf0] }
 0x4d6   : > { %v14326_v49 = vor.u32 %v15528_v2, %v14325_v4  ;;  %v14242_v4 = vor.u32 %v15505_v51, %v14239_v52  ;;  %v15508_v2 = vld [vmem:[%s19840_s6 + $0x568] sm:$0xf0]  ;;  %v15506_v18 = vld [vmem:[%s19840_s6 + $0x55c] sm:$0xf]  ;;  %v15501_v8 = vld [vmem:[%s19840_s6 + $0x534] sm:$0xf] }
 0x4d7   : > { %9415 = vmatmul.bf16.vlgmr.msrb.gmra.mxu2 %v15598_v13  ;;  %9381 = vmatpush.bf16.msrb.mxu0 %v14182_v54  ;;  %v15521_v54 = vld [vmem:[%s19840_s6 + $0x5d4] sm:$0xf]  ;;  %v15496_v52 = vld [vmem:[%s19840_s6 + $0x50c] sm:$0xf] }
 0x4d8   : > { %9428 = vmatmul.bf16.vlgmr.msrb.gmra.mxu3 %v15598_v13  ;;  %9459 = vmatpush.bf16.msra.mxu2 %v14346_v17  ;;  %v15513_v17 = vld [vmem:[%s19840_s6 + $0x590] sm:$0xf0] }
 0x4d9   : > { %9472 = vmatpush.bf16.msra.mxu3 %v13710_v20  ;;  %v15485_v20 = vld [vmem:[%s19840_s6 + $0x4b4] sm:$0xf]  ;;  %9395 = vmatpush.bf16.msrb.mxu1 %v14322_v28  ;;  %v14266_v56 = vor.u32 %v15513_v17, %v14265_v9  ;;  %v14307_v28 = vld [vmem:[%s19840_s6 + $0x5e4] sm:$0xf0] }
 0x4da   : > { %v7812_v30 = vpop.f32.mrf.mxu2  ;;  %v14162_v32 = vor.u32 %v15485_v20, %v14159_v57  ;;  %v7788_v31 = vpop.f32.mrf.mxu0  ;;  %v15465_v20 = vld [vmem:[%s19840_s6 + $0x414] sm:$0xf]  ;;  %v14079_v57 = vld [vmem:[%s19840_s6 + $0x424] sm:$0xf0]  ;;  %v14310_v0 = vor.u32 %v15521_v54, %v14307_v28  ;;  %v14145_v54 = vld [vmem:[%s19840_s6 + $0x490] sm:$0xf] }
 0x4db   : > { %v7813_v39 = vadd.f32 %v7812_v30, %v7800_v48  ;;  %v7825_v59 = vpop.f32.mrf.mxu3  ;;  %v7801_v14 = vpop.f32.mrf.mxu1  ;;  %v14102_v48 = vor.u32 %v15470_v23, %v14099_v46  ;;  %v6783_v30 = vperm.slane %v18615_v33, 4  ;;  %v14219_v33 = vld [vmem:[%s19840_s6 + $0x53c] sm:$0xf0]  ;;  %v15460_v31 = vld [vmem:[%s19840_s6 + $0x3ec] sm:$0xf] }
 0x4dc   : > { %9460 = vmatpush.bf16.msra.mxu2 %v14326_v49  ;;  %9382 = vmatpush.bf16.msrb.mxu0 %v14162_v32  ;;  %v14246_v49 = vor.u32 %v15508_v2, %v14245_v45  ;;  %v14287_v32 = vld [vmem:[%s19840_s6 + $0x5bc] sm:$0xf0]  ;;  %v14199_v14 = vld [vmem:[%s19840_s6 + $0x514] sm:$0xf0]  ;;  %v15488_v23 = vld [vmem:[%s19840_s6 + $0x4c8] sm:$0xf0] }
 0x4dd   : > { %9473 = vmatpush.bf16.msra.mxu3 %v13690_v19  ;;  %v14305_v19 = vld [vmem:[%s19840_s6 + $0x5d0] sm:$0xf]  ;;  %v19119_v44 = vadd.f32 %v7825_v59, %v7813_v39  ;;  %9396 = vmatpush.bf16.msrb.mxu1 %v14302_v38  ;;  %v14082_v39 = vor.u32 %v15465_v20, %v14079_v57  ;;  %v15500_v59 = vld [vmem:[%s19840_s6 + $0x52c] sm:$0xf]  ;;  %v14059_v38 = vld [vmem:[%s19840_s6 + $0x3fc] sm:$0xf0] }
 0x4de   : > { %v14306_v47 = vor.u32 %v15523_v58, %v14305_v19  ;;  %v14222_v10 = vor.u32 %v15500_v59, %v14219_v33  ;;  %v15495_v58 = vld [vmem:[%s19840_s6 + $0x504] sm:$0xf]  ;;  %v14207_v45 = vld [vmem:[%s19840_s6 + $0x51c] sm:$0xf0]  ;;  %v14125_v59 = vld [vmem:[%s19840_s6 + $0x468] sm:$0xf] }
 0x4df   : > { %v14202_v22 = vor.u32 %v15495_v58, %v14199_v14  ;;  %v15483_v28 = vld [vmem:[%s19840_s6 + $0x4a0] sm:$0xf0]  ;;  %v14210_v20 = vor.u32 %v15496_v52, %v14207_v45  ;;  %v15478_v33 = vld [vmem:[%s19840_s6 + $0x478] sm:$0xf0]  ;;  %v14085_v14 = vld [vmem:[%s19840_s6 + $0x418] sm:$0xf] }
 0x4e0   : > { %9461 = vmatpush.bf16.msra.mxu2 %v14306_v47  ;;  %v14205_v47 = vld [vmem:[%s19840_s6 + $0x508] sm:$0xf]  ;;  %v15446_v52 = vld [vmem:[%s19840_s6 + $0x37c] sm:$0xf]  ;;  %v14007_v45 = vld [vmem:[%s19840_s6 + $0x38c] sm:$0xf0] }
 0x4e1   : > { %9474 = vmatpush.bf16.msra.mxu3 %v13670_v63  ;;  %v15480_v63 = vld [vmem:[%s19840_s6 + $0x48c] sm:$0xf] }
 0x4e2   : > { %v14142_v3 = vor.u32 %v15480_v63, %v14139_v15  ;;  %v7814_v43 = vpop.f32.mrf.mxu2  ;;  %v15498_v63 = vld [vmem:[%s19840_s6 + $0x518] sm:$0xf0]  ;;  %v14062_v15 = vor.u32 %v15460_v31, %v14059_v38 }
 0x4e3   : > { %v7827_v36 = vpop.f32.mrf.mxu3  ;;  %v14206_v7 = vor.u32 %v15498_v63, %v14205_v47  ;;  %v15468_v47 = vld [vmem:[%s19840_s6 + $0x428] sm:$0xf0] }
 0x4e4   : > { %9383 = vmatpush.bf16.msrb.mxu0 %v14142_v3  ;;  %9462 = vmatpush.bf16.msra.mxu2 %v14286_v6  ;;  %v14039_v3 = vld [vmem:[%s19840_s6 + $0x3d4] sm:$0xf0]  ;;  %v14185_v36 = vld [vmem:[%s19840_s6 + $0x4e0] sm:$0xf] }
 0x4e5   : > { %9475 = vmatpush.bf16.msra.mxu3 %v13650_v21  ;;  %v14279_v21 = vld [vmem:[%s19840_s6 + $0x5b4] sm:$0xf0]  ;;  %v14042_v55 = vor.u32 %v15455_v37, %v14039_v3  ;;  %v15453_v37 = vld [vmem:[%s19840_s6 + $0x3b0] sm:$0xf0]  ;;  %v15599_v3 = vmov 0.0  }
 0x4e6   : > { %v14282_v26 = vor.u32 %v15515_v16, %v14279_v21  ;;  %v15511_v21 = vld [vmem:[%s19840_s6 + $0x584] sm:$0xf] }
 0x4e7   : > { %v14270_v43 = vor.u32 %v15511_v21, %v14267_v60  ;;  %v14065_v21 = vld [vmem:[%s19840_s6 + $0x3f0] sm:$0xf]  ;;  %v15463_v60 = vld [vmem:[%s19840_s6 + $0x400] sm:$0xf0] }
 0x4e8   : > { %9397 = vmatpush.bf16.msrb.mxu1 %v14282_v26  ;;  %9384 = vmatpush.bf16.msrb.mxu0 %v14122_v53 }
 0x4e9   : > { %9476 = vmatpush.bf16.msra.mxu3 %v13630_v12  ;;  %v14262_v12 = vor.u32 %v15510_v40, %v14259_v27  ;;  %9463 = vmatpush.bf16.msra.mxu2 %v14266_v56  ;;  %v14250_v40 = vor.u32 %v15506_v18, %v14247_v35  ;;  %v14165_v56 = vld [vmem:[%s19840_s6 + $0x4b8] sm:$0xf] }
 0x4ec   : > { %9398 = vmatpush.bf16.msrb.mxu1 %v14262_v12  ;;  %9385 = vmatpush.bf16.msrb.mxu0 %v14102_v48  ;;  %v14227_v12 = vld [vmem:[%s19840_s6 + $0x544] sm:$0xf0]  ;;  %v14166_v48 = vor.u32 %v15488_v23, %v14165_v56  ;;  %v14167_v56 = vld [vmem:[%s19840_s6 + $0x4cc] sm:$0xf0] }
 0x4ed   : > { %9477 = vmatpush.bf16.msra.mxu3 %v13610_v1  ;;  %v14225_v1 = vld [vmem:[%s19840_s6 + $0x530] sm:$0xf]  ;;  %9464 = vmatpush.bf16.msra.mxu2 %v14246_v49 }
 0x4ee   : > { %v14226_v19 = vor.u32 %v15503_v11, %v14225_v1  ;;  %v14126_v1 = vor.u32 %v15478_v33, %v14125_v59  ;;  %v15476_v59 = vld [vmem:[%s19840_s6 + $0x46c] sm:$0xf] }
 0x4f0   : > { %9399 = vmatpush.bf16.msrb.mxu1 %v14242_v4  ;;  %9386 = vmatpush.bf16.msrb.mxu0 %v14082_v39  ;;  %v7921_v39 = vlaneseq }
 0x4f1   : > { %9478 = vmatpush.bf16.msra.mxu3 %v13590_v29  ;;  %v14290_v29 = vor.u32 %v15516_v5, %v14287_v32  ;;  %9465 = vmatpush.bf16.msra.mxu2 %v14226_v19  ;;  %v14105_v5 = vld [vmem:[%s19840_s6 + $0x440] sm:$0xf]  ;;  %v15473_v32 = vld [vmem:[%s19840_s6 + $0x450] sm:$0xf0] }
 0x4f2   : > { %v7838_v16 = vpop.f32.mrf.mxu0  ;;  %v14106_v11 = vor.u32 %v15473_v32, %v14105_v5  ;;  %v13945_v32 = vld [vmem:[%s19840_s6 + $0x300] sm:$0xf] }
 0x4f3   : > { %v7839_v24 = vadd.f32 %v7838_v16, %v6783_v30  ;;  %v7851_v26 = vpop.f32.mrf.mxu1  ;;  %v14146_v30 = vor.u32 %v15483_v28, %v14145_v54  ;;  %v15481_v54 = vld [vmem:[%s19840_s6 + $0x494] sm:$0xf]  ;;  %v14010_v28 = vor.u32 %v15446_v52, %v14007_v45  ;;  %v15416_v45 = vld [vmem:[%s19840_s6 + $0x28c] sm:$0xf] }
 0x4f4   : > { %9400 = vmatpush.bf16.msrb.mxu1 %v14222_v10  ;;  %9387 = vmatpush.bf16.msrb.mxu0 %v14062_v15  ;;  %v14086_v15 = vor.u32 %v15468_v47, %v14085_v14  ;;  %v14107_v14 = vld [vmem:[%s19840_s6 + $0x454] sm:$0xf0] }
 0x4f5   : > { %9479 = vmatpush.bf16.msra.mxu3 %v13570_v61  ;;  %v7852_v6 = vadd.f32 %v7851_v26, %v7839_v24  ;;  %9466 = vmatpush.bf16.msra.mxu2 %v14206_v7  ;;  %v15493_v61 = vld [vmem:[%s19840_s6 + $0x4f0] sm:$0xf0]  ;;  %v14066_v24 = vor.u32 %v15463_v60, %v14065_v21  ;;  %v15491_v26 = vld [vmem:[%s19840_s6 + $0x4e4] sm:$0xf]  ;;  %v14087_v60 = vld [vmem:[%s19840_s6 + $0x42c] sm:$0xf0] }
 0x4f6   : > { %v14186_v53 = vor.u32 %v15493_v61, %v14185_v36  ;;  %v14005_v36 = vld [vmem:[%s19840_s6 + $0x378] sm:$0xf] }
 0x4f8   : > { %9480 = vmatmul.bf16.vlgmr.msra.gmra.mxu3 %v15598_v13  ;;  %9401 = vmatpush.bf16.msrb.mxu1 %v14202_v22  ;;  %v14025_v22 = vld [vmem:[%s19840_s6 + $0x3a0] sm:$0xf] }
 0x4f9   : > { %9524 = vmatpush.bf16.msrb.mxu3 %v14350_v41  ;;  %9388 = vmatpush.bf16.msrb.mxu0 %v14042_v55  ;;  %v14187_v55 = vld [vmem:[%s19840_s6 + $0x4f4] sm:$0xf0]  ;;  %v14026_v61 = vor.u32 %v15453_v37, %v14025_v22  ;;  %v15428_v22 = vld [vmem:[%s19840_s6 + $0x2e8] sm:$0xf0]  ;;  %v15431_v37 = vld [vmem:[%s19840_s6 + $0x304] sm:$0xf] }
 0x4fa   : > { %v7864_v41 = vpop.f32.mrf.mxu2  ;;  %v7840_v25 = vpop.f32.mrf.mxu0 }
 0x4fb   : > { %v7865_v27 = vadd.f32 %v7864_v41, %v7852_v6  ;;  %v7877_v9 = vpop.f32.mrf.mxu3  ;;  %v7853_v17 = vpop.f32.mrf.mxu1  ;;  %v14190_v6 = vor.u32 %v15491_v26, %v14187_v55  ;;  %v14045_v41 = vld [vmem:[%s19840_s6 + $0x3c8] sm:$0xf]  ;;  %v15451_v25 = vld [vmem:[%s19840_s6 + $0x3a4] sm:$0xf]  ;;  %v13905_v26 = vld [vmem:[%s19840_s6 + $0x2b0] sm:$0xf] }
 0x4fc   : > { %9446 = vmatpush.bf16.msra.mxu1 %v14186_v53  ;;  %v15448_v53 = vld [vmem:[%s19840_s6 + $0x388] sm:$0xf0]  ;;  %v15423_v55 = vld [vmem:[%s19840_s6 + $0x2c0] sm:$0xf0] }
 0x4fd   : > { %9525 = vmatpush.bf16.msrb.mxu3 %v14330_v50  ;;  %v19282_v46 = vadd.f32 %v7877_v9, %v7865_v27  ;;  %v14230_v50 = vor.u32 %v15501_v8, %v14227_v12  ;;  %9511 = vmatpush.bf16.msrb.mxu2 %v14190_v6  ;;  %v14027_v8 = vld [vmem:[%s19840_s6 + $0x3b4] sm:$0xf0]  ;;  %v15486_v12 = vld [vmem:[%s19840_s6 + $0x4bc] sm:$0xf]  ;;  %v13927_v6 = vld [vmem:[%s19840_s6 + $0x2ec] sm:$0xf0] }
 0x4fe   : > { %v14030_v17 = vor.u32 %v15451_v25, %v14027_v8  ;;  %v14170_v23 = vor.u32 %v15486_v12, %v14167_v56  ;;  %v15421_v25 = vld [vmem:[%s19840_s6 + $0x2b4] sm:$0xf]  ;;  %v13907_v8 = vld [vmem:[%s19840_s6 + $0x2c4] sm:$0xf0]  ;;  %v15456_v12 = vld [vmem:[%s19840_s6 + $0x3cc] sm:$0xf] }
 0x4ff   : > { %v7885_v51 = vmul.f32 100.0, %v19282_v46  ;;  %v13867_v56 = vld [vmem:[%s19840_s6 + $0x274] sm:$0xf0] }
 0x500   : > { %9447 = vmatpush.bf16.msra.mxu1 %v14166_v48  ;;  %v14006_v48 = vor.u32 %v15448_v53, %v14005_v36 }
 0x501   : > { %9526 = vmatpush.bf16.msrb.mxu3 %v14310_v0  ;;  %v13549_v4 = vadd.f32 -5.0, %v7885_v51  ;;  %v7905_v2 = vadd.f32 5.0, %v7885_v51  ;;  %v7922_v0 = vand.u32 127, %v7921_v39  ;;  %v15443_v51 = vld [vmem:[%s19840_s6 + $0x360] sm:$0xf0]  ;;  %9512 = vmatpush.bf16.msrb.mxu2 %v14170_v23  ;;  %v13910_v23 = vor.u32 %v15421_v25, %v13907_v8 }
 0x502   : > { %v7866_v49 = vpop.f32.mrf.mxu2  ;;  %v13987_v39 = vld [vmem:[%s19840_s6 + $0x364] sm:$0xf0] }
 0x503   : > { %15553 = vtanh.f32 %v13549_v4  ;;  %v7879_v57 = vpop.f32.mrf.mxu3  ;;  %v19309_v58 = vadd.s32 512, %v7922_v0  ;;  %v14147_v4 = vld [vmem:[%s19840_s6 + $0x4a4] sm:$0xf0] }
 0x504   : > { %9448 = vmatpush.bf16.msra.mxu1 %v14146_v30  ;;  %15555 = vtanh.f32 %v7905_v2  ;;  %v14150_v2 = vor.u32 %v15481_v54, %v14147_v4  ;;  %v13965_v49 = vld [vmem:[%s19840_s6 + $0x328] sm:$0xf]  ;;  %v15441_v57 = vld [vmem:[%s19840_s6 + $0x354] sm:$0xf]  ;;  %v13887_v54 = vld [vmem:[%s19840_s6 + $0x29c] sm:$0xf0] }
 0x505   : > { %9527 = vmatpush.bf16.msrb.mxu3 %v14290_v29  ;;  %vm7936_vm5 = vcmp.lt.s32.totalorder %v19309_v58, 515  ;;  %v13990_v33 = vor.u32 %v15441_v57, %v13987_v39  ;;  %v13847_v4 = vld [vmem:[%s19840_s6 + $0x24c] sm:$0xf0]  ;;  %v15396_v39 = vld [vmem:[%s19840_s6 + $0x1ec] sm:$0xf] }
 0x506   : > { %vm19344_vm7 = vmpackc.low %vm7936_vm5, %vm7936_vm5  ;;  %9513 = vmatpush.bf16.msrb.mxu2 %v14150_v2  ;;  %v13890_v2 = vor.u32 %v15416_v45, %v13887_v54  ;;  %v13747_v25 = vld [vmem:[%s19840_s6 + $0x184] sm:$0xf0]  ;;  %v15376_v54 = vld [vmem:[%s19840_s6 + $0x14c] sm:$0xf] }
 0x508   : > { %9449 = vmatpush.bf16.msra.mxu1 %v14126_v1  ;;  %v14127_v1 = vld [vmem:[%s19840_s6 + $0x47c] sm:$0xf0] }
 0x509   : > { %9528 = vmatpush.bf16.msrb.mxu3 %v14270_v43  ;;  %v15554_v10 = vpop.eup %15553  ;;  %v14130_v0 = vor.u32 %v15476_v59, %v14127_v1  ;;  %v14033_v59 = vld [vmem:[%s19840_s6 + $0x3a8] sm:$0xf]  ;;  %v13807_v1 = vld [vmem:[%s19840_s6 + $0x1fc] sm:$0xf0] }
 0x50a   : > { %v15556_v19 = vpop.eup %15555  ;;  %v7900_v31 = vmul.f32 0.5, %v15554_v10  ;;  %v15433_v10 = vld [vmem:[%s19840_s6 + $0x310] sm:$0xf0] }
 0x50b   : > { %v7915_v38 = vmul.f32 0.5, %v15556_v19  ;;  %v13967_v19 = vld [vmem:[%s19840_s6 + $0x33c] sm:$0xf0]  ;;  %9514 = vmatpush.bf16.msrb.mxu2 %v14130_v0 }
 0x50c   : > { %9450 = vmatpush.bf16.msra.mxu1 %v14106_v11  ;;  %v15436_v11 = vld [vmem:[%s19840_s6 + $0x32c] sm:$0xf] }
 0x50d   : > { %9529 = vmatpush.bf16.msrb.mxu3 %v14250_v40  ;;  %v19317_v63 = vadd.f32 %v7915_v38, %v7900_v31  ;;  %v15458_v40 = vld [vmem:[%s19840_s6 + $0x3d8] sm:$0xf0]  ;;  %v15471_v31 = vld [vmem:[%s19840_s6 + $0x444] sm:$0xf]  ;;  %v13970_v38 = vor.u32 %v15436_v11, %v13967_v19 }
 0x50e   : > { %v14046_v9 = vor.u32 %v15458_v40, %v14045_v41  ;;  %v14110_v47 = vor.u32 %v15471_v31, %v14107_v14  ;;  %v13906_v41 = vor.u32 %v15423_v55, %v13905_v26  ;;  %v13885_v40 = vld [vmem:[%s19840_s6 + $0x288] sm:$0xf]  ;;  %v15391_v19 = vld [vmem:[%s19840_s6 + $0x1c4] sm:$0xf]  ;;  %v13787_v31 = vld [vmem:[%s19840_s6 + $0x1d4] sm:$0xf0] }
 0x50f   : > { %vm7946_vm3 = vcmp.gt.f32.partialorder %v19317_v63, 0.0  ;;  %vm7951_vm4 = vcmp.lt.f32.partialorder %v19317_v63, 0.0  ;;  %v7966_v29 = vand.u32 2147483647, %v19317_v63  ;;  %v13873_v14 = vld [vmem:[%s19840_s6 + $0x268] sm:$0xf] }
 0x510   : > { %9451 = vmatpush.bf16.msra.mxu1 %v14086_v15  ;;  %v7956_v16 = vsel %vm7951_vm4, -1.0, %v15599_v3  ;;  %v13946_v15 = vor.u32 %v15433_v10, %v13945_v32  ;;  %9515 = vmatpush.bf16.msrb.mxu2 %v14110_v47  ;;  %v14193_v32 = vld [vmem:[%s19840_s6 + $0x4e8] sm:$0xf]  ;;  %v15494_v10 = vld [vmem:[%s19840_s6 + $0x4f8] sm:$0xf0] }
 0x511   : > { %9530 = vmatpush.bf16.msrb.mxu3 %v14230_v50  ;;  %v7961_v7 = vsel %vm7946_vm3, 1.0, %v7956_v16  ;;  %vm7971_vm6 = vcmp.gt.f32.partialorder %v7966_v29, 0.5  ;;  %v13985_v50 = vld [vmem:[%s19840_s6 + $0x350] sm:$0xf]  ;;  %v13925_v29 = vld [vmem:[%s19840_s6 + $0x2d8] sm:$0xf]  ;;  %v14194_v11 = vor.u32 %v15494_v10, %v14193_v32 }
 0x512   : > { %v13554_v43 = vsel %vm7971_vm6, 1.0, %v15599_v3  ;;  %v13986_v30 = vor.u32 %v15443_v51, %v13985_v50  ;;  %v13947_v3 = vld [vmem:[%s19840_s6 + $0x314] sm:$0xf0]  ;;  %v15466_v16 = vld [vmem:[%s19840_s6 + $0x41c] sm:$0xf] }
 0x513   : > { %v7986_v18 = vmul.f32 %v13554_v43, %v7961_v7  ;;  %v13950_v21 = vor.u32 %v15431_v37, %v13947_v3  ;;  %v14090_v7 = vor.u32 %v15466_v16, %v14087_v60  ;;  %v15426_v43 = vld [vmem:[%s19840_s6 + $0x2dc] sm:$0xf]  ;;  %v14173_v37 = vld [vmem:[%s19840_s6 + $0x4c0] sm:$0xf]  ;;  %v15489_v3 = vld [vmem:[%s19840_s6 + $0x4d0] sm:$0xf0] }
 0x514   : > { %9452 = vmatpush.bf16.msra.mxu1 %v14066_v24  ;;  %v13926_v24 = vor.u32 %v15428_v22, %v13925_v29  ;;  %v13930_v36 = vor.u32 %v15426_v43, %v13927_v6  ;;  %v15414_v47 = vld [vmem:[%s19840_s6 + $0x278] sm:$0xf0]  ;;  %v15449_v22 = vld [vmem:[%s19840_s6 + $0x390] sm:$0xf0]  ;;  %v13853_v26 = vld [vmem:[%s19840_s6 + $0x240] sm:$0xf] }
 0x515   : > { %9531 = vmatpush.bf16.msrb.mxu3 %v14210_v20  ;;  %v19360_v27 = vpack.c.bf16 %v7986_v18, %v7986_v18  ;;  %v15438_v20 = vld [vmem:[%s19840_s6 + $0x338] sm:$0xf0]  ;;  %v15461_v18 = vld [vmem:[%s19840_s6 + $0x3f4] sm:$0xf]  ;;  %9516 = vmatpush.bf16.msrb.mxu2 %v14090_v7  ;;  %v13874_v29 = vor.u32 %v15414_v47, %v13873_v14  ;;  %v13767_v7 = vld [vmem:[%s19840_s6 + $0x1ac] sm:$0xf0] }
 0x516   : > { %v13966_v5 = vor.u32 %v15438_v20, %v13965_v49  ;;  %v15401_v49 = vld [vmem:[%s19840_s6 + $0x214] sm:$0xf]  ;;  %v13827_v20 = vld [vmem:[%s19840_s6 + $0x224] sm:$0xf0]  ;;  %v15386_v60 = vld [vmem:[%s19840_s6 + $0x19c] sm:$0xf] }
 0x517   : > { %14357 = vmatmul.msk.bf16.vlgmr.msra.gmra.mxu0 %vm19344_vm7, %v19360_v27  ;;  %14360 = vmatmul.msk.bf16.vlgmr.msrb.gmra.mxu1 %vm19344_vm7, %v19360_v27  ;;  %v13830_v57 = vor.u32 %v15401_v49, %v13827_v20  ;;  %v15409_v55 = vld [vmem:[%s19840_s6 + $0x250] sm:$0xf0]  ;;  %v13993_v43 = vld [vmem:[%s19840_s6 + $0x358] sm:$0xf]  ;;  %v13770_v8 = vor.u32 %v15386_v60, %v13767_v7  ;;  %v13953_v49 = vld [vmem:[%s19840_s6 + $0x308] sm:$0xf] }
 0x518   : > { %9433 = vmatpush.bf16.msra.mxu0 %v14026_v61  ;;  %14363 = vmatmul.msk.bf16.vlgmr.msra.gmra.mxu2 %vm19344_vm7, %v19360_v27  ;;  %v14067_v61 = vld [vmem:[%s19840_s6 + $0x404] sm:$0xf0]  ;;  %v15374_v32 = vld [vmem:[%s19840_s6 + $0x138] sm:$0xf0]  ;;  %v13933_v14 = vld [vmem:[%s19840_s6 + $0x2e0] sm:$0xf] }
 0x519   : > { %14366 = vmatmul.msk.bf16.vlgmr.msrb.gmra.mxu3 %vm19344_vm7, %v19360_v27  ;;  %9453 = vmatpush.bf16.msra.mxu1 %v14046_v9  ;;  %v14070_v53 = vor.u32 %v15461_v18, %v14067_v61  ;;  %v15418_v9 = vld [vmem:[%s19840_s6 + $0x298] sm:$0xf0]  ;;  %v13854_v18 = vor.u32 %v15409_v55, %v13853_v26  ;;  %v14153_v61 = vld [vmem:[%s19840_s6 + $0x498] sm:$0xf]  ;;  %v15469_v60 = vld [vmem:[%s19840_s6 + $0x430] sm:$0xf0] }
 0x51a   : > { %v13886_v51 = vor.u32 %v15418_v9, %v13885_v40  ;;  %9576 = vmatpush.bf16.msra.mxu3 %v14194_v11  ;;  %v15381_v9 = vld [vmem:[%s19840_s6 + $0x174] sm:$0xf]  ;;  %v9312_v20 = vpop.f32.mrf.mxu2  ;;  %v13773_v7 = vld [vmem:[%s19840_s6 + $0x1a0] sm:$0xf]  ;;  %v13913_v55 = vld [vmem:[%s19840_s6 + $0x2b8] sm:$0xf] }
 0x51b   : > { %9517 = vmatpush.bf16.msrb.mxu2 %v14070_v53  ;;  %v19535_v0 = vpop.f32.mrf.mxu3  ;;  %v15484_v53 = vld [vmem:[%s19840_s6 + $0x4a8] sm:$0xf0]  ;;  %v15389_v26 = vld [vmem:[%s19840_s6 + $0x1b0] sm:$0xf0] }
 0x51c   : > { %9434 = vmatpush.bf16.msra.mxu0 %v14006_v48  ;;  %v14047_v48 = vld [vmem:[%s19840_s6 + $0x3dc] sm:$0xf0]  ;;  %v14154_v40 = vor.u32 %v15484_v53, %v14153_v61  ;;  %v13673_v61 = vld [vmem:[%s19840_s6 + $0xd8] sm:$0xf]  ;;  %v15364_v53 = vld [vmem:[%s19840_s6 + $0xe8] sm:$0xf0] }
 0x51d   : > { %9498 = vmatpush.bf16.msrb.mxu1 %v14030_v17  ;;  %v15411_v17 = vld [vmem:[%s19840_s6 + $0x264] sm:$0xf]  ;;  %v14050_v50 = vor.u32 %v15456_v12, %v14047_v48  ;;  %v13833_v12 = vld [vmem:[%s19840_s6 + $0x218] sm:$0xf] }
 0x51e   : > { %v13870_v52 = vor.u32 %v15411_v17, %v13867_v56  ;;  %v15404_v17 = vld [vmem:[%s19840_s6 + $0x228] sm:$0xf0]  ;;  %v13973_v56 = vld [vmem:[%s19840_s6 + $0x330] sm:$0xf]  ;;  %v15439_v48 = vld [vmem:[%s19840_s6 + $0x340] sm:$0xf0] }
 0x51f   : > { %9518 = vmatpush.bf16.msrb.mxu2 %v14050_v50  ;;  %v14133_v50 = vld [vmem:[%s19840_s6 + $0x470] sm:$0xf] }
 0x520   : > { %9435 = vmatpush.bf16.msra.mxu0 %v13986_v30 }
 0x521   : > { %9499 = vmatpush.bf16.msrb.mxu1 %v14010_v28  ;;  %v15406_v28 = vld [vmem:[%s19840_s6 + $0x23c] sm:$0xf] }
 0x522   : > { %v13850_v30 = vor.u32 %v15406_v28, %v13847_v4  ;;  %v13727_v28 = vld [vmem:[%s19840_s6 + $0x15c] sm:$0xf0]  ;;  %v13750_v4 = vor.u32 %v15381_v9, %v13747_v25  ;;  %v14073_v25 = vld [vmem:[%s19840_s6 + $0x3f8] sm:$0xf] }
 0x523   : > { %v9327_v6 = vpop.f32.mrf.mxu3 }
 0x524   : > { %9436 = vmatpush.bf16.msra.mxu0 %v13966_v5  ;;  %v13774_v6 = vor.u32 %v15389_v26, %v13773_v7  ;;  %v15339_v7 = vld [vmem:[%s19840_s6 + $0x20] sm:$0xf0]  ;;  %v15534_v26 = vld [vmem:[%s19840_s6 + $0x638] sm:$0xf0] }
 0x525   : > { %9500 = vmatpush.bf16.msrb.mxu1 %v13990_v33  ;;  %v15454_v33 = vld [vmem:[%s19840_s6 + $0x3b8] sm:$0xf0] }
 0x526   : > { %v14034_v5 = vor.u32 %v15454_v33, %v14033_v59  ;;  %v15434_v59 = vld [vmem:[%s19840_s6 + $0x318] sm:$0xf0]  ;;  %v14113_v33 = vld [vmem:[%s19840_s6 + $0x448] sm:$0xf] }
 0x527   : > { %9389 = vmatmul.bf16.vlgmr.msrb.gmra.mxu0 %v15598_v13  ;;  %9454 = vmatmul.bf16.vlgmr.msra.gmra.mxu1 %v15598_v13  ;;  %v13954_v10 = vor.u32 %v15434_v59, %v13953_v49  ;;  %v9299_v9 = vpop.f32.mrf.mxu1  ;;  %v15459_v49 = vld [vmem:[%s19840_s6 + $0x3e0] sm:$0xf0] }
 0x528   : > { %9437 = vmatpush.bf16.msra.mxu0 %v13946_v15  ;;  %9519 = vmatmul.bf16.vlgmr.msrb.gmra.mxu2 %v15598_v13  ;;  %v14013_v15 = vld [vmem:[%s19840_s6 + $0x380] sm:$0xf] }
 0x529   : > { %9501 = vmatpush.bf16.msrb.mxu1 %v13970_v38  ;;  %9563 = vmatpush.bf16.msra.mxu2 %v14034_v5  ;;  %v13810_v38 = vor.u32 %v15396_v39, %v13807_v1  ;;  %v14014_v16 = vor.u32 %v15449_v22, %v14013_v15  ;;  %v15474_v1 = vld [vmem:[%s19840_s6 + $0x458] sm:$0xf0]  ;;  %v13713_v5 = vld [vmem:[%s19840_s6 + $0x128] sm:$0xf]  ;;  %v13693_v15 = vld [vmem:[%s19840_s6 + $0x100] sm:$0xf] }
 0x52a   : > { %v14114_v11 = vor.u32 %v15474_v1, %v14113_v33  ;;  %v13714_v47 = vor.u32 %v15374_v32, %v13713_v5 }
 0x52c   : > { %9438 = vmatpush.bf16.msra.mxu0 %v13926_v24  ;;  %v13790_v24 = vor.u32 %v15391_v19, %v13787_v31  ;;  %v13730_v19 = vor.u32 %v15376_v54, %v13727_v28  ;;  %v13793_v31 = vld [vmem:[%s19840_s6 + $0x1c8] sm:$0xf]  ;;  %v13653_v54 = vld [vmem:[%s19840_s6 + $0xb0] sm:$0xf]  ;;  %v15359_v28 = vld [vmem:[%s19840_s6 + $0xc0] sm:$0xf0] }
 0x52d   : > { %9502 = vmatpush.bf16.msrb.mxu1 %v13950_v21  ;;  %v14174_v21 = vor.u32 %v15489_v3, %v14173_v37  ;;  %9564 = vmatpush.bf16.msra.mxu2 %v14014_v16  ;;  %v15429_v37 = vld [vmem:[%s19840_s6 + $0x2f0] sm:$0xf0]  ;;  %v9286_v16 = vpop.f32.mrf.mxu0  ;;  %v13654_v1 = vor.u32 %v15359_v28, %v13653_v54  ;;  %v14233_v28 = vld [vmem:[%s19840_s6 + $0x538] sm:$0xf] }
 0x52e   : > { %v13934_v3 = vor.u32 %v15429_v37, %v13933_v14  ;;  %v13613_v14 = vld [vmem:[%s19840_s6 + $0x60] sm:$0xf]  ;;  %v13593_v37 = vld [vmem:[%s19840_s6 + $0x38] sm:$0xf] }
 0x52f   : > { %9577 = vmatpush.bf16.msra.mxu3 %v14174_v21  ;;  %v14093_v21 = vld [vmem:[%s19840_s6 + $0x420] sm:$0xf] }
 0x530   : > { %9439 = vmatpush.bf16.msra.mxu0 %v13906_v41 }
 0x531   : > { %9503 = vmatpush.bf16.msrb.mxu1 %v13930_v36  ;;  %v15444_v36 = vld [vmem:[%s19840_s6 + $0x368] sm:$0xf0] }
 0x532   : > { %v13994_v41 = vor.u32 %v15444_v36, %v13993_v43  ;;  %v15424_v43 = vld [vmem:[%s19840_s6 + $0x2c8] sm:$0xf0] }
 0x533   : > { %9578 = vmatpush.bf16.msra.mxu3 %v14154_v40 }
 0x534   : > { %9440 = vmatpush.bf16.msra.mxu0 %v13886_v51  ;;  %9565 = vmatpush.bf16.msra.mxu2 %v13994_v41  ;;  %v15479_v51 = vld [vmem:[%s19840_s6 + $0x480] sm:$0xf0]  ;;  %v9314_v41 = vpop.f32.mrf.mxu2 }
 0x535   : > { %9504 = vmatpush.bf16.msrb.mxu1 %v13910_v23  ;;  %v13834_v23 = vor.u32 %v15404_v17, %v13833_v12  ;;  %v14134_v45 = vor.u32 %v15479_v51, %v14133_v50  ;;  %v13753_v12 = vld [vmem:[%s19840_s6 + $0x178] sm:$0xf]  ;;  %v9300_v17 = vadd.f32 %v9299_v9, %v9286_v16  ;;  %v15419_v50 = vld [vmem:[%s19840_s6 + $0x2a0] sm:$0xf0] }
 0x536   : > { %v14313_v9 = vld [vmem:[%s19840_s6 + $0x5d8] sm:$0xf] }
 0x537   : > { %9441 = vmatmul.bf16.vlgmr.msra.gmra.mxu0 %v15598_v13  ;;  %9579 = vmatpush.bf16.msra.mxu3 %v14134_v45  ;;  %v13674_v45 = vor.u32 %v15364_v53, %v13673_v61  ;;  %v14333_v61 = vld [vmem:[%s19840_s6 + $0x600] sm:$0xf]  ;;  %v15529_v53 = vld [vmem:[%s19840_s6 + $0x610] sm:$0xf0] }
 0x538   : > { %9485 = vmatpush.bf16.msrb.mxu0 %v13870_v52  ;;  %v13974_v52 = vor.u32 %v15439_v48, %v13973_v56  ;;  %v13893_v48 = vld [vmem:[%s19840_s6 + $0x290] sm:$0xf]  ;;  %v14334_v41 = vor.u32 %v15529_v53, %v14333_v61 }
 0x539   : > { %9505 = vmatpush.bf16.msrb.mxu1 %v13890_v2  ;;  %v13813_v2 = vld [vmem:[%s19840_s6 + $0x1f0] sm:$0xf] }
 0x53a   : > { %9566 = vmatpush.bf16.msra.mxu2 %v13974_v52  ;;  %v13894_v52 = vor.u32 %v15419_v50, %v13893_v48  ;;  %v14273_v50 = vld [vmem:[%s19840_s6 + $0x588] sm:$0xf] }
 0x53b   : > { %9580 = vmatpush.bf16.msra.mxu3 %v14114_v11  ;;  %v15354_v11 = vld [vmem:[%s19840_s6 + $0x98] sm:$0xf0] }
 0x53c   : > { %9486 = vmatpush.bf16.msrb.mxu0 %v13850_v30  ;;  %9506 = vmatmul.bf16.vlgmr.msrb.gmra.mxu1 %v15598_v13  ;;  %v15399_v30 = vld [vmem:[%s19840_s6 + $0x200] sm:$0xf0]  ;;  %v9364_v5 = vpop.f32.mrf.mxu2 }
 0x53d   : > { %9550 = vmatpush.bf16.msra.mxu1 %v13874_v29  ;;  %v13814_v39 = vor.u32 %v15399_v30, %v13813_v2  ;;  %v15369_v29 = vld [vmem:[%s19840_s6 + $0x110] sm:$0xf0]  ;;  %v9288_v2 = vpop.f32.mrf.mxu0  ;;  %v14053_v30 = vld [vmem:[%s19840_s6 + $0x3d0] sm:$0xf] }
 0x53e   : > { %9567 = vmatpush.bf16.msra.mxu2 %v13954_v10  ;;  %v13694_v36 = vor.u32 %v15369_v29, %v13693_v15  ;;  %v14054_v59 = vor.u32 %v15459_v49, %v14053_v30  ;;  %v13633_v10 = vld [vmem:[%s19840_s6 + $0x88] sm:$0xf]  ;;  %v14213_v30 = vld [vmem:[%s19840_s6 + $0x510] sm:$0xf]  ;;  %v15499_v49 = vld [vmem:[%s19840_s6 + $0x520] sm:$0xf0] }
 0x540   : > { %9487 = vmatpush.bf16.msrb.mxu0 %v13830_v57  ;;  %v19630_v57 = vpop.f32.mrf.mxu3 }
 0x541   : > { %9551 = vmatpush.bf16.msra.mxu1 %v13854_v18  ;;  %v13914_v18 = vor.u32 %v15424_v43, %v13913_v55 }
 0x542   : > { %9568 = vmatpush.bf16.msra.mxu2 %v13934_v3 }
 0x544   : > { %9488 = vmatpush.bf16.msrb.mxu0 %v13810_v38  ;;  %v15394_v38 = vld [vmem:[%s19840_s6 + $0x1d8] sm:$0xf0]  ;;  %v9366_v29 = vpop.f32.mrf.mxu2 }
 0x545   : > { %9552 = vmatpush.bf16.msra.mxu1 %v13834_v23  ;;  %v13794_v22 = vor.u32 %v15394_v38, %v13793_v31  ;;  %v15384_v23 = vld [vmem:[%s19840_s6 + $0x188] sm:$0xf0]  ;;  %v13634_v31 = vor.u32 %v15354_v11, %v13633_v10 }
 0x546   : > { %9569 = vmatpush.bf16.msra.mxu2 %v13914_v18  ;;  %v13754_v51 = vor.u32 %v15384_v23, %v13753_v12 }
 0x548   : > { %9489 = vmatpush.bf16.msrb.mxu0 %v13790_v24  ;;  %v14094_v24 = vor.u32 %v15469_v60, %v14093_v21  ;;  %v9379_v40 = vpop.f32.mrf.mxu3  ;;  %v13573_v60 = vld [vmem:[%s19840_s6 + $0x10] sm:$0xf] }
 0x549   : > { %9553 = vmatpush.bf16.msra.mxu1 %v13814_v39  ;;  %v13733_v39 = vld [vmem:[%s19840_s6 + $0x150] sm:$0xf]  ;;  %v13574_v55 = vor.u32 %v15339_v7, %v13573_v60 }
 0x54a   : > { %9581 = vmatpush.bf16.msra.mxu3 %v14094_v24  ;;  %9570 = vmatpush.bf16.msra.mxu2 %v13894_v52  ;;  %v14353_v24 = vld [vmem:[%s19840_s6 + $0x628] sm:$0xf]  ;;  %v14253_v52 = vld [vmem:[%s19840_s6 + $0x560] sm:$0xf] }
 0x54c   : > { %9490 = vmatpush.bf16.msrb.mxu0 %v13770_v8  ;;  %v15464_v8 = vld [vmem:[%s19840_s6 + $0x408] sm:$0xf0] }
 0x54d   : > { %9554 = vmatpush.bf16.msra.mxu1 %v13794_v22  ;;  %v14074_v56 = vor.u32 %v15464_v8, %v14073_v25  ;;  %9571 = vmatmul.bf16.vlgmr.msra.gmra.mxu2 %v15598_v13  ;;  %v15524_v25 = vld [vmem:[%s19840_s6 + $0x5e8] sm:$0xf0] }
 0x54e   : > { %v14314_v12 = vor.u32 %v15524_v25, %v14313_v9 }
 0x54f   : > { %9582 = vmatpush.bf16.msra.mxu3 %v14074_v56  ;;  %v15519_v56 = vld [vmem:[%s19840_s6 + $0x5c0] sm:$0xf0] }
 0x550   : > { %9491 = vmatpush.bf16.msrb.mxu0 %v13750_v4  ;;  %v9313_v4 = vadd.f32 %v9312_v20, %v9300_v17  ;;  %v15379_v20 = vld [vmem:[%s19840_s6 + $0x160] sm:$0xf0]  ;;  %v14293_v17 = vld [vmem:[%s19840_s6 + $0x5b0] sm:$0xf] }
 0x551   : > { %9555 = vmatpush.bf16.msra.mxu1 %v13774_v6  ;;  %v13734_v33 = vor.u32 %v15379_v20, %v13733_v39  ;;  %v14354_v6 = vor.u32 %v15534_v26, %v14353_v24  ;;  %v14294_v23 = vor.u32 %v15519_v56, %v14293_v17 }
 0x552   : > { %v9326_v38 = vadd.f32 %v19535_v0, %v9313_v4  ;;  %v15344_v0 = vld [vmem:[%s19840_s6 + $0x48] sm:$0xf0] }
 0x553   : > { %9583 = vmatpush.bf16.msra.mxu3 %v14054_v59  ;;  %v13594_v21 = vor.u32 %v15344_v0, %v13593_v37  ;;  %v15504_v4 = vld [vmem:[%s19840_s6 + $0x548] sm:$0xf0]  ;;  %v14214_v59 = vor.u32 %v15499_v49, %v14213_v30 }
 0x554   : > { %9492 = vmatpush.bf16.msrb.mxu0 %v13730_v19  ;;  %v9301_v19 = vpop.f32.mrf.mxu1  ;;  %v14234_v2 = vor.u32 %v15504_v4, %v14233_v28 }
 0x555   : > { %9556 = vmatpush.bf16.msra.mxu1 %v13754_v51 }
 0x556   : > { %9584 = vmatmul.bf16.vlgmr.msra.gmra.mxu3 %v15598_v13 }
 0x557   : > { %9493 = vmatmul.bf16.vlgmr.msrb.gmra.mxu0 %v15598_v13 }
 0x558   : > { %9537 = vmatpush.bf16.msra.mxu0 %v13714_v47  ;;  %v15349_v47 = vld [vmem:[%s19840_s6 + $0x70] sm:$0xf0] }
 0x559   : > { %9557 = vmatpush.bf16.msra.mxu1 %v13734_v33  ;;  %v13614_v15 = vor.u32 %v15349_v47, %v13613_v14 }
 0x55a   : > { %v9416_v43 = vpop.f32.mrf.mxu2 }
 0x55b   : > { %v9429_v32 = vpop.f32.mrf.mxu3 }
 0x55c   : > { %9538 = vmatpush.bf16.msra.mxu0 %v13694_v36  ;;  %9558 = vmatmul.bf16.vlgmr.msra.gmra.mxu1 %v15598_v13  ;;  %v9351_v3 = vpop.f32.mrf.mxu1  ;;  %v9430_v18 = vadd.f32 %v9429_v32, %v9416_v43 }
 0x55d   : > { %v9365_v16 = vadd.f32 %v9364_v5, %v9351_v3 }
 0x55f   : > { %v9378_v39 = vadd.f32 %v19630_v57, %v9365_v16 }
 0x560   : > { %9539 = vmatpush.bf16.msra.mxu0 %v13674_v45  ;;  %v15509_v45 = vld [vmem:[%s19840_s6 + $0x570] sm:$0xf0] }
 0x561   : > { %v14254_v54 = vor.u32 %v15509_v45, %v14253_v52 }
 0x562   : > { %v9418_v8 = vpop.f32.mrf.mxu2 }
 0x563   : > { %v9431_v22 = vpop.f32.mrf.mxu3 }
 0x564   : > { %9540 = vmatpush.bf16.msra.mxu0 %v13654_v1  ;;  %v9353_v36 = vpop.f32.mrf.mxu1 }
 0x568   : > { %9541 = vmatpush.bf16.msra.mxu0 %v13634_v31 }
 0x56c   : > { %9542 = vmatpush.bf16.msra.mxu0 %v13614_v15 }
 0x570   : > { %9543 = vmatpush.bf16.msra.mxu0 %v13594_v21 }
 0x574   : > { %9544 = vmatpush.bf16.msra.mxu0 %v13574_v55 }
 0x577   : > { %9545 = vmatmul.bf16.vlgmr.msra.gmra.mxu0 %v15598_v13  ;;  %v15514_v13 = vld [vmem:[%s19840_s6 + $0x598] sm:$0xf0] }
 0x578   : > { %9589 = vmatpush.bf16.msrb.mxu0 %v14354_v6  ;;  %v14274_v51 = vor.u32 %v15514_v13, %v14273_v50 }
 0x57b   : > { %v19766_v40 = vpop.f32.mrf.mxu3 }
 0x57c   : > { %9590 = vmatpush.bf16.msrb.mxu0 %v14334_v41 }
 0x580   : > { %9591 = vmatpush.bf16.msrb.mxu0 %v14314_v12 }
 0x583   : > { %v9483_v48 = vpop.f32.mrf.mxu3 }
 0x584   : > { %9592 = vmatpush.bf16.msrb.mxu0 %v14294_v23 }
 0x588   : > { %9593 = vmatpush.bf16.msrb.mxu0 %v14274_v51 }
 0x58c   : > { %9594 = vmatpush.bf16.msrb.mxu0 %v14254_v54 }
 0x590   : > { %9595 = vmatpush.bf16.msrb.mxu0 %v14234_v2 }
 0x594   : > { %9596 = vmatpush.bf16.msrb.mxu0 %v14214_v59  ;;  %v9338_v20 = vpop.f32.mrf.mxu0  ;;  %v9403_v33 = vpop.f32.mrf.mxu1 }
 0x595   : > { %v9339_v1 = vadd.f32 %v9338_v20, %v9326_v38 }
 0x597   : > { %14369 = vmatmul.msk.bf16.vlgmr.msrb.gmra.mxu0 %vm19344_vm7, %v19360_v27  ;;  %v9602_v5 = vadd.f32 %v9339_v1, %v18721_v62 }
 0x599   : > { %v9607_v27 = vmax.f32 %v9602_v5, 0.0 }
 0x59b   : > { %v9468_v32 = vpop.f32.mrf.mxu2 }
 0x59c   : > { %v9533_v10 = vpop.f32.mrf.mxu3  ;;  %v9340_v11 = vpop.f32.mrf.mxu0 }
 0x59d   : > { %v9405_v19 = vpop.f32.mrf.mxu1 }
 0x5a3   : > { %v9470_v31 = vpop.f32.mrf.mxu2 }
 0x5a4   : > { %v9535_v14 = vpop.f32.mrf.mxu3  ;;  %v9390_v47 = vpop.f32.mrf.mxu0 }
 0x5a5   : > { %v9391_v57 = vadd.f32 %v9390_v47, %v9378_v39  ;;  %v9455_v15 = vpop.f32.mrf.mxu1 }
 0x5a7   : > { %v9404_v29 = vadd.f32 %v9403_v33, %v9391_v57 }
 0x5a9   : > { %v9603_v22 = vadd.f32 %v9404_v29, %v18836_v34 }
 0x5ab   : > { %v9608_v37 = vmax.f32 %v9603_v22, 0.0  ;;  %v9520_v7 = vpop.f32.mrf.mxu2 }
 0x5ac   : > { %v9392_v35 = vpop.f32.mrf.mxu0 }
 0x5ad   : > { %v9621_v0 = vrot.slane %v9608_v37, 6  ;;  %v9457_v3 = vpop.f32.mrf.mxu1 }
 0x5af   : > { %v9624_v38 = vsel %vm6527_vm0, %v9607_v27, %v9621_v0 }
 0x5b3   : > { %v9522_v6 = vpop.f32.mrf.mxu2 }
 0x5b4   : > { %v9442_v62 = vpop.f32.mrf.mxu0 }
 0x5b5   : > { %v9443_v16 = vadd.f32 %v9442_v62, %v9430_v18 }
 0x5b7   : > { %v9456_v60 = vadd.f32 %v9455_v15, %v9443_v16 }
 0x5b9   : > { %v9507_v21 = vpop.f32.mrf.mxu1  ;;  %v9469_v24 = vadd.f32 %v9468_v32, %v9456_v60 }
 0x5bb   : > { %v9604_v26 = vadd.f32 %v9469_v24, %v18936_v42 }
 0x5bc   : > { %v9444_v55 = vpop.f32.mrf.mxu0 }
 0x5bd   : > { %v9609_v25 = vmax.f32 %v9604_v26, 0.0 }
 0x5bf   : > { %v9622_v17 = vrot.slane %v9609_v25, 4 }
 0x5c1   : > { %v9509_v43 = vpop.f32.mrf.mxu1 }
 0x5d0   : > { %v9572_v23 = vpop.f32.mrf.mxu2 }
 0x5d4   : > { %v9494_v36 = vpop.f32.mrf.mxu0 }
 0x5d5   : > { %v9495_v34 = vadd.f32 %v9494_v36, %v19766_v40 }
 0x5d7   : > { %v9508_v61 = vadd.f32 %v9507_v21, %v9495_v34 }
 0x5d8   : > { %v9574_v13 = vpop.f32.mrf.mxu2 }
 0x5d9   : > { %v9521_v53 = vadd.f32 %v9520_v7, %v9508_v61  ;;  %v9559_v12 = vpop.f32.mrf.mxu1  ;;  %v9585_v48 = vpop.f32.mrf.mxu3 }
 0x5db   : > { %v9534_v41 = vadd.f32 %v9533_v10, %v9521_v53 }
 0x5dc   : > { %v9496_v9 = vpop.f32.mrf.mxu0 }
 0x5dd   : > { %v9605_v8 = vadd.f32 %v9534_v41, %v19119_v44 }
 0x5df   : > { %v9610_v18 = vmax.f32 %v9605_v8, 0.0 }
 0x5e1   : > { %v9623_v56 = vrot.slane %v9610_v18, 2  ;;  %v9561_v40 = vpop.f32.mrf.mxu1  ;;  %v9587_v51 = vpop.f32.mrf.mxu3 }
 0x5e3   : > { %v9625_v42 = vsel %vm6529_vm1, %v9622_v17, %v9623_v56 }
 0x5e4   : > { %v9626_v50 = vsel %vm6531_vm2, %v9624_v38, %v9625_v42 }
 0x5e5   : > { %9628 = vst [vmem:[%s19842_s8] sm:$0xff] %v9626_v50 }
 0x5f4   : > { %v9546_v52 = vpop.f32.mrf.mxu0 }
 0x5f5   : > { %v9560_v44 = vadd.f32 %v9559_v12, %v9546_v52 }
 0x5f7   : > { %v9573_v54 = vadd.f32 %v9572_v23, %v9560_v44 }
 0x5f9   : > { %v9586_v28 = vadd.f32 %v9585_v48, %v9573_v54 }
 0x5fc   : > { %v9548_v45 = vpop.f32.mrf.mxu0 }
 0x614   : > { %v9598_v4 = vpop.f32.mrf.mxu0 }
 0x615   : > { %v9599_v2 = vadd.f32 %v9598_v4, %v9586_v28 }
 0x617   : > { %v9606_v30 = vadd.f32 %v9599_v2, %v19282_v46 }
 0x619   : > { %v9611_v49 = vmax.f32 %v9606_v30, 0.0 }
 0x61b   : > { %v9616_v39 = vsel %vm7936_vm5, %v19317_v63, %v9611_v49 }
 0x61c   : > { %9629 = vst [vmem:[%s19842_s8 + $0x8] sm:$0x3] %v9616_v39  ;;  %v9600_v59 = vpop.f32.mrf.mxu0 }
 0x61d PF: > { %p15539_p7 = scmp.eq.s32.totalorder %s15652_s28, 1  ;;  %s15600_s29 = smov [#allocation3]  }
 0x61e   : > { %s9636_s30 = sshll.u32 %s15600_s29, 4  ;;  %s9638_s11 = sshll.u32 %s19841_s7, 4  ;;  %s9637_s30 = int_to_ptr.vmem [resolvable:$true] %s9636_s30  ;;  %s9639_s11 = int_to_ptr.hbm [resolvable:$true] %s9638_s11 }
 0x61f   : > { %15536 = dma.vmem_to_hbm [thread:$0]  (%p15539_p7), %s9637_s30, 128, %s9639_s11, [#allocation4]  }
 0x620   : > { %15590 = dma.done.wait (%p15539_p7), [#allocation4], 128  }
 0x621   : > { %15592 = vsyncadd (%p15539_p7), [#allocation4], 4294967168 }
 0x622 PF: > { %s20_s27 = sadd.s32 1, %s15595_s27  }
 0x623   : > { %p17_p8 = scmp.ge.s32.totalorder %s20_s27, 4  }
 0x625   :  { %19 = sbr.rel (!%p17_p8) target bundleno = 1 (0x1), region = 95 }
 0x62a   :  { %9658 = vsyncpa [#allocation4], 1 }
 0x62b   :  { %9660 = vsyncpa [#allocation4 + $0x1], 1 }

</bundles_post_ra>
